<compile_context>
chip_gen: v7x
topology: tpu7x:2x2x1
jax: 0.10.0
libtpu: 0.0.40
codegen_flags: <defaults>
</compile_context>

<pallas_src>
import numpy as np
import jax
import jax.numpy as jnp
from jax.experimental import pallas as pl
from jax.experimental.pallas import tpu as pltpu

H = W = 28                      # Linear(3136) = 4 * 28 * 28
PW = W + 2                      # padded width for the 3x3 'same' conv
P = (H + 2) * PW                # 900 padded spatial positions
OFF = 128                       # lane offset of padded position 0 inside activation rows
NW = 1024                       # lane-dense compute window (multiple of 128, covers all 900)
LBUF = OFF + NW + 128           # 1280 lanes per activation row (margin for +/-31 tap shifts)
CHANNELS = [(1, 4), (4, 8), (8, 16), (16, 4)]
RELU_BEFORE_BN = [True, True, True, False]   # blocks 1-3: Conv-ReLU-BN, block 4: Conv-BN-ReLU
BN_EPS = 1e-5
TAP_OFFSETS = [(kh - 1) * PW + (kw - 1) for kh in range(3) for kw in range(3)]
C_LAST = CHANNELS[-1][1]
FEAT = C_LAST * H * W           # 3136
HIDDEN = 512
OUT = 16


# ----------------------------- fused in-kernel building blocks -----------------------------
def _conv_block(x, wt, bias, scale, shift, relu_before_bn, mask):
    """Conv3x3 'same' + bias + eval-BN + ReLU, lane-dense.

    x: (cin, LBUF) f32, padded 30x30 grid on lanes at offset OFF (zeros elsewhere).
    Returns (cout, LBUF) f32 in the same layout (non-interior lanes zeroed = next pad).
    """
    # im2col: 9 statically shifted lane slices stacked on sublanes -> a single MXU matmul.
    cols = [x[:, OFF + d:OFF + d + NW] for d in TAP_OFFSETS]
    im2col = jnp.concatenate(cols, axis=0).astype(jnp.bfloat16)          # (9*cin, NW)
    y = jnp.dot(wt, im2col, preferred_element_type=jnp.float32)          # (cout, NW) f32
    if relu_before_bn:                    # Conv -> ReLU -> BN
        y = jnp.maximum(y + bias, 0.0) * scale + shift
    else:                                 # Conv -> BN -> ReLU  (conv bias folded into shift)
        y = jnp.maximum(y * scale + shift, 0.0)
    y = y * mask                          # zero the padding ring / tail lanes
    zpad = jnp.zeros((y.shape[0], OFF), jnp.float32)
    return jnp.concatenate([zpad, y, zpad], axis=1)                      # (cout, LBUF)


def siamese_kernel(x_ref, mask_ref,
                   c1w, c1b, c1s, c1t,
                   c2w, c2b, c2s, c2t,
                   c3w, c3b, c3s, c3t,
                   c4w, c4s, c4t,
                   w1_ref, b1_ref, w2_ref, b2_ref,
                   o_ref):
    mask = mask_ref[...]                                   # (1, NW) f32
    a = x_ref[0]                                           # (1, LBUF) f32
    a = _conv_block(a, c1w[...], c1b[...], c1s[...], c1t[...], True, mask)
    a = _conv_block(a, c2w[...], c2b[...], c2s[...], c2t[...], True, mask)
    a = _conv_block(a, c3w[...], c3b[...], c3s[...], c3t[...], True, mask)
    a = _conv_block(a, c4w[...], None, c4s[...], c4t[...], False, mask)

    # Flatten (NCHW) + Linear(3136 -> 512): w1 rows were pre-permuted into the padded-lane
    # layout (non-interior rows zero), so per-channel GEMVs reproduce nn.Flatten exactly.
    h = b1_ref[...]                                        # (1, HIDDEN) f32 accumulator
    for c in range(C_LAST):
        row = a[c:c + 1, OFF:OFF + NW].astype(jnp.bfloat16)              # (1, NW)
        h = h + jnp.dot(row, w1_ref[c], preferred_element_type=jnp.float32)

    # TODO(synk): Dropout(0.5) layers are eval-mode identities (no RNG mask applied).
    out = jnp.dot(h.astype(jnp.bfloat16), w2_ref[...],
                  preferred_element_type=jnp.float32) + b2_ref[...]      # (1, OUT)
    o_ref[0] = out


# -------------------------------------- wrapper ---------------------------------------
def _bcast_spec(shape):
    rank = len(shape)
    return pl.BlockSpec(shape, lambda *_: (0,) * rank)


def siamese_forward(x_nchw, kp):
    B = x_nchw.shape[0]
    # Build the padded-lane input buffer: (B, 1, LBUF) with the zero-padded 30x30 image
    # flattened onto lanes at offset OFF.  (Single tiny pad/reshape; no im2col in HBM.)
    xp = jnp.pad(x_nchw[:, 0].astype(jnp.float32), ((0, 0), (1, 1), (1, 1)))   # (B, 30, 30)
    xbuf = jnp.pad(xp.reshape(B, 1, P), ((0, 0), (0, 0), (OFF, LBUF - OFF - P)))

    flat_conv = kp["conv_flat"]
    in_specs = ([pl.BlockSpec((1, 1, LBUF), lambda b: (b, 0, 0)),
                 _bcast_spec(kp["mask"].shape)]
                + [_bcast_spec(a.shape) for a in flat_conv]
                + [_bcast_spec(kp["w1"].shape), _bcast_spec(kp["b1"].shape),
                   _bcast_spec(kp["w2"].shape), _bcast_spec(kp["b2"].shape)])

    out = pl.pallas_call(
        siamese_kernel,
        out_shape=jax.ShapeDtypeStruct((B, 1, OUT), jnp.float32),
        grid=(B,),
        in_specs=in_specs,
        out_specs=pl.BlockSpec((1, 1, OUT), lambda b: (b, 0, 0)),
        compiler_params=pltpu.CompilerParams(dimension_semantics=("parallel",)),
    )(xbuf, kp["mask"], *flat_conv, kp["w1"], kp["b1"], kp["w2"], kp["b2"])
    return out.reshape(B, OUT)


# ------------------------------------ parameters --------------------------------------
def init_params(key):
    params = {"convs": []}
    for i, (cin, cout) in enumerate(CHANNELS):
        key, kw_, kb, kg, kbe, km, kv = jax.random.split(key, 7)
        w = jax.random.normal(kw_, (3, 3, cin, cout), jnp.float32) / np.sqrt(9 * cin)
        b = 0.1 * jax.random.normal(kb, (cout,), jnp.float32)
        gamma = 1.0 + 0.1 * jax.random.normal(kg, (cout,), jnp.float32)
        beta = 0.1 * jax.random.normal(kbe, (cout,), jnp.float32)
        rmean = 0.1 * jax.random.normal(km, (cout,), jnp.float32)
        rvar = 0.5 + jax.random.uniform(kv, (cout,), jnp.float32)
        scale = gamma / jnp.sqrt(rvar + BN_EPS)            # eval-mode BN folded to scale/shift
        shift = beta - rmean * scale
        params["convs"].append(dict(w=w, b=b, scale=scale, shift=shift))
    key, k1, k2, k3, k4 = jax.random.split(key, 5)
    params["w1"] = jax.random.normal(k1, (FEAT, HIDDEN), jnp.float32) / np.sqrt(FEAT)
    params["b1"] = 0.1 * jax.random.normal(k2, (HIDDEN,), jnp.float32)
    params["w2"] = jax.random.normal(k3, (HIDDEN, OUT), jnp.float32) / np.sqrt(HIDDEN)
    params["b2"] = 0.1 * jax.random.normal(k4, (OUT,), jnp.float32)
    return params


def prepare_kernel_params(params):
    conv_flat = []
    for i, (cin, cout) in enumerate(CHANNELS):
        layer = params["convs"][i]
        # HWIO (3,3,cin,cout) -> (9*cin, cout) -> (cout, 9*cin); tap-major / cin-minor
        # to match the in-kernel im2col row order.
        wt = jnp.asarray(layer["w"]).reshape(9 * cin, cout).T.astype(jnp.bfloat16)
        scale = layer["scale"].reshape(cout, 1).astype(jnp.float32)
        if RELU_BEFORE_BN[i]:
            conv_flat += [wt, layer["b"].reshape(cout, 1).astype(jnp.float32),
                          scale, layer["shift"].reshape(cout, 1).astype(jnp.float32)]
        else:       # Conv -> BN -> ReLU: fold conv bias into the BN shift.
            shift = (layer["b"] * layer["scale"] + layer["shift"]).reshape(cout, 1)
            conv_flat += [wt, scale, shift.astype(jnp.float32)]

    # Linear1 weight: permute the NCHW-flatten rows into the padded-lane layout and
    # zero the non-interior rows -> kernel does plain (1,1024)x(1024,512) GEMVs.
    w1 = np.asarray(params["w1"], np.float32).reshape(C_LAST, H * W, HIDDEN)
    r_int = ((np.arange(H) + 1)[:, None] * PW + (np.arange(W) + 1)[None, :]).reshape(-1)
    w1p = np.zeros((C_LAST, NW, HIDDEN), np.float32)
    w1p[:, r_int, :] = w1

    mask = np.zeros((1, NW), np.float32)
    r = np.arange(NW)
    pi, pj = r // PW, r % PW
    mask[0, (pi >= 1) & (pi <= H) & (pj >= 1) & (pj <= W) & (r < P)] = 1.0

    return dict(conv_flat=conv_flat,
                w1=jnp.asarray(w1p).astype(jnp.bfloat16),
                b1=params["b1"].reshape(1, HIDDEN).astype(jnp.float32),
                w2=params["w2"].astype(jnp.bfloat16),
                b2=params["b2"].reshape(1, OUT).astype(jnp.float32),
                mask=jnp.asarray(mask))


# ------------------------------------- reference --------------------------------------
def reference_forward(x_nchw, params):
    """Pure-JAX reference with the same precision policy (bf16 operands, f32 accum)."""
    x = x_nchw.astype(jnp.float32)
    for i, layer in enumerate(params["convs"]):
        y = jax.lax.conv_general_dilated(
            x.astype(jnp.bfloat16), layer["w"].astype(jnp.bfloat16),
            window_strides=(1, 1), padding="SAME",
            dimension_numbers=("NCHW", "HWIO", "NCHW"),
            preferred_element_type=jnp.float32)
        y = y + layer["b"].reshape(1, -1, 1, 1)
        s = layer["scale"].reshape(1, -1, 1, 1)
        t = layer["shift"].reshape(1, -1, 1, 1)
        if RELU_BEFORE_BN[i]:
            y = jnp.maximum(y, 0.0) * s + t
        else:
            y = jnp.maximum(y * s + t, 0.0)
        x = y
    x = x.reshape(x.shape[0], -1)                                  # NCHW flatten
    h = jnp.dot(x.astype(jnp.bfloat16), params["w1"].astype(jnp.bfloat16),
                preferred_element_type=jnp.float32) + params["b1"]
    out = jnp.dot(h.astype(jnp.bfloat16), params["w2"].astype(jnp.bfloat16),
                  preferred_element_type=jnp.float32) + params["b2"]
    return out


if __name__ == "__main__":
    key = jax.random.PRNGKey(0)
    kparam_key, kx = jax.random.split(key)
    params = init_params(kparam_key)
    kparams = prepare_kernel_params(params)
    x = jax.random.normal(kx, (2, 1, H, W), jnp.float32)           # PyTorch-style NCHW input

    fwd = jax.jit(siamese_forward)
    out = jax.block_until_ready(fwd(x, kparams))
    ref = jax.block_until_ready(reference_forward(x, params))

    assert out.shape == (2, OUT) and out.dtype == jnp.float32
    np.testing.assert_allclose(np.asarray(out), np.asarray(ref), rtol=1e-2, atol=1e-2)
    print("KERNEL_OK")
</pallas_src>

<mosaic_0001>
module attributes {stable_mosaic.version = 11 : i64} {
  func.func @siamese_kernel(%arg0: i32, %arg1: memref<1x1x1280xf32, #tpu.memory_space<vmem>>, %arg2: memref<1x1024xf32, #tpu.memory_space<vmem>>, %arg3: memref<4x9xbf16, #tpu.memory_space<vmem>>, %arg4: memref<4x1xf32, #tpu.memory_space<vmem>>, %arg5: memref<4x1xf32, #tpu.memory_space<vmem>>, %arg6: memref<4x1xf32, #tpu.memory_space<vmem>>, %arg7: memref<8x36xbf16, #tpu.memory_space<vmem>>, %arg8: memref<8x1xf32, #tpu.memory_space<vmem>>, %arg9: memref<8x1xf32, #tpu.memory_space<vmem>>, %arg10: memref<8x1xf32, #tpu.memory_space<vmem>>, %arg11: memref<16x72xbf16, #tpu.memory_space<vmem>>, %arg12: memref<16x1xf32, #tpu.memory_space<vmem>>, %arg13: memref<16x1xf32, #tpu.memory_space<vmem>>, %arg14: memref<16x1xf32, #tpu.memory_space<vmem>>, %arg15: memref<4x144xbf16, #tpu.memory_space<vmem>>, %arg16: memref<4x1xf32, #tpu.memory_space<vmem>>, %arg17: memref<4x1xf32, #tpu.memory_space<vmem>>, %arg18: memref<4x1024x512xbf16, #tpu.memory_space<vmem>>, %arg19: memref<1x512xf32, #tpu.memory_space<vmem>>, %arg20: memref<512x16xbf16, #tpu.memory_space<vmem>>, %arg21: memref<1x16xf32, #tpu.memory_space<vmem>>, %arg22: memref<1x1x16xf32, #tpu.memory_space<vmem>>) attributes {dimension_semantics = [#tpu.dimension_semantics<parallel>], iteration_bounds = array<i64: 2>, scalar_prefetch = 0 : i64, scratch_operands = 0 : i64, tpu.core_type = #tpu.core_type<tc>, window_params = [{transform_indices = @transform_0, window_bounds = array<i64: 1, 1, 1280>}, {pipeline_mode = #tpu.pipeline_mode<synchronous>, transform_indices = @transform_1, window_bounds = array<i64: 1, 1024>}, {pipeline_mode = #tpu.pipeline_mode<synchronous>, transform_indices = @transform_2, window_bounds = array<i64: 4, 9>}, {pipeline_mode = #tpu.pipeline_mode<synchronous>, transform_indices = @transform_3, window_bounds = array<i64: 4, 1>}, {pipeline_mode = #tpu.pipeline_mode<synchronous>, transform_indices = @transform_4, window_bounds = array<i64: 4, 1>}, {pipeline_mode = #tpu.pipeline_mode<synchronous>, transform_indices = @transform_5, window_bounds = array<i64: 4, 1>}, {pipeline_mode = #tpu.pipeline_mode<synchronous>, transform_indices = @transform_6, window_bounds = array<i64: 8, 36>}, {pipeline_mode = #tpu.pipeline_mode<synchronous>, transform_indices = @transform_7, window_bounds = array<i64: 8, 1>}, {pipeline_mode = #tpu.pipeline_mode<synchronous>, transform_indices = @transform_8, window_bounds = array<i64: 8, 1>}, {pipeline_mode = #tpu.pipeline_mode<synchronous>, transform_indices = @transform_9, window_bounds = array<i64: 8, 1>}, {pipeline_mode = #tpu.pipeline_mode<synchronous>, transform_indices = @transform_10, window_bounds = array<i64: 16, 72>}, {pipeline_mode = #tpu.pipeline_mode<synchronous>, transform_indices = @transform_11, window_bounds = array<i64: 16, 1>}, {pipeline_mode = #tpu.pipeline_mode<synchronous>, transform_indices = @transform_12, window_bounds = array<i64: 16, 1>}, {pipeline_mode = #tpu.pipeline_mode<synchronous>, transform_indices = @transform_13, window_bounds = array<i64: 16, 1>}, {pipeline_mode = #tpu.pipeline_mode<synchronous>, transform_indices = @transform_14, window_bounds = array<i64: 4, 144>}, {pipeline_mode = #tpu.pipeline_mode<synchronous>, transform_indices = @transform_15, window_bounds = array<i64: 4, 1>}, {pipeline_mode = #tpu.pipeline_mode<synchronous>, transform_indices = @transform_16, window_bounds = array<i64: 4, 1>}, {pipeline_mode = #tpu.pipeline_mode<synchronous>, transform_indices = @transform_17, window_bounds = array<i64: 4, 1024, 512>}, {pipeline_mode = #tpu.pipeline_mode<synchronous>, transform_indices = @transform_18, window_bounds = array<i64: 1, 512>}, {pipeline_mode = #tpu.pipeline_mode<synchronous>, transform_indices = @transform_19, window_bounds = array<i64: 512, 16>}, {pipeline_mode = #tpu.pipeline_mode<synchronous>, transform_indices = @transform_20, window_bounds = array<i64: 1, 16>}, {transform_indices = @transform_21, window_bounds = array<i64: 1, 1, 16>}]} {
    %c0 = arith.constant 0 : index
    %c0_0 = arith.constant 0 : index
    %0 = vector.load %arg2[%c0, %c0_0] : memref<1x1024xf32, #tpu.memory_space<vmem>>, vector<1x1024xf32>
    %c0_1 = arith.constant 0 : index
    %c0_2 = arith.constant 0 : index
    %c0_3 = arith.constant 0 : index
    %1 = vector.load %arg1[%c0_1, %c0_2, %c0_3] : memref<1x1x1280xf32, #tpu.memory_space<vmem>>, vector<1x1x1280xf32>
    %2 = vector.shape_cast %1 : vector<1x1x1280xf32> to vector<1x1280xf32>
    %c0_4 = arith.constant 0 : index
    %c0_5 = arith.constant 0 : index
    %3 = vector.load %arg3[%c0_4, %c0_5] : memref<4x9xbf16, #tpu.memory_space<vmem>>, vector<4x9xbf16>
    %c0_6 = arith.constant 0 : index
    %c0_7 = arith.constant 0 : index
    %4 = vector.load %arg4[%c0_6, %c0_7] : memref<4x1xf32, #tpu.memory_space<vmem>>, vector<4x1xf32>
    %c0_8 = arith.constant 0 : index
    %c0_9 = arith.constant 0 : index
    %5 = vector.load %arg5[%c0_8, %c0_9] : memref<4x1xf32, #tpu.memory_space<vmem>>, vector<4x1xf32>
    %c0_10 = arith.constant 0 : index
    %c0_11 = arith.constant 0 : index
    %6 = vector.load %arg6[%c0_10, %c0_11] : memref<4x1xf32, #tpu.memory_space<vmem>>, vector<4x1xf32>
    %7 = vector.extract_strided_slice %2 {offsets = [0, 97], sizes = [1, 1024], strides = [1, 1]} : vector<1x1280xf32> to vector<1x1024xf32>
    %8 = vector.extract_strided_slice %2 {offsets = [0, 98], sizes = [1, 1024], strides = [1, 1]} : vector<1x1280xf32> to vector<1x1024xf32>
    %9 = vector.extract_strided_slice %2 {offsets = [0, 99], sizes = [1, 1024], strides = [1, 1]} : vector<1x1280xf32> to vector<1x1024xf32>
    %10 = vector.extract_strided_slice %2 {offsets = [0, 127], sizes = [1, 1024], strides = [1, 1]} : vector<1x1280xf32> to vector<1x1024xf32>
    %11 = vector.extract_strided_slice %2 {offsets = [0, 128], sizes = [1, 1024], strides = [1, 1]} : vector<1x1280xf32> to vector<1x1024xf32>
    %12 = vector.extract_strided_slice %2 {offsets = [0, 129], sizes = [1, 1024], strides = [1, 1]} : vector<1x1280xf32> to vector<1x1024xf32>
    %13 = vector.extract_strided_slice %2 {offsets = [0, 157], sizes = [1, 1024], strides = [1, 1]} : vector<1x1280xf32> to vector<1x1024xf32>
    %14 = vector.extract_strided_slice %2 {offsets = [0, 158], sizes = [1, 1024], strides = [1, 1]} : vector<1x1280xf32> to vector<1x1024xf32>
    %15 = vector.extract_strided_slice %2 {offsets = [0, 159], sizes = [1, 1024], strides = [1, 1]} : vector<1x1280xf32> to vector<1x1024xf32>
    %16 = tpu.concatenate %7, %8, %9, %10, %11, %12, %13, %14, %15 in 0 : vector<1x1024xf32>, vector<1x1024xf32>, vector<1x1024xf32>, vector<1x1024xf32>, vector<1x1024xf32>, vector<1x1024xf32>, vector<1x1024xf32>, vector<1x1024xf32>, vector<1x1024xf32> -> vector<9x1024xf32>
    %17 = arith.truncf %16 : vector<9x1024xf32> to vector<9x1024xbf16>
    %cst = arith.constant dense<0.000000e+00> : vector<4x1024xf32>
    %18 = tpu.matmul %3, %17, %cst {dimension_numbers = #tpu.dot_dimension_numbers<[1], [0], [0], [1], [0, 0, 1, 1], [], []>} : vector<4x9xbf16>, vector<9x1024xbf16>, vector<4x1024xf32> -> vector<4x1024xf32>
    %19 = vector.broadcast %4 : vector<4x1xf32> to vector<4x1024xf32>
    %20 = arith.addf %18, %19 : vector<4x1024xf32>
    %cst_12 = arith.constant 0.000000e+00 : f32
    %21 = vector.broadcast %cst_12 : f32 to vector<4x1024xf32>
    %22 = arith.maximumf %20, %21 : vector<4x1024xf32>
    %23 = vector.broadcast %5 : vector<4x1xf32> to vector<4x1024xf32>
    %24 = arith.mulf %22, %23 : vector<4x1024xf32>
    %25 = vector.broadcast %6 : vector<4x1xf32> to vector<4x1024xf32>
    %26 = arith.addf %24, %25 : vector<4x1024xf32>
    %27 = vector.broadcast %0 : vector<1x1024xf32> to vector<4x1024xf32>
    %28 = arith.mulf %26, %27 : vector<4x1024xf32>
    %cst_13 = arith.constant 0.000000e+00 : f32
    %29 = vector.broadcast %cst_13 : f32 to vector<4x128xf32>
    %30 = tpu.concatenate %29, %28, %29 in 1 : vector<4x128xf32>, vector<4x1024xf32>, vector<4x128xf32> -> vector<4x1280xf32>
    %c0_14 = arith.constant 0 : index
    %c0_15 = arith.constant 0 : index
    %31 = vector.load %arg7[%c0_14, %c0_15] : memref<8x36xbf16, #tpu.memory_space<vmem>>, vector<8x36xbf16>
    %c0_16 = arith.constant 0 : index
    %c0_17 = arith.constant 0 : index
    %32 = vector.load %arg8[%c0_16, %c0_17] : memref<8x1xf32, #tpu.memory_space<vmem>>, vector<8x1xf32>
    %c0_18 = arith.constant 0 : index
    %c0_19 = arith.constant 0 : index
    %33 = vector.load %arg9[%c0_18, %c0_19] : memref<8x1xf32, #tpu.memory_space<vmem>>, vector<8x1xf32>
    %c0_20 = arith.constant 0 : index
    %c0_21 = arith.constant 0 : index
    %34 = vector.load %arg10[%c0_20, %c0_21] : memref<8x1xf32, #tpu.memory_space<vmem>>, vector<8x1xf32>
    %35 = vector.extract_strided_slice %30 {offsets = [0, 97], sizes = [4, 1024], strides = [1, 1]} : vector<4x1280xf32> to vector<4x1024xf32>
    %36 = vector.extract_strided_slice %30 {offsets = [0, 98], sizes = [4, 1024], strides = [1, 1]} : vector<4x1280xf32> to vector<4x1024xf32>
    %37 = vector.extract_strided_slice %30 {offsets = [0, 99], sizes = [4, 1024], strides = [1, 1]} : vector<4x1280xf32> to vector<4x1024xf32>
    %38 = vector.extract_strided_slice %30 {offsets = [0, 127], sizes = [4, 1024], strides = [1, 1]} : vector<4x1280xf32> to vector<4x1024xf32>
    %39 = vector.extract_strided_slice %30 {offsets = [0, 128], sizes = [4, 1024], strides = [1, 1]} : vector<4x1280xf32> to vector<4x1024xf32>
    %40 = vector.extract_strided_slice %30 {offsets = [0, 129], sizes = [4, 1024], strides = [1, 1]} : vector<4x1280xf32> to vector<4x1024xf32>
    %41 = vector.extract_strided_slice %30 {offsets = [0, 157], sizes = [4, 1024], strides = [1, 1]} : vector<4x1280xf32> to vector<4x1024xf32>
    %42 = vector.extract_strided_slice %30 {offsets = [0, 158], sizes = [4, 1024], strides = [1, 1]} : vector<4x1280xf32> to vector<4x1024xf32>
    %43 = vector.extract_strided_slice %30 {offsets = [0, 159], sizes = [4, 1024], strides = [1, 1]} : vector<4x1280xf32> to vector<4x1024xf32>
    %44 = tpu.concatenate %35, %36, %37, %38, %39, %40, %41, %42, %43 in 0 : vector<4x1024xf32>, vector<4x1024xf32>, vector<4x1024xf32>, vector<4x1024xf32>, vector<4x1024xf32>, vector<4x1024xf32>, vector<4x1024xf32>, vector<4x1024xf32>, vector<4x1024xf32> -> vector<36x1024xf32>
    %45 = arith.truncf %44 : vector<36x1024xf32> to vector<36x1024xbf16>
    %cst_22 = arith.constant dense<0.000000e+00> : vector<8x1024xf32>
    %46 = tpu.matmul %31, %45, %cst_22 {dimension_numbers = #tpu.dot_dimension_numbers<[1], [0], [0], [1], [0, 0, 1, 1], [], []>} : vector<8x36xbf16>, vector<36x1024xbf16>, vector<8x1024xf32> -> vector<8x1024xf32>
    %47 = vector.broadcast %32 : vector<8x1xf32> to vector<8x1024xf32>
    %48 = arith.addf %46, %47 : vector<8x1024xf32>
    %cst_23 = arith.constant 0.000000e+00 : f32
    %49 = vector.broadcast %cst_23 : f32 to vector<8x1024xf32>
    %50 = arith.maximumf %48, %49 : vector<8x1024xf32>
    %51 = vector.broadcast %33 : vector<8x1xf32> to vector<8x1024xf32>
    %52 = arith.mulf %50, %51 : vector<8x1024xf32>
    %53 = vector.broadcast %34 : vector<8x1xf32> to vector<8x1024xf32>
    %54 = arith.addf %52, %53 : vector<8x1024xf32>
    %55 = vector.broadcast %0 : vector<1x1024xf32> to vector<8x1024xf32>
    %56 = arith.mulf %54, %55 : vector<8x1024xf32>
    %cst_24 = arith.constant 0.000000e+00 : f32
    %57 = vector.broadcast %cst_24 : f32 to vector<8x128xf32>
    %58 = tpu.concatenate %57, %56, %57 in 1 : vector<8x128xf32>, vector<8x1024xf32>, vector<8x128xf32> -> vector<8x1280xf32>
    %c0_25 = arith.constant 0 : index
    %c0_26 = arith.constant 0 : index
    %59 = vector.load %arg11[%c0_25, %c0_26] : memref<16x72xbf16, #tpu.memory_space<vmem>>, vector<16x72xbf16>
    %c0_27 = arith.constant 0 : index
    %c0_28 = arith.constant 0 : index
    %60 = vector.load %arg12[%c0_27, %c0_28] : memref<16x1xf32, #tpu.memory_space<vmem>>, vector<16x1xf32>
    %c0_29 = arith.constant 0 : index
    %c0_30 = arith.constant 0 : index
    %61 = vector.load %arg13[%c0_29, %c0_30] : memref<16x1xf32, #tpu.memory_space<vmem>>, vector<16x1xf32>
    %c0_31 = arith.constant 0 : index
    %c0_32 = arith.constant 0 : index
    %62 = vector.load %arg14[%c0_31, %c0_32] : memref<16x1xf32, #tpu.memory_space<vmem>>, vector<16x1xf32>
    %63 = vector.extract_strided_slice %58 {offsets = [0, 97], sizes = [8, 1024], strides = [1, 1]} : vector<8x1280xf32> to vector<8x1024xf32>
    %64 = vector.extract_strided_slice %58 {offsets = [0, 98], sizes = [8, 1024], strides = [1, 1]} : vector<8x1280xf32> to vector<8x1024xf32>
    %65 = vector.extract_strided_slice %58 {offsets = [0, 99], sizes = [8, 1024], strides = [1, 1]} : vector<8x1280xf32> to vector<8x1024xf32>
    %66 = vector.extract_strided_slice %58 {offsets = [0, 127], sizes = [8, 1024], strides = [1, 1]} : vector<8x1280xf32> to vector<8x1024xf32>
    %67 = vector.extract_strided_slice %58 {offsets = [0, 128], sizes = [8, 1024], strides = [1, 1]} : vector<8x1280xf32> to vector<8x1024xf32>
    %68 = vector.extract_strided_slice %58 {offsets = [0, 129], sizes = [8, 1024], strides = [1, 1]} : vector<8x1280xf32> to vector<8x1024xf32>
    %69 = vector.extract_strided_slice %58 {offsets = [0, 157], sizes = [8, 1024], strides = [1, 1]} : vector<8x1280xf32> to vector<8x1024xf32>
    %70 = vector.extract_strided_slice %58 {offsets = [0, 158], sizes = [8, 1024], strides = [1, 1]} : vector<8x1280xf32> to vector<8x1024xf32>
    %71 = vector.extract_strided_slice %58 {offsets = [0, 159], sizes = [8, 1024], strides = [1, 1]} : vector<8x1280xf32> to vector<8x1024xf32>
    %72 = tpu.concatenate %63, %64, %65, %66, %67, %68, %69, %70, %71 in 0 : vector<8x1024xf32>, vector<8x1024xf32>, vector<8x1024xf32>, vector<8x1024xf32>, vector<8x1024xf32>, vector<8x1024xf32>, vector<8x1024xf32>, vector<8x1024xf32>, vector<8x1024xf32> -> vector<72x1024xf32>
    %73 = arith.truncf %72 : vector<72x1024xf32> to vector<72x1024xbf16>
    %cst_33 = arith.constant dense<0.000000e+00> : vector<16x1024xf32>
    %74 = tpu.matmul %59, %73, %cst_33 {dimension_numbers = #tpu.dot_dimension_numbers<[1], [0], [0], [1], [0, 0, 1, 1], [], []>} : vector<16x72xbf16>, vector<72x1024xbf16>, vector<16x1024xf32> -> vector<16x1024xf32>
    %75 = vector.broadcast %60 : vector<16x1xf32> to vector<16x1024xf32>
    %76 = arith.addf %74, %75 : vector<16x1024xf32>
    %cst_34 = arith.constant 0.000000e+00 : f32
    %77 = vector.broadcast %cst_34 : f32 to vector<16x1024xf32>
    %78 = arith.maximumf %76, %77 : vector<16x1024xf32>
    %79 = vector.broadcast %61 : vector<16x1xf32> to vector<16x1024xf32>
    %80 = arith.mulf %78, %79 : vector<16x1024xf32>
    %81 = vector.broadcast %62 : vector<16x1xf32> to vector<16x1024xf32>
    %82 = arith.addf %80, %81 : vector<16x1024xf32>
    %83 = vector.broadcast %0 : vector<1x1024xf32> to vector<16x1024xf32>
    %84 = arith.mulf %82, %83 : vector<16x1024xf32>
    %cst_35 = arith.constant 0.000000e+00 : f32
    %85 = vector.broadcast %cst_35 : f32 to vector<16x128xf32>
    %86 = tpu.concatenate %85, %84, %85 in 1 : vector<16x128xf32>, vector<16x1024xf32>, vector<16x128xf32> -> vector<16x1280xf32>
    %c0_36 = arith.constant 0 : index
    %c0_37 = arith.constant 0 : index
    %87 = vector.load %arg15[%c0_36, %c0_37] : memref<4x144xbf16, #tpu.memory_space<vmem>>, vector<4x144xbf16>
    %c0_38 = arith.constant 0 : index
    %c0_39 = arith.constant 0 : index
    %88 = vector.load %arg16[%c0_38, %c0_39] : memref<4x1xf32, #tpu.memory_space<vmem>>, vector<4x1xf32>
    %c0_40 = arith.constant 0 : index
    %c0_41 = arith.constant 0 : index
    %89 = vector.load %arg17[%c0_40, %c0_41] : memref<4x1xf32, #tpu.memory_space<vmem>>, vector<4x1xf32>
    %90 = vector.extract_strided_slice %86 {offsets = [0, 97], sizes = [16, 1024], strides = [1, 1]} : vector<16x1280xf32> to vector<16x1024xf32>
    %91 = vector.extract_strided_slice %86 {offsets = [0, 98], sizes = [16, 1024], strides = [1, 1]} : vector<16x1280xf32> to vector<16x1024xf32>
    %92 = vector.extract_strided_slice %86 {offsets = [0, 99], sizes = [16, 1024], strides = [1, 1]} : vector<16x1280xf32> to vector<16x1024xf32>
    %93 = vector.extract_strided_slice %86 {offsets = [0, 127], sizes = [16, 1024], strides = [1, 1]} : vector<16x1280xf32> to vector<16x1024xf32>
    %94 = vector.extract_strided_slice %86 {offsets = [0, 128], sizes = [16, 1024], strides = [1, 1]} : vector<16x1280xf32> to vector<16x1024xf32>
    %95 = vector.extract_strided_slice %86 {offsets = [0, 129], sizes = [16, 1024], strides = [1, 1]} : vector<16x1280xf32> to vector<16x1024xf32>
    %96 = vector.extract_strided_slice %86 {offsets = [0, 157], sizes = [16, 1024], strides = [1, 1]} : vector<16x1280xf32> to vector<16x1024xf32>
    %97 = vector.extract_strided_slice %86 {offsets = [0, 158], sizes = [16, 1024], strides = [1, 1]} : vector<16x1280xf32> to vector<16x1024xf32>
    %98 = vector.extract_strided_slice %86 {offsets = [0, 159], sizes = [16, 1024], strides = [1, 1]} : vector<16x1280xf32> to vector<16x1024xf32>
    %99 = tpu.concatenate %90, %91, %92, %93, %94, %95, %96, %97, %98 in 0 : vector<16x1024xf32>, vector<16x1024xf32>, vector<16x1024xf32>, vector<16x1024xf32>, vector<16x1024xf32>, vector<16x1024xf32>, vector<16x1024xf32>, vector<16x1024xf32>, vector<16x1024xf32> -> vector<144x1024xf32>
    %100 = arith.truncf %99 : vector<144x1024xf32> to vector<144x1024xbf16>
    %cst_42 = arith.constant dense<0.000000e+00> : vector<4x1024xf32>
    %101 = tpu.matmul %87, %100, %cst_42 {dimension_numbers = #tpu.dot_dimension_numbers<[1], [0], [0], [1], [0, 0, 1, 1], [], []>} : vector<4x144xbf16>, vector<144x1024xbf16>, vector<4x1024xf32> -> vector<4x1024xf32>
    %102 = vector.broadcast %88 : vector<4x1xf32> to vector<4x1024xf32>
    %103 = arith.mulf %101, %102 : vector<4x1024xf32>
    %104 = vector.broadcast %89 : vector<4x1xf32> to vector<4x1024xf32>
    %105 = arith.addf %103, %104 : vector<4x1024xf32>
    %cst_43 = arith.constant 0.000000e+00 : f32
    %106 = vector.broadcast %cst_43 : f32 to vector<4x1024xf32>
    %107 = arith.maximumf %105, %106 : vector<4x1024xf32>
    %108 = vector.broadcast %0 : vector<1x1024xf32> to vector<4x1024xf32>
    %109 = arith.mulf %107, %108 : vector<4x1024xf32>
    %cst_44 = arith.constant 0.000000e+00 : f32
    %110 = vector.broadcast %cst_44 : f32 to vector<4x128xf32>
    %111 = tpu.concatenate %110, %109, %110 in 1 : vector<4x128xf32>, vector<4x1024xf32>, vector<4x128xf32> -> vector<4x1280xf32>
    %c0_45 = arith.constant 0 : index
    %c0_46 = arith.constant 0 : index
    %112 = vector.load %arg19[%c0_45, %c0_46] : memref<1x512xf32, #tpu.memory_space<vmem>>, vector<1x512xf32>
    %113 = vector.extract_strided_slice %111 {offsets = [0, 128], sizes = [1, 1024], strides = [1, 1]} : vector<4x1280xf32> to vector<1x1024xf32>
    %114 = arith.truncf %113 : vector<1x1024xf32> to vector<1x1024xbf16>
    %c0_47 = arith.constant 0 : index
    %c0_48 = arith.constant 0 : index
    %c0_49 = arith.constant 0 : index
    %115 = vector.load %arg18[%c0_47, %c0_48, %c0_49] : memref<4x1024x512xbf16, #tpu.memory_space<vmem>>, vector<1x1024x512xbf16>
    %116 = vector.shape_cast %115 : vector<1x1024x512xbf16> to vector<1024x512xbf16>
    %cst_50 = arith.constant dense<0.000000e+00> : vector<1x512xf32>
    %117 = tpu.matmul %114, %116, %cst_50 {dimension_numbers = #tpu.dot_dimension_numbers<[1], [0], [0], [1], [0, 0, 1, 1], [], []>} : vector<1x1024xbf16>, vector<1024x512xbf16>, vector<1x512xf32> -> vector<1x512xf32>
    %118 = arith.addf %112, %117 : vector<1x512xf32>
    %119 = vector.extract_strided_slice %111 {offsets = [1, 128], sizes = [1, 1024], strides = [1, 1]} : vector<4x1280xf32> to vector<1x1024xf32>
    %120 = arith.truncf %119 : vector<1x1024xf32> to vector<1x1024xbf16>
    %c1 = arith.constant 1 : index
    %c0_51 = arith.constant 0 : index
    %c0_52 = arith.constant 0 : index
    %121 = vector.load %arg18[%c1, %c0_51, %c0_52] : memref<4x1024x512xbf16, #tpu.memory_space<vmem>>, vector<1x1024x512xbf16>
    %122 = vector.shape_cast %121 : vector<1x1024x512xbf16> to vector<1024x512xbf16>
    %cst_53 = arith.constant dense<0.000000e+00> : vector<1x512xf32>
    %123 = tpu.matmul %120, %122, %cst_53 {dimension_numbers = #tpu.dot_dimension_numbers<[1], [0], [0], [1], [0, 0, 1, 1], [], []>} : vector<1x1024xbf16>, vector<1024x512xbf16>, vector<1x512xf32> -> vector<1x512xf32>
    %124 = arith.addf %118, %123 : vector<1x512xf32>
    %125 = vector.extract_strided_slice %111 {offsets = [2, 128], sizes = [1, 1024], strides = [1, 1]} : vector<4x1280xf32> to vector<1x1024xf32>
    %126 = arith.truncf %125 : vector<1x1024xf32> to vector<1x1024xbf16>
    %c2 = arith.constant 2 : index
    %c0_54 = arith.constant 0 : index
    %c0_55 = arith.constant 0 : index
    %127 = vector.load %arg18[%c2, %c0_54, %c0_55] : memref<4x1024x512xbf16, #tpu.memory_space<vmem>>, vector<1x1024x512xbf16>
    %128 = vector.shape_cast %127 : vector<1x1024x512xbf16> to vector<1024x512xbf16>
    %cst_56 = arith.constant dense<0.000000e+00> : vector<1x512xf32>
    %129 = tpu.matmul %126, %128, %cst_56 {dimension_numbers = #tpu.dot_dimension_numbers<[1], [0], [0], [1], [0, 0, 1, 1], [], []>} : vector<1x1024xbf16>, vector<1024x512xbf16>, vector<1x512xf32> -> vector<1x512xf32>
    %130 = arith.addf %124, %129 : vector<1x512xf32>
    %131 = vector.extract_strided_slice %111 {offsets = [3, 128], sizes = [1, 1024], strides = [1, 1]} : vector<4x1280xf32> to vector<1x1024xf32>
    %132 = arith.truncf %131 : vector<1x1024xf32> to vector<1x1024xbf16>
    %c3 = arith.constant 3 : index
    %c0_57 = arith.constant 0 : index
    %c0_58 = arith.constant 0 : index
    %133 = vector.load %arg18[%c3, %c0_57, %c0_58] : memref<4x1024x512xbf16, #tpu.memory_space<vmem>>, vector<1x1024x512xbf16>
    %134 = vector.shape_cast %133 : vector<1x1024x512xbf16> to vector<1024x512xbf16>
    %cst_59 = arith.constant dense<0.000000e+00> : vector<1x512xf32>
    %135 = tpu.matmul %132, %134, %cst_59 {dimension_numbers = #tpu.dot_dimension_numbers<[1], [0], [0], [1], [0, 0, 1, 1], [], []>} : vector<1x1024xbf16>, vector<1024x512xbf16>, vector<1x512xf32> -> vector<1x512xf32>
    %136 = arith.addf %130, %135 : vector<1x512xf32>
    %137 = arith.truncf %136 : vector<1x512xf32> to vector<1x512xbf16>
    %c0_60 = arith.constant 0 : index
    %c0_61 = arith.constant 0 : index
    %138 = vector.load %arg20[%c0_60, %c0_61] : memref<512x16xbf16, #tpu.memory_space<vmem>>, vector<512x16xbf16>
    %cst_62 = arith.constant dense<0.000000e+00> : vector<1x16xf32>
    %139 = tpu.matmul %137, %138, %cst_62 {dimension_numbers = #tpu.dot_dimension_numbers<[1], [0], [0], [1], [0, 0, 1, 1], [], []>} : vector<1x512xbf16>, vector<512x16xbf16>, vector<1x16xf32> -> vector<1x16xf32>
    %c0_63 = arith.constant 0 : index
    %c0_64 = arith.constant 0 : index
    %140 = vector.load %arg21[%c0_63, %c0_64] : memref<1x16xf32, #tpu.memory_space<vmem>>, vector<1x16xf32>
    %141 = arith.addf %139, %140 : vector<1x16xf32>
    %c0_65 = arith.constant 0 : index
    %c0_66 = arith.constant 0 : index
    %c0_67 = arith.constant 0 : index
    %142 = vector.load %arg22[%c0_65, %c0_66, %c0_67] : memref<1x1x16xf32, #tpu.memory_space<vmem>>, vector<1x1x16xf32>
    %143 = vector.shape_cast %142 : vector<1x1x16xf32> to vector<1x16xf32>
    %144 = vector.shape_cast %141 : vector<1x16xf32> to vector<1x1x16xf32>
    tpu.vector_store %arg22[%c0_65, %c0_66, %c0_67], %144 {strides = array<i32>} : memref<1x1x16xf32, #tpu.memory_space<vmem>>, vector<1x1x16xf32>,
    return
  }
  func.func @transform_0(%arg0: i32) -> (i32, i32, i32) {
    %c0_i32 = arith.constant 0 : i32
    %c0_i32_0 = arith.constant 0 : i32
    %c0_i32_1 = arith.constant 0 : i32
    return %arg0, %c0_i32, %c0_i32_0 : i32, i32, i32
  }
  func.func @transform_1(%arg0: i32) -> (i32, i32) {
    %c0_i32 = arith.constant 0 : i32
    %c0_i32_0 = arith.constant 0 : i32
    %c0_i32_1 = arith.constant 0 : i32
    return %c0_i32, %c0_i32_0 : i32, i32
  }
  func.func @transform_2(%arg0: i32) -> (i32, i32) {
    %c0_i32 = arith.constant 0 : i32
    %c0_i32_0 = arith.constant 0 : i32
    %c0_i32_1 = arith.constant 0 : i32
    return %c0_i32, %c0_i32_0 : i32, i32
  }
  func.func @transform_3(%arg0: i32) -> (i32, i32) {
    %c0_i32 = arith.constant 0 : i32
    %c0_i32_0 = arith.constant 0 : i32
    %c0_i32_1 = arith.constant 0 : i32
    return %c0_i32, %c0_i32_0 : i32, i32
  }
  func.func @transform_4(%arg0: i32) -> (i32, i32) {
    %c0_i32 = arith.constant 0 : i32
    %c0_i32_0 = arith.constant 0 : i32
    %c0_i32_1 = arith.constant 0 : i32
    return %c0_i32, %c0_i32_0 : i32, i32
  }
  func.func @transform_5(%arg0: i32) -> (i32, i32) {
    %c0_i32 = arith.constant 0 : i32
    %c0_i32_0 = arith.constant 0 : i32
    %c0_i32_1 = arith.constant 0 : i32
    return %c0_i32, %c0_i32_0 : i32, i32
  }
  func.func @transform_6(%arg0: i32) -> (i32, i32) {
    %c0_i32 = arith.constant 0 : i32
    %c0_i32_0 = arith.constant 0 : i32
    %c0_i32_1 = arith.constant 0 : i32
    return %c0_i32, %c0_i32_0 : i32, i32
  }
  func.func @transform_7(%arg0: i32) -> (i32, i32) {
    %c0_i32 = arith.constant 0 : i32
    %c0_i32_0 = arith.constant 0 : i32
    %c0_i32_1 = arith.constant 0 : i32
    return %c0_i32, %c0_i32_0 : i32, i32
  }
  func.func @transform_8(%arg0: i32) -> (i32, i32) {
    %c0_i32 = arith.constant 0 : i32
    %c0_i32_0 = arith.constant 0 : i32
    %c0_i32_1 = arith.constant 0 : i32
    return %c0_i32, %c0_i32_0 : i32, i32
  }
  func.func @transform_9(%arg0: i32) -> (i32, i32) {
    %c0_i32 = arith.constant 0 : i32
    %c0_i32_0 = arith.constant 0 : i32
    %c0_i32_1 = arith.constant 0 : i32
    return %c0_i32, %c0_i32_0 : i32, i32
  }
  func.func @transform_10(%arg0: i32) -> (i32, i32) {
    %c0_i32 = arith.constant 0 : i32
    %c0_i32_0 = arith.constant 0 : i32
    %c0_i32_1 = arith.constant 0 : i32
    return %c0_i32, %c0_i32_0 : i32, i32
  }
  func.func @transform_11(%arg0: i32) -> (i32, i32) {
    %c0_i32 = arith.constant 0 : i32
    %c0_i32_0 = arith.constant 0 : i32
    %c0_i32_1 = arith.constant 0 : i32
    return %c0_i32, %c0_i32_0 : i32, i32
  }
  func.func @transform_12(%arg0: i32) -> (i32, i32) {
    %c0_i32 = arith.constant 0 : i32
    %c0_i32_0 = arith.constant 0 : i32
    %c0_i32_1 = arith.constant 0 : i32
    return %c0_i32, %c0_i32_0 : i32, i32
  }
  func.func @transform_13(%arg0: i32) -> (i32, i32) {
    %c0_i32 = arith.constant 0 : i32
    %c0_i32_0 = arith.constant 0 : i32
    %c0_i32_1 = arith.constant 0 : i32
    return %c0_i32, %c0_i32_0 : i32, i32
  }
  func.func @transform_14(%arg0: i32) -> (i32, i32) {
    %c0_i32 = arith.constant 0 : i32
    %c0_i32_0 = arith.constant 0 : i32
    %c0_i32_1 = arith.constant 0 : i32
    return %c0_i32, %c0_i32_0 : i32, i32
  }
  func.func @transform_15(%arg0: i32) -> (i32, i32) {
    %c0_i32 = arith.constant 0 : i32
    %c0_i32_0 = arith.constant 0 : i32
    %c0_i32_1 = arith.constant 0 : i32
    return %c0_i32, %c0_i32_0 : i32, i32
  }
  func.func @transform_16(%arg0: i32) -> (i32, i32) {
    %c0_i32 = arith.constant 0 : i32
    %c0_i32_0 = arith.constant 0 : i32
    %c0_i32_1 = arith.constant 0 : i32
    return %c0_i32, %c0_i32_0 : i32, i32
  }
  func.func @transform_17(%arg0: i32) -> (i32, i32, i32) {
    %c0_i32 = arith.constant 0 : i32
    %c0_i32_0 = arith.constant 0 : i32
    %c0_i32_1 = arith.constant 0 : i32
    %c0_i32_2 = arith.constant 0 : i32
    return %c0_i32, %c0_i32_0, %c0_i32_1 : i32, i32, i32
  }
  func.func @transform_18(%arg0: i32) -> (i32, i32) {
    %c0_i32 = arith.constant 0 : i32
    %c0_i32_0 = arith.constant 0 : i32
    %c0_i32_1 = arith.constant 0 : i32
    return %c0_i32, %c0_i32_0 : i32, i32
  }
  func.func @transform_19(%arg0: i32) -> (i32, i32) {
    %c0_i32 = arith.constant 0 : i32
    %c0_i32_0 = arith.constant 0 : i32
    %c0_i32_1 = arith.constant 0 : i32
    return %c0_i32, %c0_i32_0 : i32, i32
  }
  func.func @transform_20(%arg0: i32) -> (i32, i32) {
    %c0_i32 = arith.constant 0 : i32
    %c0_i32_0 = arith.constant 0 : i32
    %c0_i32_1 = arith.constant 0 : i32
    return %c0_i32, %c0_i32_0 : i32, i32
  }
  func.func @transform_21(%arg0: i32) -> (i32, i32, i32) {
    %c0_i32 = arith.constant 0 : i32
    %c0_i32_0 = arith.constant 0 : i32
    %c0_i32_1 = arith.constant 0 : i32
    return %arg0, %c0_i32, %c0_i32_0 : i32, i32, i32
  }
}

</mosaic_0001>

<bundles_post_ra>
// kernel: siamese_forward.1
= control target key start
LH: loop header
LB: loop body
LE: loop exit
PB: predicated region body
PF: predicated region fallthrough
CT: control target
= control target key end

     0   :  { %s19932_s0 = inlined_call_operand.vmem [shape: f32[2,1,1280], index: 0, kind: input, shape index: {}]   ;;  %s19933_s1 = inlined_call_operand.hbm [shape: f32[1,1024], index: 1, kind: input, shape index: {}]   ;;  %s19934_s2 = inlined_call_operand.hbm [shape: bf16[4,9], index: 2, kind: input, shape index: {}]   ;;  %s19935_s3 = inlined_call_operand.vmem [shape: f32[4,1], index: 3, kind: input, shape index: {}]   ;;  %s19936_s4 = inlined_call_operand.vmem [shape: f32[4,1], index: 4, kind: input, shape index: {}]   ;;  %s19937_s5 = inlined_call_operand.vmem [shape: f32[4,1], index: 5, kind: input, shape index: {}]   ;;  %s19938_s6 = inlined_call_operand.hbm [shape: bf16[8,36], index: 6, kind: input, shape index: {}]   ;;  %s19939_s7 = inlined_call_operand.vmem [shape: f32[8,1], index: 7, kind: input, shape index: {}]   ;;  %s19940_s8 = inlined_call_operand.vmem [shape: f32[8,1], index: 8, kind: input, shape index: {}]   ;;  %s19941_s9 = inlined_call_operand.vmem [shape: f32[8,1], index: 9, kind: input, shape index: {}]   ;;  %s19942_s10 = inlined_call_operand.hbm [shape: bf16[16,72], index: 10, kind: input, shape index: {}]   ;;  %s19943_s11 = inlined_call_operand.vmem [shape: f32[16,1], index: 11, kind: input, shape index: {}]   ;;  %s19944_s12 = inlined_call_operand.vmem [shape: f32[16,1], index: 12, kind: input, shape index: {}]   ;;  %s19945_s13 = inlined_call_operand.vmem [shape: f32[16,1], index: 13, kind: input, shape index: {}]   ;;  %s19946_s14 = inlined_call_operand.hbm [shape: bf16[4,144], index: 14, kind: input, shape index: {}]   ;;  %s19947_s15 = inlined_call_operand.vmem [shape: f32[4,1], index: 15, kind: input, shape index: {}]   ;;  %s19948_s16 = inlined_call_operand.vmem [shape: f32[4,1], index: 16, kind: input, shape index: {}]   ;;  %s19949_s17 = inlined_call_operand.hbm [shape: bf16[4,1024,512], index: 17, kind: input, shape index: {}]   ;;  %s19950_s18 = inlined_call_operand.hbm [shape: f32[1,512], index: 18, kind: input, shape index: {}]   ;;  %s19951_s19 = inlined_call_operand.vmem [shape: bf16[512,16], index: 19, kind: input, shape index: {}]   ;;  %s19952_s20 = inlined_call_operand.hbm [shape: f32[1,16], index: 20, kind: input, shape index: {}]   ;;  %s19953_s21 = inlined_call_operand.hbm [shape: f32[2,1,16], index: 21, kind: output, shape index: {}]  }
   0x1   :  { %20037 = sst [smem:[#allocation45_spill]] %s19932_s0 }
   0x2   :  { %20038 = sst [smem:[#allocation46_spill]] %s19933_s1 }
   0x3   :  { %20039 = sst [smem:[#allocation47_spill]] %s19934_s2 }
   0x4   :  { %20040 = sst [smem:[#allocation48_spill]] %s19935_s3 }
   0x5   :  { %20041 = sst [smem:[#allocation49_spill]] %s19936_s4 }
   0x6   :  { %20042 = sst [smem:[#allocation50_spill]] %s19937_s5 }
   0x7   :  { %20043 = sst [smem:[#allocation51_spill]] %s19942_s10 }
   0x8   :  { %20044 = sst [smem:[#allocation52_spill]] %s19945_s13 }
   0x9   :  { %20045 = sst [smem:[#allocation53_spill]] %s19947_s15 }
   0xa   :  { %20046 = sst [smem:[#allocation54_spill]] %s19948_s16 }
   0xb   :  { %20047 = sst [smem:[#allocation55_spill]] %s19951_s19 }
   0xc   :  { %20048 = sst [smem:[#allocation56_spill]] %s19953_s21 }
   0xd   :  { %26 = vsyncpa [#allocation3], 0 }
   0xe   :  { %27 = vsyncpa [#allocation6], 0 }
   0xf   :  { %28 = vsyncpa [#allocation9], 0 }
  0x10   :  { %29 = vsyncpa [#allocation12], 0 }
  0x11   :  { %30 = vsyncpa [#allocation15], 0 }
  0x12   :  { %31 = vsyncpa [#allocation4], 0 }
  0x13   :  { %33 = vsyncpa [#allocation4 + $0x1], 0  ;;  %s16637_s2 = smov 0   ;;  %s16639_s25 = smov 0  }
  0x14   :  { %s16641_s26 = smov 0   ;;  %s16643_s27 = smov 0  }
  0x15 LB: > { %20049 = sst [smem:[#allocation23_spill]] %s16486_s2  ;;  %s16658_s3 = sadd.s32 4294967295, %s16498_s27   ;;  %s16498_s27 = sphi %s16643_s27, %s20207_s27   ;;  %s16494_s26 = sphi %s16641_s26, %s20210_s26   ;;  %s16490_s25 = sphi %s16639_s25, %s20209_s25   ;;  %s16486_s2 = sphi %s16637_s2, %s20208_s2  }
  0x16   : > { %20050 = sst [smem:[#allocation24_spill]] %s16490_s25  ;;  %s12461_s28 = sadd.s32 4294967294, %s16498_s27  }
  0x17   : > { %20051 = sst [smem:[#allocation25_spill]] %s16494_s26  ;;  %s16662_s29 = sadd.s32 1, %s16498_s27  }
  0x18   : > { %20052 = sst [smem:[#allocation26_spill]] %s16498_s27  ;;  %s492_s0 = sadd.s32 1, %s16494_s26 }
  0x19   : > { %20053 = sst [smem:[#allocation27_spill]] %s16662_s29  ;;  %s489_s4 = ssub.s32 %s16498_s27, %s16662_s29 }
  0x1a   : > { %p502_p0 = scmp.ne.s32.totalorder %s16494_s26, %s16490_s25  ;;  %p490_p1 = scmp.eq.s32.totalorder %s489_s4, 0 }
  0x1b   : > { %p503_p2 = scmp.eq.s32.totalorder %s16658_s3, 1  ;;  %p508_p3 = scmp.ne.s32.totalorder %s16490_s25, %s16486_s2 }
  0x1c   : > { %p509_p4 = scmp.eq.s32.totalorder %s12461_s28, 1  ;;  %p12462_p7 = scmp.ge.s32.totalorder %s16498_s27, 1 }
  0x1d   : > { %s16673_s30 = scalar_select %p490_p1, %s16494_s26, %s492_s0  }
  0x1e   : > { %p16675_p5 = por %p503_p2, %p502_p0  ;;  %p16679_p6 = por %p509_p4, %p508_p3 }
  0x1f   : > { %20054 = sst [smem:[#allocation28_spill]] %s16673_s30  ;;  %p516_p8 = scmp.lt.s32.totalorder %s16498_s27, 3 }
  0x20   : > { %s20055_s5 = scalar_select %p16675_p5, 1, 0 }
  0x21   : > { %s20057_s22 = scalar_select %p16679_p6, 1, 0 }
  0x22   : > { %20056 = sst [smem:[#allocation29_spill]] %s20055_s5  ;;  %p19966_p9 = scmp.eq.s32.totalorder %s16658_s3, 0 }
  0x23   : > { %20058 = sst [smem:[#allocation30_spill]] %s20057_s22  ;;  %p16686_p10 = pnand %p12462_p7, %p516_p8 }
  0x24   : > { %s16500_s1 = smov [#allocation5]   ;;  %s16501_s28 = smov [#allocation8]  }
  0x25   : > { %s20059_s23 = scalar_select %p16686_p10, 1, 0 }
  0x26   : > { %s540_s24 = sshll.u32 %s16500_s1, 4  ;;  %p13741_p11 = pneg %p16686_p10  ;;  %s541_s24 = int_to_ptr.vmem [resolvable:$true] %s540_s24 }
  0x27   : > { %s579_s0 = sshll.u32 %s16501_s28, 4  ;;  %s16502_s30 = smov [#allocation11]   ;;  %s16698_s0 = int_to_ptr.vmem [resolvable:$true] %s579_s0 }
  0x28   : > { %p16694_p12 = pnand %p19966_p9, %p13741_p11  ;;  %s16700_s26 = sshll.u32 %s16502_s30, 4  ;;  %s619_s26 = int_to_ptr.vmem [resolvable:$true] %s16700_s26 }
  0x29   : > { %s20061_s2 = sld [smem:[#allocation47_spill]] }
  0x2a   : > { %p16710_p0 = pneg %p16694_p12 }
  0x2f   : > { %s20062_s21 = smov %s20061_s2  ;;  %s16192_s1 = scalar_lea.hbm %s20061_s2, 32 }
  0x30   : > { %p16193_p13 = scmp.ne.s32.totalorder %s20062_s21, %s16192_s1  ;;  %p16199_p3 = scmp.lt.u32.totalorder %s16192_s1, %s20062_s21 }
  0x32   : > { %p16195_p1 = pnand %p16710_p0, %p16193_p13 }
  0x34   : > { %p16196_p2 = pneg %p16195_p1 }
  0x36   : > { %p16201_p4 = pnand %p16199_p3, %p16196_p2 }
  0x38   : > { %16204 = shalt.err (!%p16201_p4)
}
  0x39   : > { %s16205_s2 = scalar_lea.vmem %s541_s24, 32  ;;  %p16213_p9 = scmp.lt.s32.totalorder %s541_s24, %s541_s24 }
  0x3a   : > { %p16206_p7 = scmp.ne.s32.totalorder %s541_s24, %s16205_s2  ;;  %p16214_p6 = scmp.lt.s32.totalorder %s16205_s2, %s16205_s2 }
  0x3c   : > { %p16208_p8 = pnand %p16206_p7, %p16710_p0  ;;  %p16215_p5 = por %p16214_p6, %p16213_p9 }
  0x3e   : > { %p16209_p11 = pneg %p16208_p8 }
  0x40   : > { %p16216_p10 = pnand %p16215_p5, %p16209_p11 }
  0x42   : > { %16219 = shalt.err (!%p16216_p10)
}
  0x43   : > { %13747 = dma.hbm_to_vmem [thread:$0]  (!%p16694_p12), %s20062_s21, 32, %s541_s24, [#allocation6]  }
  0x44   : > { %s20064_s10 = sld [smem:[#allocation51_spill]] }
  0x4a   : > { %s16220_s22 = scalar_lea.hbm %s20064_s10, 128 }
  0x4b   : > { %p16221_p13 = scmp.ne.s32.totalorder %s20064_s10, %s16220_s22  ;;  %p16227_p5 = scmp.lt.u32.totalorder %s16220_s22, %s20064_s10 }
  0x4d   : > { %p16223_p1 = pnand %p16221_p13, %p16710_p0 }
  0x4f   : > { %p16224_p6 = pneg %p16223_p1 }
  0x51   : > { %p16229_p9 = pnand %p16227_p5, %p16224_p6 }
  0x53   : > { %16232 = shalt.err (!%p16229_p9)
}
  0x54   : > { %s16233_s24 = scalar_lea.vmem %s16698_s0, 128  ;;  %p16241_p4 = scmp.lt.s32.totalorder %s16698_s0, %s16698_s0 }
  0x55   : > { %p16234_p10 = scmp.ne.s32.totalorder %s16698_s0, %s16233_s24  ;;  %p16242_p7 = scmp.lt.s32.totalorder %s16233_s24, %s16233_s24 }
  0x57   : > { %p16236_p2 = pnand %p16234_p10, %p16710_p0  ;;  %p16243_p8 = por %p16242_p7, %p16241_p4 }
  0x59   : > { %p16237_p3 = pneg %p16236_p2 }
  0x5b   : > { %p16244_p11 = pnand %p16243_p8, %p16237_p3 }
  0x5d   : > { %16247 = shalt.err (!%p16244_p11)
}
  0x5e   : > { %s16503_s27 = smov 64   ;;  %s16504_s19 = smov 4  }
  0x5f   : > { %13753 = dma.hbm_to_vmem [thread:$0]  (!%p16694_p12), %s20064_s10, 128, %s16698_s0, [#allocation9], %s16503_s27, %s16503_s27, %s16504_s19  }
  0x60   : > { %s16248_s1 = scalar_lea.hbm %s19949_s17, 131072 }
  0x61   : > { %p16249_p13 = scmp.ne.s32.totalorder %s19949_s17, %s16248_s1  ;;  %p16255_p5 = scmp.lt.u32.totalorder %s16248_s1, %s19949_s17 }
  0x63   : > { %p16251_p1 = pnand %p16249_p13, %p16710_p0 }
  0x65   : > { %p16252_p6 = pneg %p16251_p1 }
  0x67   : > { %p16257_p9 = pnand %p16255_p5, %p16252_p6 }
  0x69   : > { %16260 = shalt.err (!%p16257_p9)
}
  0x6a   : > { %s16261_s29 = scalar_lea.vmem %s619_s26, 131072  ;;  %p16269_p4 = scmp.lt.s32.totalorder %s619_s26, %s619_s26 }
  0x6b   : > { %p16262_p10 = scmp.ne.s32.totalorder %s619_s26, %s16261_s29  ;;  %p16270_p7 = scmp.lt.s32.totalorder %s16261_s29, %s16261_s29 }
  0x6d   : > { %p16264_p2 = pnand %p16262_p10, %p16710_p0  ;;  %p16271_p8 = por %p16270_p7, %p16269_p4 }
  0x6f   : > { %p16265_p3 = pneg %p16264_p2 }
  0x71   : > { %p16272_p11 = pnand %p16271_p8, %p16265_p3 }
  0x73   : > { %16275 = shalt.err (!%p16272_p11)
}
  0x74   : > { %s16505_s0 = smov 256   ;;  %s16506_s27 = smov 16  }
  0x75   : > { %13759 = dma.hbm_to_vmem [thread:$0]  (!%p16694_p12), %s19949_s17, 131072, %s619_s26, [#allocation12], %s16505_s0, %s16505_s0, %s16506_s27  }
  0x76   : > { %s16507_s25 = smov [#allocation2]   ;;  %s16508_s22 = smov [#allocation7]  }
  0x77   : > { %s529_s5 = sshll.u32 %s16507_s25, 4  ;;  %s560_s1 = sshll.u32 %s16508_s22, 4  ;;  %s530_s5 = int_to_ptr.vmem [resolvable:$true] %s529_s5  ;;  %s561_s1 = int_to_ptr.vmem [resolvable:$true] %s560_s1 }
  0x78   : > { %s20065_s24 = sld [smem:[#allocation46_spill]] }
  0x7e   : > { %s16276_s29 = scalar_lea.hbm %s20065_s24, 128 }
  0x7f   : > { %p16277_p13 = scmp.ne.s32.totalorder %s20065_s24, %s16276_s29  ;;  %p16283_p5 = scmp.lt.u32.totalorder %s16276_s29, %s20065_s24 }
  0x81   : > { %p16279_p1 = pnand %p16277_p13, %p16710_p0 }
  0x83   : > { %p16280_p6 = pneg %p16279_p1 }
  0x85   : > { %p16285_p9 = pnand %p16283_p5, %p16280_p6 }
  0x87   : > { %16288 = shalt.err (!%p16285_p9)
}
  0x88   : > { %s16289_s26 = scalar_lea.vmem %s530_s5, 128  ;;  %p16297_p4 = scmp.lt.s32.totalorder %s530_s5, %s530_s5 }
  0x89   : > { %p16290_p10 = scmp.ne.s32.totalorder %s530_s5, %s16289_s26  ;;  %p16298_p7 = scmp.lt.s32.totalorder %s16289_s26, %s16289_s26 }
  0x8b   : > { %p16292_p2 = pnand %p16290_p10, %p16710_p0  ;;  %p16299_p8 = por %p16298_p7, %p16297_p4 }
  0x8d   : > { %p16293_p3 = pneg %p16292_p2 }
  0x8f   : > { %p16300_p11 = pnand %p16299_p8, %p16293_p3 }
  0x91   : > { %16303 = shalt.err (!%p16300_p11)
}
  0x92   : > { %13744 = dma.hbm_to_vmem [thread:$0]  (!%p16694_p12), %s20065_s24, 128, %s530_s5, [#allocation3]  }
  0x93   : > { %s16304_s0 = scalar_lea.hbm %s19938_s6, 64 }
  0x94   : > { %p16305_p13 = scmp.ne.s32.totalorder %s19938_s6, %s16304_s0  ;;  %p16311_p5 = scmp.lt.u32.totalorder %s16304_s0, %s19938_s6 }
  0x96   : > { %p16307_p1 = pnand %p16305_p13, %p16710_p0 }
  0x98   : > { %p16308_p6 = pneg %p16307_p1 }
  0x9a   : > { %p16313_p9 = pnand %p16311_p5, %p16308_p6 }
  0x9c   : > { %16316 = shalt.err (!%p16313_p9)
}
  0x9d   : > { %s16317_s22 = scalar_lea.vmem %s561_s1, 64  ;;  %p16325_p4 = scmp.lt.s32.totalorder %s561_s1, %s561_s1 }
  0x9e   : > { %p16318_p10 = scmp.ne.s32.totalorder %s561_s1, %s16317_s22  ;;  %p16326_p7 = scmp.lt.s32.totalorder %s16317_s22, %s16317_s22 }
  0xa0   : > { %p16320_p2 = pnand %p16318_p10, %p16710_p0  ;;  %p16327_p8 = por %p16326_p7, %p16325_p4 }
  0xa2   : > { %p16321_p3 = pneg %p16320_p2 }
  0xa4   : > { %p16328_p11 = pnand %p16327_p8, %p16321_p3 }
  0xa6   : > { %16331 = shalt.err (!%p16328_p11)
}
  0xa7   : > { %13750 = dma.hbm_to_vmem [thread:$0]  (!%p16694_p12), %s19938_s6, 64, %s561_s1, [#allocation6]  }
  0xa8   : > { %s16509_s2 = smov [#allocation10]   ;;  %s16510_s26 = smov [#allocation13]  }
  0xa9   : > { %s602_s29 = sshll.u32 %s16509_s2, 4  ;;  %s632_s10 = sshll.u32 %s16510_s26, 4  ;;  %s603_s29 = int_to_ptr.vmem [resolvable:$true] %s602_s29  ;;  %s633_s10 = int_to_ptr.vmem [resolvable:$true] %s632_s10 }
  0xaa   : > { %s16332_s16 = scalar_lea.hbm %s19946_s14, 64 }
  0xab   : > { %p16333_p13 = scmp.ne.s32.totalorder %s19946_s14, %s16332_s16  ;;  %p16339_p5 = scmp.lt.u32.totalorder %s16332_s16, %s19946_s14 }
  0xad   : > { %p16335_p1 = pnand %p16333_p13, %p16710_p0 }
  0xaf   : > { %p16336_p6 = pneg %p16335_p1 }
  0xb1   : > { %p16341_p9 = pnand %p16339_p5, %p16336_p6 }
  0xb3   : > { %16344 = shalt.err (!%p16341_p9)
}
  0xb4   : > { %s16345_s1 = scalar_lea.vmem %s603_s29, 64  ;;  %p16353_p4 = scmp.lt.s32.totalorder %s603_s29, %s603_s29 }
  0xb5   : > { %p16346_p10 = scmp.ne.s32.totalorder %s603_s29, %s16345_s1  ;;  %p16354_p7 = scmp.lt.s32.totalorder %s16345_s1, %s16345_s1 }
  0xb7   : > { %p16348_p2 = pnand %p16346_p10, %p16710_p0  ;;  %p16355_p8 = por %p16354_p7, %p16353_p4 }
  0xb9   : > { %p16349_p3 = pneg %p16348_p2 }
  0xbb   : > { %p16356_p11 = pnand %p16355_p8, %p16349_p3 }
  0xbd   : > { %16359 = shalt.err (!%p16356_p11)
}
  0xbe   : > { %13756 = dma.hbm_to_vmem [thread:$0]  (!%p16694_p12), %s19946_s14, 64, %s603_s29, [#allocation9]  }
  0xbf   : > { %s16360_s2 = scalar_lea.hbm %s19950_s18, 64 }
  0xc0   : > { %p16361_p13 = scmp.ne.s32.totalorder %s19950_s18, %s16360_s2  ;;  %p16367_p5 = scmp.lt.u32.totalorder %s16360_s2, %s19950_s18 }
  0xc2   : > { %p16363_p1 = pnand %p16361_p13, %p16710_p0 }
  0xc4   : > { %p16364_p6 = pneg %p16363_p1 }
  0xc6   : > { %p16369_p9 = pnand %p16367_p5, %p16364_p6 }
  0xc8   : > { %16372 = shalt.err (!%p16369_p9)
}
  0xc9   : > { %s16373_s0 = scalar_lea.vmem %s633_s10, 64  ;;  %p16381_p4 = scmp.lt.s32.totalorder %s633_s10, %s633_s10 }
  0xca   : > { %p16374_p10 = scmp.ne.s32.totalorder %s633_s10, %s16373_s0  ;;  %p16382_p7 = scmp.lt.s32.totalorder %s16373_s0, %s16373_s0 }
  0xcc   : > { %p16376_p2 = pnand %p16374_p10, %p16710_p0  ;;  %p16383_p8 = por %p16382_p7, %p16381_p4 }
  0xce   : > { %p16377_p3 = pneg %p16376_p2 }
  0xd0   : > { %p16384_p11 = pnand %p16383_p8, %p16377_p3 }
  0xd2   : > { %16387 = shalt.err (!%p16384_p11)
}
  0xd3   : > { %13762 = dma.hbm_to_vmem [thread:$0]  (!%p16694_p12), %s19950_s18, 64, %s633_s10, [#allocation12]  }
  0xd4   : > { %s16511_s21 = smov [#allocation14]   ;;  %s16388_s22 = scalar_lea.hbm %s19952_s20, 16 }
  0xd5   : > { %s646_s19 = sshll.u32 %s16511_s21, 4  ;;  %p16389_p13 = scmp.ne.s32.totalorder %s19952_s20, %s16388_s22  ;;  %s647_s19 = int_to_ptr.vmem [resolvable:$true] %s646_s19 }
  0xd6   : > { %p16395_p5 = scmp.lt.u32.totalorder %s16388_s22, %s19952_s20 }
  0xd7   : > { %p16391_p1 = pnand %p16389_p13, %p16710_p0 }
  0xd9   : > { %p16392_p6 = pneg %p16391_p1 }
  0xdb   : > { %p16397_p9 = pnand %p16395_p5, %p16392_p6 }
  0xdd   : > { %16400 = shalt.err (!%p16397_p9)
}
  0xde   : > { %s16401_s10 = scalar_lea.vmem %s647_s19, 16  ;;  %s16408_s15 = scalar_lea.vmem %s647_s19, 32 }
  0xdf   : > { %p16402_p10 = scmp.ne.s32.totalorder %s647_s19, %s16401_s10  ;;  %p16409_p4 = scmp.lt.s32.totalorder %s647_s19, %s647_s19 }
  0xe0   : > { %p16410_p7 = scmp.lt.s32.totalorder %s16408_s15, %s16401_s10 }
  0xe1   : > { %p16404_p2 = pnand %p16402_p10, %p16710_p0 }
  0xe2   : > { %p16411_p8 = por %p16410_p7, %p16409_p4 }
  0xe3   : > { %p16405_p3 = pneg %p16404_p2 }
  0xe5   : > { %p16412_p11 = pnand %p16411_p8, %p16405_p3 }
  0xe7   : > { %16415 = shalt.err (!%p16412_p11)
}
  0xe8   : > { %13765 = dma.hbm_to_vmem [thread:$0]  (!%p16694_p12), %s19952_s20, 16, %s647_s19, [#allocation15]  }
  0xe9   : > { %p20066_p13 = scmp.ne.s32.totalorder %s20059_s23, 0 }
  0xeb   : > { %666 = sbr.rel (%p20066_p13) target bundleno = 3994 (0xf9a), region = 104 }
  0xf2   : > { %p20067_p1 = scmp.eq.s32.totalorder %s16658_s3, 0 }
  0xf4   : > { %16461 = dma.done.wait (%p20067_p1), [#allocation3], 128   ;;  %p20068_p0 = pmov %p20067_p1 }
  0xf6   : > { %16463 = vsyncadd (%p20068_p0), [#allocation3], 4294967168  ;;  %p20069_p6 = pmov %p20068_p0 }
  0xf7   : > { %p20070_p5 = pmov %p20068_p0 }
  0xf8   : > { %16465 = dma.done.wait (%p20069_p6), [#allocation6], 96  }
  0xf9   : > { %16467 = vsyncadd (%p20070_p5), [#allocation6], 4294967200  ;;  %p20071_p9 = pmov %p20068_p0 }
  0xfa   : > { %p20072_p12 = pmov %p20068_p0 }
  0xfb   : > { %16469 = dma.done.wait (%p20071_p9), [#allocation9], 192  }
  0xfc   : > { %16471 = vsyncadd (%p20072_p12), [#allocation9], 4294967104  ;;  %p20073_p10 = pmov %p20068_p0 }
  0xfd   : > { %p20074_p2 = pmov %p20068_p0 }
  0xfe   : > { %16473 = dma.done.wait (%p20073_p10), [#allocation12], 131136  }
  0xff   : > { %16475 = vsyncadd (%p20074_p2), [#allocation12], 4294836160  ;;  %p20075_p3 = pmov %p20068_p0 }
 0x100   : > { %p20076_p4 = pmov %p20068_p0 }
 0x101   : > { %16477 = dma.done.wait (%p20075_p3), [#allocation15], 16  }
 0x102   : > { %16479 = vsyncadd (%p20076_p4), [#allocation15], 4294967280  ;;  %p752_p7 = scmp.lt.s32.totalorder %s16658_s3, 1  ;;  %v766_v0 = vlaneseq  ;;  %s20082_s29 = sld [smem:[#allocation45_spill]]  ;;  %vm829_vm0 = vcmask 1039360   ;;  %vm865_vm1 = vcmask 1031168  }
 0x103   : > { %s16512_s21 = smov 127   ;;  %s16513_s19 = smov 126   ;;  %vm1100_vm2 = vcmask 1040384   ;;  %vm1110_vm3 = vcmask 1041408   ;;  %vm901_vm4 = vcmask 801792   ;;  %vm1120_vm5 = vcmask 1042432  }
 0x104   : > { %s753_s23 = scalar_select %p752_p7, %s16658_s3, 1  ;;  %v16882_v1 = vshrl.u32 %v766_v0, 7  ;;  %vm935_vm6 = vcmask 793600   ;;  %vm1130_vm7 = vcmask 1043456   ;;  %vm974_vm8 = vcmask 785408  }
 0x105   : > { %s16514_s1 = smov 98   ;;  %s16515_s25 = smov 97   ;;  %vm1010_vm9 = vcmask 556032   ;;  %vm1046_vm10 = vcmask 547840   ;;  %vm1140_vm11 = vcmask 1044480   ;;  %vm1150_vm12 = vcmask 1045504  }
 0x106   : > { %20077 = vst [vmem:[#allocation31_spill] sm:$0xff] %v16882_v1  ;;  %s13706_s4 = smul.u32 10, %s753_s23  ;;  %v784_v2 = vsub.s32 4, %v16882_v1  ;;  %v788_v3 = vsub.s32 5, %v16882_v1  ;;  %v16887_v4 = vsub.s32 1, %v16882_v1  ;;  %v16890_v5 = vsub.s32 2, %v16882_v1 }
 0x107   : > { %v16893_v6 = vsub.s32 0, %v16882_v1  ;;  %v16896_v7 = vsub.s32 3, %v16882_v1  ;;  %v792_v18 = vsub.s32 6, %v16882_v1  ;;  %s16516_s22 = smov 96   ;;  %s16517_s5 = smov 68   ;;  %v796_v22 = vsub.s32 7, %v16882_v1 }
 0x108   : > { %20078 = vst [vmem:[#allocation32_spill] sm:$0xff] %v16887_v4  ;;  %20079 = vst [vmem:[#allocation33_spill] sm:$0xff] %v16890_v5  ;;  %s16901_s27 = scalar_lea.vmem %s20082_s29, %s13706_s4  ;;  %s16518_s30 = smov 67   ;;  %vm1082_vm13 = vcmask 539648   ;;  %vm1160_vm14 = vcmask 1046528   ;;  %vm1211_vm15 = vcmask 252928  }
 0x109   : > { %20080 = vst [vmem:[#allocation34_spill] sm:$0xff] %v16893_v6  ;;  %20081 = vst [vmem:[#allocation35_spill] sm:$0xff] %v16896_v7  ;;  %v758_v8 = vld [vmem:[%s16901_s27] sm:$0xff]  ;;  %v759_v23 = vld [vmem:[%s16901_s27 + $0x8] sm:$0x3]  ;;  %s16519_s2 = smov 66  }
 0x10a   : > { %v16906_v9 = vrot.slane %v758_v8, %v784_v2  ;;  %v16910_v10 = vrot.slane %v758_v8, %v788_v3  ;;  %v16913_v11 = vrot.slane %v758_v8, %v16887_v4  ;;  %v16916_v12 = vrot.slane %v758_v8, %v16890_v5  ;;  %s16521_s26 = smov 31   ;;  %s20083_s13 = sld [smem:[#allocation48_spill]] }
 0x10b   : > { %v16919_v13 = vrot.slane %v758_v8, %v16893_v6  ;;  %v16922_v14 = vrot.slane %v758_v8, %v16896_v7  ;;  %v16941_v19 = vrot.slane %v758_v8, %v792_v18  ;;  %v16965_v24 = vrot.slane %v758_v8, %v796_v22  ;;  %s20084_s4 = sld [smem:[#allocation49_spill]]  ;;  %s20085_s29 = sld [smem:[#allocation50_spill]] }
 0x10c   : > { %v13855_v15 = vpack.i.bf16 %v16910_v10, %v16906_v9  ;;  %v13845_v16 = vpack.i.bf16 %v16916_v12, %v16913_v11  ;;  %v16968_v25 = vrot.slane %v759_v23, %v16893_v6  ;;  %v955_v28 = vrot.slane %v759_v23, %v16887_v4  ;;  %s20201_s15 = sld [smem:[#allocation56_spill]] }
 0x10d   : > { %v13850_v17 = vpack.i.bf16 %v16919_v13, %v16922_v14  ;;  %v13900_v20 = vpack.i.bf16 %v16941_v19, %v16910_v10  ;;  %v13895_v21 = vpack.i.bf16 %v16906_v9, %v16922_v14  ;;  %v13960_v26 = vpack.i.bf16 %v16965_v24, %v16941_v19 }
 0x10e   : > { %13856 = vrot.lane.b32.xlu1 %v13855_v15, %s16512_s21  ;;  %13846 = vrot.lane.b32.xlu0 %v13845_v16, %s16512_s21  ;;  %v13980_v27 = vpack.i.bf16 %v16968_v25, %v16965_v24  ;;  %v14000_v29 = vpack.i.bf16 %v955_v28, %v16968_v25 }
 0x112   : > { %13861 = vrot.lane.b32.xlu1 %v13845_v16, %s16513_s19  ;;  %13851 = vrot.lane.b32.xlu0 %v13850_v17, %s16512_s21 }
 0x116   : > { %13871 = vrot.lane.b32.xlu1 %v13855_v15, %s16513_s19  ;;  %13866 = vrot.lane.b32.xlu0 %v13850_v17, %s16513_s19 }
 0x11a   : > { %13881 = vrot.lane.b32.xlu1 %v13850_v17, %s16514_s1  ;;  %13876 = vrot.lane.b32.xlu0 %v13845_v16, %s16514_s1 }
 0x11e   : > { %13891 = vrot.lane.b32.xlu1 %v13845_v16, %s16515_s25  ;;  %13886 = vrot.lane.b32.xlu0 %v13855_v15, %s16514_s1 }
 0x122   : > { %13901 = vrot.lane.b32.xlu1 %v13900_v20, %s16515_s25  ;;  %13896 = vrot.lane.b32.xlu0 %v13895_v21, %s16515_s25 }
 0x126   : > { %13911 = vrot.lane.b32.xlu1 %v13895_v21, %s16516_s22  ;;  %13906 = vrot.lane.b32.xlu0 %v13845_v16, %s16516_s22 }
 0x12a   : > { %13921 = vrot.lane.b32.xlu1 %v13845_v16, %s16517_s5  ;;  %13916 = vrot.lane.b32.xlu0 %v13900_v20, %s16516_s22 }
 0x12e   : > { %13931 = vrot.lane.b32.xlu1 %v13900_v20, %s16517_s5  ;;  %13926 = vrot.lane.b32.xlu0 %v13895_v21, %s16517_s5 }
 0x132   : > { %13941 = vrot.lane.b32.xlu1 %v13895_v21, %s16518_s30  ;;  %13936 = vrot.lane.b32.xlu0 %v13845_v16, %s16518_s30 }
 0x136   : > { %13951 = vrot.lane.b32.xlu1 %v13845_v16, %s16519_s2  ;;  %13946 = vrot.lane.b32.xlu0 %v13900_v20, %s16518_s30 }
 0x13a   : > { %1072 = vrot.lane.b32.xlu1 %v16910_v10, %s16519_s2  ;;  %13956 = vrot.lane.b32.xlu0 %v13895_v21, %s16519_s2 }
 0x13e   : > { %827 = vrot.lane.b32.xlu1 %v16968_v25, %s16512_s21  ;;  %13961 = vrot.lane.b32.xlu0 %v13960_v26, %s16512_s21 }
 0x142   : > { %863 = vrot.lane.b32.xlu1 %v16968_v25, %s16513_s19  ;;  %13966 = vrot.lane.b32.xlu0 %v13960_v26, %s16513_s19 }
 0x146   : > { %899 = vrot.lane.b32.xlu1 %v16968_v25, %s16514_s1  ;;  %13971 = vrot.lane.b32.xlu0 %v13960_v26, %s16514_s1 }
 0x14a   : > { %13981 = vrot.lane.b32.xlu1 %v13980_v27, %s16516_s22  ;;  %13976 = vrot.lane.b32.xlu0 %v13980_v27, %s16515_s25 }
 0x14e   : > { %13986 = vrot.lane.b32.xlu1 %v13980_v27, %s16517_s5  ;;  %972 = vrot.lane.b32.xlu0 %v955_v28, %s16516_s22 }
 0x152   : > { %13991 = vrot.lane.b32.xlu1 %v13980_v27, %s16518_s30  ;;  %1008 = vrot.lane.b32.xlu0 %v955_v28, %s16517_s5 }
 0x156   : > { %13996 = vrot.lane.b32.xlu1 %v13960_v26, %s16519_s2  ;;  %1044 = vrot.lane.b32.xlu0 %v955_v28, %s16518_s30 }
 0x15a   : > { %14001 = vrot.lane.b32.xlu0 %v14000_v29, %s16519_s2 }
 0x180   : > { %v16997_v30 = vpop.permute.xlu1 %13856  ;;  %v13847_v31 = vpop.permute.xlu0 %13846 }
 0x181   : > { %v13859_v40 = vunpack.i.h.bf16 %v16997_v30  ;;  %v13858_v41 = vunpack.i.l.bf16 %v16997_v30  ;;  %v13849_v42 = vunpack.i.h.bf16 %v13847_v31  ;;  %v13848_v43 = vunpack.i.l.bf16 %v13847_v31 }
 0x183   : > { %v834_v50 = vsel %vm829_vm0, %v13858_v41, %v13859_v40  ;;  %v831_v51 = vsel %vm829_vm0, %v13848_v43, %v13849_v42 }
 0x184   : > { %v13862_v32 = vpop.permute.xlu1 %13861  ;;  %v13852_v33 = vpop.permute.xlu0 %13851  ;;  %v1102_v63 = vsel %vm1100_vm2, %v16913_v11, %v831_v51  ;;  %v1105_v8 = vsel %vm1100_vm2, %v16906_v9, %v834_v50 }
 0x185   : > { %v13864_v44 = vunpack.i.h.bf16 %v13862_v32  ;;  %v13863_v45 = vunpack.i.l.bf16 %v13862_v32  ;;  %v13854_v46 = vunpack.i.h.bf16 %v13852_v33  ;;  %v13853_v49 = vunpack.i.l.bf16 %v13852_v33 }
 0x187   : > { %v867_v52 = vsel %vm865_vm1, %v13863_v45, %v13864_v44  ;;  %v830_v53 = vsel %vm829_vm0, %v13854_v46, %v13848_v43  ;;  %v832_v59 = vsel %vm829_vm0, %v13849_v42, %v13853_v49  ;;  %v833_v16 = vsel %vm829_vm0, %v13853_v49, %v13858_v41 }
 0x188   : > { %v16999_v34 = vpop.permute.xlu1 %13871  ;;  %v13867_v35 = vpop.permute.xlu0 %13866  ;;  %v1112_v15 = vsel %vm1110_vm3, %v1102_v63, %v867_v52  ;;  %v1101_v17 = vsel %vm1100_vm2, %v16919_v13, %v830_v53  ;;  %v1103_v20 = vsel %vm1100_vm2, %v16916_v12, %v832_v59  ;;  %v1104_v33 = vsel %vm1100_vm2, %v16922_v14, %v833_v16 }
 0x189   : > { %v13874_v54 = vunpack.i.h.bf16 %v16999_v34  ;;  %v13873_v55 = vunpack.i.l.bf16 %v16999_v34  ;;  %v13869_v56 = vunpack.i.h.bf16 %v13867_v35  ;;  %v13868_v60 = vunpack.i.l.bf16 %v13867_v35 }
 0x18b   : > { %v870_v11 = vsel %vm865_vm1, %v13873_v55, %v13874_v54  ;;  %v866_v21 = vsel %vm865_vm1, %v13869_v56, %v13863_v45  ;;  %v868_v26 = vsel %vm865_vm1, %v13864_v44, %v13868_v60  ;;  %v869_v27 = vsel %vm865_vm1, %v13868_v60, %v13873_v55 }
 0x18c   : > { %v17001_v36 = vpop.permute.xlu1 %13881  ;;  %v17003_v37 = vpop.permute.xlu0 %13876  ;;  %v1115_v35 = vsel %vm1110_vm3, %v1105_v8, %v870_v11  ;;  %v1111_v41 = vsel %vm1110_vm3, %v1101_v17, %v866_v21  ;;  %v1113_v42 = vsel %vm1110_vm3, %v1103_v20, %v868_v26  ;;  %v1114_v43 = vsel %vm1110_vm3, %v1104_v33, %v869_v27 }
 0x18d   : > { %v13884_v61 = vunpack.i.h.bf16 %v17001_v36  ;;  %v13878_v62 = vunpack.i.l.bf16 %v17003_v37  ;;  %v13879_v0 = vunpack.i.h.bf16 %v17003_v37  ;;  %v13883_v13 = vunpack.i.l.bf16 %v17001_v36 }
 0x18f   : > { %v902_v28 = vsel %vm901_vm4, %v13884_v61, %v13878_v62  ;;  %v903_v12 = vsel %vm901_vm4, %v13878_v62, %v13879_v0  ;;  %v904_v14 = vsel %vm901_vm4, %v13879_v0, %v13883_v13 }
 0x190   : > { %v17005_v38 = vpop.permute.xlu1 %13891  ;;  %v17007_v39 = vpop.permute.xlu0 %13886  ;;  %v1122_v46 = vsel %vm1120_vm5, %v1112_v15, %v903_v12  ;;  %v1121_v49 = vsel %vm1120_vm5, %v1111_v41, %v902_v28  ;;  %v1123_v61 = vsel %vm1120_vm5, %v1113_v42, %v904_v14 }
 0x191   : > { %v13894_v29 = vunpack.i.h.bf16 %v17005_v38  ;;  %v13893_v31 = vunpack.i.l.bf16 %v17005_v38  ;;  %v13888_v32 = vunpack.i.l.bf16 %v17007_v39  ;;  %v13889_v37 = vunpack.i.h.bf16 %v17007_v39 }
 0x193   : > { %v936_v51 = vsel %vm935_vm6, %v13893_v31, %v13894_v29  ;;  %v905_v52 = vsel %vm901_vm4, %v13883_v13, %v13888_v32  ;;  %v906_v55 = vsel %vm901_vm4, %v13888_v32, %v13889_v37  ;;  %v1131_v62 = vsel %vm1130_vm7, %v1121_v49, %v13893_v31 }
 0x194   : > { %v17011_v47 = vpop.permute.xlu1 %13901  ;;  %v17013_v48 = vpop.permute.xlu0 %13896  ;;  %v1132_v15 = vsel %vm1130_vm7, %v1122_v46, %v936_v51  ;;  %v1124_v11 = vsel %vm1120_vm5, %v1114_v43, %v905_v52  ;;  %v1125_v21 = vsel %vm1120_vm5, %v1115_v35, %v906_v55  ;;  %v19974_v55 = vmov 0  }
 0x195   : > { %v13898_v36 = vunpack.i.l.bf16 %v17013_v48  ;;  %v13899_v38 = vunpack.i.h.bf16 %v17013_v48  ;;  %v13903_v50 = vunpack.i.l.bf16 %v17011_v47  ;;  %1282 = vmatprep.mubr.bf16.mxu0 %v19974_v55  ;;  %1323 = vmatprep.mubr.bf16.mxu1 %v19974_v55 }
 0x196   : > { %14005 = vset.pattern.permute.xlu0 %v19974_v55  ;;  %14006 = vset.pattern.permute.xlu1 %v19974_v55 }
 0x197   : > { %v937_v56 = vsel %vm935_vm6, %v13894_v29, %v13898_v36  ;;  %v938_v63 = vsel %vm935_vm6, %v13898_v36, %v13899_v38  ;;  %v939_v16 = vsel %vm935_vm6, %v13899_v38, %v13903_v50 }
 0x198   : > { %v17023_v57 = vpop.permute.xlu1 %13911  ;;  %v17025_v58 = vpop.permute.xlu0 %13906  ;;  %v1134_v27 = vsel %vm1130_vm7, %v1124_v11, %v938_v63  ;;  %v1135_v29 = vsel %vm1130_vm7, %v1125_v21, %v939_v16 }
 0x199   : > { %v13909_v48 = vunpack.i.h.bf16 %v17025_v58  ;;  %v13908_v53 = vunpack.i.l.bf16 %v17025_v58  ;;  %v13913_v0 = vunpack.i.l.bf16 %v17023_v57  ;;  %v13914_v13 = vunpack.i.h.bf16 %v17023_v57 }
 0x19b   : > { %v975_v26 = vsel %vm974_vm8, %v13908_v53, %v13909_v48  ;;  %v976_v31 = vsel %vm974_vm8, %v13909_v48, %v13913_v0  ;;  %v977_v49 = vsel %vm974_vm8, %v13913_v0, %v13914_v13 }
 0x19c   : > { %v17045_v23 = vpop.permute.xlu1 %13921  ;;  %v17047_v9 = vpop.permute.xlu0 %13916  ;;  %v1142_v57 = vsel %vm1140_vm11, %v1132_v15, %v975_v26 }
 0x19d   : > { %v13924_v59 = vunpack.i.h.bf16 %v17045_v23  ;;  %v13923_v60 = vunpack.i.l.bf16 %v17045_v23  ;;  %v1133_v23 = vsel %vm1130_vm7, %v1123_v61, %v937_v56  ;;  %v13918_v41 = vunpack.i.l.bf16 %v17047_v9 }
 0x19e   : > { %v1143_v11 = vsel %vm1140_vm11, %v1133_v23, %v976_v31 }
 0x19f   : > { %v1011_v28 = vsel %vm1010_vm9, %v13923_v60, %v13924_v59 }
 0x1a0   : > { %v17066_v44 = vpop.permute.xlu1 %13931  ;;  %v17068_v45 = vpop.permute.xlu0 %13926  ;;  %v1152_v46 = vsel %vm1150_vm12, %v1142_v57, %v1011_v28 }
 0x1a1   : > { %v13928_v12 = vunpack.i.l.bf16 %v17068_v45  ;;  %v13933_v38 = vunpack.i.l.bf16 %v17066_v44  ;;  %v13929_v14 = vunpack.i.h.bf16 %v17068_v45 }
 0x1a3   : > { %v1012_v51 = vsel %vm1010_vm9, %v13924_v59, %v13928_v12  ;;  %v1141_v59 = vsel %vm1140_vm11, %v1131_v62, %v13908_v53  ;;  %v1013_v62 = vsel %vm1010_vm9, %v13928_v12, %v13929_v14 }
 0x1a4   : > { %v17088_v8 = vpop.permute.xlu1 %13941  ;;  %v13937_v58 = vpop.permute.xlu0 %13936  ;;  %v1151_v21 = vsel %vm1150_vm12, %v1141_v59, %v13923_v60  ;;  %v1153_v53 = vsel %vm1150_vm12, %v1143_v11, %v1012_v51 }
 0x1a5   : > { %v13939_v17 = vunpack.i.h.bf16 %v13937_v58  ;;  %v13938_v20 = vunpack.i.l.bf16 %v13937_v58  ;;  %v13943_v32 = vunpack.i.l.bf16 %v17088_v8  ;;  %v13944_v56 = vunpack.i.h.bf16 %v17088_v8 }
 0x1a6   : > { %v978_v8 = vsel %vm974_vm8, %v13914_v13, %v13918_v41 }
 0x1a7   : > { %v1047_v36 = vsel %vm1046_vm10, %v13938_v20, %v13939_v17  ;;  %v1048_v15 = vsel %vm1046_vm10, %v13939_v17, %v13943_v32  ;;  %v1014_v17 = vsel %vm1010_vm9, %v13929_v14, %v13933_v38  ;;  %v1161_v23 = vsel %vm1160_vm14, %v1151_v21, %v13938_v20 }
 0x1a8   : > { %v13952_v33 = vpop.permute.xlu1 %13951  ;;  %v17105_v35 = vpop.permute.xlu0 %13946  ;;  %v1162_v48 = vsel %vm1160_vm14, %v1152_v46, %v1047_v36  ;;  %v1163_v28 = vsel %vm1160_vm14, %v1153_v53, %v1048_v15  ;;  %v1049_v60 = vsel %vm1046_vm10, %v13943_v32, %v13944_v56  ;;  %v1145_v12 = vsel %vm1140_vm11, %v1135_v29, %v978_v8 }
 0x1a9   : > { %v13954_v42 = vunpack.i.h.bf16 %v13952_v33  ;;  %v13953_v43 = vunpack.i.l.bf16 %v13952_v33  ;;  %v13948_v61 = vunpack.i.l.bf16 %v17105_v35  ;;  %v13904_v8 = vunpack.i.h.bf16 %v17011_v47 }
 0x1aa   : > { %v13934_v21 = vunpack.i.h.bf16 %v17066_v44  ;;  %v13949_v34 = vunpack.i.h.bf16 %v17105_v35 }
 0x1ab   : > { %v1083_v52 = vsel %vm1082_vm13, %v13953_v43, %v13954_v42  ;;  %v1170_v33 = vpack.c.bf16 %v13953_v43, %v1161_v23  ;;  %v1050_v57 = vsel %vm1046_vm10, %v13944_v56, %v13948_v61  ;;  %v1155_v43 = vsel %vm1150_vm12, %v1145_v12, %v1014_v17 }
 0x1ac   : > { %v17120_v63 = vpop.permute.xlu1 %1072  ;;  %v13957_v45 = vpop.permute.xlu0 %13956  ;;  %v1171_v58 = vpack.c.bf16 %v1083_v52, %v1162_v48  ;;  %v1165_v51 = vsel %vm1160_vm14, %v1155_v43, %v1050_v57  ;;  %v13919_v17 = vunpack.i.h.bf16 %v17047_v9  ;;  %v1051_v47 = vsel %vm1046_vm10, %v13948_v61, %v13949_v34 }
 0x1ad   : > { %v13959_v0 = vunpack.i.h.bf16 %v13957_v45  ;;  %v13958_v16 = vunpack.i.l.bf16 %v13957_v45 }
 0x1ae   : > { %1195 = vrot.lane.b32.xlu1 %v1171_v58, %s16521_s26 }
 0x1af   : > { %v1084_v26 = vsel %vm1082_vm13, %v13954_v42, %v13958_v16  ;;  %v1086_v46 = vsel %vm1082_vm13, %v13959_v0, %v17120_v63  ;;  %v1085_v20 = vsel %vm1082_vm13, %v13958_v16, %v13959_v0  ;;  %v1144_v42 = vsel %vm1140_vm11, %v1134_v27, %v977_v49 }
 0x1b0   : > { %v828_v13 = vpop.permute.xlu1 %827  ;;  %v13962_v31 = vpop.permute.xlu0 %13961  ;;  %v1172_v36 = vpack.c.bf16 %v1084_v26, %v1163_v28  ;;  %v1154_v14 = vsel %vm1150_vm12, %v1144_v42, %v1013_v62  ;;  %v1174_v56 = vpack.c.bf16 %v1086_v46, %v1165_v51  ;;  %v940_v28 = vsel %vm935_vm6, %v13903_v50, %v13904_v8 }
 0x1b1   : > { %v1164_v32 = vsel %vm1160_vm14, %v1154_v14, %v1049_v60  ;;  %v13963_v45 = vunpack.i.l.bf16 %v13962_v31  ;;  %v13964_v16 = vunpack.i.h.bf16 %v13962_v31  ;;  %v1015_v31 = vsel %vm1010_vm9, %v13933_v38, %v13934_v21 }
 0x1b2   : > { %1193 = vrot.lane.b32.xlu1 %v1170_v33, %s16521_s26  ;;  %1197 = vrot.lane.b32.xlu0 %v1172_v36, %s16521_s26  ;;  %v1173_v29 = vpack.c.bf16 %v1085_v20, %v1164_v32  ;;  %v1109_v9 = vsel %vm1100_vm2, %v16968_v25, %v828_v13 }
 0x1b3   : > { %v835_v15 = vsel %vm829_vm0, %v13859_v40, %v13963_v45  ;;  %v836_v33 = vsel %vm829_vm0, %v13963_v45, %v13964_v16 }
 0x1b4   : > { %v864_v52 = vpop.permute.xlu1 %863  ;;  %v13967_v48 = vpop.permute.xlu0 %13966  ;;  %v1106_v30 = vsel %vm1100_vm2, %v16910_v10, %v835_v15  ;;  %v979_v10 = vsel %vm974_vm8, %v13918_v41, %v13919_v17  ;;  %v1107_v12 = vsel %vm1100_vm2, %v16941_v19, %v836_v33 }
 0x1b5   : > { %v13968_v58 = vunpack.i.l.bf16 %v13967_v48  ;;  %v13969_v62 = vunpack.i.h.bf16 %v13967_v48  ;;  %v1119_v51 = vsel %vm1110_vm3, %v1109_v9, %v864_v52 }
 0x1b6   : > { %1201 = vrot.lane.b32.xlu1 %v1174_v56, %s16521_s26  ;;  %1199 = vrot.lane.b32.xlu0 %v1173_v29, %s16521_s26 }
 0x1b7   : > { %v871_v0 = vsel %vm865_vm1, %v13874_v54, %v13968_v58  ;;  %v872_v60 = vsel %vm865_vm1, %v13968_v58, %v13969_v62  ;;  %v873_v20 = vsel %vm865_vm1, %v13969_v62, %v864_v52 }
 0x1b8   : > { %v900_v27 = vpop.permute.xlu1 %899  ;;  %v13972_v49 = vpop.permute.xlu0 %13971  ;;  %v1116_v54 = vsel %vm1110_vm3, %v1106_v30, %v871_v0  ;;  %v1117_v61 = vsel %vm1110_vm3, %v1107_v12, %v872_v60 }
 0x1b9   : > { %v13973_v59 = vunpack.i.l.bf16 %v13972_v49  ;;  %v13974_v23 = vunpack.i.h.bf16 %v13972_v49  ;;  %v1129_v49 = vsel %vm1120_vm5, %v1119_v51, %v900_v27 }
 0x1bb   : > { %v907_v11 = vsel %vm901_vm4, %v13889_v37, %v13973_v59  ;;  %v837_v37 = vsel %vm829_vm0, %v13964_v16, %v828_v13  ;;  %v908_v41 = vsel %vm901_vm4, %v13973_v59, %v13974_v23  ;;  %v909_v43 = vsel %vm901_vm4, %v13974_v23, %v900_v27 }
 0x1bc   : > { %v13982_v40 = vpop.permute.xlu1 %13981  ;;  %v13977_v53 = vpop.permute.xlu0 %13976  ;;  %v1126_v39 = vsel %vm1120_vm5, %v1116_v54, %v907_v11  ;;  %v1108_v44 = vsel %vm1100_vm2, %v16965_v24, %v837_v37  ;;  %v1127_v32 = vsel %vm1120_vm5, %v1117_v61, %v908_v41  ;;  %v762_v61 = vld [vmem:[%s20084_s4] sm:$0xf]  ;;  %vm1220_vm2 = vcmask 72704   ;;  %s20128_s4 = sld [smem:[#allocation52_spill]] }
 0x1bd   : > { %v13978_v26 = vunpack.i.l.bf16 %v13977_v53  ;;  %v13979_v46 = vunpack.i.h.bf16 %v13977_v53  ;;  %v1136_v50 = vsel %vm1130_vm7, %v1126_v39, %v940_v28  ;;  %v13983_v38 = vunpack.i.l.bf16 %v13982_v40 }
 0x1be   : > { %v13984_v14 = vunpack.i.h.bf16 %v13982_v40  ;;  %v1146_v24 = vsel %vm1140_vm11, %v1136_v50, %v979_v10  ;;  %v1118_v56 = vsel %vm1110_vm3, %v1108_v44, %v873_v20 }
 0x1bf   : > { %v941_v35 = vsel %vm935_vm6, %v13904_v8, %v13978_v26  ;;  %v942_v19 = vsel %vm935_vm6, %v13978_v26, %v13979_v46  ;;  %v980_v29 = vsel %vm974_vm8, %v13919_v17, %v13983_v38  ;;  %v1128_v15 = vsel %vm1120_vm5, %v1118_v56, %v909_v43  ;;  %v763_v43 = vld [vmem:[%s20085_s29] sm:$0xf] }
 0x1c0   : > { %v13987_v36 = vpop.permute.xlu1 %13986  ;;  %v973_v57 = vpop.permute.xlu0 %972  ;;  %v1137_v45 = vsel %vm1130_vm7, %v1127_v32, %v941_v35  ;;  %v1156_v52 = vsel %vm1150_vm12, %v1146_v24, %v1015_v31  ;;  %v981_v0 = vsel %vm974_vm8, %v13983_v38, %v13984_v14  ;;  %v1138_v16 = vsel %vm1130_vm7, %v1128_v15, %v942_v19 }
 0x1c1   : > { %v13988_v42 = vunpack.i.l.bf16 %v13987_v36  ;;  %v13989_v58 = vunpack.i.h.bf16 %v13987_v36  ;;  %v1139_v40 = vsel %vm1130_vm7, %v1129_v49, %v13979_v46  ;;  %v1147_v27 = vsel %vm1140_vm11, %v1137_v45, %v980_v29  ;;  %v760_v45 = vld [vmem:[#allocation5] sm:$0x3] }
 0x1c2   : > { %v1166_v39 = vsel %vm1160_vm14, %v1156_v52, %v1051_v47  ;;  %v1148_v50 = vsel %vm1140_vm11, %v1138_v16, %v981_v0  ;;  %vm1985_vm5 = vcmask 293888  }
 0x1c3   : > { %v1016_v59 = vsel %vm1010_vm9, %v13934_v21, %v13988_v42  ;;  %v1017_v54 = vsel %vm1010_vm9, %v13988_v42, %v13989_v58  ;;  %v982_v21 = vsel %vm974_vm8, %v13984_v14, %v973_v57  ;;  %v761_v42 = vld [vmem:[%s20083_s13] sm:$0xf] }
 0x1c4   : > { %v13992_v25 = vpop.permute.xlu1 %13991  ;;  %v1009_v13 = vpop.permute.xlu0 %1008  ;;  %v1157_v23 = vsel %vm1150_vm12, %v1147_v27, %v1016_v59  ;;  %v1149_v60 = vsel %vm1140_vm11, %v1139_v40, %v982_v21 }
 0x1c5   : > { %v13993_v48 = vunpack.i.l.bf16 %v13992_v25  ;;  %v13994_v11 = vunpack.i.h.bf16 %v13992_v25  ;;  %v1018_v37 = vsel %vm1010_vm9, %v13989_v58, %v1009_v13  ;;  %v16522_v25 = vmov 65535  }
 0x1c6   : > { %v1159_v9 = vsel %vm1150_vm12, %v1149_v60, %v1018_v37  ;;  %v1224_v13 = vsel %vm1130_vm7, 4294967295, %v16522_v25 }
 0x1c7   : > { %v1052_v17 = vsel %vm1046_vm10, %v13949_v34, %v13993_v48  ;;  %v1053_v57 = vsel %vm1046_vm10, %v13993_v48, %v13994_v11  ;;  %v1225_v24 = vsel %vm1140_vm11, %v1224_v13, 0 }
 0x1c8   : > { %v13997_v8 = vpop.permute.xlu1 %13996  ;;  %v1045_v30 = vpop.permute.xlu0 %1044  ;;  %v1167_v34 = vsel %vm1160_vm14, %v1157_v23, %v1052_v17 }
 0x1c9   : > { %v13999_v53 = vunpack.i.h.bf16 %v13997_v8  ;;  %v13998_v62 = vunpack.i.l.bf16 %v13997_v8  ;;  %v1054_v10 = vsel %vm1046_vm10, %v13994_v11, %v1045_v30 }
 0x1ca   : > { %v1169_v44 = vsel %vm1160_vm14, %v1159_v9, %v1054_v10  ;;  %v17273_v10 = vld [vmem:[#allocation2] sm:$0xff] }
 0x1cb   : > { %v1088_v26 = vsel %vm1082_vm13, %v13998_v62, %v13999_v53  ;;  %v1087_v28 = vsel %vm1082_vm13, %v17120_v63, %v13998_v62  ;;  %v1158_v63 = vsel %vm1150_vm12, %v1148_v50, %v1017_v54 }
 0x1cc   : > { %v14002_v31 = vpop.permute.xlu0 %14001  ;;  %v1176_v33 = vpack.c.bf16 %v1088_v26, %v1167_v34  ;;  %v1175_v36 = vpack.c.bf16 %v1087_v28, %v1166_v39  ;;  %v1168_v12 = vsel %vm1160_vm14, %v1158_v63, %v1053_v57 }
 0x1cd   : > { %v14004_v46 = vunpack.i.h.bf16 %v14002_v31  ;;  %v14003_v47 = vunpack.i.l.bf16 %v14002_v31 }
 0x1ce   : > { %1205 = vrot.lane.b32.xlu1 %v1176_v33, %s16521_s26  ;;  %1203 = vrot.lane.b32.xlu0 %v1175_v36, %s16521_s26 }
 0x1cf   : > { %v1090_v41 = vsel %vm1082_vm13, %v14003_v47, %v14004_v46  ;;  %v1089_v38 = vsel %vm1082_vm13, %v13999_v53, %v14003_v47  ;;  %v17278_v47 = vrot.slane %v17273_v10, %v16893_v6 }
 0x1d0   : > { %v1178_v20 = vpack.c.bf16 %v1090_v41, %v1169_v44  ;;  %v1177_v35 = vpack.c.bf16 %v1089_v38, %v1168_v12  ;;  %v17288_v12 = vrot.slane %v17273_v10, %v16887_v4 }
 0x1d1   : > { %20086 = vst [vmem:[#allocation36_spill] sm:$0xff] %v17278_v47 }
 0x1d2   : > { %1209 = vrot.lane.b32.xlu1 %v1178_v20, %s16521_s26  ;;  %1207 = vrot.lane.b32.xlu0 %v1177_v35, %s16521_s26  ;;  %20087 = vst [vmem:[#allocation37_spill] sm:$0xff] %v17288_v12 }
 0x1d6   : > { %1181 = vperm.xlu0 %14005, %v761_v42   ;;  %1424 = vperm.xlu1 %14006, %v762_v61  }
 0x1da   : > { %1437 = vperm.xlu1 %14006, %v763_v43  }
 0x220   : > { %v1196_v14 = vpop.permute.xlu1 %1195 }
 0x224   : > { %v1194_v51 = vpop.permute.xlu1 %1193  ;;  %v1198_v32 = vpop.permute.xlu0 %1197 }
 0x225   : > { %v1212_v19 = vsel %vm1211_vm15, %v1194_v51, %v1196_v14  ;;  %v1213_v48 = vsel %vm1211_vm15, %v1196_v14, %v1198_v32 }
 0x226   : > { %v1230_v56 = vand.u32 %v1225_v24, %v1213_v48  ;;  %v1227_v29 = vand.u32 %v1225_v24, %v1212_v19 }
 0x228   : > { %v1202_v58 = vpop.permute.xlu1 %1201  ;;  %1250 = vmatprep.subr.bf16.mxu0 %v1230_v56  ;;  %v1200_v49 = vpop.permute.xlu0 %1199 }
 0x229   : > { %1251 = vmatpush1.bf16.msra.mxu0 %v1227_v29  ;;  %v1215_v15 = vsel %vm1211_vm15, %v1200_v49, %v1202_v58  ;;  %v1214_v59 = vsel %vm1211_vm15, %v1198_v32, %v1200_v49  ;;  %v19972_v29 = vmov 0.0   ;;  %v17316_v49 = vrot.slane %v17273_v10, %v16896_v7 }
 0x22a   : > { %v1236_v52 = vand.u32 %v1225_v24, %v1215_v15  ;;  %v1233_v0 = vand.u32 %v1225_v24, %v1214_v59 }
 0x22b   : > { %20089 = vst [vmem:[#allocation39_spill] sm:$0xff] %v17316_v49 }
 0x22c   : > { %12481 = vmatmul.mubr.msk.bf16.vlgmr.msra.gmra.mrb[0].mxu0 %vm1220_vm2, %v760_v45  ;;  %1291 = vmatprep.subr.bf16.mxu1 %v1236_v52 }
 0x22d   : > { %1292 = vmatpush1.bf16.msra.mxu1 %v1233_v0  ;;  %1364 = vmatprep.mubr.bf16.mxu0 %v19974_v55 }
 0x230   : > { %12482 = vmatmul.mubr.msk.bf16.vlgmr.msra.gmra.mrb[0].mxu1 %vm1220_vm2, %v760_v45 }
 0x231   : > { %1405 = vmatprep.mubr.bf16.mxu1 %v19974_v55 }
 0x240   : > { %v1206_v16 = vpop.permute.xlu1 %1205  ;;  %v1204_v11 = vpop.permute.xlu0 %1203 }
 0x241   : > { %v1216_v8 = vsel %vm1211_vm15, %v1202_v58, %v1204_v11  ;;  %v1217_v30 = vsel %vm1211_vm15, %v1204_v11, %v1206_v16 }
 0x242   : > { %v1239_v17 = vand.u32 %v1225_v24, %v1216_v8  ;;  %v1242_v40 = vand.u32 %v1225_v24, %v1217_v30 }
 0x244   : > { %v1210_v53 = vpop.permute.xlu1 %1209  ;;  %1332 = vmatprep.subr.bf16.mxu0 %v1242_v40  ;;  %v1208_v62 = vpop.permute.xlu0 %1207 }
 0x245   : > { %v1218_v27 = vsel %vm1211_vm15, %v1206_v16, %v1208_v62  ;;  %v1219_v54 = vsel %vm1211_vm15, %v1208_v62, %v1210_v53  ;;  %1333 = vmatpush1.bf16.msra.mxu0 %v1239_v17  ;;  %v17333_v16 = vrot.slane %v19972_v29, 4 }
 0x246   : > { %v1245_v21 = vand.u32 %v1225_v24, %v1218_v27  ;;  %v1248_v23 = vand.u32 %v1225_v24, %v1219_v54  ;;  %v17298_v24 = vrot.slane %v17273_v10, %v16890_v5 }
 0x248   : > { %12483 = vmatmul.mubr.msk.bf16.vlgmr.msra.gmra.mrb[4].mxu0 %vm1220_vm2, %v760_v45  ;;  %1373 = vmatprep.subr.bf16.mxu1 %v1248_v23  ;;  %20088 = vst [vmem:[#allocation38_spill] sm:$0xff] %v17298_v24 }
 0x249   : > { %1374 = vmatpush1.bf16.msra.mxu1 %v1245_v21  ;;  %2045 = vmatprep.mubr.bf16.mxu0 %v19974_v55 }
 0x24c   : > { %12484 = vmatmul.mubr.msk.bf16.vlgmr.msra.gmra.mrb[4].mxu1 %vm1220_vm2, %v760_v45 }
 0x24d   : > { %2086 = vmatprep.mubr.bf16.mxu1 %v19974_v55 }
 0x255   : > { %v17268_v39 = vpop.permute.xlu0 %1181  ;;  %v17270_v26 = vpop.permute.xlu1 %1424 }
 0x259   : > { %v17284_v38 = vpop.permute.xlu1 %1437 }
 0x2ff   : > { %v1284_v37 = vpop.f32.mrb[0].mxu0 }
 0x300   : > { %v1286_v34 = vpop.f32.mrb[1].mxu0  ;;  %v1285_v28 = vadd.f32 %v1284_v37, %v17268_v39 }
 0x301   : > { %v1287_v31 = vadd.f32 %v1286_v34, %v17268_v39  ;;  %v1288_v33 = vpop.f32.mrb[2].mxu0 }
 0x302   : > { %v1414_v36 = vmax.f32 %v1285_v28, 0.0  ;;  %v1289_v57 = vpop.f32.mrb[3].mxu0 }
 0x303   : > { %v1415_v60 = vmax.f32 %v1287_v31, 0.0  ;;  %v1325_v46 = vpop.f32.mrb[0].mxu1 }
 0x304   : > { %v1427_v50 = vmul.f32 %v17270_v26, %v1414_v36  ;;  %v1326_v9 = vadd.f32 %v1325_v46, %v17268_v39  ;;  %v1327_v63 = vpop.f32.mrb[1].mxu1 }
 0x305   : > { %v1428_v44 = vmul.f32 %v17270_v26, %v1415_v60  ;;  %v1328_v41 = vadd.f32 %v1327_v63, %v17268_v39  ;;  %v1329_v20 = vpop.f32.mrb[2].mxu1 }
 0x306   : > { %v1416_v35 = vmax.f32 %v1326_v9, 0.0  ;;  %v1440_v42 = vadd.f32 %v17284_v38, %v1427_v50  ;;  %v1330_v61 = vpop.f32.mrb[3].mxu1  ;;  %v17351_v9 = vrot.slane %v17273_v10, %v788_v3  ;;  %v17365_v20 = vrot.slane %v17273_v10, %v784_v2 }
 0x307   : > { %v1417_v43 = vmax.f32 %v1328_v41, 0.0  ;;  %v1441_v14 = vadd.f32 %v17284_v38, %v1428_v44  ;;  %v17357_v44 = vrot.slane %v17273_v10, %v792_v18 }
 0x308   : > { %v1429_v25 = vmul.f32 %v17270_v26, %v1416_v35  ;;  %v17294_v13 = vmul.f32 %v17278_v47, %v1440_v42  ;;  %20090 = vst [vmem:[#allocation40_spill] sm:$0xff] %v17365_v20 }
 0x309   : > { %v17301_v51 = vmul.f32 %v17288_v12, %v1441_v14  ;;  %v1430_v32 = vmul.f32 %v17270_v26, %v1417_v43 }
 0x30a   : > { %v1442_v19 = vadd.f32 %v17284_v38, %v1429_v25  ;;  %v1511_v52 = vrot.slane %v17294_v13, 4 }
 0x30b   : > { %v14012_v48 = vpack.i.bf16 %v17301_v51, %v17294_v13  ;;  %v1443_v58 = vadd.f32 %v17284_v38, %v1430_v32  ;;  %v1512_v0 = vrot.slane %v17301_v51, 4 }
 0x30c   : > { %v17308_v56 = vmul.f32 %v17298_v24, %v1442_v19 }
 0x30d   : > { %14013 = vrot.lane.b32.xlu0 %v14012_v48, %s16513_s19  ;;  %v17321_v15 = vmul.f32 %v17316_v49, %v1443_v58  ;;  %v14052_v30 = vpack.i.bf16 %v1512_v0, %v1511_v52 }
 0x30e   : > { %v14007_v45 = vpack.i.bf16 %v19972_v29, %v17308_v56  ;;  %v1513_v11 = vrot.slane %v17308_v56, 4 }
 0x30f   : > { %v14022_v59 = vpack.i.bf16 %v17321_v15, %v17308_v56  ;;  %v1514_v46 = vrot.slane %v17321_v15, 4 }
 0x310   : > { %14008 = vrot.lane.b32.xlu1 %v14007_v45, %s16513_s19  ;;  %v14042_v54 = vpack.i.bf16 %v17333_v16, %v1513_v11 }
 0x311   : > { %14018 = vrot.lane.b32.xlu0 %v14012_v48, %s16515_s25  ;;  %v14067_v35 = vpack.i.bf16 %v1514_v46, %v1513_v11  ;;  %v17410_v11 = vrot.slane %v17273_v10, %v796_v22 }
 0x314   : > { %1765 = vrot.lane.b32.xlu1 %v17308_v56, %s16519_s2 }
 0x315   : > { %14028 = vrot.lane.b32.xlu0 %v14012_v48, %s16517_s5 }
 0x318   : > { %14023 = vrot.lane.b32.xlu1 %v14022_v59, %s16515_s25 }
 0x319   : > { %14038 = vrot.lane.b32.xlu0 %v14012_v48, %s16519_s2 }
 0x31b   : > { %v1366_v8 = vpop.f32.mrb[4].mxu0 }
 0x31c   : > { %v1367_v17 = vadd.f32 %v1366_v8, %v17268_v39  ;;  %v1368_v40 = vpop.f32.mrb[5].mxu0  ;;  %14033 = vrot.lane.b32.xlu1 %v14022_v59, %s16517_s5 }
 0x31d   : > { %v1369_v53 = vadd.f32 %v1368_v40, %v17268_v39  ;;  %14053 = vrot.lane.b32.xlu0 %v14052_v30, %s16512_s21  ;;  %v1370_v62 = vpop.f32.mrb[6].mxu0 }
 0x31e   : > { %v1418_v27 = vmax.f32 %v1367_v17, 0.0  ;;  %v1371_v21 = vpop.f32.mrb[7].mxu0 }
 0x31f   : > { %v1419_v23 = vmax.f32 %v1369_v53, 0.0  ;;  %v1407_v37 = vpop.f32.mrb[4].mxu1 }
 0x320   : > { %v1408_v34 = vadd.f32 %v1407_v37, %v17268_v39  ;;  %v1409_v28 = vpop.f32.mrb[5].mxu1  ;;  %14043 = vrot.lane.b32.xlu1 %v14042_v54, %s16512_s21  ;;  %v1431_v36 = vmul.f32 %v17270_v26, %v1418_v27 }
 0x321   : > { %v1432_v31 = vmul.f32 %v17270_v26, %v1419_v23  ;;  %14058 = vrot.lane.b32.xlu0 %v14052_v30, %s16514_s1  ;;  %v1411_v33 = vpop.f32.mrb[6].mxu1  ;;  %v1410_v58 = vadd.f32 %v1409_v28, %v17268_v39 }
 0x322   : > { %v1420_v57 = vmax.f32 %v1408_v34, 0.0  ;;  %v1412_v60 = vpop.f32.mrb[7].mxu1  ;;  %v1444_v41 = vadd.f32 %v17284_v38, %v1431_v36 }
 0x323   : > { %v1445_v50 = vadd.f32 %v17284_v38, %v1432_v31  ;;  %v1421_v59 = vmax.f32 %v1410_v58, 0.0 }
 0x324   : > { %v1433_v63 = vmul.f32 %v17270_v26, %v1420_v57  ;;  %14048 = vrot.lane.b32.xlu1 %v14042_v54, %s16514_s1  ;;  %v17377_v61 = vmul.f32 %v17365_v20, %v1444_v41 }
 0x325   : > { %14063 = vrot.lane.b32.xlu0 %v14052_v30, %s16516_s22  ;;  %v17369_v42 = vmul.f32 %v17351_v9, %v1445_v50  ;;  %v1434_v0 = vmul.f32 %v17270_v26, %v1421_v59 }
 0x326   : > { %v1446_v3 = vadd.f32 %v17284_v38, %v1433_v63  ;;  %v14082_v43 = vpack.i.bf16 %v17377_v61, %v17321_v15  ;;  %v1515_v32 = vrot.slane %v17377_v61, 4 }
 0x327   : > { %v14092_v14 = vpack.i.bf16 %v17369_v42, %v17377_v61  ;;  %v1516_v19 = vrot.slane %v17369_v42, 4  ;;  %v1447_v39 = vadd.f32 %v17284_v38, %v1434_v0 }
 0x328   : > { %v17372_v18 = vmul.f32 %v17357_v44, %v1446_v3  ;;  %14068 = vrot.lane.b32.xlu1 %v14067_v35, %s16516_s22  ;;  %v14102_v45 = vpack.i.bf16 %v1515_v32, %v1514_v46 }
 0x329   : > { %14073 = vrot.lane.b32.xlu0 %v14052_v30, %s16518_s30  ;;  %v14122_v52 = vpack.i.bf16 %v1516_v19, %v1515_v32  ;;  %v17415_v8 = vmul.f32 %v17410_v11, %v1447_v39 }
 0x32a   : > { %v14087_v2 = vpack.i.bf16 %v17372_v18, %v17369_v42  ;;  %v1517_v25 = vrot.slane %v17372_v18, 4 }
 0x32b   : > { %v1518_v26 = vrot.slane %v17415_v8, 4  ;;  %v17426_v22 = vpack.i.bf16 %v19972_v29, %v17415_v8 }
 0x32c   : > { %14078 = vrot.lane.b32.xlu1 %v14067_v35, %s16518_s30  ;;  %v14112_v48 = vpack.i.bf16 %v1517_v25, %v1516_v19 }
 0x32d   : > { %14088 = vrot.lane.b32.xlu0 %v14087_v2, %s16513_s19  ;;  %v14147_v10 = vpack.i.bf16 %v17333_v16, %v1518_v26 }
 0x330   : > { %14083 = vrot.lane.b32.xlu1 %v14082_v43, %s16513_s19 }
 0x331   : > { %14093 = vrot.lane.b32.xlu0 %v14092_v14, %s16515_s25 }
 0x334   : > { %1668 = vrot.lane.b32.xlu1 %v1517_v25, %s16516_s22 }
 0x335   : > { %14098 = vrot.lane.b32.xlu0 %v14092_v14, %s16517_s5 }
 0x338   : > { %14113 = vrot.lane.b32.xlu1 %v14112_v48, %s16512_s21 }
 0x339   : > { %14103 = vrot.lane.b32.xlu0 %v14102_v45, %s16512_s21 }
 0x33c   : > { %14118 = vrot.lane.b32.xlu1 %v14112_v48, %s16514_s1 }
 0x33d   : > { %14108 = vrot.lane.b32.xlu0 %v14102_v45, %s16514_s1 }
 0x340   : > { %14123 = vrot.lane.b32.xlu1 %v14122_v52, %s16516_s22 }
 0x341   : > { %1636 = vrot.lane.b32.xlu0 %v17372_v18, %s16515_s25 }
 0x344   : > { %14128 = vrot.lane.b32.xlu1 %v14122_v52, %s16518_s30 }
 0x345   : > { %1703 = vrot.lane.b32.xlu0 %v17372_v18, %s16517_s5 }
 0x348   : > { %1738 = vrot.lane.b32.xlu1 %v1517_v25, %s16518_s30 }
 0x349   : > { %14133 = vrot.lane.b32.xlu0 %v14082_v43, %s16519_s2 }
 0x34c   : > { %14138 = vrot.lane.b32.xlu1 %v14087_v2, %s16519_s2 }
 0x34d   : > { %1570 = vrot.lane.b32.xlu0 %v17415_v8, %s16513_s19 }
 0x350   : > { %1535 = vrot.lane.b32.xlu1 %v1518_v26, %s16512_s21 }
 0x351   : > { %1638 = vrot.lane.b32.xlu0 %v17415_v8, %s16515_s25 }
 0x354   : > { %1605 = vrot.lane.b32.xlu1 %v1518_v26, %s16514_s1 }
 0x355   : > { %14143 = vrot.lane.b32.xlu0 %v17426_v22, %s16517_s5 }
 0x358   : > { %14148 = vrot.lane.b32.xlu1 %v14147_v10, %s16516_s22 }
 0x35c   : > { %14153 = vrot.lane.b32.xlu1 %v14147_v10, %s16518_s30 }
 0x37f   : > { %v17434_v38 = vpop.permute.xlu0 %14013 }
 0x380   : > { %v14016_v14 = vunpack.i.h.bf16 %v17434_v38 }
 0x382   : > { %v17436_v30 = vpop.permute.xlu1 %14008 }
 0x383   : > { %v17438_v17 = vpop.permute.xlu0 %14018  ;;  %v14010_v63 = vunpack.i.l.bf16 %v17436_v30 }
 0x384   : > { %v14020_v25 = vunpack.i.l.bf16 %v17438_v17 }
 0x385   : > { %v1574_v39 = vsel %vm865_vm1, %v14016_v14, %v14010_v63 }
 0x386   : > { %v17440_v40 = vpop.permute.xlu1 %1765 }
 0x387   : > { %v17442_v53 = vpop.permute.xlu0 %14028 }
 0x388   : > { %v14030_v32 = vunpack.i.l.bf16 %v17442_v53  ;;  %v19982_v26 = vunpack.i.h.bf16 %v17442_v53  ;;  %v20101_v1 = vunpack.i.h.bf16 %v17442_v53 }
 0x38a   : > { %v17444_v62 = vpop.permute.xlu1 %14023 }
 0x38b   : > { %v14039_v27 = vpop.permute.xlu0 %14038 }
 0x38c   : > { %v14041_v54 = vunpack.i.h.bf16 %v14039_v27  ;;  %v14040_v21 = vunpack.i.l.bf16 %v14039_v27 }
 0x38e   : > { %v17446_v16 = vpop.permute.xlu1 %14033  ;;  %v1850_v23 = vpack.c.bf16 %v14040_v21, %v14040_v21  ;;  %v1779_v37 = vsel %vm1082_vm13, %v14040_v21, %v14041_v54  ;;  %v1780_v31 = vsel %vm1082_vm13, %v14041_v54, %v17440_v40 }
 0x38f   : > { %v17449_v34 = vpop.permute.xlu0 %14053  ;;  %v1851_v28 = vpack.c.bf16 %v1779_v37, %v1779_v37  ;;  %v1852_v36 = vpack.c.bf16 %v1780_v31, %v1780_v31  ;;  %v19976_v37 = vunpack.i.h.bf16 %v17438_v17 }
 0x390   : > { %1927 = vrot.lane.b32.xlu0 %v1850_v23, %s16521_s26  ;;  %v14056_v48 = vunpack.i.h.bf16 %v17449_v34 }
 0x391   : > { %1929 = vrot.lane.b32.xlu1 %v1851_v28, %s16521_s26 }
 0x392   : > { %v17455_v33 = vpop.permute.xlu1 %14043 }
 0x393   : > { %v17457_v57 = vpop.permute.xlu0 %14058  ;;  %v14045_v35 = vunpack.i.l.bf16 %v17455_v33 }
 0x394   : > { %1931 = vrot.lane.b32.xlu0 %v1852_v36, %s16521_s26  ;;  %v14061_v2 = vunpack.i.h.bf16 %v17457_v57 }
 0x395   : > { %v1539_v21 = vsel %vm829_vm0, %v14056_v48, %v14045_v35 }
 0x396   : > { %v17460_v60 = vpop.permute.xlu1 %14048  ;;  %v1798_v36 = vsel %vm1130_vm7, %v17301_v51, %v1539_v21 }
 0x397   : > { %v17462_v46 = vpop.permute.xlu0 %14063  ;;  %v14050_v50 = vunpack.i.l.bf16 %v17460_v60 }
 0x398   : > { %v14065_v41 = vunpack.i.l.bf16 %v17462_v46  ;;  %v19978_v10 = vunpack.i.h.bf16 %v17462_v46  ;;  %v20103_v53 = vunpack.i.h.bf16 %v17462_v46 }
 0x399   : > { %v1609_v58 = vsel %vm901_vm4, %v14061_v2, %v14050_v50 }
 0x39a   : > { %v17467_v3 = vpop.permute.xlu1 %14068  ;;  %v1814_v52 = vsel %vm1130_vm7, %v14020_v25, %v14065_v41  ;;  %v1807_v23 = vsel %vm1130_vm7, %v1574_v39, %v1609_v58  ;;  %v1674_v58 = vsel %vm974_vm8, %v14065_v41, %v19978_v10  ;;  %v14051_v10 = vunpack.i.h.bf16 %v17460_v60 }
 0x39b   : > { %v17471_v43 = vpop.permute.xlu0 %14073  ;;  %v1834_v39 = vpack.c.bf16 %v1807_v23, %v1798_v36 }
 0x39c   : > { %v14075_v19 = vunpack.i.l.bf16 %v17471_v43  ;;  %v19981_v45 = vunpack.i.h.bf16 %v17471_v43 }
 0x39e   : > { %v17482_v59 = vpop.permute.xlu1 %14078  ;;  %v1823_v0 = vsel %vm1130_vm7, %v14030_v32, %v14075_v19  ;;  %v1744_v28 = vsel %vm1046_vm10, %v14075_v19, %v19981_v45 }
 0x39f   : > { %v17489_v27 = vpop.permute.xlu0 %14088  ;;  %v1841_v54 = vpack.c.bf16 %v1823_v0, %v1814_v52  ;;  %v1709_v52 = vsel %vm1010_vm9, %v14030_v32, %v19982_v26 }
 0x3a0   : > { %v1824_v19 = vsel %vm1130_vm7, %v1709_v52, %v1744_v28 }
 0x3a1   : > { %1909 = vrot.lane.b32.xlu1 %v1841_v54, %s16521_s26  ;;  %v1640_v54 = vsel %vm935_vm6, %v14020_v25, %v19976_v37 }
 0x3a2   : > { %v17498_v31 = vpop.permute.xlu1 %14083  ;;  %v1815_v21 = vsel %vm1130_vm7, %v1640_v54, %v1674_v58 }
 0x3a3   : > { %v17508_v0 = vpop.permute.xlu0 %14093  ;;  %v1842_v29 = vpack.c.bf16 %v1824_v19, %v1815_v21  ;;  %v19979_v36 = vunpack.i.l.bf16 %v17498_v31  ;;  %v14055_v21 = vunpack.i.l.bf16 %v17449_v34 }
 0x3a5   : > { %1895 = vrot.lane.b32.xlu1 %v1834_v39, %s16521_s26 }
 0x3a6   : > { %v17515_v51 = vpop.permute.xlu1 %1668 }
 0x3a7   : > { %v17518_v32 = vpop.permute.xlu0 %14098 }
 0x3a9   : > { %1911 = vrot.lane.b32.xlu1 %v1842_v29, %s16521_s26  ;;  %v1575_v29 = vsel %vm865_vm1, %v14010_v63, %v19979_v36  ;;  %v17552_v36 = vunpack.i.h.bf16 %v17436_v30  ;;  %v19989_v30 = vunpack.i.h.bf16 %v17446_v16 }
 0x3aa   : > { %v17521_v41 = vpop.permute.xlu1 %14113 }
 0x3ab   : > { %v17523_v23 = vpop.permute.xlu0 %14103 }
 0x3ac   : > { %v19977_v28 = vunpack.i.l.bf16 %v17523_v23 }
 0x3ae   : > { %v17527_v25 = vpop.permute.xlu1 %14118  ;;  %v1540_v58 = vsel %vm829_vm0, %v14045_v35, %v19977_v28  ;;  %v14015_v28 = vunpack.i.l.bf16 %v17434_v38 }
 0x3af   : > { %v17529_v52 = vpop.permute.xlu0 %14108  ;;  %v1799_v37 = vsel %vm1130_vm7, %v17308_v56, %v1540_v58  ;;  %v1538_v56 = vsel %vm829_vm0, %v14055_v21, %v14056_v48 }
 0x3b0   : > { %v19980_v39 = vunpack.i.l.bf16 %v17529_v52  ;;  %v1573_v60 = vsel %vm865_vm1, %v14015_v28, %v14016_v14  ;;  %v1572_v58 = vsel %vm865_vm1, %v17552_v36, %v14015_v28  ;;  %v17578_v14 = vsel %vm1130_vm7, %v17294_v13, %v1538_v56 }
 0x3b1   : > { %v14071_v13 = vunpack.i.h.bf16 %v17467_v3  ;;  %v20093_v6 = vunpack.i.h.bf16 %v17529_v52 }
 0x3b2   : > { %v1610_v19 = vsel %vm901_vm4, %v14050_v50, %v19980_v39  ;;  %v17541_v54 = vpop.permute.xlu1 %14123  ;;  %v14046_v50 = vunpack.i.h.bf16 %v17455_v33  ;;  %v14060_v39 = vunpack.i.l.bf16 %v17457_v57 }
 0x3b3   : > { %v17544_v55 = vpop.permute.xlu0 %1636  ;;  %v1808_v35 = vsel %vm1130_vm7, %v1575_v29, %v1610_v19 }
 0x3b4   : > { %v1835_v63 = vpack.c.bf16 %v1808_v35, %v1799_v37  ;;  %v1607_v38 = vsel %vm901_vm4, %v14051_v10, %v14060_v39  ;;  %v1537_v35 = vsel %vm829_vm0, %v14046_v50, %v14055_v21  ;;  %v1608_v48 = vsel %vm901_vm4, %v14060_v39, %v14061_v2 }
 0x3b5   : > { %v14081_v10 = vunpack.i.h.bf16 %v17482_v59  ;;  %v1805_v29 = vsel %vm1130_vm7, %v1572_v58, %v1607_v38 }
 0x3b6   : > { %v17556_v34 = vpop.permute.xlu1 %14128  ;;  %1897 = vrot.lane.b32.xlu1 %v1835_v63, %s16521_s26  ;;  %v19988_v63 = vunpack.i.l.bf16 %v17518_v32 }
 0x3b7   : > { %v17559_v45 = vpop.permute.xlu0 %1703  ;;  %v19983_v33 = vunpack.i.l.bf16 %v17556_v34 }
 0x3b8   : > { %v1712_v50 = vsel %vm1010_vm9, %v19989_v30, %v19988_v63  ;;  %v1796_v63 = vsel %vm1130_vm7, 0.0, %v1537_v35  ;;  %v14070_v30 = vunpack.i.l.bf16 %v17467_v3  ;;  %v20097_v35 = vunpack.i.h.bf16 %v17498_v31 }
 0x3b9   : > { %v1747_v37 = vsel %vm1046_vm10, %v14081_v10, %v19983_v33  ;;  %v20091_v33 = vunpack.i.l.bf16 %v17541_v54 }
 0x3ba   : > { %v17570_v19 = vpop.permute.xlu1 %1738  ;;  %v1827_v7 = vsel %vm1130_vm7, %v1712_v50, %v1747_v37  ;;  %v20096_v37 = vunpack.i.l.bf16 %v17489_v27  ;;  %v20099_v50 = vunpack.i.h.bf16 %v17523_v23 }
 0x3bb   : > { %v17583_v26 = vpop.permute.xlu0 %14133  ;;  %v1677_v38 = vsel %vm974_vm8, %v14071_v13, %v20091_v33  ;;  %v14080_v33 = vunpack.i.l.bf16 %v17482_v59  ;;  %v20098_v59 = vunpack.i.l.bf16 %v17521_v41 }
 0x3bc   : > { %v19986_v2 = vunpack.i.h.bf16 %v17583_v26  ;;  %v14135_v39 = vunpack.i.l.bf16 %v17583_v26  ;;  %v1577_v3 = vsel %vm865_vm1, %v20097_v35, %v20096_v37  ;;  %v14025_v37 = vunpack.i.l.bf16 %v17444_v62 }
 0x3bd   : > { %v20100_v35 = vunpack.i.l.bf16 %v17446_v16 }
 0x3be   : > { %v17598_v21 = vpop.permute.xlu1 %14138  ;;  %v1781_v57 = vsel %vm1082_vm13, %v17440_v40, %v14135_v39  ;;  %v1782_v28 = vsel %vm1082_vm13, %v14135_v39, %v19986_v2  ;;  %v20092_v40 = vunpack.i.l.bf16 %v17527_v25 }
 0x3bf   : > { %v1853_v58 = vpack.c.bf16 %v1781_v57, %v1781_v57  ;;  %v1854_v56 = vpack.c.bf16 %v1782_v28, %v1782_v28  ;;  %v17619_v2 = vpop.permute.xlu0 %1570  ;;  %v20094_v28 = vunpack.i.l.bf16 %v17508_v0  ;;  %v20095_v57 = vunpack.i.h.bf16 %v17444_v62 }
 0x3c0   : > { %v1612_v39 = vsel %vm901_vm4, %v20093_v6, %v20092_v40  ;;  %v1806_v6 = vsel %vm1130_vm7, %v1573_v60, %v1608_v48  ;;  %v1542_v40 = vsel %vm829_vm0, %v20099_v50, %v20098_v59  ;;  %v14131_v60 = vunpack.i.h.bf16 %v17556_v34 }
 0x3c1   : > { %v1643_v5 = vsel %vm935_vm6, %v20095_v57, %v20094_v28  ;;  %1933 = vrot.lane.b32.xlu0 %v1853_v58, %s16521_s26  ;;  %1935 = vrot.lane.b32.xlu1 %v1854_v56, %s16521_s26  ;;  %v1832_v28 = vpack.c.bf16 %v1805_v29, %v1796_v63  ;;  %v14126_v56 = vunpack.i.h.bf16 %v17541_v54  ;;  %v1810_v57 = vsel %vm1130_vm7, %v1577_v3, %v1612_v39 }
 0x3c2   : > { %v17643_v4 = vpop.permute.xlu1 %1535  ;;  %v1818_v58 = vsel %vm1130_vm7, %v1643_v5, %v1677_v38  ;;  %v1710_v59 = vsel %vm1010_vm9, %v20101_v1, %v20100_v35  ;;  %v14096_v50 = vunpack.i.h.bf16 %v17508_v0  ;;  %v1833_v5 = vpack.c.bf16 %v1806_v6, %v17578_v14 }
 0x3c3   : > { %v1845_v48 = vpack.c.bf16 %v1827_v7, %v1818_v58  ;;  %v20102_v29 = vunpack.i.h.bf16 %v17471_v43  ;;  %v14101_v7 = vunpack.i.h.bf16 %v17518_v32  ;;  %v1749_v38 = vsel %vm1046_vm10, %v14131_v60, %v17570_v19  ;;  %v17677_v6 = vpop.permute.xlu0 %1638 }
 0x3c4   : > { %v1801_v1 = vsel %vm1130_vm7, %v17377_v61, %v1542_v40  ;;  %v1675_v43 = vsel %vm974_vm8, %v20103_v53, %v14070_v30  ;;  %v1746_v14 = vsel %vm1046_vm10, %v14080_v33, %v14081_v10  ;;  %v1645_v39 = vsel %vm935_vm6, %v14096_v50, %v17544_v55 }
 0x3c5   : > { %v1745_v63 = vsel %vm1046_vm10, %v20102_v29, %v14080_v33  ;;  %1917 = vrot.lane.b32.xlu1 %v1845_v48, %s16521_s26  ;;  %1891 = vrot.lane.b32.xlu0 %v1832_v28, %s16521_s26  ;;  %v1837_v58 = vpack.c.bf16 %v1810_v57, %v1801_v1  ;;  %v1679_v61 = vsel %vm974_vm8, %v14126_v56, %v17515_v51  ;;  %v14141_v10 = vunpack.i.h.bf16 %v17598_v21 }
 0x3c6   : > { %v17679_v3 = vpop.permute.xlu1 %1605  ;;  %v1714_v46 = vsel %vm1010_vm9, %v14101_v7, %v17559_v45  ;;  %v14140_v33 = vunpack.i.l.bf16 %v17598_v21  ;;  %v1825_v28 = vsel %vm1130_vm7, %v1710_v59, %v1745_v63  ;;  %v20104_v48 = vunpack.i.h.bf16 %v17438_v17  ;;  %v1499_v21 = vld [vmem:[%s19940_s8] sm:$0xff] }
 0x3c7   : > { %v1829_v40 = vsel %vm1130_vm7, %v1714_v46, %v1749_v38  ;;  %v20105_v35 = vunpack.i.h.bf16 %v17446_v16  ;;  %v20106_v29 = vunpack.i.l.bf16 %v17446_v16  ;;  %v1676_v53 = vsel %vm974_vm8, %v14070_v30, %v14071_v13 }
 0x3c8   : > { %v1641_v57 = vsel %vm935_vm6, %v20104_v48, %v14025_v37  ;;  %v20107_v38 = vunpack.i.h.bf16 %v17444_v62  ;;  %v1820_v17 = vsel %vm1130_vm7, %v1645_v39, %v1679_v61  ;;  %v14121_v48 = vunpack.i.h.bf16 %v17527_v25 }
 0x3c9   : > { %v1711_v1 = vsel %vm1010_vm9, %v20106_v29, %v20105_v35  ;;  %1901 = vrot.lane.b32.xlu1 %v1837_v58, %s16521_s26  ;;  %1893 = vrot.lane.b32.xlu0 %v1833_v5, %s16521_s26  ;;  %v1816_v46 = vsel %vm1130_vm7, %v1641_v57, %v1675_v43  ;;  %v1847_v35 = vpack.c.bf16 %v1829_v40, %v1820_v17  ;;  %v14091_v13 = vunpack.i.h.bf16 %v17489_v27 }
 0x3ca   : > { %v1642_v59 = vsel %vm935_vm6, %v14025_v37, %v20107_v38  ;;  %v17708_v63 = vpop.permute.xlu1 %14148  ;;  %v1826_v16 = vsel %vm1130_vm7, %v1711_v1, %v1746_v14  ;;  %v1843_v30 = vpack.c.bf16 %v1825_v28, %v1816_v46  ;;  %v1784_v62 = vsel %vm1082_vm13, %v14140_v33, %v14141_v10  ;;  %v17719_v37 = vpop.permute.xlu0 %14143 }
 0x3cb   : > { %v1817_v5 = vsel %vm1130_vm7, %v1642_v59, %v1676_v53  ;;  %v14116_v43 = vunpack.i.h.bf16 %v17521_v41  ;;  %v20108_v14 = vunpack.i.h.bf16 %v17529_v52  ;;  %v20109_v39 = vunpack.i.l.bf16 %v17529_v52 }
 0x3cc   : > { %v1614_v61 = vsel %vm901_vm4, %v14121_v48, %v17679_v3  ;;  %v1844_v40 = vpack.c.bf16 %v1826_v16, %v1817_v5  ;;  %v20110_v28 = vunpack.i.h.bf16 %v17498_v31  ;;  %v20111_v57 = vunpack.i.l.bf16 %v17498_v31 }
 0x3cd   : > { %v1611_v58 = vsel %vm901_vm4, %v20109_v39, %v20108_v14  ;;  %1921 = vrot.lane.b32.xlu1 %v1847_v35, %s16521_s26  ;;  %1913 = vrot.lane.b32.xlu0 %v1843_v30, %s16521_s26  ;;  %v20112_v1 = vunpack.i.h.bf16 %v17523_v23  ;;  %v20113_v52 = vunpack.i.l.bf16 %v17523_v23  ;;  %v1579_v38 = vsel %vm865_vm1, %v14091_v13, %v17619_v2 }
 0x3ce   : > { %v1576_v29 = vsel %vm865_vm1, %v20111_v57, %v20110_v28  ;;  %v14154_v59 = vpop.permute.xlu1 %14153  ;;  %v1856_v17 = vpack.c.bf16 %v1784_v62, %v1784_v62  ;;  %v1544_v46 = vsel %vm829_vm0, %v14116_v43, %v17643_v4  ;;  %v14145_v16 = vunpack.i.l.bf16 %v17719_v37 }
 0x3cf   : > { %v1541_v53 = vsel %vm829_vm0, %v20113_v52, %v20112_v1  ;;  %v14150_v31 = vunpack.i.l.bf16 %v17708_v63  ;;  %v14155_v35 = vunpack.i.l.bf16 %v14154_v59  ;;  %v1812_v30 = vsel %vm1130_vm7, %v1579_v38, %v1614_v61 }
 0x3d0   : > { %v1809_v5 = vsel %vm1130_vm7, %v1576_v29, %v1611_v58  ;;  %v20114_v23 = vunpack.i.l.bf16 %v17527_v25  ;;  %v20115_v62 = vunpack.i.l.bf16 %v17489_v27  ;;  %v20116_v57 = vunpack.i.l.bf16 %v17521_v41 }
 0x3d1   : > { %v1750_v39 = vsel %vm1046_vm10, %v17570_v19, %v14155_v35  ;;  %1939 = vrot.lane.b32.xlu1 %v1856_v17, %s16521_s26  ;;  %1915 = vrot.lane.b32.xlu0 %v1844_v40, %s16521_s26  ;;  %v1803_v25 = vsel %vm1130_vm7, %v17372_v18, %v1544_v46  ;;  %v1715_v19 = vsel %vm1010_vm9, %v17559_v45, %v14145_v16  ;;  %v20118_v29 = vunpack.i.l.bf16 %v17518_v32 }
 0x3d2   : > { %v1613_v14 = vsel %vm901_vm4, %v20114_v23, %v14121_v48  ;;  %v1578_v28 = vsel %vm865_vm1, %v20115_v62, %v14091_v13  ;;  %v1543_v61 = vsel %vm829_vm0, %v20116_v57, %v14116_v43  ;;  %v1800_v48 = vsel %vm1130_vm7, %v17321_v15, %v1541_v53 }
 0x3d3   : > { %v1839_v58 = vpack.c.bf16 %v1812_v30, %v1803_v25  ;;  %v1680_v40 = vsel %vm974_vm8, %v17515_v51, %v14150_v31  ;;  %v1836_v27 = vpack.c.bf16 %v1809_v5, %v1800_v48  ;;  %v1830_v13 = vsel %vm1130_vm7, %v1715_v19, %v1750_v39 }
 0x3d4   : > { %v1811_v41 = vsel %vm1130_vm7, %v1578_v28, %v1613_v14  ;;  %v20117_v43 = vunpack.i.l.bf16 %v17556_v34  ;;  %v1646_v15 = vsel %vm935_vm6, %v17544_v55, %v17677_v6  ;;  %v1802_v51 = vsel %vm1130_vm7, %v17369_v42, %v1543_v61 }
 0x3d5   : > { %1905 = vrot.lane.b32.xlu1 %v1839_v58, %s16521_s26  ;;  %1899 = vrot.lane.b32.xlu0 %v1836_v27, %s16521_s26  ;;  %v1821_v45 = vsel %vm1130_vm7, %v1646_v15, %v1680_v40  ;;  %v1713_v34 = vsel %vm1010_vm9, %v20118_v29, %v14101_v7  ;;  %v1838_v52 = vpack.c.bf16 %v1811_v41, %v1802_v51  ;;  %v20120_v42 = vunpack.i.l.bf16 %v17508_v0 }
 0x3d6   : > { %v1748_v18 = vsel %vm1046_vm10, %v20117_v43, %v14131_v60  ;;  %v20119_v60 = vunpack.i.l.bf16 %v17541_v54  ;;  %v1848_v1 = vpack.c.bf16 %v1830_v13, %v1821_v45  ;;  %v20121_v54 = vunpack.i.h.bf16 %v17583_v26  ;;  %v17841_v43 = vld [vmem:[#allocation7] sm:$0xf] }
 0x3d7   : > { %v1828_v53 = vsel %vm1130_vm7, %v1713_v34, %v1748_v18  ;;  %v1644_v38 = vsel %vm935_vm6, %v20120_v42, %v14096_v50  ;;  %v14156_v46 = vunpack.i.h.bf16 %v14154_v59  ;;  %v17813_v0 = vunpack.i.h.bf16 %v17719_v37 }
 0x3d8   : > { %v1678_v55 = vsel %vm974_vm8, %v20119_v60, %v14126_v56  ;;  %v1783_v56 = vsel %vm1082_vm13, %v20121_v54, %v14140_v33  ;;  %v14151_v50 = vunpack.i.h.bf16 %v17708_v63  ;;  %v1813_v30 = vsel %vm1130_vm7, %v17619_v2, %v17679_v3 }
 0x3d9   : > { %1923 = vrot.lane.b32.xlu1 %v1848_v1, %s16521_s26  ;;  %1903 = vrot.lane.b32.xlu0 %v1838_v52, %s16521_s26  ;;  %v1819_v32 = vsel %vm1130_vm7, %v1644_v38, %v1678_v55  ;;  %v1855_v17 = vpack.c.bf16 %v1783_v56, %v1783_v56  ;;  %20122 = vst [vmem:[#allocation41_spill] sm:$0xff] %v17813_v0  ;;  %v20123_v29 = vmov 0  }
 0x3da   : > { %v1846_v7 = vpack.c.bf16 %v1828_v53, %v1819_v32  ;;  %v1751_v5 = vsel %vm1046_vm10, %v14155_v35, %v14156_v46  ;;  %v1804_v26 = vsel %vm1130_vm7, %v17415_v8, %v17643_v4  ;;  %v1716_v37 = vsel %vm1010_vm9, %v14145_v16, %v17813_v0 }
 0x3db   : > { %v1840_v33 = vpack.c.bf16 %v1813_v30, %v1804_v26  ;;  %v1681_v59 = vsel %vm974_vm8, %v14150_v31, %v14151_v50  ;;  %v1831_v63 = vsel %vm1130_vm7, %v1716_v37, %v1751_v5 }
 0x3dc   : > { %v1822_v2 = vsel %vm1130_vm7, %v17677_v6, %v1681_v59 }
 0x3dd   : > { %1919 = vrot.lane.b32.xlu0 %v1846_v7, %s16521_s26  ;;  %v1849_v3 = vpack.c.bf16 %v1831_v63, %v1822_v2 }
 0x3e1   : > { %1937 = vrot.lane.b32.xlu0 %v1855_v17, %s16521_s26 }
 0x3e5   : > { %14158 = vrot.lane.b32.xlu0 %v17426_v22, %s16519_s2 }
 0x3e9   : > { %1907 = vrot.lane.b32.xlu0 %v1840_v33, %s16521_s26 }
 0x3ed   : > { %1925 = vrot.lane.b32.xlu0 %v1849_v3, %s16521_s26 }
 0x402   : > { %v1928_v23 = vpop.permute.xlu0 %1927 }
 0x403   : > { %v1930_v22 = vpop.permute.xlu1 %1929 }
 0x404   : > { %v1961_v19 = vsel %vm1211_vm15, %v1928_v23, %v1930_v22 }
 0x405   : > { %v1990_v13 = vsel %vm1110_vm3, %v1961_v19, 0 }
 0x406   : > { %v1932_v8 = vpop.permute.xlu0 %1931 }
 0x407   : > { %v1962_v40 = vsel %vm1211_vm15, %v1930_v22, %v1932_v8 }
 0x413   : > { %v1910_v35 = vpop.permute.xlu1 %1909 }
 0x417   : > { %v1896_v4 = vpop.permute.xlu1 %1895 }
 0x41b   : > { %v1912_v14 = vpop.permute.xlu1 %1911 }
 0x41c   : > { %v1953_v58 = vsel %vm1211_vm15, %v1910_v35, %v1912_v14 }
 0x428   : > { %v1898_v16 = vpop.permute.xlu1 %1897 }
 0x429   : > { %v1947_v45 = vsel %vm1211_vm15, %v1896_v4, %v1898_v16 }
 0x433   : > { %v1934_v39 = vpop.permute.xlu0 %1933  ;;  %v1936_v31 = vpop.permute.xlu1 %1935 }
 0x434   : > { %v1963_v53 = vsel %vm1211_vm15, %v1932_v8, %v1934_v39  ;;  %v1964_v42 = vsel %vm1211_vm15, %v1934_v39, %v1936_v31  ;;  %v1498_v8 = vld [vmem:[%s19939_s7] sm:$0xff] }
 0x435   : > { %v1996_v54 = vsel %vm1110_vm3, %v1963_v53, 0 }
 0x437   : > { %v1892_v62 = vpop.permute.xlu0 %1891  ;;  %v1918_v25 = vpop.permute.xlu1 %1917 }
 0x43b   : > { %v1894_v28 = vpop.permute.xlu0 %1893  ;;  %v1902_v41 = vpop.permute.xlu1 %1901 }
 0x43c   : > { %v1946_v57 = vsel %vm1211_vm15, %v1894_v28, %v1896_v4  ;;  %v1945_v61 = vsel %vm1211_vm15, %v1892_v62, %v1894_v28 }
 0x43d   : > { %2013 = vmatprep.subr.bf16.mxu0 %v1946_v57 }
 0x43e   : > { %2014 = vmatpush1.bf16.msra.mxu0 %v1945_v61 }
 0x43f   : > { %v1914_v6 = vpop.permute.xlu0 %1913  ;;  %v1922_v60 = vpop.permute.xlu1 %1921 }
 0x440   : > { %v1954_v48 = vsel %vm1211_vm15, %v1912_v14, %v1914_v6 }
 0x441   : > { %2015 = vmatprep.subr.bf16.mxu0 %v1954_v48 }
 0x442   : > { %2016 = vmatpush1.bf16.msra.mxu0 %v1953_v58 }
 0x443   : > { %12485 = vmatprep.subr.msk.bf16.mxu0 %vm1110_vm3, %v1962_v40  ;;  %v1916_v27 = vpop.permute.xlu0 %1915  ;;  %v1940_v56 = vpop.permute.xlu1 %1939 }
 0x444   : > { %v1956_v51 = vsel %vm1211_vm15, %v1916_v27, %v1918_v25  ;;  %v1955_v1 = vsel %vm1211_vm15, %v1914_v6, %v1916_v27 }
 0x446   : > { %2018 = vmatpush1.bf16.msra.mxu0 %v1990_v13 }
 0x447   : > { %v1900_v18 = vpop.permute.xlu0 %1899  ;;  %v1906_v26 = vpop.permute.xlu1 %1905 }
 0x448   : > { %v1948_v15 = vsel %vm1211_vm15, %v1898_v16, %v1900_v18  ;;  %v1949_v52 = vsel %vm1211_vm15, %v1900_v18, %v1902_v41  ;;  %v1500_v16 = vld [vmem:[%s19941_s9] sm:$0xff] }
 0x449   : > { %12486 = vmatmul.mubr.msk.bf16.vlgmr.msra.gmra.mrb[8].mxu0 %vm1985_vm5, %v17841_v43  ;;  %2054 = vmatprep.subr.bf16.mxu1 %v1948_v15 }
 0x44a   : > { %2055 = vmatpush1.bf16.msra.mxu1 %v1947_v45  ;;  %2127 = vmatprep.mubr.bf16.mxu0 %v20123_v29 }
 0x44b   : > { %2056 = vmatprep.subr.bf16.mxu1 %v1956_v51  ;;  %v1904_v34 = vpop.permute.xlu0 %1903  ;;  %v1924_v4 = vpop.permute.xlu1 %1923 }
 0x44c   : > { %v1950_v55 = vsel %vm1211_vm15, %v1902_v41, %v1904_v34  ;;  %v1951_v23 = vsel %vm1211_vm15, %v1904_v34, %v1906_v26  ;;  %v1959_v39 = vsel %vm1211_vm15, %v1922_v60, %v1924_v4 }
 0x44d   : > { %2095 = vmatprep.subr.bf16.mxu0 %v1950_v55 }
 0x44e   : > { %2057 = vmatpush1.bf16.msra.mxu1 %v1955_v1  ;;  %2096 = vmatpush1.bf16.msra.mxu0 %v1949_v52 }
 0x44f   : > { %12487 = vmatprep.subr.msk.bf16.mxu1 %vm1110_vm3, %v1964_v42  ;;  %v1920_v38 = vpop.permute.xlu0 %1919 }
 0x450   : > { %v1958_v32 = vsel %vm1211_vm15, %v1920_v38, %v1922_v60  ;;  %v1957_v7 = vsel %vm1211_vm15, %v1918_v25, %v1920_v38 }
 0x451   : > { %2097 = vmatprep.subr.bf16.mxu0 %v1958_v32 }
 0x452   : > { %2059 = vmatpush1.bf16.msra.mxu1 %v1996_v54  ;;  %2098 = vmatpush1.bf16.msra.mxu0 %v1957_v7 }
 0x453   : > { %v1938_v17 = vpop.permute.xlu0 %1937 }
 0x454   : > { %v1965_v46 = vsel %vm1211_vm15, %v1936_v31, %v1938_v17  ;;  %v1966_v50 = vsel %vm1211_vm15, %v1938_v17, %v1940_v56 }
 0x455   : > { %12488 = vmatmul.mubr.msk.bf16.vlgmr.msra.gmra.mrb[8].mxu1 %vm1985_vm5, %v17841_v43  ;;  %12489 = vmatprep.subr.msk.bf16.mxu0 %vm1110_vm3, %v1966_v50  ;;  %v2002_v30 = vsel %vm1110_vm3, %v1965_v46, 0 }
 0x456   : > { %2100 = vmatpush1.bf16.msra.mxu0 %v2002_v30  ;;  %2168 = vmatprep.mubr.bf16.mxu1 %v20123_v29 }
 0x457   : > { %v14159_v5 = vpop.permute.xlu0 %14158 }
 0x458   : > { %v17865_v33 = vunpack.i.h.bf16 %v14159_v5  ;;  %v14160_v37 = vunpack.i.l.bf16 %v14159_v5 }
 0x459   : > { %12490 = vmatmul.mubr.msk.bf16.vlgmr.msra.gmra.mrb[12].mxu0 %vm1985_vm5, %v17841_v43 }
 0x45a   : > { %20124 = vst [vmem:[#allocation42_spill] sm:$0xff] %v17865_v33  ;;  %v1786_v59 = vsel %vm1082_vm13, %v14160_v37, %v17865_v33  ;;  %v1785_v63 = vsel %vm1082_vm13, %v14141_v10, %v14160_v37  ;;  %2833 = vmatprep.mubr.bf16.mxu0 %v20123_v29 }
 0x45b   : > { %v1908_v2 = vpop.permute.xlu0 %1907  ;;  %v1858_v3 = vpack.c.bf16 %v1786_v59, %v1786_v59  ;;  %v1857_v22 = vpack.c.bf16 %v1785_v63, %v1785_v63 }
 0x45c   : > { %v1952_v35 = vsel %vm1211_vm15, %v1906_v26, %v1908_v2 }
 0x45d   : > { %2136 = vmatprep.subr.bf16.mxu1 %v1952_v35  ;;  %1943 = vrot.lane.b32.xlu0 %v1858_v3, %s16521_s26  ;;  %v20125_v3 = vmov 0.0  }
 0x45e   : > { %1941 = vrot.lane.b32.xlu1 %v1857_v22, %s16521_s26  ;;  %2137 = vmatpush1.bf16.msra.mxu1 %v1951_v23 }
 0x45f   : > { %v1926_v10 = vpop.permute.xlu0 %1925 }
 0x460   : > { %v1960_v14 = vsel %vm1211_vm15, %v1924_v4, %v1926_v10 }
 0x461   : > { %2138 = vmatprep.subr.bf16.mxu1 %v1960_v14  ;;  %2187 = vperm.xlu0 %14005, %v1499_v21  }
 0x462   : > { %1861 = vperm.xlu1 %14006, %v1498_v8   ;;  %2139 = vmatpush1.bf16.msra.mxu1 %v1959_v39 }
 0x466   : > { %2200 = vperm.xlu1 %14006, %v1500_v16  }
 0x4cf   : > { %v1944_v62 = vpop.permute.xlu0 %1943 }
 0x4d0   : > { %v1942_v31 = vpop.permute.xlu1 %1941 }
 0x4d1   : > { %v1967_v28 = vsel %vm1211_vm15, %v1940_v56, %v1942_v31  ;;  %v1968_v57 = vsel %vm1211_vm15, %v1942_v31, %v1944_v62 }
 0x4d2   : > { %12491 = vmatprep.subr.msk.bf16.mxu1 %vm1110_vm3, %v1968_v57  ;;  %v2008_v61 = vsel %vm1110_vm3, %v1967_v28, 0  ;;  %vm2773_vm3 = vcmask 588800  }
 0x4d3   : > { %2141 = vmatpush1.bf16.msra.mxu1 %v2008_v61 }
 0x4d6   : > { %12492 = vmatmul.mubr.msk.bf16.vlgmr.msra.gmra.mrb[12].mxu1 %vm1985_vm5, %v17841_v43 }
 0x4d7   : > { %2876 = vmatprep.mubr.bf16.mxu1 %v20123_v29 }
 0x4e0   : > { %v17901_v41 = vpop.permute.xlu0 %2187 }
 0x4e1   : > { %v17897_v6 = vpop.permute.xlu1 %1861 }
 0x4e5   : > { %v17904_v45 = vpop.permute.xlu1 %2200 }
 0x51c   : > { %v2047_v25 = vpop.f32.mrb[8].mxu0 }
 0x51d   : > { %v2048_v48 = vadd.f32 %v2047_v25, %v17897_v6  ;;  %v2049_v58 = vpop.f32.mrb[9].mxu0 }
 0x51e   : > { %v2050_v19 = vadd.f32 %v2049_v58, %v17897_v6  ;;  %v2051_v40 = vpop.f32.mrb[10].mxu0 }
 0x51f   : > { %v2177_v27 = vmax.f32 %v2048_v48, 0.0  ;;  %v2052_v13 = vpop.f32.mrb[11].mxu0 }
 0x520   : > { %v2178_v18 = vmax.f32 %v2050_v19, 0.0 }
 0x521   : > { %v2190_v15 = vmul.f32 %v17901_v41, %v2177_v27 }
 0x522   : > { %v2191_v43 = vmul.f32 %v17901_v41, %v2178_v18 }
 0x523   : > { %v2203_v51 = vadd.f32 %v17904_v45, %v2190_v15 }
 0x524   : > { %v2204_v34 = vadd.f32 %v17904_v45, %v2191_v43 }
 0x525   : > { %v17910_v60 = vmul.f32 %v2203_v51, %v17278_v47 }
 0x526   : > { %v17913_v55 = vmul.f32 %v2204_v34, %v17288_v12 }
 0x528   : > { %v2088_v1 = vpop.f32.mrb[8].mxu1  ;;  %v14167_v52 = vpack.i.bf16 %v17913_v55, %v17910_v60 }
 0x529   : > { %v2089_v53 = vadd.f32 %v2088_v1, %v17897_v6  ;;  %v2090_v42 = vpop.f32.mrb[9].mxu1 }
 0x52a   : > { %v2091_v38 = vadd.f32 %v2090_v42, %v17897_v6  ;;  %14168 = vrot.lane.b32.xlu1 %v14167_v52, %s16513_s19  ;;  %14163 = vrot.lane.b32.xlu0 %v14167_v52, %s16512_s21  ;;  %v2092_v32 = vpop.f32.mrb[10].mxu1 }
 0x52b   : > { %v2179_v7 = vmax.f32 %v2089_v53, 0.0  ;;  %v2093_v54 = vpop.f32.mrb[11].mxu1 }
 0x52c   : > { %v2180_v56 = vmax.f32 %v2091_v38, 0.0  ;;  %v2129_v17 = vpop.f32.mrb[12].mxu0 }
 0x52d   : > { %v2192_v46 = vmul.f32 %v17901_v41, %v2179_v7  ;;  %v2131_v50 = vpop.f32.mrb[13].mxu0  ;;  %v2130_v23 = vadd.f32 %v2129_v17, %v17897_v6 }
 0x52e   : > { %v2193_v30 = vmul.f32 %v17901_v41, %v2180_v56  ;;  %14173 = vrot.lane.b32.xlu1 %v14167_v52, %s16514_s1  ;;  %v2133_v5 = vpop.f32.mrb[14].mxu0  ;;  %v2132_v62 = vadd.f32 %v2131_v50, %v17897_v6 }
 0x52f   : > { %v2205_v26 = vadd.f32 %v17904_v45, %v2192_v46  ;;  %v2134_v37 = vpop.f32.mrb[15].mxu0  ;;  %v2181_v4 = vmax.f32 %v2130_v23, 0.0 }
 0x530   : > { %v2206_v59 = vadd.f32 %v17904_v45, %v2193_v30  ;;  %v2182_v57 = vmax.f32 %v2132_v62, 0.0 }
 0x531   : > { %v17927_v63 = vmul.f32 %v2205_v26, %v17298_v24  ;;  %v2194_v21 = vmul.f32 %v17901_v41, %v2181_v4 }
 0x532   : > { %14178 = vrot.lane.b32.xlu1 %v14167_v52, %s16515_s25  ;;  %v17931_v2 = vmul.f32 %v2206_v59, %v17316_v49  ;;  %v2195_v58 = vmul.f32 %v17901_v41, %v2182_v57 }
 0x533   : > { %v14207_v22 = vpack.i.bf16 %v20125_v3, %v17927_v63  ;;  %v2207_v10 = vadd.f32 %v17904_v45, %v2194_v21 }
 0x534   : > { %v14212_v35 = vpack.i.bf16 %v17931_v2, %v17927_v63  ;;  %v2208_v51 = vadd.f32 %v17904_v45, %v2195_v58 }
 0x535   : > { %14208 = vrot.lane.b32.xlu0 %v14207_v22, %s16514_s1  ;;  %v17951_v8 = vmul.f32 %v2207_v10, %v17365_v20 }
 0x536   : > { %14183 = vrot.lane.b32.xlu1 %v14167_v52, %s16516_s22  ;;  %v17998_v53 = vmul.f32 %v2208_v51, %v17351_v9 }
 0x537   : > { %v14242_v14 = vpack.i.bf16 %v17951_v8, %v17931_v2 }
 0x539   : > { %14213 = vrot.lane.b32.xlu0 %v14212_v35, %s16513_s19 }
 0x53a   : > { %14188 = vrot.lane.b32.xlu1 %v14167_v52, %s16517_s5 }
 0x53d   : > { %14218 = vrot.lane.b32.xlu0 %v14212_v35, %s16515_s25 }
 0x53e   : > { %14193 = vrot.lane.b32.xlu1 %v14167_v52, %s16518_s30 }
 0x541   : > { %14223 = vrot.lane.b32.xlu0 %v14212_v35, %s16516_s22 }
 0x542   : > { %14198 = vrot.lane.b32.xlu1 %v14167_v52, %s16519_s2 }
 0x545   : > { %14228 = vrot.lane.b32.xlu0 %v14212_v35, %s16517_s5 }
 0x546   : > { %14203 = vrot.lane.b32.xlu1 %v14207_v22, %s16512_s21 }
 0x549   : > { %14233 = vrot.lane.b32.xlu0 %v14212_v35, %s16518_s30 }
 0x54a   : > { %2278 = vrot.lane.b32.xlu1 %v17951_v8, %s16513_s19 }
 0x54d   : > { %14238 = vrot.lane.b32.xlu0 %v14212_v35, %s16519_s2 }
 0x54e   : > { %2346 = vrot.lane.b32.xlu1 %v17951_v8, %s16515_s25 }
 0x551   : > { %14243 = vrot.lane.b32.xlu0 %v14242_v14, %s16512_s21 }
 0x552   : > { %2413 = vrot.lane.b32.xlu1 %v17951_v8, %s16517_s5 }
 0x555   : > { %14248 = vrot.lane.b32.xlu0 %v14242_v14, %s16514_s1 }
 0x556   : > { %2481 = vrot.lane.b32.xlu1 %v17951_v8, %s16519_s2 }
 0x559   : > { %2378 = vrot.lane.b32.xlu0 %v17951_v8, %s16516_s22 }
 0x55d   : > { %2446 = vrot.lane.b32.xlu0 %v17951_v8, %s16518_s30 }
 0x59c   : > { %v17971_v39 = vpop.permute.xlu1 %14168  ;;  %v17976_v31 = vpop.permute.xlu0 %14163 }
 0x59d   : > { %v14165_v5 = vunpack.i.l.bf16 %v17976_v31  ;;  %v14170_v23 = vunpack.i.l.bf16 %v17971_v39  ;;  %v14166_v57 = vunpack.i.h.bf16 %v17976_v31 }
 0x59f   : > { %v2254_v31 = vsel %vm829_vm0, %v14165_v5, %v14166_v57 }
 0x5a0   : > { %v17973_v16 = vpop.permute.xlu1 %14173 }
 0x5a1   : > { %v14175_v4 = vunpack.i.l.bf16 %v17973_v16  ;;  %v14176_v51 = vunpack.i.h.bf16 %v17973_v16 }
 0x5a4   : > { %v17978_v28 = vpop.permute.xlu1 %14178 }
 0x5a5   : > { %v14180_v35 = vunpack.i.l.bf16 %v17978_v28 }
 0x5a7   : > { %v17980_v61 = vpop.permute.xlu0 %14208 }
 0x5a8   : > { %v17982_v25 = vpop.permute.xlu1 %14183  ;;  %v18037_v59 = vunpack.i.h.bf16 %v17980_v61 }
 0x5a9   : > { %v2170_v48 = vpop.f32.mrb[12].mxu1  ;;  %v14185_v26 = vunpack.i.l.bf16 %v17982_v25  ;;  %v14186_v58 = vunpack.i.h.bf16 %v17982_v25 }
 0x5aa   : > { %v2171_v19 = vadd.f32 %v2170_v48, %v17897_v6  ;;  %v17986_v40 = vpop.f32.mrb[13].mxu1  ;;  %v2321_v48 = vsel %vm901_vm4, %v18037_v59, %v14175_v4 }
 0x5ab   : > { %v2174_v27 = vpop.f32.mrb[14].mxu1  ;;  %v17988_v13 = vpop.permute.xlu0 %14213  ;;  %v2524_v21 = vpack.c.bf16 %v14185_v26, %v14180_v35 }
 0x5ac   : > { %v2183_v18 = vmax.f32 %v2171_v19, 0.0  ;;  %v2175_v15 = vpop.f32.mrb[15].mxu1  ;;  %v17990_v43 = vpop.permute.xlu1 %14188  ;;  %v2286_v19 = vsel %vm865_vm1, %v17552_v36, %v14170_v23  ;;  %v14181_v27 = vunpack.i.h.bf16 %v17978_v28  ;;  %v14171_v28 = vunpack.i.h.bf16 %v17971_v39 }
 0x5ad   : > { %v14190_v50 = vunpack.i.l.bf16 %v17990_v43  ;;  %v2515_v15 = vpack.c.bf16 %v2321_v48, %v2286_v19  ;;  %v14215_v16 = vunpack.i.l.bf16 %v17988_v13  ;;  %v14210_v39 = vunpack.i.l.bf16 %v17980_v61 }
 0x5ae   : > { %v2196_v34 = vmul.f32 %v17901_v41, %v2183_v18 }
 0x5af   : > { %v18003_v38 = vpop.permute.xlu0 %14218  ;;  %v2288_v19 = vsel %vm865_vm1, %v14171_v28, %v14215_v16  ;;  %v2323_v61 = vsel %vm901_vm4, %v14176_v51, %v14210_v39 }
 0x5b0   : > { %v2209_v1 = vadd.f32 %v17904_v45, %v2196_v34  ;;  %v17995_v52 = vpop.permute.xlu1 %14193  ;;  %v2388_v34 = vsel %vm974_vm8, %v14185_v26, %v14186_v58 }
 0x5b1   : > { %v14195_v17 = vunpack.i.l.bf16 %v17995_v52  ;;  %v14196_v26 = vunpack.i.h.bf16 %v17995_v52 }
 0x5b2   : > { %v18001_v42 = vmul.f32 %v2209_v1, %v17357_v44 }
 0x5b3   : > { %v18015_v54 = vpop.permute.xlu0 %14223  ;;  %v2533_v37 = vpack.c.bf16 %v14195_v17, %v14190_v50  ;;  %v2456_v52 = vsel %vm1046_vm10, %v14195_v17, %v14196_v26 }
 0x5b4   : > { %v18005_v32 = vpop.permute.xlu1 %14198  ;;  %v18009_v7 = vpack.i.bf16 %v18001_v42, %v17998_v53  ;;  %v14226_v17 = vunpack.i.h.bf16 %v18015_v54 }
 0x5b5   : > { %v18048_v10 = vunpack.i.l.bf16 %v18005_v32 }
 0x5b6   : > { %14253 = vrot.lane.b32.xlu1 %v18009_v7, %s16512_s21  ;;  %14263 = vrot.lane.b32.xlu0 %v18009_v7, %s16514_s1 }
 0x5b7   : > { %v18028_v30 = vpop.permute.xlu0 %14228  ;;  %v2542_v18 = vpack.c.bf16 %v18048_v10, %v18048_v10 }
 0x5b8   : > { %v18017_v56 = vpop.permute.xlu1 %14203 }
 0x5b9   : > { %v18025_v46 = vunpack.i.h.bf16 %v18017_v56  ;;  %v14205_v25 = vunpack.i.l.bf16 %v18017_v56 }
 0x5ba   : > { %14258 = vrot.lane.b32.xlu1 %v18009_v7, %s16513_s19  ;;  %14268 = vrot.lane.b32.xlu0 %v18009_v7, %s16515_s25 }
 0x5bb   : > { %v2253_v22 = vsel %vm829_vm0, %v18025_v46, %v14165_v5  ;;  %v18050_v14 = vpop.permute.xlu0 %14233  ;;  %v2322_v5 = vsel %vm901_vm4, %v14175_v4, %v14176_v51  ;;  %v2255_v56 = vsel %vm829_vm0, %v14166_v57, %v14205_v25  ;;  %v14225_v57 = vunpack.i.l.bf16 %v18015_v54 }
 0x5bc   : > { %v2506_v62 = vpack.c.bf16 %v2253_v22, %v20125_v3 }
 0x5be   : > { %14273 = vrot.lane.b32.xlu1 %v18009_v7, %s16516_s22  ;;  %14283 = vrot.lane.b32.xlu0 %v18009_v7, %s16518_s30 }
 0x5bf   : > { %v18068_v1 = vpop.permute.xlu0 %14238 }
 0x5c2   : > { %14278 = vrot.lane.b32.xlu1 %v18009_v7, %s16517_s5  ;;  %2665 = vrot.lane.b32.xlu0 %v2533_v37, %s16521_s26  ;;  %v2354_v37 = vsel %vm935_vm6, %v14180_v35, %v14181_v27  ;;  %v14191_v35 = vunpack.i.h.bf16 %v17990_v43 }
 0x5c3   : > { %v2525_v22 = vpack.c.bf16 %v2388_v34, %v2354_v37  ;;  %v18084_v48 = vpop.permute.xlu0 %14243  ;;  %v2389_v34 = vsel %vm974_vm8, %v14186_v58, %v14225_v57 }
 0x5c4   : > { %v2421_v43 = vsel %vm1010_vm9, %v14190_v50, %v14191_v35  ;;  %v14245_v37 = vunpack.i.l.bf16 %v18084_v48  ;;  %v14221_v50 = vunpack.i.h.bf16 %v18003_v38 }
 0x5c6   : > { %2647 = vrot.lane.b32.xlu1 %v2524_v21, %s16521_s26  ;;  %2611 = vrot.lane.b32.xlu0 %v2506_v62, %s16521_s26  ;;  %v2507_v21 = vpack.c.bf16 %v2254_v31, %v17910_v60  ;;  %v2287_v62 = vsel %vm865_vm1, %v14170_v23, %v14171_v28  ;;  %v2508_v60 = vpack.c.bf16 %v2255_v56, %v17913_v55  ;;  %v14220_v23 = vunpack.i.l.bf16 %v18003_v38 }
 0x5c7   : > { %v2516_v4 = vpack.c.bf16 %v2322_v5, %v2287_v62  ;;  %v14230_v55 = vunpack.i.l.bf16 %v18028_v30  ;;  %v2534_v31 = vpack.c.bf16 %v2456_v52, %v2421_v43  ;;  %v18108_v5 = vpop.permute.xlu1 %2278  ;;  %v14246_v56 = vunpack.i.h.bf16 %v18084_v48 }
 0x5c8   : > { %v2355_v51 = vsel %vm935_vm6, %v14181_v27, %v14220_v23  ;;  %v2256_v62 = vsel %vm829_vm0, %v14205_v25, %v14245_v37  ;;  %v14216_v38 = vunpack.i.h.bf16 %v17988_v13  ;;  %v2356_v27 = vsel %vm935_vm6, %v14220_v23, %v14221_v50 }
 0x5c9   : > { %v2526_v58 = vpack.c.bf16 %v2389_v34, %v2355_v51  ;;  %v2257_v52 = vsel %vm829_vm0, %v14245_v37, %v14246_v56 }
 0x5ca   : > { %2683 = vrot.lane.b32.xlu1 %v2542_v18, %s16521_s26  ;;  %2629 = vrot.lane.b32.xlu0 %v2515_v15, %s16521_s26  ;;  %v14235_v18 = vunpack.i.l.bf16 %v18050_v14  ;;  %v2517_v15 = vpack.c.bf16 %v2323_v61, %v2288_v19  ;;  %v14236_v19 = vunpack.i.h.bf16 %v18050_v14  ;;  %v2289_v13 = vsel %vm865_vm1, %v14215_v16, %v14216_v38 }
 0x5cb   : > { %v18125_v61 = vpop.permute.xlu1 %2346  ;;  %v2510_v23 = vpack.c.bf16 %v2257_v52, %v17931_v2  ;;  %v2173_v2 = vadd.f32 %v17986_v40, %v17897_v6 }
 0x5cc   : > { %v2457_v28 = vsel %vm1046_vm10, %v14196_v26, %v14235_v18  ;;  %v2390_v26 = vsel %vm974_vm8, %v14225_v57, %v14226_v17  ;;  %v2357_v6 = vsel %vm935_vm6, %v14221_v50, %v18125_v61 }
 0x5cd   : > { %v2184_v40 = vmax.f32 %v2173_v2, 0.0 }
 0x5ce   : > { %2649 = vrot.lane.b32.xlu1 %v2525_v22, %s16521_s26  ;;  %2613 = vrot.lane.b32.xlu0 %v2507_v21, %s16521_s26  ;;  %v18101_v22 = vpop.permute.xlu0 %14248  ;;  %v2422_v21 = vsel %vm1010_vm9, %v14191_v35, %v14230_v55  ;;  %v2509_v35 = vpack.c.bf16 %v2256_v62, %v17927_v63  ;;  %v14231_v63 = vunpack.i.h.bf16 %v18028_v30  ;;  %v2290_v30 = vsel %vm865_vm1, %v14216_v38, %v18108_v5 }
 0x5cf   : > { %v2535_v54 = vpack.c.bf16 %v2457_v28, %v2422_v21  ;;  %v14251_v25 = vunpack.i.h.bf16 %v18101_v22  ;;  %v18146_v34 = vpop.permute.xlu1 %2413  ;;  %v14240_v28 = vunpack.i.l.bf16 %v18068_v1  ;;  %v2197_v50 = vmul.f32 %v17901_v41, %v2184_v40 }
 0x5d0   : > { %v2423_v16 = vsel %vm1010_vm9, %v14230_v55, %v14231_v63  ;;  %v2424_v62 = vsel %vm1010_vm9, %v14231_v63, %v18146_v34 }
 0x5d2   : > { %2615 = vrot.lane.b32.xlu1 %v2508_v60, %s16521_s26  ;;  %2631 = vrot.lane.b32.xlu0 %v2516_v4, %s16521_s26  ;;  %v14250_v60 = vunpack.i.l.bf16 %v18101_v22  ;;  %v2527_v4 = vpack.c.bf16 %v2390_v26, %v2356_v27  ;;  %v18131_v43 = vpop.permute.xlu0 %2378 }
 0x5d3   : > { %v2391_v37 = vsel %vm974_vm8, %v14226_v17, %v18131_v43 }
 0x5d4   : > { %v2324_v57 = vsel %vm901_vm4, %v14210_v39, %v14250_v60  ;;  %v2325_v39 = vsel %vm901_vm4, %v14250_v60, %v14251_v25  ;;  %v2528_v55 = vpack.c.bf16 %v2391_v37, %v2357_v6 }
 0x5d5   : > { %v2518_v14 = vpack.c.bf16 %v2324_v57, %v2289_v13 }
 0x5d6   : > { %2633 = vrot.lane.b32.xlu1 %v2517_v15, %s16521_s26  ;;  %2667 = vrot.lane.b32.xlu0 %v2534_v31, %s16521_s26  ;;  %v14201_v15 = vunpack.i.h.bf16 %v18005_v32  ;;  %v2458_v31 = vsel %vm1046_vm10, %v14235_v18, %v14236_v19  ;;  %v2519_v18 = vpack.c.bf16 %v2325_v39, %v2290_v30  ;;  %v18153_v21 = vpop.permute.xlu0 %2446 }
 0x5d7   : > { %v2536_v32 = vpack.c.bf16 %v2458_v31, %v2423_v16  ;;  %v2459_v17 = vsel %vm1046_vm10, %v14236_v19, %v18153_v21 }
 0x5d8   : > { %v2489_v51 = vsel %vm1082_vm13, %v18048_v10, %v14201_v15  ;;  %v2490_v26 = vsel %vm1082_vm13, %v14201_v15, %v14240_v28  ;;  %v18163_v10 = vpop.permute.xlu1 %2481  ;;  %v2537_v60 = vpack.c.bf16 %v2459_v17, %v2424_v62 }
 0x5d9   : > { %v2544_v38 = vpack.c.bf16 %v2490_v26, %v2490_v26 }
 0x5da   : > { %2669 = vrot.lane.b32.xlu1 %v2535_v54, %s16521_s26  ;;  %2651 = vrot.lane.b32.xlu0 %v2526_v58, %s16521_s26  ;;  %v2543_v54 = vpack.c.bf16 %v2489_v51, %v2489_v51  ;;  %v14241_v58 = vunpack.i.h.bf16 %v18068_v1 }
 0x5dc   : > { %v2492_v1 = vsel %vm1082_vm13, %v14241_v58, %v18163_v10  ;;  %v2491_v27 = vsel %vm1082_vm13, %v14240_v28, %v14241_v58 }
 0x5dd   : > { %v2545_v19 = vpack.c.bf16 %v2491_v27, %v2491_v27 }
 0x5de   : > { %2617 = vrot.lane.b32.xlu1 %v2509_v35, %s16521_s26  ;;  %2653 = vrot.lane.b32.xlu0 %v2527_v4, %s16521_s26  ;;  %v2210_v35 = vadd.f32 %v17904_v45, %v2197_v50  ;;  %v2546_v4 = vpack.c.bf16 %v2492_v1, %v2492_v1 }
 0x5e0   : > { %v18179_v41 = vmul.f32 %v2210_v35, %v17410_v11 }
 0x5e2   : > { %2635 = vrot.lane.b32.xlu1 %v2518_v14, %s16521_s26  ;;  %2619 = vrot.lane.b32.xlu0 %v2510_v23, %s16521_s26 }
 0x5e6   : > { %2671 = vrot.lane.b32.xlu1 %v2536_v32, %s16521_s26  ;;  %2637 = vrot.lane.b32.xlu0 %v2519_v18, %s16521_s26 }
 0x5ea   : > { %2655 = vrot.lane.b32.xlu1 %v2528_v55, %s16521_s26  ;;  %2685 = vrot.lane.b32.xlu0 %v2543_v54, %s16521_s26 }
 0x5ee   : > { %2687 = vrot.lane.b32.xlu1 %v2544_v38, %s16521_s26  ;;  %2673 = vrot.lane.b32.xlu0 %v2537_v60, %s16521_s26 }
 0x5f2   : > { %2691 = vrot.lane.b32.xlu1 %v2546_v4, %s16521_s26  ;;  %2689 = vrot.lane.b32.xlu0 %v2545_v19, %s16521_s26 }
 0x5f6   : > { %2251 = vrot.lane.b32.xlu1 %v18179_v41, %s16512_s21  ;;  %14288 = vrot.lane.b32.xlu0 %v18009_v7, %s16519_s2 }
 0x5fa   : > { %2319 = vrot.lane.b32.xlu1 %v18179_v41, %s16514_s1  ;;  %2284 = vrot.lane.b32.xlu0 %v18179_v41, %s16513_s19 }
 0x628   : > { %v18189_v45 = vpop.permute.xlu1 %14253  ;;  %v18191_v52 = vpop.permute.xlu0 %14263 }
 0x629   : > { %v14255_v57 = vunpack.i.l.bf16 %v18189_v45  ;;  %v14265_v63 = vunpack.i.l.bf16 %v18191_v52  ;;  %v14256_v2 = vunpack.i.h.bf16 %v18189_v45 }
 0x62b   : > { %v2258_v13 = vsel %vm829_vm0, %v14246_v56, %v14255_v57  ;;  %v2326_v31 = vsel %vm901_vm4, %v14251_v25, %v14265_v63  ;;  %v2259_v51 = vsel %vm829_vm0, %v14255_v57, %v14256_v2 }
 0x62c   : > { %v18198_v14 = vpop.permute.xlu1 %14258  ;;  %v18200_v7 = vpop.permute.xlu0 %14268  ;;  %v2511_v23 = vpack.c.bf16 %v2258_v13, %v17951_v8  ;;  %v14292_v8 = vpack.i.bf16 %v20125_v3, %v18179_v41  ;;  %v2512_v17 = vpack.c.bf16 %v2259_v51, %v17998_v53 }
 0x62d   : > { %v14260_v15 = vunpack.i.l.bf16 %v18198_v14  ;;  %v14270_v56 = vunpack.i.l.bf16 %v18200_v7  ;;  %v14261_v32 = vunpack.i.h.bf16 %v18198_v14 }
 0x62e   : > { %2621 = vrot.lane.b32.xlu1 %v2511_v23, %s16521_s26 }
 0x62f   : > { %v2291_v48 = vsel %vm865_vm1, %v18108_v5, %v14260_v15  ;;  %v14266_v5 = vunpack.i.h.bf16 %v18191_v52  ;;  %v2358_v25 = vsel %vm935_vm6, %v18125_v61, %v14270_v56  ;;  %v2292_v6 = vsel %vm865_vm1, %v14260_v15, %v14261_v32 }
 0x630   : > { %v18211_v39 = vpop.permute.xlu1 %14273  ;;  %v18213_v16 = vpop.permute.xlu0 %14283  ;;  %v2520_v30 = vpack.c.bf16 %v2326_v31, %v2291_v48 }
 0x631   : > { %v14275_v22 = vunpack.i.l.bf16 %v18211_v39  ;;  %v14276_v40 = vunpack.i.h.bf16 %v18211_v39  ;;  %v2327_v61 = vsel %vm901_vm4, %v14265_v63, %v14266_v5  ;;  %v14286_v38 = vunpack.i.h.bf16 %v18213_v16 }
 0x632   : > { %14293 = vrot.lane.b32.xlu1 %v14292_v8, %s16516_s22  ;;  %2639 = vrot.lane.b32.xlu0 %v2520_v30, %s16521_s26  ;;  %v2521_v58 = vpack.c.bf16 %v2327_v61, %v2292_v6  ;;  %v14285_v53 = vunpack.i.l.bf16 %v18213_v16 }
 0x633   : > { %v2392_v18 = vsel %vm974_vm8, %v18131_v43, %v14275_v22  ;;  %v14271_v43 = vunpack.i.h.bf16 %v18200_v7  ;;  %v2393_v26 = vsel %vm974_vm8, %v14275_v22, %v14276_v40 }
 0x634   : > { %v18227_v3 = vpop.permute.xlu1 %14278  ;;  %v2666_v28 = vpop.permute.xlu0 %2665  ;;  %v2529_v37 = vpack.c.bf16 %v2392_v18, %v2358_v25  ;;  %v2460_v57 = vsel %vm1046_vm10, %v18153_v21, %v14285_v53  ;;  %v2461_v13 = vsel %vm1046_vm10, %v14285_v53, %v14286_v38 }
 0x635   : > { %v14281_v62 = vunpack.i.h.bf16 %v18227_v3  ;;  %v14280_v50 = vunpack.i.l.bf16 %v18227_v3  ;;  %v2359_v60 = vsel %vm935_vm6, %v14270_v56, %v14271_v43 }
 0x636   : > { %14298 = vrot.lane.b32.xlu1 %v14292_v8, %s16518_s30  ;;  %2657 = vrot.lane.b32.xlu0 %v2529_v37, %s16521_s26  ;;  %v2530_v35 = vpack.c.bf16 %v2393_v26, %v2359_v60 }
 0x637   : > { %v2425_v4 = vsel %vm1010_vm9, %v18146_v34, %v14280_v50  ;;  %v2426_v19 = vsel %vm1010_vm9, %v14280_v50, %v14281_v62 }
 0x638   : > { %v2648_v55 = vpop.permute.xlu1 %2647  ;;  %v2612_v54 = vpop.permute.xlu0 %2611  ;;  %v2539_v15 = vpack.c.bf16 %v2461_v13, %v2426_v19  ;;  %v2538_v34 = vpack.c.bf16 %v2460_v57, %v2425_v4 }
 0x63a   : > { %2641 = vrot.lane.b32.xlu1 %v2521_v58, %s16521_s26  ;;  %2623 = vrot.lane.b32.xlu0 %v2512_v17, %s16521_s26 }
 0x63c   : > { %v2684_v1 = vpop.permute.xlu1 %2683  ;;  %v2630_v27 = vpop.permute.xlu0 %2629 }
 0x63e   : > { %2659 = vrot.lane.b32.xlu1 %v2530_v35, %s16521_s26  ;;  %2352 = vrot.lane.b32.xlu0 %v18179_v41, %s16515_s25 }
 0x640   : > { %v2650_v63 = vpop.permute.xlu1 %2649  ;;  %v2614_v23 = vpop.permute.xlu0 %2613 }
 0x641   : > { %v2701_v21 = vsel %vm1211_vm15, %v2612_v54, %v2614_v23  ;;  %v2717_v6 = vsel %vm1211_vm15, %v2648_v55, %v2650_v63 }
 0x642   : > { %2677 = vrot.lane.b32.xlu1 %v2539_v15, %s16521_s26  ;;  %2675 = vrot.lane.b32.xlu0 %v2538_v34, %s16521_s26 }
 0x644   : > { %v2616_v31 = vpop.permute.xlu1 %2615  ;;  %v2632_v48 = vpop.permute.xlu0 %2631 }
 0x645   : > { %v2702_v56 = vsel %vm1211_vm15, %v2614_v23, %v2616_v31  ;;  %v2709_v25 = vsel %vm1211_vm15, %v2630_v27, %v2632_v48 }
 0x646   : > { %2419 = vrot.lane.b32.xlu0 %v18179_v41, %s16517_s5  ;;  %2801 = vmatprep.subr.bf16.mxu0 %v2702_v56 }
 0x647   : > { %2802 = vmatpush1.bf16.msra.mxu0 %v2701_v21  ;;  %v18304_v21 = vld [vmem:[#allocation8] sm:$0xff]  }
 0x648   : > { %v2634_v8 = vpop.permute.xlu1 %2633  ;;  %v2668_v30 = vpop.permute.xlu0 %2667 }
 0x649   : > { %v2710_v22 = vsel %vm1211_vm15, %v2632_v48, %v2634_v8  ;;  %v2725_v17 = vsel %vm1211_vm15, %v2666_v28, %v2668_v30 }
 0x64a   : > { %2803 = vmatprep.subr.bf16.mxu0 %v2710_v22 }
 0x64b   : > { %2804 = vmatpush1.bf16.msra.mxu0 %v2709_v25 }
 0x64c   : > { %v2670_v18 = vpop.permute.xlu1 %2669  ;;  %v2652_v37 = vpop.permute.xlu0 %2651 }
 0x64d   : > { %v2718_v51 = vsel %vm1211_vm15, %v2650_v63, %v2652_v37  ;;  %v2726_v61 = vsel %vm1211_vm15, %v2668_v30, %v2670_v18 }
 0x64e   : > { %2805 = vmatprep.subr.bf16.mxu0 %v2718_v51 }
 0x64f   : > { %2806 = vmatpush1.bf16.msra.mxu0 %v2717_v6 }
 0x650   : > { %v2618_v54 = vpop.permute.xlu1 %2617  ;;  %2807 = vmatprep.subr.bf16.mxu0 %v2726_v61  ;;  %v2654_v58 = vpop.permute.xlu0 %2653 }
 0x651   : > { %v2703_v53 = vsel %vm1211_vm15, %v2616_v31, %v2618_v54  ;;  %v2719_v13 = vsel %vm1211_vm15, %v2652_v37, %v2654_v58 }
 0x653   : > { %2808 = vmatpush1.bf16.msra.mxu0 %v2725_v17 }
 0x654   : > { %v2636_v26 = vpop.permute.xlu1 %2635  ;;  %v18280_v50 = vpop.permute.xlu0 %2619 }
 0x655   : > { %v2704_v60 = vsel %vm1211_vm15, %v2618_v54, %v18280_v50  ;;  %v2711_v28 = vsel %vm1211_vm15, %v2634_v8, %v2636_v26 }
 0x656   : > { %2844 = vmatprep.subr.bf16.mxu1 %v2704_v60 }
 0x657   : > { %2845 = vmatpush1.bf16.msra.mxu1 %v2703_v53 }
 0x658   : > { %v2672_v55 = vpop.permute.xlu1 %2671  ;;  %v18285_v27 = vpop.permute.xlu0 %2637 }
 0x659   : > { %v2712_v35 = vsel %vm1211_vm15, %v2636_v26, %v18285_v27  ;;  %v2727_v56 = vsel %vm1211_vm15, %v2670_v18, %v2672_v55 }
 0x65a   : > { %2846 = vmatprep.subr.bf16.mxu1 %v2712_v35 }
 0x65b   : > { %2847 = vmatpush1.bf16.msra.mxu1 %v2711_v28 }
 0x65c   : > { %v18290_v4 = vpop.permute.xlu1 %2655  ;;  %v2686_v19 = vpop.permute.xlu0 %2685 }
 0x65d   : > { %v2720_v57 = vsel %vm1211_vm15, %v2654_v58, %v18290_v4  ;;  %v2733_v63 = vsel %vm1211_vm15, %v2684_v1, %v2686_v19 }
 0x65e   : > { %2848 = vmatprep.subr.bf16.mxu1 %v2720_v57  ;;  %v2778_v48 = vsel %vm1130_vm7, %v2733_v63, 0 }
 0x65f   : > { %2849 = vmatpush1.bf16.msra.mxu1 %v2719_v13 }
 0x660   : > { %v2688_v23 = vpop.permute.xlu1 %2687  ;;  %v18296_v15 = vpop.permute.xlu0 %2673 }
 0x661   : > { %v2734_v34 = vsel %vm1211_vm15, %v2686_v19, %v2688_v23  ;;  %v2728_v31 = vsel %vm1211_vm15, %v2672_v55, %v18296_v15 }
 0x662   : > { %12494 = vmatprep.subr.msk.bf16.mxu0 %vm1130_vm7, %v2734_v34  ;;  %2850 = vmatprep.subr.bf16.mxu1 %v2728_v31 }
 0x663   : > { %2810 = vmatpush1.bf16.msra.mxu0 %v2778_v48  ;;  %2851 = vmatpush1.bf16.msra.mxu1 %v2727_v56 }
 0x664   : > { %v18306_v1 = vpop.permute.xlu1 %2691  ;;  %v2690_v8 = vpop.permute.xlu0 %2689 }
 0x665   : > { %v2735_v30 = vsel %vm1211_vm15, %v2688_v23, %v2690_v8  ;;  %v2736_v22 = vsel %vm1211_vm15, %v2690_v8, %v18306_v1 }
 0x666   : > { %12496 = vmatprep.subr.msk.bf16.mxu1 %vm1130_vm7, %v2736_v22  ;;  %v2784_v25 = vsel %vm1130_vm7, %v2735_v30, 0  ;;  %12495 = vmatmul.mubr.msk.bf16.vlgmr.msra.gmra.mrb[16].mxu0 %vm2773_vm3, %v18304_v21 }
 0x667   : > { %2853 = vmatpush1.bf16.msra.mxu1 %v2784_v25  ;;  %2919 = vmatprep.mubr.bf16.mxu0 %v20123_v29 }
 0x668   : > { %v2252_v18 = vpop.permute.xlu1 %2251  ;;  %v18316_v37 = vpop.permute.xlu0 %14288 }
 0x669   : > { %v14291_v51 = vunpack.i.h.bf16 %v18316_v37  ;;  %v14290_v6 = vunpack.i.l.bf16 %v18316_v37  ;;  %v2260_v26 = vsel %vm829_vm0, %v14256_v2, %v2252_v18  ;;  %v2514_v45 = vpack.c.bf16 %v2252_v18, %v18179_v41  ;;  %v2222_v37 = vld [vmem:[%s19943_s11 + $0x8] sm:$0xff] }
 0x66a   : > { %12497 = vmatmul.mubr.msk.bf16.vlgmr.msra.gmra.mrb[16].mxu1 %vm2773_vm3, %v18304_v21  ;;  %v2513_v55 = vpack.c.bf16 %v2260_v26, %v18001_v42 }
 0x66b   : > { %v2494_v61 = vsel %vm1082_vm13, %v14290_v6, %v14291_v51  ;;  %v2493_v54 = vsel %vm1082_vm13, %v18163_v10, %v14290_v6  ;;  %2962 = vmatprep.mubr.bf16.mxu1 %v20123_v29 }
 0x66c   : > { %v2548_v58 = vpack.c.bf16 %v2494_v61, %v2494_v61  ;;  %v2547_v17 = vpack.c.bf16 %v2493_v54, %v2493_v54  ;;  %v2320_v60 = vpop.permute.xlu1 %2319  ;;  %v2285_v53 = vpop.permute.xlu0 %2284 }
 0x66d   : > { %v2328_v10 = vsel %vm901_vm4, %v14266_v5, %v2320_v60  ;;  %v2293_v29 = vsel %vm865_vm1, %v14261_v32, %v2285_v53  ;;  %v2523_v42 = vpack.c.bf16 %v2320_v60, %v2285_v53 }
 0x66e   : > { %2695 = vrot.lane.b32.xlu1 %v2548_v58, %s16521_s26  ;;  %2693 = vrot.lane.b32.xlu0 %v2547_v17, %s16521_s26  ;;  %v2522_v2 = vpack.c.bf16 %v2328_v10, %v2293_v29 }
 0x672   : > { %2625 = vrot.lane.b32.xlu1 %v2513_v55, %s16521_s26  ;;  %2487 = vrot.lane.b32.xlu0 %v18179_v41, %s16519_s2 }
 0x676   : > { %2643 = vrot.lane.b32.xlu1 %v2522_v2, %s16521_s26  ;;  %2627 = vrot.lane.b32.xlu0 %v2514_v45, %s16521_s26 }
 0x67a   : > { %2645 = vrot.lane.b32.xlu0 %v2523_v42, %s16521_s26 }
 0x6a0   : > { %v2622_v52 = vpop.permute.xlu1 %2621 }
 0x6a1   : > { %v2705_v63 = vsel %vm1211_vm15, %v18280_v50, %v2622_v52 }
 0x6a4   : > { %v14294_v5 = vpop.permute.xlu1 %14293  ;;  %v2640_v14 = vpop.permute.xlu0 %2639 }
 0x6a5   : > { %v18347_v28 = vunpack.i.h.bf16 %v14294_v5  ;;  %v14295_v19 = vunpack.i.l.bf16 %v14294_v5  ;;  %v2713_v22 = vsel %vm1211_vm15, %v18285_v27, %v2640_v14 }
 0x6a7   : > { %20126 = vst [vmem:[#allocation43_spill] sm:$0xff] %v18347_v28  ;;  %v2395_v31 = vsel %vm974_vm8, %v14295_v19, %v18347_v28  ;;  %v2394_v56 = vsel %vm974_vm8, %v14276_v40, %v14295_v19  ;;  %v2223_v19 = vld [vmem:[%s19944_s12] sm:$0xff] }
 0x6a8   : > { %v14299_v35 = vpop.permute.xlu1 %14298  ;;  %v2658_v32 = vpop.permute.xlu0 %2657 }
 0x6a9   : > { %v18374_v7 = vunpack.i.h.bf16 %v14299_v35  ;;  %v14300_v40 = vunpack.i.l.bf16 %v14299_v35 }
 0x6ab   : > { %20127 = vst [vmem:[#allocation44_spill] sm:$0xff] %v18374_v7  ;;  %v2462_v61 = vsel %vm1046_vm10, %v14286_v38, %v14300_v40  ;;  %v2463_v54 = vsel %vm1046_vm10, %v14300_v40, %v18374_v7 }
 0x6ac   : > { %v18349_v57 = vpop.permute.xlu1 %2641  ;;  %v2624_v13 = vpop.permute.xlu0 %2623 }
 0x6ad   : > { %v2706_v41 = vsel %vm1211_vm15, %v2622_v52, %v2624_v13  ;;  %v2714_v23 = vsel %vm1211_vm15, %v2640_v14, %v18349_v57 }
 0x6ae   : > { %2887 = vmatprep.subr.bf16.mxu0 %v2706_v41 }
 0x6af   : > { %2888 = vmatpush1.bf16.msra.mxu0 %v2705_v63  ;;  %v2225_v63 = vld [vmem:[%s20128_s4] sm:$0xff] }
 0x6b0   : > { %v18356_v34 = vpop.permute.xlu1 %2659  ;;  %2889 = vmatprep.subr.bf16.mxu0 %v2714_v23  ;;  %v2353_v48 = vpop.permute.xlu0 %2352  ;;  %v16524_v23 = vmov 0.0|0.0  }
 0x6b1   : > { %v2360_v8 = vsel %vm935_vm6, %v14271_v43, %v2353_v48  ;;  %v2532_v50 = vpack.c.bf16 %v2395_v31, %v2353_v48  ;;  %v2722_v25 = vsel %vm1211_vm15, %v2658_v32, %v18356_v34  ;;  %v2721_v43 = vsel %vm1211_vm15, %v18290_v4, %v2658_v32  ;;  %v2224_v32 = vld [vmem:[%s19944_s12 + $0x8] sm:$0xff] }
 0x6b2   : > { %v2531_v30 = vpack.c.bf16 %v2394_v56, %v2360_v8 }
 0x6b3   : > { %2890 = vmatpush1.bf16.msra.mxu0 %v2713_v22  ;;  %2663 = vrot.lane.b32.xlu0 %v2532_v50, %s16521_s26 }
 0x6b4   : > { %v18371_v18 = vpop.permute.xlu1 %2677  ;;  %2891 = vmatprep.subr.bf16.mxu0 %v2722_v25  ;;  %v2676_v39 = vpop.permute.xlu0 %2675  ;;  %2661 = vrot.lane.b32.xlu1 %v2531_v30, %s16521_s26 }
 0x6b5   : > { %v2730_v27 = vsel %vm1211_vm15, %v2676_v39, %v18371_v18  ;;  %v2729_v60 = vsel %vm1211_vm15, %v18296_v15, %v2676_v39 }
 0x6b7   : > { %2892 = vmatpush1.bf16.msra.mxu0 %v2721_v43 }
 0x6b8   : > { %2893 = vmatprep.subr.bf16.mxu0 %v2730_v27  ;;  %v2420_v6 = vpop.permute.xlu0 %2419 }
 0x6b9   : > { %v2427_v58 = vsel %vm1010_vm9, %v14281_v62, %v2420_v6  ;;  %v2428_v4 = vsel %vm1010_vm9, %v2420_v6, %v17813_v0 }
 0x6ba   : > { %v2540_v17 = vpack.c.bf16 %v2462_v61, %v2427_v58  ;;  %v2541_v26 = vpack.c.bf16 %v2463_v54, %v2428_v4 }
 0x6bb   : > { %2894 = vmatpush1.bf16.msra.mxu0 %v2729_v60 }
 0x6bc   : > { %2679 = vrot.lane.b32.xlu1 %v2540_v17, %s16521_s26  ;;  %2681 = vrot.lane.b32.xlu0 %v2541_v26, %s16521_s26 }
 0x6e0   : > { %v18394_v16 = vpop.permute.xlu1 %2695  ;;  %v2694_v38 = vpop.permute.xlu0 %2693 }
 0x6e1   : > { %v2737_v3 = vsel %vm1211_vm15, %v18306_v1, %v2694_v38  ;;  %v2738_v62 = vsel %vm1211_vm15, %v2694_v38, %v18394_v16 }
 0x6e2   : > { %12498 = vmatprep.subr.msk.bf16.mxu0 %vm1130_vm7, %v2738_v62  ;;  %v2790_v53 = vsel %vm1130_vm7, %v2737_v3, 0 }
 0x6e3   : > { %2896 = vmatpush1.bf16.msra.mxu0 %v2790_v53 }
 0x6e4   : > { %v2488_v15 = vpop.permute.xlu0 %2487  ;;  %v2626_v55 = vpop.permute.xlu1 %2625 }
 0x6e5   : > { %v2495_v10 = vsel %vm1082_vm13, %v14291_v51, %v2488_v15  ;;  %v2496_v29 = vsel %vm1082_vm13, %v2488_v15, %v17865_v33  ;;  %v2221_v51 = vld [vmem:[%s19943_s11] sm:$0xff]  ;;  %v2707_v52 = vsel %vm1211_vm15, %v2624_v13, %v2626_v55  ;;  %v2226_v13 = vld [vmem:[%s20128_s4 + $0x8] sm:$0xff] }
 0x6e6   : > { %v2549_v45 = vpack.c.bf16 %v2495_v10, %v2495_v10  ;;  %v2550_v2 = vpack.c.bf16 %v2496_v29, %v2496_v29  ;;  %12499 = vmatmul.mubr.msk.bf16.vlgmr.msra.gmra.mrb[20].mxu0 %vm2773_vm3, %v18304_v21 }
 0x6e8   : > { %2699 = vrot.lane.b32.xlu0 %v2550_v2, %s16521_s26  ;;  %2697 = vrot.lane.b32.xlu1 %v2549_v45, %s16521_s26  ;;  %v2628_v1 = vpop.permute.xlu0 %2627  ;;  %v2644_v5 = vpop.permute.xlu1 %2643 }
 0x6e9   : > { %v2708_v42 = vsel %vm1211_vm15, %v2626_v55, %v2628_v1  ;;  %v2715_v41 = vsel %vm1211_vm15, %v18349_v57, %v2644_v5 }
 0x6ea   : > { %2930 = vmatprep.subr.bf16.mxu1 %v2708_v42 }
 0x6eb   : > { %2931 = vmatpush1.bf16.msra.mxu1 %v2707_v52 }
 0x6ec   : > { %2558 = vperm.xlu0 %14005, %v2222_v37   ;;  %2553 = vperm.xlu1 %14006, %v2221_v51   ;;  %v2646_v14 = vpop.permute.xlu0 %2645 }
 0x6ed   : > { %v2716_v35 = vsel %vm1211_vm15, %v2644_v5, %v2646_v14 }
 0x6ee   : > { %2932 = vmatprep.subr.bf16.mxu1 %v2716_v35 }
 0x6ef   : > { %2933 = vmatpush1.bf16.msra.mxu1 %v2715_v41 }
 0x6f0   : > { %2996 = vperm.xlu0 %14005, %v2224_v32   ;;  %2991 = vperm.xlu1 %14006, %v2223_v19  }
 0x6f4   : > { %3022 = vperm.xlu0 %14005, %v2226_v13   ;;  %3017 = vperm.xlu1 %14006, %v2225_v63  }
 0x6f8   : > { %3774 = vrot.lane.b32.xlu1 %v16524_v23, %s16521_s26 }
 0x725   : > { %v2664_v31 = vpop.permute.xlu0 %2663 }
 0x726   : > { %v2662_v48 = vpop.permute.xlu1 %2661 }
 0x727   : > { %v2724_v57 = vsel %vm1211_vm15, %v2662_v48, %v2664_v31  ;;  %v2723_v56 = vsel %vm1211_vm15, %v18356_v34, %v2662_v48 }
 0x728   : > { %2934 = vmatprep.subr.bf16.mxu1 %v2724_v57 }
 0x729   : > { %2935 = vmatpush1.bf16.msra.mxu1 %v2723_v56 }
 0x72e   : > { %v2680_v8 = vpop.permute.xlu1 %2679  ;;  %v2682_v50 = vpop.permute.xlu0 %2681 }
 0x72f   : > { %v2732_v30 = vsel %vm1211_vm15, %v2680_v8, %v2682_v50  ;;  %v2731_v22 = vsel %vm1211_vm15, %v18371_v18, %v2680_v8 }
 0x730   : > { %2936 = vmatprep.subr.bf16.mxu1 %v2732_v30 }
 0x731   : > { %2937 = vmatpush1.bf16.msra.mxu1 %v2731_v22 }
 0x739   : > { %v2835_v25 = vpop.f32.mrb[16].mxu0 }
 0x73a   : > { %v2837_v39 = vpop.f32.mrb[17].mxu0 }
 0x73b   : > { %v2839_v40 = vpop.f32.mrb[18].mxu0 }
 0x73c   : > { %v2841_v43 = vpop.f32.mrb[19].mxu0 }
 0x73d   : > { %v2878_v27 = vpop.f32.mrb[16].mxu1 }
 0x73e   : > { %v18441_v6 = vpop.f32.mrb[17].mxu1 }
 0x73f   : > { %v2882_v61 = vpop.f32.mrb[18].mxu1 }
 0x740   : > { %v18443_v34 = vpop.f32.mrb[19].mxu1 }
 0x75a   : > { %v2698_v54 = vpop.permute.xlu1 %2697  ;;  %v2700_v58 = vpop.permute.xlu0 %2699 }
 0x75b   : > { %v2739_v4 = vsel %vm1211_vm15, %v18394_v16, %v2698_v54  ;;  %v2740_v17 = vsel %vm1211_vm15, %v2698_v54, %v2700_v58 }
 0x75c   : > { %12500 = vmatprep.subr.msk.bf16.mxu1 %vm1130_vm7, %v2740_v17  ;;  %v2796_v18 = vsel %vm1130_vm7, %v2739_v4, 0  ;;  %vm4080_vm7 = vcmask 130048  }
 0x75d   : > { %2939 = vmatpush1.bf16.msra.mxu1 %v2796_v18 }
 0x760   : > { %12501 = vmatmul.mubr.msk.bf16.vlgmr.msra.gmra.mrb[20].mxu1 %vm2773_vm3, %v18304_v21 }
 0x76b   : > { %v18452_v26 = vpop.permute.xlu1 %2553  ;;  %v18454_v60 = vpop.permute.xlu0 %2558 }
 0x76c   : > { %v2836_v38 = vadd.f32 %v2835_v25, %v18452_v26  ;;  %v2838_v3 = vadd.f32 %v2837_v39, %v18452_v26  ;;  %v2879_v16 = vadd.f32 %v2878_v27, %v18452_v26  ;;  %v2840_v62 = vadd.f32 %v2839_v40, %v18454_v60 }
 0x76d   : > { %v2842_v53 = vadd.f32 %v2841_v43, %v18454_v60  ;;  %v2883_v15 = vadd.f32 %v2882_v61, %v18454_v60  ;;  %v2881_v54 = vadd.f32 %v18441_v6, %v18452_v26  ;;  %v2885_v6 = vadd.f32 %v18443_v34, %v18454_v60 }
 0x76e   : > { %v2973_v55 = vmax.f32 %v2836_v38, 0.0  ;;  %v2974_v10 = vmax.f32 %v2838_v3, 0.0  ;;  %v2975_v29 = vmax.f32 %v2879_v16, 0.0  ;;  %v2981_v21 = vmax.f32 %v2840_v62, 0.0 }
 0x76f   : > { %v2982_v45 = vmax.f32 %v2842_v53, 0.0  ;;  %v2983_v2 = vmax.f32 %v2883_v15, 0.0  ;;  %v18462_v1 = vpop.permute.xlu1 %2991  ;;  %v18464_v42 = vpop.permute.xlu0 %2996  ;;  %v2976_v58 = vmax.f32 %v2881_v54, 0.0 }
 0x770   : > { %v2999_v37 = vmul.f32 %v18462_v1, %v2973_v55  ;;  %v3000_v51 = vmul.f32 %v18462_v1, %v2974_v10  ;;  %v3001_v52 = vmul.f32 %v18462_v1, %v2975_v29  ;;  %v3007_v5 = vmul.f32 %v18464_v42, %v2981_v21 }
 0x771   : > { %v3008_v14 = vmul.f32 %v18464_v42, %v2982_v45  ;;  %v3009_v35 = vmul.f32 %v18464_v42, %v2983_v2  ;;  %v3002_v3 = vmul.f32 %v18462_v1, %v2976_v58 }
 0x773   : > { %v18472_v32 = vpop.permute.xlu1 %3017  ;;  %v18474_v19 = vpop.permute.xlu0 %3022 }
 0x774   : > { %v3025_v41 = vadd.f32 %v18472_v32, %v2999_v37  ;;  %v3026_v13 = vadd.f32 %v18472_v32, %v3000_v51  ;;  %v3027_v63 = vadd.f32 %v18472_v32, %v3001_v52  ;;  %v3033_v23 = vadd.f32 %v18474_v19, %v3007_v5 }
 0x775   : > { %v3034_v31 = vadd.f32 %v18474_v19, %v3008_v14  ;;  %v3035_v48 = vadd.f32 %v18474_v19, %v3009_v35  ;;  %v3028_v15 = vadd.f32 %v18472_v32, %v3002_v3  ;;  %v2984_v51 = vmax.f32 %v2885_v6, 0.0 }
 0x776   : > { %v3041_v57 = vmul.f32 %v3025_v41, %v17278_v47  ;;  %v3042_v56 = vmul.f32 %v3026_v13, %v17288_v12  ;;  %v18485_v8 = vmul.f32 %v3027_v63, %v17298_v24  ;;  %v3049_v50 = vmul.f32 %v3033_v23, %v17278_v47 }
 0x777   : > { %v3050_v30 = vmul.f32 %v3034_v31, %v17288_v12  ;;  %v18490_v22 = vmul.f32 %v3035_v48, %v17298_v24  ;;  %v18538_v45 = vmul.f32 %v3028_v15, %v17316_v49  ;;  %v3010_v34 = vmul.f32 %v18464_v42, %v2984_v51  ;;  %v3775_v63 = vpop.permute.xlu1 %3774 }
 0x778   : > { %v14307_v25 = vpack.i.bf16 %v3042_v56, %v3041_v57  ;;  %v14342_v39 = vpack.i.bf16 %v3049_v50, %v18485_v8  ;;  %v3603_v40 = vpack.c.bf16 %v3049_v50, %v3041_v57 }
 0x779   : > { %v3604_v43 = vpack.c.bf16 %v3050_v30, %v3042_v56  ;;  %v14387_v27 = vpack.i.bf16 %v18490_v22, %v3050_v30  ;;  %v3036_v35 = vadd.f32 %v18474_v19, %v3010_v34 }
 0x77a   : > { %14308 = vrot.lane.b32.xlu0 %v14307_v25, %s16513_s19  ;;  %14303 = vrot.lane.b32.xlu1 %v14307_v25, %s16512_s21 }
 0x77b   : > { %v18564_v41 = vmul.f32 %v3036_v35, %v17316_v49 }
 0x77e   : > { %14318 = vrot.lane.b32.xlu0 %v14307_v25, %s16515_s25  ;;  %14313 = vrot.lane.b32.xlu1 %v14307_v25, %s16514_s1 }
 0x782   : > { %14328 = vrot.lane.b32.xlu0 %v14307_v25, %s16517_s5  ;;  %14323 = vrot.lane.b32.xlu1 %v14307_v25, %s16516_s22 }
 0x786   : > { %14338 = vrot.lane.b32.xlu0 %v14307_v25, %s16519_s2  ;;  %14333 = vrot.lane.b32.xlu1 %v14307_v25, %s16518_s30 }
 0x78a   : > { %14343 = vrot.lane.b32.xlu0 %v14342_v39, %s16512_s21  ;;  %3776 = vrot.lane.b32.xlu1 %v3603_v40, %s16521_s26 }
 0x78e   : > { %14353 = vrot.lane.b32.xlu0 %v14342_v39, %s16514_s1  ;;  %14348 = vrot.lane.b32.xlu1 %v14342_v39, %s16513_s19 }
 0x792   : > { %14363 = vrot.lane.b32.xlu0 %v14342_v39, %s16516_s22  ;;  %14358 = vrot.lane.b32.xlu1 %v14342_v39, %s16515_s25 }
 0x796   : > { %14373 = vrot.lane.b32.xlu0 %v14342_v39, %s16518_s30  ;;  %14368 = vrot.lane.b32.xlu1 %v14342_v39, %s16517_s5 }
 0x79a   : > { %3778 = vrot.lane.b32.xlu0 %v3604_v43, %s16521_s26  ;;  %14378 = vrot.lane.b32.xlu1 %v14342_v39, %s16519_s2 }
 0x79e   : > { %14388 = vrot.lane.b32.xlu0 %v14387_v27, %s16513_s19  ;;  %14383 = vrot.lane.b32.xlu1 %v14387_v27, %s16512_s21 }
 0x7a2   : > { %14398 = vrot.lane.b32.xlu0 %v14387_v27, %s16515_s25  ;;  %14393 = vrot.lane.b32.xlu1 %v14387_v27, %s16514_s1 }
 0x7a6   : > { %14408 = vrot.lane.b32.xlu0 %v14387_v27, %s16517_s5  ;;  %14403 = vrot.lane.b32.xlu1 %v14387_v27, %s16516_s22 }
 0x7aa   : > { %14418 = vrot.lane.b32.xlu0 %v14387_v27, %s16519_s2  ;;  %14413 = vrot.lane.b32.xlu1 %v14387_v27, %s16518_s30 }
 0x7b9   : > { %v2921_v4 = vpop.f32.mrb[20].mxu0 }
 0x7ba   : > { %v2922_v17 = vadd.f32 %v2921_v4, %v18452_v26  ;;  %v18525_v18 = vpop.f32.mrb[21].mxu0 }
 0x7bb   : > { %v2925_v38 = vpop.f32.mrb[22].mxu0 }
 0x7bc   : > { %v2977_v16 = vmax.f32 %v2922_v17, 0.0  ;;  %v2926_v62 = vadd.f32 %v2925_v38, %v18454_v60  ;;  %v18529_v53 = vpop.f32.mrb[23].mxu0 }
 0x7be   : > { %v3003_v55 = vmul.f32 %v18462_v1, %v2977_v16  ;;  %v2985_v10 = vmax.f32 %v2926_v62, 0.0 }
 0x7c0   : > { %v3029_v29 = vadd.f32 %v18472_v32, %v3003_v55  ;;  %v3011_v21 = vmul.f32 %v18464_v42, %v2985_v10 }
 0x7c2   : > { %v18541_v2 = vmul.f32 %v3029_v29, %v17365_v20  ;;  %v3037_v37 = vadd.f32 %v18474_v19, %v3011_v21 }
 0x7c4   : > { %v18545_v52 = vmul.f32 %v3037_v37, %v17365_v20  ;;  %v18549_v5 = vpack.i.bf16 %v18541_v2, %v18538_v45 }
 0x7c6   : > { %14428 = vrot.lane.b32.xlu0 %v18549_v5, %s16513_s19  ;;  %14423 = vrot.lane.b32.xlu1 %v18549_v5, %s16512_s21  ;;  %v18572_v13 = vpack.i.bf16 %v18545_v52, %v18564_v41 }
 0x7ca   : > { %14438 = vrot.lane.b32.xlu0 %v18549_v5, %s16515_s25  ;;  %14433 = vrot.lane.b32.xlu1 %v18549_v5, %s16514_s1 }
 0x7ce   : > { %14448 = vrot.lane.b32.xlu0 %v18549_v5, %s16517_s5  ;;  %14443 = vrot.lane.b32.xlu1 %v18549_v5, %s16516_s22 }
 0x7d2   : > { %14453 = vrot.lane.b32.xlu0 %v18572_v13, %s16512_s21  ;;  %14458 = vrot.lane.b32.xlu1 %v18572_v13, %s16513_s19 }
 0x7d6   : > { %14463 = vrot.lane.b32.xlu0 %v18572_v13, %s16514_s1  ;;  %14468 = vrot.lane.b32.xlu1 %v18572_v13, %s16515_s25 }
 0x7da   : > { %14473 = vrot.lane.b32.xlu0 %v18572_v13, %s16516_s22  ;;  %14478 = vrot.lane.b32.xlu1 %v18572_v13, %s16517_s5 }
 0x7ec   : > { %v18586_v23 = vpop.permute.xlu1 %14303  ;;  %v18588_v31 = vpop.permute.xlu0 %14308 }
 0x7ed   : > { %v14305_v62 = vunpack.i.l.bf16 %v18586_v23  ;;  %v14310_v14 = vunpack.i.l.bf16 %v18588_v31 }
 0x7ef   : > { %v3108_v35 = vsel %vm829_vm0, %v18025_v46, %v14305_v62 }
 0x7f0   : > { %v18590_v48 = vpop.permute.xlu1 %14313  ;;  %v18592_v57 = vpop.permute.xlu0 %14318 }
 0x7f1   : > { %v14320_v17 = vunpack.i.l.bf16 %v18592_v57  ;;  %v14315_v61 = vunpack.i.l.bf16 %v18590_v48 }
 0x7f3   : > { %v3240_v49 = vsel %vm901_vm4, %v18037_v59, %v14315_v61 }
 0x7f4   : > { %v18594_v56 = vpop.permute.xlu1 %14323  ;;  %v18596_v50 = vpop.permute.xlu0 %14328 }
 0x7f5   : > { %v19993_v38 = vunpack.i.l.bf16 %v18594_v56  ;;  %v14330_v51 = vunpack.i.l.bf16 %v18596_v50 }
 0x7f8   : > { %v18598_v30 = vpop.permute.xlu1 %14333  ;;  %v18600_v25 = vpop.permute.xlu0 %14338 }
 0x7fc   : > { %v3777_v39 = vpop.permute.xlu1 %3776  ;;  %v18602_v40 = vpop.permute.xlu0 %14343 }
 0x7fd   : > { %v14346_v54 = vunpack.i.h.bf16 %v18602_v40  ;;  %v3936_v47 = vsel %vm1211_vm15, %v3775_v63, %v3777_v39 }
 0x7ff   : > { %v3116_v10 = vsel %vm829_vm0, %v18025_v46, %v14346_v54 }
 0x800   : > { %v18604_v43 = vpop.permute.xlu1 %14348  ;;  %v18606_v27 = vpop.permute.xlu0 %14353 }
 0x801   : > { %v14351_v6 = vunpack.i.h.bf16 %v18604_v43  ;;  %v14356_v29 = vunpack.i.h.bf16 %v18606_v27 }
 0x803   : > { %v3182_v20 = vsel %vm865_vm1, %v17552_v36, %v14351_v6  ;;  %v3248_v24 = vsel %vm901_vm4, %v18037_v59, %v14356_v29 }
 0x804   : > { %v18609_v58 = vpop.permute.xlu1 %14358  ;;  %v18611_v4 = vpop.permute.xlu0 %14363  ;;  %v3629_v46 = vpack.c.bf16 %v3248_v24, %v3240_v49  ;;  %v20002_v49 = vunpack.i.h.bf16 %v18590_v48 }
 0x805   : > { %v14361_v3 = vunpack.i.h.bf16 %v18609_v58  ;;  %v19992_v16 = vunpack.i.h.bf16 %v18611_v4 }
 0x807   : > { %v3638_v15 = vpack.c.bf16 %v14361_v3, %v14320_v17  ;;  %v3647_v55 = vpack.c.bf16 %v19992_v16, %v19993_v38  ;;  %v3611_v38 = vpack.c.bf16 %v3116_v10, %v3108_v35  ;;  %v3174_v35 = vsel %vm865_vm1, %v17552_v36, %v14310_v14 }
 0x808   : > { %v18626_v21 = vpop.permute.xlu1 %14368  ;;  %v18628_v37 = vpop.permute.xlu0 %14373  ;;  %v3620_v12 = vpack.c.bf16 %v3182_v20, %v3174_v35  ;;  %v20129_v36 = vunpack.i.h.bf16 %v18586_v23  ;;  %v20003_v20 = vunpack.i.h.bf16 %v18592_v57 }
 0x809   : > { %v19996_v34 = vunpack.i.h.bf16 %v18626_v21  ;;  %3864 = vrot.lane.b32.xlu0 %v3647_v55, %s16521_s26  ;;  %3846 = vrot.lane.b32.xlu1 %v3638_v15, %s16521_s26 }
 0x80a   : > { %v3109_v59 = vsel %vm829_vm0, %v14305_v62, %v20129_v36 }
 0x80b   : > { %v3656_v16 = vpack.c.bf16 %v19996_v34, %v14330_v51 }
 0x80c   : > { %v18644_v55 = vpop.permute.xlu1 %14378  ;;  %v18646_v15 = vpop.permute.xlu0 %3778 }
 0x80d   : > { %3792 = vrot.lane.b32.xlu0 %v3611_v38, %s16521_s26  ;;  %3882 = vrot.lane.b32.xlu1 %v3656_v16, %s16521_s26  ;;  %v3937_v34 = vsel %vm1211_vm15, %v3777_v39, %v18646_v15 }
 0x80e   : > { %4084 = vmatprep.subr.bf16.mxu0 %v3937_v34 }
 0x80f   : > { %4085 = vmatpush1.bf16.msra.mxu0 %v3936_v47  ;;  %v20130_v47 = vunpack.i.h.bf16 %v18588_v31 }
 0x810   : > { %v18659_v38 = vpop.permute.xlu1 %14383  ;;  %v18661_v16 = vpop.permute.xlu0 %14388 }
 0x811   : > { %v14385_v33 = vunpack.i.l.bf16 %v18659_v38  ;;  %v14390_v10 = vunpack.i.l.bf16 %v18661_v16  ;;  %3828 = vrot.lane.b32.xlu0 %v3629_v46, %s16521_s26  ;;  %3810 = vrot.lane.b32.xlu1 %v3620_v12, %s16521_s26  ;;  %v3175_v24 = vsel %vm865_vm1, %v14310_v14, %v20130_v47 }
 0x813   : > { %v3117_v63 = vsel %vm829_vm0, %v14346_v54, %v14385_v33  ;;  %v3183_v39 = vsel %vm865_vm1, %v14351_v6, %v14390_v10  ;;  %v3241_v54 = vsel %vm901_vm4, %v14315_v61, %v20002_v49  ;;  %v3306_v6 = vsel %vm935_vm6, %v14320_v17, %v20003_v20 }
 0x814   : > { %v18677_v34 = vpop.permute.xlu1 %14393  ;;  %v18679_v46 = vpop.permute.xlu0 %14398  ;;  %v3612_v12 = vpack.c.bf16 %v3117_v63, %v3109_v59  ;;  %v3621_v35 = vpack.c.bf16 %v3183_v39, %v3175_v24  ;;  %v20131_v49 = vunpack.i.h.bf16 %v18594_v56  ;;  %v20132_v17 = vunpack.i.l.bf16 %v18594_v56 }
 0x815   : > { %v14395_v62 = vunpack.i.l.bf16 %v18677_v34  ;;  %v14400_v36 = vunpack.i.l.bf16 %v18679_v46  ;;  %v20015_v0 = vunpack.i.h.bf16 %v18677_v34 }
 0x816   : > { %3794 = vrot.lane.b32.xlu0 %v3612_v12, %s16521_s26  ;;  %3812 = vrot.lane.b32.xlu1 %v3621_v35, %s16521_s26  ;;  %v20007_v35 = vunpack.i.h.bf16 %v18659_v38 }
 0x817   : > { %v3249_v59 = vsel %vm901_vm4, %v14356_v29, %v14395_v62  ;;  %v3313_v24 = vsel %vm935_vm6, %v14361_v3, %v14400_v36  ;;  %v3370_v29 = vsel %vm974_vm8, %v20132_v17, %v20131_v49  ;;  %v20133_v3 = vunpack.i.h.bf16 %v18596_v50 }
 0x818   : > { %v18695_v63 = vpop.permute.xlu1 %14403  ;;  %v18697_v39 = vpop.permute.xlu0 %14408  ;;  %v3630_v47 = vpack.c.bf16 %v3249_v59, %v3241_v54  ;;  %v3639_v12 = vpack.c.bf16 %v3313_v24, %v3306_v6  ;;  %v14335_v54 = vunpack.i.l.bf16 %v18598_v30  ;;  %v20134_v59 = vunpack.i.h.bf16 %v18611_v4 }
 0x819   : > { %v14405_v14 = vunpack.i.l.bf16 %v18695_v63  ;;  %v20006_v61 = vunpack.i.l.bf16 %v18697_v39  ;;  %v3436_v20 = vsel %vm1010_vm9, %v14330_v51, %v20133_v3  ;;  %v20135_v49 = vunpack.i.h.bf16 %v18626_v21 }
 0x81a   : > { %3830 = vrot.lane.b32.xlu0 %v3630_v47, %s16521_s26  ;;  %3848 = vrot.lane.b32.xlu1 %v3639_v12, %s16521_s26  ;;  %v14376_v12 = vunpack.i.h.bf16 %v18628_v37  ;;  %v3118_v6 = vsel %vm829_vm0, %v14385_v33, %v20007_v35  ;;  %v14350_v33 = vunpack.i.l.bf16 %v18604_v43 }
 0x81b   : > { %v3378_v24 = vsel %vm974_vm8, %v20134_v59, %v14405_v14  ;;  %v3444_v51 = vsel %vm1010_vm9, %v20135_v49, %v20006_v61  ;;  %v20136_v49 = vunpack.i.h.bf16 %v18598_v30 }
 0x81c   : > { %v18723_v17 = vpop.permute.xlu1 %14413  ;;  %v3648_v3 = vpack.c.bf16 %v3378_v24, %v3370_v29  ;;  %v3657_v47 = vpack.c.bf16 %v3444_v51, %v3436_v20  ;;  %v20137_v20 = vunpack.i.l.bf16 %v18602_v40  ;;  %v20138_v29 = vunpack.i.h.bf16 %v18586_v23  ;;  %v18747_v28 = vpop.permute.xlu0 %14418 }
 0x81d   : > { %v14415_v59 = vunpack.i.l.bf16 %v18723_v17  ;;  %v3502_v61 = vsel %vm1046_vm10, %v14335_v54, %v20136_v49  ;;  %v20140_v23 = vunpack.i.h.bf16 %v18588_v31  ;;  %v20141_v31 = vunpack.i.h.bf16 %v18590_v48 }
 0x81e   : > { %3866 = vrot.lane.b32.xlu0 %v3648_v3, %s16521_s26  ;;  %3884 = vrot.lane.b32.xlu1 %v3657_v47, %s16521_s26  ;;  %v3110_v24 = vsel %vm829_vm0, %v20138_v29, %v20137_v20  ;;  %v20139_v3 = vunpack.i.h.bf16 %v18661_v16  ;;  %v14401_v20 = vunpack.i.h.bf16 %v18679_v46  ;;  %v14420_v29 = vunpack.i.l.bf16 %v18747_v28 }
 0x81f   : > { %v3510_v51 = vsel %vm1046_vm10, %v14376_v12, %v14415_v59  ;;  %v3613_v7 = vpack.c.bf16 %v3118_v6, %v3110_v24  ;;  %v3176_v49 = vsel %vm865_vm1, %v20140_v23, %v14350_v33 }
 0x820   : > { %v3666_v35 = vpack.c.bf16 %v3510_v51, %v3502_v61  ;;  %v3184_v47 = vsel %vm865_vm1, %v14390_v10, %v20139_v3  ;;  %v14355_v61 = vunpack.i.l.bf16 %v18606_v27  ;;  %v3250_v10 = vsel %vm901_vm4, %v14395_v62, %v20015_v0 }
 0x821   : > { %v3622_v6 = vpack.c.bf16 %v3184_v47, %v3176_v49  ;;  %v14360_v62 = vunpack.i.l.bf16 %v18609_v58  ;;  %v14381_v51 = vunpack.i.h.bf16 %v18644_v55  ;;  %v3665_v3 = vpack.c.bf16 %v14376_v12, %v14335_v54 }
 0x822   : > { %3902 = vrot.lane.b32.xlu0 %v3666_v35, %s16521_s26  ;;  %3796 = vrot.lane.b32.xlu1 %v3613_v7, %s16521_s26  ;;  %v14341_v35 = vunpack.i.h.bf16 %v18600_v25  ;;  %v14340_v7 = vunpack.i.l.bf16 %v18600_v25  ;;  %v3242_v24 = vsel %vm901_vm4, %v20141_v31, %v14355_v61  ;;  %v3314_v23 = vsel %vm935_vm6, %v14400_v36, %v14401_v20 }
 0x823   : > { %v3631_v47 = vpack.c.bf16 %v3250_v10, %v3242_v24  ;;  %v20012_v49 = vunpack.i.h.bf16 %v18695_v63  ;;  %v20142_v54 = vunpack.i.h.bf16 %v18592_v57  ;;  %v20014_v36 = vunpack.i.l.bf16 %v18611_v4 }
 0x824   : > { %v3568_v48 = vsel %vm1082_vm13, %v14340_v7, %v14341_v35  ;;  %v20143_v57 = vunpack.i.h.bf16 %v18594_v56  ;;  %v20145_v56 = vunpack.i.h.bf16 %v18596_v50 }
 0x825   : > { %v3307_v12 = vsel %vm935_vm6, %v20142_v54, %v14360_v62  ;;  %v3379_v24 = vsel %vm974_vm8, %v14405_v14, %v20012_v49  ;;  %v20016_v54 = vunpack.i.l.bf16 %v18626_v21 }
 0x826   : > { %3814 = vrot.lane.b32.xlu0 %v3622_v6, %s16521_s26  ;;  %14483 = vrot.lane.b32.xlu1 %v18549_v5, %s16518_s30  ;;  %v3576_v6 = vsel %vm1082_vm13, %v14381_v51, %v14420_v29  ;;  %v3640_v10 = vpack.c.bf16 %v3314_v23, %v3307_v12  ;;  %v2924_v12 = vadd.f32 %v18525_v18, %v18452_v26 }
 0x827   : > { %v3675_v31 = vpack.c.bf16 %v3576_v6, %v3568_v48  ;;  %v20144_v6 = vunpack.i.l.bf16 %v18697_v39  ;;  %v14416_v48 = vunpack.i.h.bf16 %v18723_v17 }
 0x82a   : > { %3900 = vrot.lane.b32.xlu0 %v3665_v3, %s16521_s26  ;;  %3832 = vrot.lane.b32.xlu1 %v3631_v47, %s16521_s26  ;;  %v20013_v3 = vunpack.i.h.bf16 %v18697_v39  ;;  %v3371_v47 = vsel %vm974_vm8, %v20143_v57, %v20014_v36  ;;  %v2978_v36 = vmax.f32 %v2924_v12, 0.0 }
 0x82b   : > { %v3649_v23 = vpack.c.bf16 %v3379_v24, %v3371_v47  ;;  %v14375_v24 = vunpack.i.l.bf16 %v18628_v37  ;;  %v3674_v47 = vpack.c.bf16 %v14381_v51, %v14340_v7  ;;  %v20146_v7 = vunpack.i.h.bf16 %v18598_v30 }
 0x82c   : > { %v3445_v14 = vsel %vm1010_vm9, %v20144_v6, %v20013_v3 }
 0x82d   : > { %v3503_v51 = vsel %vm1046_vm10, %v20146_v7, %v14375_v24 }
 0x82e   : > { %3850 = vrot.lane.b32.xlu0 %v3640_v10, %s16521_s26  ;;  %3920 = vrot.lane.b32.xlu1 %v3675_v31, %s16521_s26  ;;  %v2928_v10 = vadd.f32 %v18529_v53, %v18454_v60  ;;  %v3437_v31 = vsel %vm1010_vm9, %v20145_v56, %v20016_v54  ;;  %v3511_v53 = vsel %vm1046_vm10, %v14415_v59, %v14416_v48  ;;  %v14380_v59 = vunpack.i.l.bf16 %v18644_v55 }
 0x82f   : > { %v3658_v49 = vpack.c.bf16 %v3445_v14, %v3437_v31 }
 0x830   : > { %v2986_v0 = vmax.f32 %v2928_v10, 0.0 }
 0x832   : > { %14488 = vrot.lane.b32.xlu0 %v18572_v13, %s16518_s30  ;;  %3868 = vrot.lane.b32.xlu1 %v3649_v23, %s16521_s26  ;;  %v20017_v23 = vunpack.i.h.bf16 %v18747_v28 }
 0x833   : > { %v2964_v57 = vpop.f32.mrb[20].mxu1 }
 0x834   : > { %v2965_v18 = vadd.f32 %v2964_v57, %v18452_v26  ;;  %v2966_v6 = vpop.f32.mrb[21].mxu1  ;;  %v3667_v57 = vpack.c.bf16 %v3511_v53, %v3503_v51  ;;  %v3577_v30 = vsel %vm1082_vm13, %v14420_v29, %v20017_v23 }
 0x835   : > { %v2968_v3 = vpop.f32.mrb[22].mxu1  ;;  %v2967_v14 = vadd.f32 %v2966_v6, %v18452_v26 }
 0x836   : > { %v2979_v50 = vmax.f32 %v2965_v18, 0.0  ;;  %v2969_v56 = vadd.f32 %v2968_v3, %v18454_v60  ;;  %v2970_v54 = vpop.f32.mrb[23].mxu1  ;;  %3886 = vrot.lane.b32.xlu0 %v3658_v49, %s16521_s26  ;;  %3918 = vrot.lane.b32.xlu1 %v3674_v47, %s16521_s26  ;;  %v3004_v47 = vmul.f32 %v18462_v1, %v2978_v36  ;;  %v3012_v18 = vmul.f32 %v18464_v42, %v2986_v0 }
 0x837   : > { %v2971_v12 = vadd.f32 %v2970_v54, %v18454_v60  ;;  %v3569_v60 = vsel %vm1082_vm13, %v14341_v35, %v14380_v59  ;;  %v2980_v54 = vmax.f32 %v2967_v14, 0.0 }
 0x838   : > { %v3005_v10 = vmul.f32 %v18462_v1, %v2979_v50  ;;  %v2987_v3 = vmax.f32 %v2969_v56, 0.0  ;;  %v18838_v31 = vpop.permute.xlu1 %14423  ;;  %v18840_v49 = vpop.permute.xlu0 %14428  ;;  %v3676_v50 = vpack.c.bf16 %v3577_v30, %v3569_v60  ;;  %v3038_v56 = vadd.f32 %v18474_v19, %v3012_v18 }
 0x839   : > { %v2988_v6 = vmax.f32 %v2971_v12, 0.0  ;;  %v3006_v25 = vmul.f32 %v18462_v1, %v2980_v54 }
 0x83a   : > { %v3013_v26 = vmul.f32 %v18464_v42, %v2987_v3  ;;  %14493 = vrot.lane.b32.xlu0 %v18549_v5, %s16519_s2  ;;  %3904 = vrot.lane.b32.xlu1 %v3667_v57, %s16521_s26  ;;  %v3031_v29 = vadd.f32 %v18472_v32, %v3005_v10  ;;  %v3030_v5 = vadd.f32 %v18472_v32, %v3004_v47  ;;  %v14425_v3 = vunpack.i.l.bf16 %v18838_v31 }
 0x83b   : > { %v3014_v7 = vmul.f32 %v18464_v42, %v2988_v6  ;;  %v3606_v42 = vpack.c.bf16 %v18564_v41, %v18538_v45  ;;  %v20147_v57 = vpack.c.bf16 %v18490_v22, %v18485_v8  ;;  %v3032_v30 = vadd.f32 %v18472_v32, %v3006_v25 }
 0x83c   : > { %v3039_v36 = vadd.f32 %v18474_v19, %v3013_v26  ;;  %v18858_v0 = vpop.permute.xlu1 %14433  ;;  %v18860_v53 = vpop.permute.xlu0 %14438  ;;  %v18870_v35 = vmul.f32 %v3031_v29, %v17357_v44  ;;  %v18882_v10 = vmul.f32 %v3030_v5, %v17351_v9  ;;  %v14430_v45 = vunpack.i.l.bf16 %v18840_v49 }
 0x83d   : > { %v3040_v1 = vadd.f32 %v18474_v19, %v3014_v7  ;;  %v20148_v26 = vunpack.i.l.bf16 %v18602_v40  ;;  %v14435_v60 = vunpack.i.l.bf16 %v18858_v0  ;;  %v14440_v54 = vunpack.i.l.bf16 %v18860_v53 }
 0x83e   : > { %3922 = vrot.lane.b32.xlu0 %v3676_v50, %s16521_s26  ;;  %14498 = vrot.lane.b32.xlu1 %v18572_v13, %s16519_s2  ;;  %v18873_v51 = vmul.f32 %v3039_v36, %v17357_v44  ;;  %v18885_v13 = vmul.f32 %v3038_v56, %v17351_v9  ;;  %v18902_v19 = vpack.i.bf16 %v18870_v35, %v18882_v10  ;;  %v20149_v36 = vunpack.i.h.bf16 %v18661_v16 }
 0x83f   : > { %v18911_v32 = vmul.f32 %v3040_v1, %v17410_v11  ;;  %v3111_v6 = vsel %vm829_vm0, %v20148_v26, %v14425_v3  ;;  %v18925_v29 = vmul.f32 %v3032_v30, %v17410_v11  ;;  %v3177_v40 = vsel %vm865_vm1, %v14350_v33, %v14430_v45 }
 0x840   : > { %v18875_v14 = vpop.permute.xlu1 %14443  ;;  %v18877_v12 = vpop.permute.xlu0 %14448  ;;  %v18906_v18 = vpack.i.bf16 %v18873_v51, %v18885_v13  ;;  %v20150_v5 = vunpack.i.h.bf16 %v18659_v38  ;;  %v3243_v16 = vsel %vm901_vm4, %v14355_v61, %v14435_v60  ;;  %v18954_v38 = vsel %vm935_vm6, %v14360_v62, %v14440_v54 }
 0x841   : > { %v18962_v33 = vpack.i.bf16 %v18911_v32, %v18925_v29  ;;  %v14445_v27 = vunpack.i.l.bf16 %v18875_v14  ;;  %v14450_v61 = vunpack.i.l.bf16 %v18877_v12  ;;  %v20151_v62 = vunpack.i.h.bf16 %v18677_v34 }
 0x842   : > { %3780 = vrot.lane.b32.xlu0 %v20147_v57, %s16521_s26  ;;  %3782 = vrot.lane.b32.xlu1 %v3606_v42, %s16521_s26  ;;  %v20152_v34 = vunpack.i.l.bf16 %v18611_v4 }
 0x844   : > { %v18896_v41 = vpop.permute.xlu1 %14458  ;;  %v18898_v47 = vpop.permute.xlu0 %14453  ;;  %v3372_v46 = vsel %vm974_vm8, %v20152_v34, %v14445_v27 }
 0x845   : > { %v14460_v8 = vunpack.i.l.bf16 %v18896_v41  ;;  %v14455_v22 = vunpack.i.l.bf16 %v18898_v47  ;;  %v20026_v34 = vunpack.i.h.bf16 %v18896_v41 }
 0x846   : > { %14503 = vrot.lane.b32.xlu0 %v18902_v19, %s16512_s21  ;;  %14508 = vrot.lane.b32.xlu1 %v18906_v18, %s16512_s21 }
 0x847   : > { %v3185_v50 = vsel %vm865_vm1, %v20149_v36, %v14460_v8  ;;  %v3119_v56 = vsel %vm829_vm0, %v20150_v5, %v14455_v22 }
 0x848   : > { %v18938_v7 = vpop.permute.xlu1 %14468  ;;  %v18940_v25 = vpop.permute.xlu0 %14463  ;;  %v3614_v42 = vpack.c.bf16 %v3119_v56, %v3111_v6  ;;  %v3623_v1 = vpack.c.bf16 %v3185_v50, %v3177_v40 }
 0x849   : > { %v14470_v57 = vunpack.i.l.bf16 %v18938_v7  ;;  %v14465_v43 = vunpack.i.l.bf16 %v18940_v25 }
 0x84a   : > { %14513 = vrot.lane.b32.xlu0 %v18902_v19, %s16513_s19  ;;  %14518 = vrot.lane.b32.xlu1 %v18906_v18, %s16513_s19 }
 0x84b   : > { %v3315_v58 = vsel %vm935_vm6, %v14401_v20, %v14470_v57  ;;  %v3251_v30 = vsel %vm901_vm4, %v20151_v62, %v14465_v43  ;;  %v20153_v20 = vunpack.i.l.bf16 %v18626_v21 }
 0x84c   : > { %v18972_v26 = vpop.permute.xlu1 %14478  ;;  %v18974_v6 = vpop.permute.xlu0 %14473  ;;  %v3632_v40 = vpack.c.bf16 %v3251_v30, %v3243_v16  ;;  %v3641_v36 = vpack.c.bf16 %v3315_v58, %v18954_v38  ;;  %v20154_v16 = vunpack.i.h.bf16 %v18697_v39  ;;  %v20155_v58 = vunpack.i.h.bf16 %v18695_v63 }
 0x84d   : > { %v14480_v50 = vunpack.i.l.bf16 %v18972_v26  ;;  %v14475_v5 = vunpack.i.l.bf16 %v18974_v6  ;;  %v3438_v56 = vsel %vm1010_vm9, %v20153_v20, %v14450_v61  ;;  %v14456_v63 = vunpack.i.h.bf16 %v18898_v47 }
 0x84e   : > { %14523 = vrot.lane.b32.xlu0 %v18902_v19, %s16514_s1  ;;  %14528 = vrot.lane.b32.xlu1 %v18906_v18, %s16514_s1  ;;  %v14426_v39 = vunpack.i.h.bf16 %v18838_v31 }
 0x84f   : > { %v3446_v38 = vsel %vm1010_vm9, %v20154_v16, %v14480_v50  ;;  %v3380_v62 = vsel %vm974_vm8, %v20155_v58, %v14475_v5 }
 0x850   : > { %v3650_v30 = vpack.c.bf16 %v3380_v62, %v3372_v46  ;;  %v3659_v23 = vpack.c.bf16 %v3446_v38, %v3438_v56  ;;  %v3120_v46 = vsel %vm829_vm0, %v14455_v22, %v14456_v63  ;;  %v3112_v20 = vsel %vm829_vm0, %v14425_v3, %v14426_v39 }
 0x851   : > { %v14431_v56 = vunpack.i.h.bf16 %v18840_v49  ;;  %v3615_v16 = vpack.c.bf16 %v3120_v46, %v3112_v20  ;;  %v3186_v38 = vsel %vm865_vm1, %v14460_v8, %v20026_v34  ;;  %v20024_v22 = vunpack.i.h.bf16 %v18940_v25 }
 0x852   : > { %14533 = vrot.lane.b32.xlu0 %v18902_v19, %s16515_s25  ;;  %14538 = vrot.lane.b32.xlu1 %v18906_v18, %s16515_s25  ;;  %v20025_v3 = vunpack.i.h.bf16 %v18858_v0  ;;  %v20022_v46 = vunpack.i.h.bf16 %v18938_v7 }
 0x853   : > { %v3178_v58 = vsel %vm865_vm1, %v14430_v45, %v14431_v56  ;;  %v3252_v8 = vsel %vm901_vm4, %v14465_v43, %v20024_v22  ;;  %v20023_v45 = vunpack.i.h.bf16 %v18860_v53 }
 0x854   : > { %v3624_v62 = vpack.c.bf16 %v3186_v38, %v3178_v58  ;;  %v20020_v38 = vunpack.i.h.bf16 %v18974_v6  ;;  %v20018_v58 = vunpack.i.h.bf16 %v18972_v26 }
 0x856   : > { %14543 = vrot.lane.b32.xlu0 %v18902_v19, %s16516_s22  ;;  %14548 = vrot.lane.b32.xlu1 %v18906_v18, %s16516_s22 }
 0x85a   : > { %14553 = vrot.lane.b32.xlu0 %v18902_v19, %s16517_s5  ;;  %14558 = vrot.lane.b32.xlu1 %v18906_v18, %s16517_s5 }
 0x85e   : > { %14563 = vrot.lane.b32.xlu0 %v18902_v19, %s16518_s30  ;;  %14568 = vrot.lane.b32.xlu1 %v18906_v18, %s16518_s30 }
 0x862   : > { %3798 = vrot.lane.b32.xlu0 %v3614_v42, %s16521_s26  ;;  %3800 = vrot.lane.b32.xlu1 %v3615_v16, %s16521_s26  ;;  %v3244_v42 = vsel %vm901_vm4, %v14435_v60, %v20025_v3  ;;  %v3316_v16 = vsel %vm935_vm6, %v14470_v57, %v20022_v46  ;;  %v20021_v60 = vunpack.i.h.bf16 %v18875_v14  ;;  %v3381_v57 = vsel %vm974_vm8, %v14475_v5, %v20020_v38 }
 0x863   : > { %v3633_v20 = vpack.c.bf16 %v3252_v8, %v3244_v42 }
 0x866   : > { %3816 = vrot.lane.b32.xlu0 %v3623_v1, %s16521_s26  ;;  %3818 = vrot.lane.b32.xlu1 %v3624_v62, %s16521_s26  ;;  %v3309_v1 = vsel %vm935_vm6, %v14440_v54, %v20023_v45  ;;  %v20019_v62 = vunpack.i.h.bf16 %v18877_v12  ;;  %v19075_v54 = vld.sshfl [vmem:[#allocation10] sm:$0x33 pattern:$0x76325410] }
 0x867   : > { %v3642_v43 = vpack.c.bf16 %v3316_v16, %v3309_v1  ;;  %v19079_v42 = vcombine.high %v19075_v54, %v19075_v54 }
 0x869   : > { %12503 = vmatprep.mubr.msk.bf16.mxu0 %vm4080_vm7, %v19079_v42  ;;  %12504 = vmatprep.mubr.msk.bf16.mxu1 %vm4080_vm7, %v19079_v42 }
 0x86a   : > { %3834 = vrot.lane.b32.xlu0 %v3632_v40, %s16521_s26  ;;  %3836 = vrot.lane.b32.xlu1 %v3633_v20, %s16521_s26  ;;  %v3373_v40 = vsel %vm974_vm8, %v14445_v27, %v20021_v60  ;;  %v3439_v27 = vsel %vm1010_vm9, %v14450_v61, %v20019_v62 }
 0x86b   : > { %v3651_v8 = vpack.c.bf16 %v3381_v57, %v3373_v40 }
 0x86e   : > { %3852 = vrot.lane.b32.xlu0 %v3641_v36, %s16521_s26  ;;  %3854 = vrot.lane.b32.xlu1 %v3642_v43, %s16521_s26  ;;  %v3447_v36 = vsel %vm1010_vm9, %v14480_v50, %v20018_v58 }
 0x86f   : > { %v3660_v5 = vpack.c.bf16 %v3447_v36, %v3439_v27 }
 0x872   : > { %3870 = vrot.lane.b32.xlu0 %v3650_v30, %s16521_s26  ;;  %3872 = vrot.lane.b32.xlu1 %v3651_v8, %s16521_s26 }
 0x876   : > { %3888 = vrot.lane.b32.xlu0 %v3659_v23, %s16521_s26  ;;  %3890 = vrot.lane.b32.xlu1 %v3660_v5, %s16521_s26 }
 0x87b   : > { %v3865_v50 = vpop.permute.xlu0 %3864  ;;  %v3847_v30 = vpop.permute.xlu1 %3846 }
 0x87f   : > { %v3793_v20 = vpop.permute.xlu0 %3792  ;;  %v3883_v16 = vpop.permute.xlu1 %3882 }
 0x883   : > { %v3829_v1 = vpop.permute.xlu0 %3828  ;;  %v3811_v43 = vpop.permute.xlu1 %3810 }
 0x888   : > { %v3795_v57 = vpop.permute.xlu0 %3794  ;;  %v3813_v40 = vpop.permute.xlu1 %3812 }
 0x889   : > { %v3944_v36 = vsel %vm1211_vm15, %v3793_v20, %v3795_v57  ;;  %v3952_v45 = vsel %vm1211_vm15, %v3811_v43, %v3813_v40 }
 0x88c   : > { %v3831_v61 = vpop.permute.xlu0 %3830  ;;  %v3849_v8 = vpop.permute.xlu1 %3848 }
 0x88d   : > { %v3960_v20 = vsel %vm1211_vm15, %v3829_v1, %v3831_v61 }
 0x890   : > { %v3867_v58 = vpop.permute.xlu0 %3866  ;;  %v3885_v62 = vpop.permute.xlu1 %3884 }
 0x894   : > { %v3903_v38 = vpop.permute.xlu0 %3902  ;;  %v19097_v60 = vpop.permute.xlu1 %3796 }
 0x895   : > { %v3945_v23 = vsel %vm1211_vm15, %v3795_v57, %v19097_v60 }
 0x896   : > { %4086 = vmatprep.subr.bf16.mxu0 %v3945_v23 }
 0x897   : > { %4087 = vmatpush1.bf16.msra.mxu0 %v3944_v36 }
 0x898   : > { %v19102_v27 = vpop.permute.xlu0 %3814  ;;  %v19104_v5 = vpop.permute.xlu1 %14483 }
 0x899   : > { %v3953_v46 = vsel %vm1211_vm15, %v3813_v40, %v19102_v27  ;;  %v14485_v43 = vunpack.i.l.bf16 %v19104_v5 }
 0x89a   : > { %4088 = vmatprep.subr.bf16.mxu0 %v3953_v46  ;;  %v3968_v46 = vsel %vm1211_vm15, %v3847_v30, %v3849_v8 }
 0x89b   : > { %4089 = vmatpush1.bf16.msra.mxu0 %v3952_v45  ;;  %v14486_v45 = vunpack.i.h.bf16 %v19104_v5  ;;  %v3504_v30 = vsel %vm1046_vm10, %v14375_v24, %v14485_v43 }
 0x89c   : > { %v3901_v22 = vpop.permute.xlu0 %3900  ;;  %v19109_v3 = vpop.permute.xlu1 %3832 }
 0x89d   : > { %v3961_v23 = vsel %vm1211_vm15, %v3831_v61, %v19109_v3 }
 0x89e   : > { %4090 = vmatprep.subr.bf16.mxu0 %v3961_v23 }
 0x89f   : > { %4091 = vmatpush1.bf16.msra.mxu0 %v3960_v20 }
 0x8a0   : > { %v19114_v57 = vpop.permute.xlu0 %3850  ;;  %v3921_v36 = vpop.permute.xlu1 %3920 }
 0x8a1   : > { %v3969_v21 = vsel %vm1211_vm15, %v3849_v8, %v19114_v57  ;;  %v3505_v8 = vsel %vm1046_vm10, %v14485_v43, %v14486_v45  ;;  %v3992_v43 = vsel %vm1211_vm15, %v3901_v22, %v3903_v38 }
 0x8a2   : > { %4092 = vmatprep.subr.bf16.mxu0 %v3969_v21  ;;  %v3976_v21 = vsel %vm1211_vm15, %v3865_v50, %v3867_v58 }
 0x8a3   : > { %4093 = vmatpush1.bf16.msra.mxu0 %v3968_v46 }
 0x8a4   : > { %v19121_v40 = vpop.permute.xlu0 %14488  ;;  %v19123_v23 = vpop.permute.xlu1 %3868 }
 0x8a5   : > { %v20031_v1 = vunpack.i.h.bf16 %v19121_v40  ;;  %v14490_v61 = vunpack.i.l.bf16 %v19121_v40  ;;  %v3977_v20 = vsel %vm1211_vm15, %v3867_v58, %v19123_v23 }
 0x8a6   : > { %4094 = vmatprep.subr.bf16.mxu0 %v3977_v20  ;;  %v3984_v20 = vsel %vm1211_vm15, %v3883_v16, %v3885_v62 }
 0x8a7   : > { %v3512_v46 = vsel %vm1046_vm10, %v14416_v48, %v14490_v61  ;;  %v3513_v34 = vsel %vm1046_vm10, %v14490_v61, %v20031_v1  ;;  %4095 = vmatpush1.bf16.msra.mxu0 %v3976_v21 }
 0x8a8   : > { %v3668_v4 = vpack.c.bf16 %v3512_v46, %v3504_v30  ;;  %v3669_v58 = vpack.c.bf16 %v3513_v34, %v3505_v8  ;;  %v19142_v50 = vpop.permute.xlu0 %3886  ;;  %v3919_v37 = vpop.permute.xlu1 %3918 }
 0x8a9   : > { %v3985_v24 = vsel %vm1211_vm15, %v3885_v62, %v19142_v50  ;;  %v4000_v46 = vsel %vm1211_vm15, %v3919_v37, %v3921_v36 }
 0x8aa   : > { %4096 = vmatprep.subr.bf16.mxu0 %v3985_v24  ;;  %3908 = vrot.lane.b32.xlu1 %v3669_v58, %s16521_s26  ;;  %v20156_v58 = vunpack.i.h.bf16 %v18747_v28 }
 0x8ab   : > { %3906 = vrot.lane.b32.xlu0 %v3668_v4, %s16521_s26  ;;  %4097 = vmatpush1.bf16.msra.mxu0 %v3984_v20 }
 0x8ac   : > { %v19149_v17 = vpop.permute.xlu0 %14493  ;;  %v19151_v48 = vpop.permute.xlu1 %3904 }
 0x8ad   : > { %v3993_v34 = vsel %vm1211_vm15, %v3903_v38, %v19151_v48  ;;  %v20027_v61 = vunpack.i.h.bf16 %v19149_v17  ;;  %v14495_v62 = vunpack.i.l.bf16 %v19149_v17 }
 0x8ae   : > { %4098 = vmatprep.subr.bf16.mxu0 %v3993_v34 }
 0x8af   : > { %4099 = vmatpush1.bf16.msra.mxu0 %v3992_v43  ;;  %v3570_v22 = vsel %vm1082_vm13, %v14380_v59, %v14495_v62  ;;  %v3571_v38 = vsel %vm1082_vm13, %v14495_v62, %v20027_v61 }
 0x8b0   : > { %v19158_v16 = vpop.permute.xlu0 %3922  ;;  %v19160_v21 = vpop.permute.xlu1 %14498 }
 0x8b1   : > { %v20029_v4 = vunpack.i.h.bf16 %v19160_v21  ;;  %v14500_v30 = vunpack.i.l.bf16 %v19160_v21  ;;  %v4001_v8 = vsel %vm1211_vm15, %v3921_v36, %v19158_v16 }
 0x8b2   : > { %4100 = vmatprep.subr.bf16.mxu0 %v4001_v8 }
 0x8b3   : > { %v3578_v24 = vsel %vm1082_vm13, %v20156_v58, %v14500_v30  ;;  %v3579_v20 = vsel %vm1082_vm13, %v14500_v30, %v20029_v4  ;;  %4101 = vmatpush1.bf16.msra.mxu0 %v4000_v46 }
 0x8b4   : > { %v3677_v34 = vpack.c.bf16 %v3578_v24, %v3570_v22  ;;  %v3678_v36 = vpack.c.bf16 %v3579_v20, %v3571_v38  ;;  %v3781_v37 = vpop.permute.xlu0 %3780  ;;  %v19179_v43 = vpop.permute.xlu1 %3782  ;;  %v20157_v20 = vpack.c.bf16 %v18545_v52, %v18541_v2 }
 0x8b5   : > { %v3938_v55 = vsel %vm1211_vm15, %v18646_v15, %v3781_v37  ;;  %v3939_v59 = vsel %vm1211_vm15, %v3781_v37, %v19179_v43 }
 0x8b6   : > { %4125 = vmatprep.subr.bf16.mxu1 %v3939_v59  ;;  %3926 = vrot.lane.b32.xlu1 %v3678_v36, %s16521_s26  ;;  %v3608_v59 = vpack.c.bf16 %v18885_v13, %v18882_v10 }
 0x8b7   : > { %3924 = vrot.lane.b32.xlu0 %v3677_v34, %s16521_s26  ;;  %4126 = vmatpush1.bf16.msra.mxu1 %v3938_v55 }
 0x8b8   : > { %v19187_v28 = vpop.permute.xlu0 %14503  ;;  %v19189_v62 = vpop.permute.xlu1 %14508  ;;  %4117 = vmatmul.mubr.bf16.vlgmr.msra.gmra.mrb[24].mxu0 %v19075_v54 }
 0x8b9   : > { %12505 = vmatprep.mubr.msk.bf16.mxu0 %vm4080_vm7, %v19079_v42  ;;  %v20028_v58 = vunpack.i.h.bf16 %v19187_v28  ;;  %v14505_v24 = vunpack.i.l.bf16 %v19187_v28  ;;  %v20030_v34 = vunpack.i.h.bf16 %v19189_v62  ;;  %v14510_v36 = vunpack.i.l.bf16 %v19189_v62 }
 0x8ba   : > { %14578 = vrot.lane.b32.xlu1 %v18906_v18, %s16519_s2 }
 0x8bb   : > { %14573 = vrot.lane.b32.xlu0 %v18902_v19, %s16519_s2  ;;  %v3113_v61 = vsel %vm829_vm0, %v14426_v39, %v14505_v24  ;;  %v3114_v2 = vsel %vm829_vm0, %v14505_v24, %v20028_v58  ;;  %v3122_v10 = vsel %vm829_vm0, %v14510_v36, %v20030_v34  ;;  %v20159_v39 = vunpack.i.h.bf16 %v18896_v41 }
 0x8bc   : > { %v19198_v15 = vpop.permute.xlu0 %14513  ;;  %v19200_v30 = vpop.permute.xlu1 %14518  ;;  %v3617_v4 = vpack.c.bf16 %v3122_v10, %v3114_v2  ;;  %v20161_v41 = vpack.c.bf16 %v18873_v51, %v18870_v35 }
 0x8bd   : > { %v14515_v52 = vunpack.i.l.bf16 %v19198_v15  ;;  %v20032_v31 = vunpack.i.h.bf16 %v19198_v15  ;;  %v14520_v13 = vunpack.i.l.bf16 %v19200_v30 }
 0x8be   : > { %14588 = vrot.lane.b32.xlu1 %v18962_v33, %s16513_s19 }
 0x8bf   : > { %14583 = vrot.lane.b32.xlu0 %v18962_v33, %s16512_s21  ;;  %v3180_v34 = vsel %vm865_vm1, %v14515_v52, %v20032_v31  ;;  %v3187_v1 = vsel %vm865_vm1, %v20159_v39, %v14520_v13 }
 0x8c0   : > { %v19206_v8 = vpop.permute.xlu0 %14523  ;;  %v19208_v46 = vpop.permute.xlu1 %14528 }
 0x8c1   : > { %v20033_v5 = vunpack.i.h.bf16 %v19206_v8  ;;  %v14530_v10 = vunpack.i.l.bf16 %v19208_v46 }
 0x8c2   : > { %14598 = vrot.lane.b32.xlu1 %v18962_v33, %s16515_s25  ;;  %s20195_s25 = sld [smem:[#allocation24_spill]] }
 0x8c3   : > { %14593 = vrot.lane.b32.xlu0 %v18962_v33, %s16514_s1  ;;  %s20185_s1 = sld [smem:[#allocation54_spill]] }
 0x8c4   : > { %v19214_v19 = vpop.permute.xlu0 %14533  ;;  %v19216_v18 = vpop.permute.xlu1 %14538 }
 0x8c5   : > { %v14535_v39 = vunpack.i.l.bf16 %v19214_v19 }
 0x8c6   : > { %14608 = vrot.lane.b32.xlu1 %v18962_v33, %s16517_s5  ;;  %s20186_s5 = sld [smem:[#allocation53_spill]] }
 0x8c7   : > { %14603 = vrot.lane.b32.xlu0 %v18962_v33, %s16516_s22 }
 0x8c8   : > { %v19222_v22 = vpop.permute.xlu0 %14543  ;;  %v19224_v38 = vpop.permute.xlu1 %14548  ;;  %s750_s22 = sand.u32 1, %s20195_s25  }
 0x8c9   : > { %s12315_s16 = scalar_lea.sflag [#allocation4], %s750_s22 }
 0x8ca   : > { %3784 = vrot.lane.b32.xlu1 %v20157_v20, %s16521_s26  ;;  %v3121_v20 = vsel %vm829_vm0, %v14456_v63, %v14510_v36  ;;  %v3179_v36 = vsel %vm865_vm1, %v14431_v56, %v14515_v52  ;;  %v20162_v56 = vunpack.i.h.bf16 %v19200_v30 }
 0x8cb   : > { %14613 = vrot.lane.b32.xlu0 %v18962_v33, %s16518_s30  ;;  %v3616_v63 = vpack.c.bf16 %v3121_v20, %v3113_v61  ;;  %v20036_v20 = vunpack.i.h.bf16 %v19208_v46  ;;  %s13563_s30 = sshll.u32 %s16658_s3, 4  ;;  %s16526_s3 = smov [#allocation16]  }
 0x8cc   : > { %v19236_v37 = vpop.permute.xlu0 %14553  ;;  %v19238_v55 = vpop.permute.xlu1 %14558  ;;  %v3188_v61 = vsel %vm865_vm1, %v14520_v13, %v20162_v56  ;;  %v20034_v13 = vunpack.i.h.bf16 %v19214_v19  ;;  %s19890_s13 = scalar_lea.hbm %s20201_s15, %s13563_s30  ;;  %s16420_s28 = sshll.u32 %s16526_s3, 4  ;;  %s16421_s28 = int_to_ptr.vmem [resolvable:$false] %s16420_s28 }
 0x8cd   : > { %v3626_v56 = vpack.c.bf16 %v3188_v61, %v3180_v34  ;;  %s16422_s0 = scalar_lea.vmem %s16421_s28, 32 }
 0x8ce   : > { %14618 = vrot.lane.b32.xlu1 %v18962_v33, %s16519_s2  ;;  %s751_s2 = scalar_lea.vmem [#allocation16], %s750_s22 }
 0x8cf   : > { %3786 = vrot.lane.b32.xlu0 %v3608_v59, %s16521_s26  ;;  %v20158_v59 = vpack.c.bf16 %v18911_v32, %v18925_v29  ;;  %v20160_v32 = vunpack.i.h.bf16 %v19121_v40 }
 0x8d0   : > { %v19261_v24 = vpop.permute.xlu0 %14563  ;;  %v19263_v58 = vpop.permute.xlu1 %14568 }
 0x8d1   : > { %v14565_v47 = vunpack.i.l.bf16 %v19261_v24  ;;  %v14570_v33 = vunpack.i.l.bf16 %v19263_v58 }
 0x8d2   : > { %3790 = vrot.lane.b32.xlu1 %v20158_v59, %s16521_s26  ;;  %v20035_v59 = vunpack.i.h.bf16 %v19216_v18 }
 0x8d3   : > { %v19285_v49 = vsel %vm1046_vm10, %v14486_v45, %v14565_v47  ;;  %v19292_v29 = vsel %vm1046_vm10, %v20160_v32, %v14570_v33  ;;  %3788 = vrot.lane.b32.xlu0 %v20161_v41, %s16521_s26  ;;  %v14525_v45 = vunpack.i.l.bf16 %v19206_v8  ;;  %v14540_v32 = vunpack.i.l.bf16 %v19216_v18 }
 0x8d4   : > { %v3670_v2 = vpack.c.bf16 %v19292_v29, %v19285_v49  ;;  %v3799_v40 = vpop.permute.xlu0 %3798  ;;  %v19305_v52 = vpop.permute.xlu1 %3800  ;;  %v3625_v41 = vpack.c.bf16 %v3187_v1, %v3179_v36  ;;  %v20163_v1 = vunpack.i.h.bf16 %v18858_v0  ;;  %v20164_v36 = vunpack.i.h.bf16 %v18940_v25 }
 0x8d5   : > { %v3946_v35 = vsel %vm1211_vm15, %v19097_v60, %v3799_v40  ;;  %v3947_v51 = vsel %vm1211_vm15, %v3799_v40, %v19305_v52  ;;  %v3246_v40 = vsel %vm901_vm4, %v14525_v45, %v20033_v5  ;;  %v14545_v5 = vunpack.i.l.bf16 %v19222_v22 }
 0x8d6   : > { %4127 = vmatprep.subr.bf16.mxu1 %v3947_v51  ;;  %3804 = vrot.lane.b32.xlu1 %v3617_v4, %s16521_s26  ;;  %v3254_v4 = vsel %vm901_vm4, %v14530_v10, %v20036_v20  ;;  %v3245_v34 = vsel %vm901_vm4, %v20163_v1, %v14525_v45  ;;  %v3253_v61 = vsel %vm901_vm4, %v20164_v36, %v14530_v10  ;;  %v14546_v0 = vunpack.i.h.bf16 %v19222_v22 }
 0x8d7   : > { %3802 = vrot.lane.b32.xlu0 %v3616_v63, %s16521_s26  ;;  %4128 = vmatpush1.bf16.msra.mxu1 %v3946_v35  ;;  %v3311_v35 = vsel %vm935_vm6, %v14535_v39, %v20034_v13  ;;  %v14551_v45 = vunpack.i.h.bf16 %v19224_v38  ;;  %v14550_v25 = vunpack.i.l.bf16 %v19224_v38  ;;  %v3635_v10 = vpack.c.bf16 %v3254_v4, %v3246_v40 }
 0x8d8   : > { %v3817_v60 = vpop.permute.xlu0 %3816  ;;  %v19319_v31 = vpop.permute.xlu1 %3818  ;;  %v20166_v20 = vunpack.i.h.bf16 %v18938_v7  ;;  %v20167_v40 = vunpack.i.h.bf16 %v18875_v14  ;;  %v14556_v14 = vunpack.i.h.bf16 %v19236_v37 }
 0x8d9   : > { %v3954_v51 = vsel %vm1211_vm15, %v19102_v27, %v3817_v60  ;;  %v3955_v63 = vsel %vm1211_vm15, %v3817_v60, %v19319_v31  ;;  %v3318_v27 = vsel %vm935_vm6, %v14540_v32, %v20035_v59  ;;  %v3383_v7 = vsel %vm974_vm8, %v14550_v25, %v14551_v45 }
 0x8da   : > { %4129 = vmatprep.subr.bf16.mxu1 %v3955_v63  ;;  %3822 = vrot.lane.b32.xlu1 %v3626_v56, %s16521_s26  ;;  %v3634_v63 = vpack.c.bf16 %v3253_v61, %v3245_v34  ;;  %v20165_v56 = vunpack.i.h.bf16 %v18860_v53  ;;  %v3374_v4 = vsel %vm974_vm8, %v20167_v40, %v14545_v5  ;;  %v3375_v53 = vsel %vm974_vm8, %v14545_v5, %v14546_v0 }
 0x8db   : > { %3820 = vrot.lane.b32.xlu0 %v3625_v41, %s16521_s26  ;;  %4130 = vmatpush1.bf16.msra.mxu1 %v3954_v51  ;;  %v3317_v41 = vsel %vm935_vm6, %v20166_v20, %v14540_v32  ;;  %v3644_v51 = vpack.c.bf16 %v3318_v27, %v3311_v35  ;;  %v14555_v20 = vunpack.i.l.bf16 %v19236_v37  ;;  %v14560_v32 = vunpack.i.l.bf16 %v19238_v55 }
 0x8dc   : > { %v3835_v60 = vpop.permute.xlu0 %3834  ;;  %v19349_v1 = vpop.permute.xlu1 %3836  ;;  %v3310_v36 = vsel %vm935_vm6, %v20165_v56, %v14535_v39  ;;  %v3653_v27 = vpack.c.bf16 %v3383_v7, %v3375_v53 }
 0x8dd   : > { %v3962_v13 = vsel %vm1211_vm15, %v19109_v3, %v3835_v60  ;;  %v3963_v59 = vsel %vm1211_vm15, %v3835_v60, %v19349_v1  ;;  %v20168_v3 = vunpack.i.h.bf16 %v18974_v6  ;;  %v3643_v6 = vpack.c.bf16 %v3317_v41, %v3310_v36 }
 0x8de   : > { %4131 = vmatprep.subr.bf16.mxu1 %v3963_v59  ;;  %3840 = vrot.lane.b32.xlu1 %v3635_v10, %s16521_s26  ;;  %v14561_v59 = vunpack.i.h.bf16 %v19238_v55  ;;  %v3441_v60 = vsel %vm1010_vm9, %v14555_v20, %v14556_v14 }
 0x8df   : > { %v3382_v39 = vsel %vm974_vm8, %v20168_v3, %v14550_v25  ;;  %3838 = vrot.lane.b32.xlu0 %v3634_v63, %s16521_s26  ;;  %4132 = vmatpush1.bf16.msra.mxu1 %v3962_v13  ;;  %v20169_v25 = vunpack.i.h.bf16 %v18877_v12  ;;  %v14571_v12 = vunpack.i.h.bf16 %v19263_v58 }
 0x8e0   : > { %v3853_v5 = vpop.permute.xlu0 %3852  ;;  %v19379_v34 = vpop.permute.xlu1 %3854  ;;  %v3652_v13 = vpack.c.bf16 %v3382_v39, %v3374_v4  ;;  %v3449_v56 = vsel %vm1010_vm9, %v14560_v32, %v14561_v59 }
 0x8e1   : > { %v3970_v61 = vsel %vm1211_vm15, %v19114_v57, %v3853_v5  ;;  %v3971_v35 = vsel %vm1211_vm15, %v3853_v5, %v19379_v34  ;;  %v3440_v10 = vsel %vm1010_vm9, %v20169_v25, %v14555_v20  ;;  %v20170_v57 = vunpack.i.h.bf16 %v18972_v26 }
 0x8e2   : > { %4133 = vmatprep.subr.bf16.mxu1 %v3971_v35  ;;  %3858 = vrot.lane.b32.xlu1 %v3644_v51, %s16521_s26  ;;  %v14566_v51 = vunpack.i.h.bf16 %v19261_v24  ;;  %v3662_v53 = vpack.c.bf16 %v3449_v56, %v3441_v60  ;;  %v3515_v7 = vsel %vm1046_vm10, %v14570_v33, %v14571_v12  ;;  %v20171_v60 = vunpack.i.h.bf16 %v19160_v21 }
 0x8e3   : > { %3856 = vrot.lane.b32.xlu0 %v3643_v6, %s16521_s26  ;;  %4134 = vmatpush1.bf16.msra.mxu1 %v3970_v61  ;;  %v3448_v63 = vsel %vm1010_vm9, %v20170_v57, %v14560_v32 }
 0x8e4   : > { %v3871_v36 = vpop.permute.xlu0 %3870  ;;  %v19399_v41 = vpop.permute.xlu1 %3872  ;;  %v3661_v26 = vpack.c.bf16 %v3448_v63, %v3440_v10  ;;  %v20172_v63 = vunpack.i.h.bf16 %v19149_v17  ;;  %v20173_v17 = vunpack.i.h.bf16 %v19189_v62 }
 0x8e5   : > { %v3978_v40 = vsel %vm1211_vm15, %v19123_v23, %v3871_v36  ;;  %v3979_v4 = vsel %vm1211_vm15, %v3871_v36, %v19399_v41  ;;  %v3507_v23 = vsel %vm1046_vm10, %v14565_v47, %v14566_v51 }
 0x8e6   : > { %4135 = vmatprep.subr.bf16.mxu1 %v3979_v4  ;;  %3876 = vrot.lane.b32.xlu1 %v3653_v27, %s16521_s26  ;;  %v3671_v5 = vpack.c.bf16 %v3515_v7, %v3507_v23 }
 0x8e7   : > { %3874 = vrot.lane.b32.xlu0 %v3652_v13, %s16521_s26  ;;  %4136 = vmatpush1.bf16.msra.mxu1 %v3978_v40 }
 0x8e8   : > { %v3889_v3 = vpop.permute.xlu0 %3888  ;;  %v19409_v39 = vpop.permute.xlu1 %3890 }
 0x8e9   : > { %v3986_v20 = vsel %vm1211_vm15, %v19142_v50, %v3889_v3  ;;  %v3987_v32 = vsel %vm1211_vm15, %v3889_v3, %v19409_v39 }
 0x8ea   : > { %4137 = vmatprep.subr.bf16.mxu1 %v3987_v32  ;;  %3894 = vrot.lane.b32.xlu1 %v3662_v53, %s16521_s26  ;;  %v20174_v32 = vunpack.i.h.bf16 %v19187_v28 }
 0x8eb   : > { %3892 = vrot.lane.b32.xlu0 %v3661_v26, %s16521_s26  ;;  %4138 = vmatpush1.bf16.msra.mxu1 %v3986_v20 }
 0x8ee   : > { %3912 = vrot.lane.b32.xlu1 %v3671_v5, %s16521_s26 }
 0x8ef   : > { %3910 = vrot.lane.b32.xlu0 %v3670_v2, %s16521_s26 }
 0x91c   : > { %v19432_v47 = vpop.permute.xlu1 %3908 }
 0x91d   : > { %v3907_v50 = vpop.permute.xlu0 %3906 }
 0x91e   : > { %v3994_v33 = vsel %vm1211_vm15, %v19151_v48, %v3907_v50  ;;  %v3995_v6 = vsel %vm1211_vm15, %v3907_v50, %v19432_v47 }
 0x91f   : > { %4139 = vmatprep.subr.bf16.mxu1 %v3995_v6 }
 0x920   : > { %4140 = vmatpush1.bf16.msra.mxu1 %v3994_v33 }
 0x928   : > { %v19438_v61 = vpop.permute.xlu1 %3926 }
 0x929   : > { %v3925_v35 = vpop.permute.xlu0 %3924 }
 0x92a   : > { %v4002_v13 = vsel %vm1211_vm15, %v19158_v16, %v3925_v35  ;;  %v4003_v49 = vsel %vm1211_vm15, %v3925_v35, %v19438_v61  ;;  %v20175_v35 = vunpack.i.h.bf16 %v19200_v30  ;;  %v20177_v30 = vunpack.i.h.bf16 %v19208_v46 }
 0x92b   : > { %4141 = vmatprep.subr.bf16.mxu1 %v4003_v49  ;;  %v20176_v49 = vunpack.i.h.bf16 %v19198_v15  ;;  %v20178_v15 = vunpack.i.h.bf16 %v19206_v8 }
 0x92c   : > { %4142 = vmatpush1.bf16.msra.mxu1 %v4002_v13  ;;  %v19444_v29 = vpop.permute.xlu1 %14578 }
 0x92d   : > { %v14581_v48 = vunpack.i.h.bf16 %v19444_v29  ;;  %v14580_v2 = vunpack.i.l.bf16 %v19444_v29  ;;  %v19448_v27 = vpop.permute.xlu0 %14573 }
 0x92e   : > { %v14576_v25 = vunpack.i.h.bf16 %v19448_v27  ;;  %v14575_v10 = vunpack.i.l.bf16 %v19448_v27 }
 0x92f   : > { %v3580_v16 = vsel %vm1082_vm13, %v20171_v60, %v14580_v2  ;;  %v3581_v57 = vsel %vm1082_vm13, %v14580_v2, %v14581_v48  ;;  %4158 = vmatmul.mubr.bf16.vlgmr.msra.gmra.mrb[24].mxu1 %v19075_v54 }
 0x930   : > { %v3572_v56 = vsel %vm1082_vm13, %v20172_v63, %v14575_v10  ;;  %v3573_v36 = vsel %vm1082_vm13, %v14575_v10, %v14576_v25  ;;  %v14589_v40 = vpop.permute.xlu1 %14588  ;;  %12506 = vmatprep.mubr.msk.bf16.mxu1 %vm4080_vm7, %v19079_v42 }
 0x931   : > { %v3679_v21 = vpack.c.bf16 %v3580_v16, %v3572_v56  ;;  %v3680_v4 = vpack.c.bf16 %v3581_v57, %v3573_v36  ;;  %v14584_v26 = vpop.permute.xlu0 %14583  ;;  %v14591_v23 = vunpack.i.h.bf16 %v14589_v40  ;;  %v14590_v7 = vunpack.i.l.bf16 %v14589_v40 }
 0x932   : > { %v14586_v53 = vunpack.i.h.bf16 %v14584_v26  ;;  %v14585_v3 = vunpack.i.l.bf16 %v14584_v26 }
 0x933   : > { %3930 = vrot.lane.b32.xlu1 %v3680_v4, %s16521_s26  ;;  %3928 = vrot.lane.b32.xlu0 %v3679_v21, %s16521_s26  ;;  %v3189_v13 = vsel %vm865_vm1, %v20175_v35, %v14591_v23  ;;  %v3181_v2 = vsel %vm865_vm1, %v20176_v49, %v14590_v7  ;;  %v3628_v60 = vpack.c.bf16 %v14591_v23, %v14590_v7  ;;  %v20179_v7 = vunpack.i.h.bf16 %v19216_v18  ;;  %v20181_v35 = vld [vmem:[#allocation43_spill] sm:$0xff] }
 0x934   : > { %v3123_v20 = vsel %vm829_vm0, %v20173_v17, %v14586_v53  ;;  %v3115_v5 = vsel %vm829_vm0, %v20174_v32, %v14585_v3  ;;  %v3619_v42 = vpack.c.bf16 %v14586_v53, %v14585_v3  ;;  %v14599_v50 = vpop.permute.xlu1 %14598  ;;  %v3627_v57 = vpack.c.bf16 %v3189_v13, %v3181_v2 }
 0x935   : > { %v3618_v33 = vpack.c.bf16 %v3123_v20, %v3115_v5  ;;  %v14594_v6 = vpop.permute.xlu0 %14593  ;;  %v14601_v63 = vunpack.i.h.bf16 %v14599_v50  ;;  %v14600_v56 = vunpack.i.l.bf16 %v14599_v50  ;;  %v20180_v17 = vunpack.i.h.bf16 %v19214_v19 }
 0x936   : > { %v14596_v10 = vunpack.i.h.bf16 %v14594_v6  ;;  %v14595_v62 = vunpack.i.l.bf16 %v14594_v6  ;;  %vm12312_vm0 = vcmask 122880  }
 0x937   : > { %3808 = vrot.lane.b32.xlu1 %v3619_v42, %s16521_s26  ;;  %3806 = vrot.lane.b32.xlu0 %v3618_v33, %s16521_s26  ;;  %v3319_v46 = vsel %vm935_vm6, %v20179_v7, %v14601_v63  ;;  %v3312_v8 = vsel %vm935_vm6, %v20180_v17, %v14600_v56  ;;  %v3646_v5 = vpack.c.bf16 %v14601_v63, %v14600_v56  ;;  %v20184_v7 = vld [vmem:[#allocation42_spill] sm:$0xff] }
 0x938   : > { %v14609_v28 = vpop.permute.xlu1 %14608  ;;  %v3255_v36 = vsel %vm901_vm4, %v20177_v30, %v14596_v10  ;;  %v3247_v40 = vsel %vm901_vm4, %v20178_v15, %v14595_v62  ;;  %v3637_v4 = vpack.c.bf16 %v14596_v10, %v14595_v62  ;;  %v3645_v33 = vpack.c.bf16 %v3319_v46, %v3312_v8 }
 0x939   : > { %v14604_v16 = vpop.permute.xlu0 %14603  ;;  %v3636_v53 = vpack.c.bf16 %v3255_v36, %v3247_v40  ;;  %v14611_v20 = vunpack.i.h.bf16 %v14609_v28  ;;  %v14610_v42 = vunpack.i.l.bf16 %v14609_v28  ;;  %v20183_v36 = vld [vmem:[#allocation44_spill] sm:$0xff] }
 0x93a   : > { %v14606_v3 = vunpack.i.h.bf16 %v14604_v16  ;;  %v14605_v23 = vunpack.i.l.bf16 %v14604_v16 }
 0x93b   : > { %3826 = vrot.lane.b32.xlu1 %v3628_v60, %s16521_s26  ;;  %3824 = vrot.lane.b32.xlu0 %v3627_v57, %s16521_s26  ;;  %v3450_v2 = vsel %vm1010_vm9, %v14561_v59, %v14611_v20  ;;  %v3442_v10 = vsel %vm1010_vm9, %v14556_v14, %v14610_v42 }
 0x93c   : > { %v3785_v21 = vpop.permute.xlu1 %3784  ;;  %v3384_v18 = vsel %vm974_vm8, %v14551_v45, %v14606_v3  ;;  %v3376_v19 = vsel %vm974_vm8, %v14546_v0, %v14605_v23  ;;  %v3385_v13 = vsel %vm974_vm8, %v14606_v3, %v20181_v35  ;;  %v3377_v49 = vsel %vm974_vm8, %v14605_v23, %v20181_v35  ;;  %v20182_v0 = vld [vmem:[#allocation41_spill] sm:$0xff] }
 0x93d   : > { %v14614_v26 = vpop.permute.xlu0 %14613  ;;  %v3940_v38 = vsel %vm1211_vm15, %v19179_v43, %v3785_v21  ;;  %v3451_v45 = vsel %vm1010_vm9, %v14611_v20, %v20182_v0  ;;  %v3443_v55 = vsel %vm1010_vm9, %v14610_v42, %v20182_v0  ;;  %v3654_v62 = vpack.c.bf16 %v3384_v18, %v3376_v19 }
 0x93e   : > { %v3655_v28 = vpack.c.bf16 %v3385_v13, %v3377_v49  ;;  %v14616_v43 = vunpack.i.h.bf16 %v14614_v26  ;;  %v14615_v57 = vunpack.i.l.bf16 %v14614_v26  ;;  %v3663_v14 = vpack.c.bf16 %v3450_v2, %v3442_v10 }
 0x93f   : > { %3844 = vrot.lane.b32.xlu1 %v3637_v4, %s16521_s26  ;;  %3842 = vrot.lane.b32.xlu0 %v3636_v53, %s16521_s26  ;;  %v3664_v63 = vpack.c.bf16 %v3451_v45, %v3443_v55 }
 0x940   : > { %v14619_v32 = vpop.permute.xlu1 %14618  ;;  %v3516_v30 = vsel %vm1046_vm10, %v14571_v12, %v14616_v43  ;;  %v3517_v15 = vsel %vm1046_vm10, %v14616_v43, %v20183_v36  ;;  %v3508_v4 = vsel %vm1046_vm10, %v14566_v51, %v14615_v57  ;;  %v3509_v26 = vsel %vm1046_vm10, %v14615_v57, %v20183_v36  ;;  %v14625_v43 = vld [vmem:[#allocation11 + $0x4] ss:$16 sps:$4 sm:$0xff]  }
 0x941   : > { %v3787_v50 = vpop.permute.xlu0 %3786  ;;  %v14621_v53 = vunpack.i.h.bf16 %v14619_v32  ;;  %v14620_v58 = vunpack.i.l.bf16 %v14619_v32  ;;  %v3672_v3 = vpack.c.bf16 %v3516_v30, %v3508_v4  ;;  %v3673_v23 = vpack.c.bf16 %v3517_v15, %v3509_v26  ;;  %v14631_v15 = vld [vmem:[#allocation11 + $0x44] ss:$16 sps:$4 sm:$0xff]  }
 0x942   : > { %v3941_v6 = vsel %vm1211_vm15, %v3785_v21, %v3787_v50 }
 0x943   : > { %4166 = vmatprep.subr.bf16.mxu0 %v3941_v6  ;;  %3862 = vrot.lane.b32.xlu1 %v3646_v5, %s16521_s26  ;;  %v3583_v46 = vsel %vm1082_vm13, %v14621_v53, %v20184_v7  ;;  %v3574_v17 = vsel %vm1082_vm13, %v14576_v25, %v14620_v58  ;;  %v3575_v8 = vsel %vm1082_vm13, %v14620_v58, %v20184_v7 }
 0x944   : > { %3860 = vrot.lane.b32.xlu0 %v3645_v33, %s16521_s26  ;;  %v3791_v22 = vpop.permute.xlu1 %3790  ;;  %4167 = vmatpush1.bf16.msra.mxu0 %v3940_v38  ;;  %v3582_v20 = vsel %vm1082_vm13, %v14581_v48, %v14621_v53  ;;  %v3682_v27 = vpack.c.bf16 %v3583_v46, %v3575_v8  ;;  %v14635_v46 = vld [vmem:[#allocation11 + $0x80] ss:$16 sps:$4 sm:$0xff]  }
 0x945   : > { %v3789_v59 = vpop.permute.xlu0 %3788  ;;  %v3681_v5 = vpack.c.bf16 %v3582_v20, %v3574_v17  ;;  %v14640_v17 = vld [vmem:[#allocation11 + $0xa4] ss:$16 sps:$4 sm:$0xff]  }
 0x946   : > { %v3942_v60 = vsel %vm1211_vm15, %v3787_v50, %v3789_v59  ;;  %v3943_v16 = vsel %vm1211_vm15, %v3789_v59, %v3791_v22  ;;  %v3059_v50 = vld [vmem:[%s20185_s1] sm:$0xf] }
 0x947   : > { %4207 = vmatprep.subr.bf16.mxu1 %v3943_v16  ;;  %3880 = vrot.lane.b32.xlu1 %v3655_v28, %s16521_s26  ;;  %v14623_v16 = vld [vmem:[#allocation11] ss:$16 sps:$4 sm:$0xff]  }
 0x948   : > { %3878 = vrot.lane.b32.xlu0 %v3654_v62, %s16521_s26  ;;  %v19528_v37 = vpop.permute.xlu1 %3804  ;;  %4208 = vmatpush1.bf16.msra.mxu1 %v3942_v60 }
 0x949   : > { %v3803_v56 = vpop.permute.xlu0 %3802 }
 0x94a   : > { %v3948_v40 = vsel %vm1211_vm15, %v19305_v52, %v3803_v56  ;;  %v3949_v21 = vsel %vm1211_vm15, %v3803_v56, %v19528_v37 }
 0x94b   : > { %4168 = vmatprep.subr.bf16.mxu0 %v3949_v21  ;;  %3898 = vrot.lane.b32.xlu1 %v3664_v63, %s16521_s26  ;;  %v14628_v63 = vld [vmem:[#allocation11 + $0x24] ss:$16 sps:$4 sm:$0xff]  }
 0x94c   : > { %3896 = vrot.lane.b32.xlu0 %v3663_v14, %s16521_s26  ;;  %v19546_v12 = vpop.permute.xlu1 %3822  ;;  %4169 = vmatpush1.bf16.msra.mxu0 %v3948_v40 }
 0x94d   : > { %v3821_v52 = vpop.permute.xlu0 %3820 }
 0x94e   : > { %v3956_v24 = vsel %vm1211_vm15, %v19319_v31, %v3821_v52  ;;  %v3957_v51 = vsel %vm1211_vm15, %v3821_v52, %v19546_v12 }
 0x94f   : > { %4170 = vmatprep.subr.bf16.mxu0 %v3957_v51  ;;  %3916 = vrot.lane.b32.xlu1 %v3673_v23, %s16521_s26 }
 0x950   : > { %3914 = vrot.lane.b32.xlu0 %v3672_v3, %s16521_s26  ;;  %v19564_v31 = vpop.permute.xlu1 %3840  ;;  %4171 = vmatpush1.bf16.msra.mxu0 %v3956_v24  ;;  %v14632_v3 = vld [vmem:[#allocation11 + $0x60] ss:$16 sps:$4 sm:$0xff]  }
 0x951   : > { %v3839_v32 = vpop.permute.xlu0 %3838 }
 0x952   : > { %v3964_v25 = vsel %vm1211_vm15, %v19349_v1, %v3839_v32  ;;  %v3965_v42 = vsel %vm1211_vm15, %v3839_v32, %v19564_v31  ;;  %v3058_v1 = vld [vmem:[%s20186_s5] sm:$0xf]  ;;  %s20200_s5 = sld [smem:[#allocation29_spill]] }
 0x953   : > { %4172 = vmatprep.subr.bf16.mxu0 %v3965_v42  ;;  %3934 = vrot.lane.b32.xlu1 %v3682_v27, %s16521_s26  ;;  %v14643_v27 = vld [vmem:[#allocation11 + $0xc4] ss:$16 sps:$4 sm:$0xff]  }
 0x954   : > { %3932 = vrot.lane.b32.xlu0 %v3681_v5, %s16521_s26  ;;  %v19572_v29 = vpop.permute.xlu1 %3858  ;;  %4173 = vmatpush1.bf16.msra.mxu0 %v3964_v25  ;;  %v14638_v5 = vld [vmem:[#allocation11 + $0xa0] ss:$16 sps:$4 sm:$0xff]   ;;  %s20193_s26 = sld [smem:[#allocation55_spill]] }
 0x955   : > { %v3857_v48 = vpop.permute.xlu0 %3856 }
 0x956   : > { %v3972_v33 = vsel %vm1211_vm15, %v19379_v34, %v3857_v48  ;;  %v3973_v18 = vsel %vm1211_vm15, %v3857_v48, %v19572_v29 }
 0x957   : > { %4174 = vmatprep.subr.bf16.mxu0 %v3973_v18  ;;  %4263 = vperm.xlu1 %14006, %v3059_v50   ;;  %v14641_v50 = vld [vmem:[#allocation11 + $0xc0] ss:$16 sps:$4 sm:$0xff]  }
 0x958   : > { %4250 = vperm.xlu0 %14005, %v3058_v1   ;;  %v19584_v19 = vpop.permute.xlu1 %3876  ;;  %4175 = vmatpush1.bf16.msra.mxu0 %v3972_v33  ;;  %v14646_v1 = vld [vmem:[#allocation11 + $0xe4] ss:$16 sps:$4 sm:$0xff]   ;;  %p20202_p11 = scmp.ne.s32.totalorder %s20200_s5, 0 }
 0x959   : > { %v3875_v6 = vpop.permute.xlu0 %3874 }
 0x95a   : > { %v3980_v35 = vsel %vm1211_vm15, %v19399_v41, %v3875_v6  ;;  %v3981_v13 = vsel %vm1211_vm15, %v3875_v6, %v19584_v19  ;;  %s20194_s29 = smov %s20193_s26 }
 0x95b   : > { %4176 = vmatprep.subr.bf16.mxu0 %v3981_v13  ;;  %v14649_v13 = vld [vmem:[#allocation11 + $0x104] ss:$16 sps:$4 sm:$0xff]  }
 0x95c   : > { %v19590_v49 = vpop.permute.xlu1 %3894  ;;  %4177 = vmatpush1.bf16.msra.mxu0 %v3980_v35  ;;  %v14644_v35 = vld [vmem:[#allocation11 + $0xe0] ss:$16 sps:$4 sm:$0xff]  }
 0x95d   : > { %v3893_v34 = vpop.permute.xlu0 %3892 }
 0x95e   : > { %v3988_v2 = vsel %vm1211_vm15, %v19409_v39, %v3893_v34  ;;  %v3989_v38 = vsel %vm1211_vm15, %v3893_v34, %v19590_v49 }
 0x95f   : > { %4178 = vmatprep.subr.bf16.mxu0 %v3989_v38 }
 0x960   : > { %v19596_v22 = vpop.permute.xlu1 %3912  ;;  %4179 = vmatpush1.bf16.msra.mxu0 %v3988_v2  ;;  %v14652_v2 = vld [vmem:[#allocation11 + $0xc] ss:$16 sps:$4 sm:$0xff]  }
 0x961   : > { %v3911_v0 = vpop.permute.xlu0 %3910 }
 0x962   : > { %v3996_v41 = vsel %vm1211_vm15, %v19432_v47, %v3911_v0  ;;  %v3997_v45 = vsel %vm1211_vm15, %v3911_v0, %v19596_v22 }
 0x963   : > { %4180 = vmatprep.subr.bf16.mxu0 %v3997_v45  ;;  %v14655_v45 = vld [vmem:[#allocation11 + $0x124] ss:$16 sps:$4 sm:$0xff]  }
 0x964   : > { %4181 = vmatpush1.bf16.msra.mxu0 %v3996_v41  ;;  %v14647_v41 = vld [vmem:[#allocation11 + $0x100] ss:$16 sps:$4 sm:$0xff]  }
 0x98b   : > { %v19602_v10 = vpop.f32.mrb[24].mxu0 }
 0x98c   : > { %v19604_v55 = vpop.f32.mrb[25].mxu0 }
 0x98d   : > { %v4122_v39 = vpop.f32.mrb[26].mxu0 }
 0x98e   : > { %v4123_v62 = vpop.f32.mrb[27].mxu0  ;;  %v14658_v39 = vld [vmem:[#allocation11 + $0x2c] ss:$16 sps:$4 sm:$0xff]  }
 0x98f   : > { %v16191_v62 = vld.sshfl [vmem:[#allocation10] sm:$0x33 pattern:$0x76325410] }
 0x9a5   : > { %v19606_v59 = vpop.permute.xlu1 %3930  ;;  %v3929_v28 = vpop.permute.xlu0 %3928 }
 0x9a6   : > { %v4004_v60 = vsel %vm1211_vm15, %v19438_v61, %v3929_v28  ;;  %v4005_v47 = vsel %vm1211_vm15, %v3929_v28, %v19606_v59  ;;  %v14626_v61 = vld [vmem:[#allocation11 + $0x20] ss:$16 sps:$4 sm:$0xff]  }
 0x9a7   : > { %4182 = vmatprep.subr.bf16.mxu0 %v4005_v47  ;;  %v14653_v28 = vld [vmem:[#allocation11 + $0x120] ss:$16 sps:$4 sm:$0xff]  }
 0x9a8   : > { %4183 = vmatpush1.bf16.msra.mxu0 %v4004_v60  ;;  %v14661_v60 = vld [vmem:[#allocation11 + $0x144] ss:$16 sps:$4 sm:$0xff]   ;;  %v14659_v47 = vld [vmem:[#allocation11 + $0x140] ss:$16 sps:$4 sm:$0xff]  }
 0x9a9   : > { %v3809_v57 = vpop.permute.xlu1 %3808  ;;  %v3807_v14 = vpop.permute.xlu0 %3806  ;;  %5835 = vmatprep.subr.bf16.mxu0 %v14625_v43  ;;  %v14656_v43 = vld [vmem:[#allocation11 + $0x28] ss:$16 sps:$4 sm:$0xff]  }
 0x9aa   : > { %v3950_v56 = vsel %vm1211_vm15, %v19528_v37, %v3807_v14  ;;  %v3951_v30 = vsel %vm1211_vm15, %v3807_v14, %v3809_v57  ;;  %v14629_v37 = vld [vmem:[#allocation11 + $0x40] ss:$16 sps:$4 sm:$0xff]   ;;  %v14667_v57 = vld [vmem:[#allocation11 + $0x164] ss:$16 sps:$4 sm:$0xff]   ;;  %v14670_v14 = vld [vmem:[#allocation11 + $0x6c] ss:$16 sps:$4 sm:$0xff]  }
 0x9ab   : > { %4199 = vmatmul.mubr.bf16.vlgmr.msra.gmra.mrb[28].mxu0 %v19075_v54  ;;  %4209 = vmatprep.subr.bf16.mxu1 %v3951_v30  ;;  %v14634_v54 = vld [vmem:[#allocation11 + $0x64] ss:$16 sps:$4 sm:$0xff]  }
 0x9ac   : > { %4210 = vmatpush1.bf16.msra.mxu1 %v3950_v56  ;;  %5836 = vmatpush1.bf16.msra.mxu0 %v14623_v16  ;;  %v14662_v16 = vld [vmem:[#allocation11 + $0x48] ss:$16 sps:$4 sm:$0xff]   ;;  %v14673_v30 = vld [vmem:[#allocation11 + $0x184] ss:$16 sps:$4 sm:$0xff]  }
 0x9ad   : > { %v3827_v36 = vpop.permute.xlu1 %3826  ;;  %5837 = vmatprep.subr.bf16.mxu0 %v14628_v63  ;;  %v3825_v40 = vpop.permute.xlu0 %3824  ;;  %v14665_v63 = vld [vmem:[#allocation11 + $0x160] ss:$16 sps:$4 sm:$0xff]   ;;  %v14668_v56 = vld [vmem:[#allocation11 + $0x68] ss:$16 sps:$4 sm:$0xff]  }
 0x9ae   : > { %v3958_v21 = vsel %vm1211_vm15, %v19546_v12, %v3825_v40  ;;  %v3959_v4 = vsel %vm1211_vm15, %v3825_v40, %v3827_v36  ;;  %v14637_v12 = vld [vmem:[#allocation11 + $0x84] ss:$16 sps:$4 sm:$0xff]  }
 0x9af   : > { %4211 = vmatprep.subr.bf16.mxu1 %v3959_v4  ;;  %v14674_v4 = vld [vmem:[#allocation11 + $0x88] ss:$16 sps:$4 sm:$0xff]  }
 0x9b0   : > { %5838 = vmatpush1.bf16.msra.mxu0 %v14626_v61  ;;  %4212 = vmatpush1.bf16.msra.mxu1 %v3958_v21  ;;  %v14676_v61 = vld [vmem:[#allocation11 + $0x8c] ss:$16 sps:$4 sm:$0xff]  }
 0x9b1   : > { %v3845_v26 = vpop.permute.xlu1 %3844  ;;  %5839 = vmatprep.subr.bf16.mxu0 %v14631_v15  ;;  %v3843_v53 = vpop.permute.xlu0 %3842  ;;  %v14671_v15 = vld [vmem:[#allocation11 + $0x180] ss:$16 sps:$4 sm:$0xff]  }
 0x9b2   : > { %v3966_v58 = vsel %vm1211_vm15, %v19564_v31, %v3843_v53  ;;  %v3967_v52 = vsel %vm1211_vm15, %v3843_v53, %v3845_v26 }
 0x9b3   : > { %4213 = vmatprep.subr.bf16.mxu1 %v3967_v52 }
 0x9b4   : > { %5840 = vmatpush1.bf16.msra.mxu0 %v14629_v37  ;;  %4214 = vmatpush1.bf16.msra.mxu1 %v3966_v58  ;;  %v14679_v37 = vld [vmem:[#allocation11 + $0x1a4] ss:$16 sps:$4 sm:$0xff]   ;;  %v14677_v58 = vld [vmem:[#allocation11 + $0x1a0] ss:$16 sps:$4 sm:$0xff]  }
 0x9b5   : > { %5841 = vmatprep.subr.bf16.mxu0 %v14634_v54  ;;  %v3863_v23 = vpop.permute.xlu1 %3862  ;;  %v14682_v54 = vld [vmem:[#allocation11 + $0xac] ss:$16 sps:$4 sm:$0xff]  }
 0x9b6   : > { %v3861_v24 = vpop.permute.xlu0 %3860 }
 0x9b7   : > { %v3974_v51 = vsel %vm1211_vm15, %v19572_v29, %v3861_v24  ;;  %v3975_v7 = vsel %vm1211_vm15, %v3861_v24, %v3863_v23  ;;  %v20187_v23 = vld [vmem:[#allocation37_spill] sm:$0xff] }
 0x9b8   : > { %4215 = vmatprep.subr.bf16.mxu1 %v3975_v7  ;;  %5842 = vmatpush1.bf16.msra.mxu0 %v14632_v3  ;;  %v14680_v3 = vld [vmem:[#allocation11 + $0xa8] ss:$16 sps:$4 sm:$0xff]  }
 0x9b9   : > { %4216 = vmatpush1.bf16.msra.mxu1 %v3974_v51  ;;  %5843 = vmatprep.subr.bf16.mxu0 %v14637_v12  ;;  %v3881_v8 = vpop.permute.xlu1 %3880  ;;  %v14688_v51 = vld [vmem:[#allocation11 + $0xcc] ss:$16 sps:$4 sm:$0xff]  }
 0x9ba   : > { %v3879_v20 = vpop.permute.xlu0 %3878 }
 0x9bb   : > { %v3982_v31 = vsel %vm1211_vm15, %v19584_v19, %v3879_v20  ;;  %v3983_v32 = vsel %vm1211_vm15, %v3879_v20, %v3881_v8  ;;  %v14694_v20 = vld [vmem:[#allocation11 + $0xec] ss:$16 sps:$4 sm:$0xff]  }
 0x9bc   : > { %4217 = vmatprep.subr.bf16.mxu1 %v3983_v32  ;;  %5844 = vmatpush1.bf16.msra.mxu0 %v14635_v46  ;;  %v14686_v46 = vld [vmem:[#allocation11 + $0xc8] ss:$16 sps:$4 sm:$0xff]  }
 0x9bd   : > { %4218 = vmatpush1.bf16.msra.mxu1 %v3982_v31  ;;  %5845 = vmatprep.subr.bf16.mxu0 %v14640_v17  ;;  %v3899_v25 = vpop.permute.xlu1 %3898  ;;  %v14691_v17 = vld [vmem:[#allocation11 + $0x1e4] ss:$16 sps:$4 sm:$0xff]   ;;  %v14689_v31 = vld [vmem:[#allocation11 + $0x1e0] ss:$16 sps:$4 sm:$0xff]   ;;  %v14692_v32 = vld [vmem:[#allocation11 + $0xe8] ss:$16 sps:$4 sm:$0xff]  }
 0x9be   : > { %v3897_v42 = vpop.permute.xlu0 %3896 }
 0x9bf   : > { %v3990_v29 = vsel %vm1211_vm15, %v19590_v49, %v3897_v42  ;;  %v3991_v48 = vsel %vm1211_vm15, %v3897_v42, %v3899_v25  ;;  %v14697_v25 = vld [vmem:[#allocation11 + $0x204] ss:$16 sps:$4 sm:$0xff]   ;;  %v14700_v42 = vld [vmem:[#allocation11 + $0x10c] ss:$16 sps:$4 sm:$0xff]  }
 0x9c0   : > { %4219 = vmatprep.subr.bf16.mxu1 %v3991_v48  ;;  %5846 = vmatpush1.bf16.msra.mxu0 %v14638_v5  ;;  %v20188_v5 = vld [vmem:[#allocation36_spill] sm:$0xff] }
 0x9c1   : > { %4220 = vmatpush1.bf16.msra.mxu1 %v3990_v29  ;;  %5847 = vmatprep.subr.bf16.mxu0 %v14643_v27  ;;  %v3917_v33 = vpop.permute.xlu1 %3916  ;;  %v14695_v29 = vld [vmem:[#allocation11 + $0x200] ss:$16 sps:$4 sm:$0xff]  }
 0x9c2   : > { %v3915_v18 = vpop.permute.xlu0 %3914 }
 0x9c3   : > { %v3998_v19 = vsel %vm1211_vm15, %v19596_v22, %v3915_v18  ;;  %v3999_v6 = vsel %vm1211_vm15, %v3915_v18, %v3917_v33  ;;  %v14650_v22 = vld [vmem:[#allocation11 + $0x8] ss:$16 sps:$4 sm:$0xff]   ;;  %v14706_v33 = vld [vmem:[#allocation11 + $0x12c] ss:$16 sps:$4 sm:$0xff]   ;;  %v14701_v18 = vld [vmem:[#allocation11 + $0x220] ss:$16 sps:$4 sm:$0xff]  }
 0x9c4   : > { %4221 = vmatprep.subr.bf16.mxu1 %v3999_v6  ;;  %5848 = vmatpush1.bf16.msra.mxu0 %v14641_v50  ;;  %v14698_v50 = vld [vmem:[#allocation11 + $0x108] ss:$16 sps:$4 sm:$0xff]   ;;  %v14709_v6 = vld [vmem:[#allocation11 + $0x244] ss:$16 sps:$4 sm:$0xff]  }
 0x9c5   : > { %4222 = vmatpush1.bf16.msra.mxu1 %v3998_v19  ;;  %5849 = vmatprep.subr.bf16.mxu0 %v14646_v1  ;;  %v3935_v49 = vpop.permute.xlu1 %3934  ;;  %v14703_v1 = vld [vmem:[#allocation11 + $0x224] ss:$16 sps:$4 sm:$0xff]   ;;  %v14704_v19 = vld [vmem:[#allocation11 + $0x128] ss:$16 sps:$4 sm:$0xff]  }
 0x9c6   : > { %v3933_v34 = vpop.permute.xlu0 %3932 }
 0x9c7   : > { %v4006_v38 = vsel %vm1211_vm15, %v19606_v59, %v3933_v34  ;;  %v4007_v0 = vsel %vm1211_vm15, %v3933_v34, %v3935_v49  ;;  %v14664_v59 = vld [vmem:[#allocation11 + $0x4c] ss:$16 sps:$4 sm:$0xff]   ;;  %v14710_v49 = vld [vmem:[#allocation11 + $0x148] ss:$16 sps:$4 sm:$0xff]   ;;  %v14715_v34 = vld [vmem:[#allocation11 + $0x264] ss:$16 sps:$4 sm:$0xff]  }
 0x9c8   : > { %4223 = vmatprep.subr.bf16.mxu1 %v4007_v0  ;;  %5850 = vmatpush1.bf16.msra.mxu0 %v14644_v35  ;;  %v14712_v35 = vld [vmem:[#allocation11 + $0x14c] ss:$16 sps:$4 sm:$0xff]   ;;  %v14716_v0 = vld [vmem:[#allocation11 + $0x168] ss:$16 sps:$4 sm:$0xff]  }
 0x9c9   : > { %4224 = vmatpush1.bf16.msra.mxu1 %v4006_v38  ;;  %5851 = vmatprep.subr.bf16.mxu0 %v14649_v13  ;;  %v14707_v13 = vld [vmem:[#allocation11 + $0x240] ss:$16 sps:$4 sm:$0xff]  }
 0x9ca   : > { %5999 = vmatprep.subr.bf16.mxu1 %v14652_v2  ;;  %v14718_v2 = vld [vmem:[#allocation11 + $0x16c] ss:$16 sps:$4 sm:$0xff]   ;;  %v14713_v38 = vld [vmem:[#allocation11 + $0x260] ss:$16 sps:$4 sm:$0xff]  }
 0x9cc   : > { %4240 = vmatmul.mubr.bf16.vlgmr.msra.gmra.mrb[28].mxu1 %v16191_v62  ;;  %5852 = vmatpush1.bf16.msra.mxu0 %v14647_v41  ;;  %v14721_v41 = vld [vmem:[#allocation11 + $0x284] ss:$16 sps:$4 sm:$0xff]  }
 0x9cd   : > { %6000 = vmatpush1.bf16.msra.mxu1 %v14650_v22  ;;  %5853 = vmatprep.subr.bf16.mxu0 %v14655_v45  ;;  %v14724_v22 = vld [vmem:[#allocation11 + $0x18c] ss:$16 sps:$4 sm:$0xff]   ;;  %v14719_v45 = vld [vmem:[#allocation11 + $0x280] ss:$16 sps:$4 sm:$0xff]   ;;  %v14727_v62 = vld [vmem:[#allocation11 + $0x2a4] ss:$16 sps:$4 sm:$0xff]  }
 0x9ce   : > { %6001 = vmatprep.subr.bf16.mxu1 %v14658_v39  ;;  %v14722_v39 = vld [vmem:[#allocation11 + $0x188] ss:$16 sps:$4 sm:$0xff]  }
 0x9d0   : > { %5854 = vmatpush1.bf16.msra.mxu0 %v14653_v28  ;;  %v14730_v28 = vld [vmem:[#allocation11 + $0x1ac] ss:$16 sps:$4 sm:$0xff]  }
 0x9d1   : > { %6002 = vmatpush1.bf16.msra.mxu1 %v14656_v43  ;;  %5855 = vmatprep.subr.bf16.mxu0 %v14661_v60  ;;  %v14725_v43 = vld [vmem:[#allocation11 + $0x2a0] ss:$16 sps:$4 sm:$0xff]   ;;  %v14728_v60 = vld [vmem:[#allocation11 + $0x1a8] ss:$16 sps:$4 sm:$0xff]  }
 0x9d2   : > { %6003 = vmatprep.subr.bf16.mxu1 %v14664_v59  ;;  %v14733_v59 = vld [vmem:[#allocation11 + $0x2c4] ss:$16 sps:$4 sm:$0xff]  }
 0x9d4   : > { %5856 = vmatpush1.bf16.msra.mxu0 %v14659_v47  ;;  %v14736_v47 = vld [vmem:[#allocation11 + $0x1cc] ss:$16 sps:$4 sm:$0xff]  }
 0x9d5   : > { %6004 = vmatpush1.bf16.msra.mxu1 %v14662_v16  ;;  %5857 = vmatprep.subr.bf16.mxu0 %v14667_v57  ;;  %v14731_v16 = vld [vmem:[#allocation11 + $0x2c0] ss:$16 sps:$4 sm:$0xff]   ;;  %v14734_v57 = vld [vmem:[#allocation11 + $0x1c8] ss:$16 sps:$4 sm:$0xff]  }
 0x9d6   : > { %6005 = vmatprep.subr.bf16.mxu1 %v14670_v14  ;;  %v19641_v21 = vpop.permute.xlu1 %4263  ;;  %v14739_v14 = vld [vmem:[#allocation11 + $0x2e4] ss:$16 sps:$4 sm:$0xff]  }
 0x9d7   : > { %v19637_v36 = vpop.permute.xlu0 %4250 }
 0x9d8   : > { %5858 = vmatpush1.bf16.msra.mxu0 %v14665_v63  ;;  %v4254_v40 = vmul.f32 %v19637_v36, %v19604_v55  ;;  %v4253_v26 = vmul.f32 %v19637_v36, %v19602_v10  ;;  %v14685_v55 = vld [vmem:[#allocation11 + $0x1c4] ss:$16 sps:$4 sm:$0xff]   ;;  %v14683_v10 = vld [vmem:[#allocation11 + $0x1c0] ss:$16 sps:$4 sm:$0xff]  }
 0x9d9   : > { %6006 = vmatpush1.bf16.msra.mxu1 %v14668_v56  ;;  %5859 = vmatprep.subr.bf16.mxu0 %v14673_v30  ;;  %v14742_v56 = vld [vmem:[#allocation11 + $0x1ec] ss:$16 sps:$4 sm:$0xff]  }
 0x9da   : > { %6007 = vmatprep.subr.bf16.mxu1 %v14676_v61  ;;  %v4267_v53 = vadd.f32 %v19641_v21, %v4254_v40  ;;  %v4266_v12 = vadd.f32 %v19641_v21, %v4253_v26 }
 0x9dc   : > { %5860 = vmatpush1.bf16.msra.mxu0 %v14671_v15  ;;  %v4275_v52 = vmax.f32 %v4267_v53, 0.0  ;;  %v4274_v8 = vmax.f32 %v4266_v12, 0.0  ;;  %v14737_v15 = vld [vmem:[#allocation11 + $0x2e0] ss:$16 sps:$4 sm:$0xff]   ;;  %v14748_v53 = vld [vmem:[#allocation11 + $0x20c] ss:$16 sps:$4 sm:$0xff]  }
 0x9dd   : > { %6008 = vmatpush1.bf16.msra.mxu1 %v14674_v4  ;;  %5861 = vmatprep.subr.bf16.mxu0 %v14679_v37  ;;  %v14740_v4 = vld [vmem:[#allocation11 + $0x1e8] ss:$16 sps:$4 sm:$0xff]   ;;  %v14745_v37 = vld [vmem:[#allocation11 + $0x304] ss:$16 sps:$4 sm:$0xff]  }
 0x9de   : > { %6009 = vmatprep.subr.bf16.mxu1 %v14682_v54  ;;  %v4283_v24 = vmul.f32 %v4275_v52, %v20187_v23  ;;  %v4282_v27 = vmul.f32 %v4274_v8, %v20188_v5  ;;  %v14743_v52 = vld [vmem:[#allocation11 + $0x300] ss:$16 sps:$4 sm:$0xff]   ;;  %v20189_v12 = vld [vmem:[#allocation39_spill] sm:$0xff] }
 0x9df   : > { %v14760_v8 = vld [vmem:[#allocation11 + $0x24c] ss:$16 sps:$4 sm:$0xff]  }
 0x9e0   : > { %5862 = vmatpush1.bf16.msra.mxu0 %v14677_v58  ;;  %v19648_v7 = vpack.c.bf16 %v4283_v24, %v4283_v24  ;;  %v19653_v48 = vpack.c.bf16 %v4282_v27, %v4282_v27  ;;  %v14754_v24 = vld [vmem:[#allocation11 + $0x22c] ss:$16 sps:$4 sm:$0xff]   ;;  %v14761_v27 = vld [vmem:[#allocation11 + $0x360] ss:$16 sps:$4 sm:$0xff]  }
 0x9e1   : > { %6010 = vmatpush1.bf16.msra.mxu1 %v14680_v3  ;;  %5863 = vmatprep.subr.bf16.mxu0 %v14685_v55  ;;  %v14746_v3 = vld [vmem:[#allocation11 + $0x208] ss:$16 sps:$4 sm:$0xff]   ;;  %v14751_v55 = vld [vmem:[#allocation11 + $0x324] ss:$16 sps:$4 sm:$0xff]   ;;  %v14766_v5 = vld [vmem:[#allocation11 + $0x26c] ss:$16 sps:$4 sm:$0xff]  }
 0x9e2   : > { %5867 = vmatprep.mubr.bf16.mxu0 %v19648_v7  ;;  %6031 = vmatprep.mubr.bf16.mxu1 %v19648_v7 }
 0x9e3   : > { %6011 = vmatprep.subr.bf16.mxu1 %v14688_v51 }
 0x9e4   : > { %5864 = vmatpush1.bf16.msra.mxu0 %v14683_v10  ;;  %v14749_v10 = vld [vmem:[#allocation11 + $0x320] ss:$16 sps:$4 sm:$0xff]  }
 0x9e5   : > { %6012 = vmatpush1.bf16.msra.mxu1 %v14686_v46  ;;  %5865 = vmatprep.subr.bf16.mxu0 %v14691_v17  ;;  %v14752_v46 = vld [vmem:[#allocation11 + $0x228] ss:$16 sps:$4 sm:$0xff]   ;;  %v14757_v17 = vld [vmem:[#allocation11 + $0x344] ss:$16 sps:$4 sm:$0xff]  }
 0x9e6   : > { %6013 = vmatprep.subr.bf16.mxu1 %v14694_v20  ;;  %v14755_v20 = vld [vmem:[#allocation11 + $0x340] ss:$16 sps:$4 sm:$0xff]  }
 0x9e8   : > { %5866 = vmatpush1.bf16.msra.mxu0 %v14689_v31  ;;  %v14758_v31 = vld [vmem:[#allocation11 + $0x248] ss:$16 sps:$4 sm:$0xff]  }
 0x9e9   : > { %6014 = vmatpush1.bf16.msra.mxu1 %v14692_v32  ;;  %5876 = vmatprep.subr.bf16.mxu0 %v14697_v25  ;;  %v14763_v32 = vld [vmem:[#allocation11 + $0x364] ss:$16 sps:$4 sm:$0xff]   ;;  %v14764_v25 = vld [vmem:[#allocation11 + $0x268] ss:$16 sps:$4 sm:$0xff]  }
 0x9ea   : > { %6015 = vmatprep.subr.bf16.mxu1 %v14700_v42  ;;  %v14769_v42 = vld [vmem:[#allocation11 + $0x384] ss:$16 sps:$4 sm:$0xff]  }
 0x9eb   : > { %5868 = vmatmul.mubr.bf16.vlgmr.msra.gmra.mrb[32].mxu0 %v19653_v48 }
 0x9ec   : > { %5877 = vmatpush1.bf16.msra.mxu0 %v14695_v29  ;;  %v14772_v29 = vld [vmem:[#allocation11 + $0x28c] ss:$16 sps:$4 sm:$0xff]  }
 0x9ed   : > { %6016 = vmatpush1.bf16.msra.mxu1 %v14698_v50  ;;  %5878 = vmatprep.subr.bf16.mxu0 %v14703_v1  ;;  %v14767_v50 = vld [vmem:[#allocation11 + $0x380] ss:$16 sps:$4 sm:$0xff]  }
 0x9ee   : > { %6017 = vmatprep.subr.bf16.mxu1 %v14706_v33  ;;  %v14770_v33 = vld [vmem:[#allocation11 + $0x288] ss:$16 sps:$4 sm:$0xff]  }
 0x9f0   : > { %5879 = vmatpush1.bf16.msra.mxu0 %v14701_v18  ;;  %v14775_v18 = vld [vmem:[#allocation11 + $0x3a4] ss:$16 sps:$4 sm:$0xff]  }
 0x9f1   : > { %6018 = vmatpush1.bf16.msra.mxu1 %v14704_v19  ;;  %5880 = vmatprep.subr.bf16.mxu0 %v14709_v6  ;;  %v14778_v19 = vld [vmem:[#allocation11 + $0x2ac] ss:$16 sps:$4 sm:$0xff]   ;;  %v14773_v6 = vld [vmem:[#allocation11 + $0x3a0] ss:$16 sps:$4 sm:$0xff]  }
 0x9f2   : > { %6019 = vmatprep.subr.bf16.mxu1 %v14712_v35 }
 0x9f4   : > { %5881 = vmatpush1.bf16.msra.mxu0 %v14707_v13  ;;  %v14776_v13 = vld [vmem:[#allocation11 + $0x2a8] ss:$16 sps:$4 sm:$0xff]  }
 0x9f5   : > { %6020 = vmatpush1.bf16.msra.mxu1 %v14710_v49  ;;  %5882 = vmatprep.subr.bf16.mxu0 %v14715_v34  ;;  %v14781_v49 = vld [vmem:[#allocation11 + $0x3c4] ss:$16 sps:$4 sm:$0xff]   ;;  %v14784_v34 = vld [vmem:[#allocation11 + $0x2cc] ss:$16 sps:$4 sm:$0xff]  }
 0x9f6   : > { %6021 = vmatprep.subr.bf16.mxu1 %v14718_v2  ;;  %v14779_v2 = vld [vmem:[#allocation11 + $0x3c0] ss:$16 sps:$4 sm:$0xff]  }
 0x9f8   : > { %5883 = vmatpush1.bf16.msra.mxu0 %v14713_v38 }
 0x9f9   : > { %6022 = vmatpush1.bf16.msra.mxu1 %v14716_v0  ;;  %5884 = vmatprep.subr.bf16.mxu0 %v14721_v41  ;;  %v14782_v0 = vld [vmem:[#allocation11 + $0x2c8] ss:$16 sps:$4 sm:$0xff]   ;;  %v14787_v41 = vld [vmem:[#allocation11 + $0x3e4] ss:$16 sps:$4 sm:$0xff]  }
 0x9fa   : > { %6023 = vmatprep.subr.bf16.mxu1 %v14724_v22  ;;  %v14790_v22 = vld [vmem:[#allocation11 + $0x2ec] ss:$16 sps:$4 sm:$0xff]  }
 0x9fc   : > { %5885 = vmatpush1.bf16.msra.mxu0 %v14719_v45  ;;  %v14785_v45 = vld [vmem:[#allocation11 + $0x3e0] ss:$16 sps:$4 sm:$0xff]  }
 0x9fd   : > { %6024 = vmatpush1.bf16.msra.mxu1 %v14722_v39  ;;  %5886 = vmatprep.subr.bf16.mxu0 %v14727_v62  ;;  %v20190_v39 = vld [vmem:[#allocation38_spill] sm:$0xff] }
 0x9fe   : > { %6025 = vmatprep.subr.bf16.mxu1 %v14730_v28  ;;  %v14788_v28 = vld [vmem:[#allocation11 + $0x2e8] ss:$16 sps:$4 sm:$0xff]  }
 0xa00   : > { %5887 = vmatpush1.bf16.msra.mxu0 %v14725_v43  ;;  %v14817_v43 = vld [vmem:[#allocation11 + $0x404] ss:$16 sps:$4 sm:$0xff]  }
 0xa01   : > { %6026 = vmatpush1.bf16.msra.mxu1 %v14728_v60  ;;  %5888 = vmatprep.subr.bf16.mxu0 %v14733_v59  ;;  %v14793_v60 = vld [vmem:[#allocation11 + $0x30c] ss:$16 sps:$4 sm:$0xff]   ;;  %v14815_v59 = vld [vmem:[#allocation11 + $0x400] ss:$16 sps:$4 sm:$0xff]  }
 0xa02   : > { %v4159_v63 = vpop.f32.mrb[24].mxu1  ;;  %6027 = vmatprep.subr.bf16.mxu1 %v14736_v47 }
 0xa03   : > { %v4161_v30 = vpop.f32.mrb[25].mxu1  ;;  %v4255_v1 = vmul.f32 %v19637_v36, %v4159_v63  ;;  %v14821_v63 = vld [vmem:[#allocation11 + $0x420] ss:$16 sps:$4 sm:$0xff]  }
 0xa04   : > { %v4256_v61 = vmul.f32 %v19637_v36, %v4161_v30  ;;  %5889 = vmatpush1.bf16.msra.mxu0 %v14731_v16  ;;  %v4163_v40 = vpop.f32.mrb[26].mxu1  ;;  %v14791_v16 = vld [vmem:[#allocation11 + $0x308] ss:$16 sps:$4 sm:$0xff]   ;;  %v14829_v30 = vld [vmem:[#allocation11 + $0x444] ss:$16 sps:$4 sm:$0xff]  }
 0xa05   : > { %6028 = vmatpush1.bf16.msra.mxu1 %v14734_v57  ;;  %5890 = vmatprep.subr.bf16.mxu0 %v14739_v14  ;;  %v4164_v26 = vpop.f32.mrb[27].mxu1  ;;  %v4268_v35 = vadd.f32 %v19641_v21, %v4255_v1  ;;  %v14823_v57 = vld [vmem:[#allocation11 + $0x424] ss:$16 sps:$4 sm:$0xff]   ;;  %v14796_v14 = vld [vmem:[#allocation11 + $0x32c] ss:$16 sps:$4 sm:$0xff]  }
 0xa06   : > { %v4269_v54 = vadd.f32 %v19641_v21, %v4256_v61  ;;  %6029 = vmatprep.subr.bf16.mxu1 %v14742_v56  ;;  %v14794_v56 = vld [vmem:[#allocation11 + $0x328] ss:$16 sps:$4 sm:$0xff]   ;;  %v14799_v61 = vld [vmem:[#allocation11 + $0x34c] ss:$16 sps:$4 sm:$0xff]   ;;  %v14833_v26 = vld [vmem:[#allocation11 + $0x460] ss:$16 sps:$4 sm:$0xff]  }
 0xa07   : > { %v4276_v38 = vmax.f32 %v4268_v35, 0.0  ;;  %v14797_v40 = vld [vmem:[#allocation11 + $0x348] ss:$16 sps:$4 sm:$0xff]   ;;  %v14826_v1 = vld [vmem:[#allocation11 + $0x42c] ss:$16 sps:$4 sm:$0xff]  }
 0xa08   : > { %v4277_v58 = vmax.f32 %v4269_v54, 0.0  ;;  %5891 = vmatpush1.bf16.msra.mxu0 %v14737_v15  ;;  %v14827_v15 = vld [vmem:[#allocation11 + $0x440] ss:$16 sps:$4 sm:$0xff]   ;;  %v14800_v54 = vld [vmem:[#allocation11 + $0x368] ss:$16 sps:$4 sm:$0xff]  }
 0xa09   : > { %6030 = vmatpush1.bf16.msra.mxu1 %v14740_v4  ;;  %5892 = vmatprep.subr.bf16.mxu0 %v14745_v37  ;;  %v4284_v62 = vmul.f32 %v4276_v38, %v20190_v39  ;;  %v14835_v4 = vld [vmem:[#allocation11 + $0x464] ss:$16 sps:$4 sm:$0xff]   ;;  %v14802_v37 = vld [vmem:[#allocation11 + $0x36c] ss:$16 sps:$4 sm:$0xff]   ;;  %v14875_v35 = vld [vmem:[#allocation11 + $0x540] ss:$16 sps:$4 sm:$0xff]  }
 0xa0a   : > { %v4285_v23 = vmul.f32 %v4277_v58, %v20189_v12  ;;  %6040 = vmatprep.subr.bf16.mxu1 %v14748_v53  ;;  %v14841_v53 = vld [vmem:[#allocation11 + $0x484] ss:$16 sps:$4 sm:$0xff]   ;;  %v14805_v58 = vld [vmem:[#allocation11 + $0x38c] ss:$16 sps:$4 sm:$0xff]   ;;  %v14836_v38 = vld [vmem:[#allocation11 + $0x468] ss:$16 sps:$4 sm:$0xff]  }
 0xa0b   : > { %v19667_v47 = vpack.c.bf16 %v4284_v62, %v4284_v62  ;;  %v14808_v12 = vld [vmem:[#allocation11 + $0x3ac] ss:$16 sps:$4 sm:$0xff]   ;;  %v14895_v39 = vld [vmem:[#allocation11 + $0x5a4] ss:$16 sps:$4 sm:$0xff]  }
 0xa0c   : > { %v19659_v51 = vpack.c.bf16 %v4285_v23, %v4285_v23  ;;  %6032 = vmatmul.mubr.bf16.vlgmr.msra.gmra.mrb[32].mxu1 %v19653_v48  ;;  %5893 = vmatpush1.bf16.msra.mxu0 %v14743_v52  ;;  %v14839_v52 = vld [vmem:[#allocation11 + $0x480] ss:$16 sps:$4 sm:$0xff]   ;;  %v14850_v62 = vld [vmem:[#allocation11 + $0x4ac] ss:$16 sps:$4 sm:$0xff]  }
 0xa0d   : > { %6041 = vmatpush1.bf16.msra.mxu1 %v14746_v3  ;;  %5894 = vmatprep.subr.bf16.mxu0 %v14751_v55  ;;  %v14803_v3 = vld [vmem:[#allocation11 + $0x388] ss:$16 sps:$4 sm:$0xff]   ;;  %v14847_v55 = vld [vmem:[#allocation11 + $0x4a4] ss:$16 sps:$4 sm:$0xff]   ;;  %v14845_v23 = vld [vmem:[#allocation11 + $0x4a0] ss:$16 sps:$4 sm:$0xff]  }
 0xa0e   : > { %5908 = vmatprep.mubr.bf16.mxu0 %v19659_v51  ;;  %6072 = vmatprep.mubr.bf16.mxu1 %v19659_v51 }
 0xa0f   : > { %6042 = vmatprep.subr.bf16.mxu1 %v14754_v24  ;;  %v14806_v24 = vld [vmem:[#allocation11 + $0x3a8] ss:$16 sps:$4 sm:$0xff]  }
 0xa10   : > { %5895 = vmatpush1.bf16.msra.mxu0 %v14749_v10  ;;  %v14853_v10 = vld [vmem:[#allocation11 + $0x4c4] ss:$16 sps:$4 sm:$0xff]  }
 0xa11   : > { %6043 = vmatpush1.bf16.msra.mxu1 %v14752_v46  ;;  %5896 = vmatprep.subr.bf16.mxu0 %v14757_v17  ;;  %v14811_v46 = vld [vmem:[#allocation11 + $0x3cc] ss:$16 sps:$4 sm:$0xff]   ;;  %v14851_v17 = vld [vmem:[#allocation11 + $0x4c0] ss:$16 sps:$4 sm:$0xff]  }
 0xa12   : > { %6044 = vmatprep.subr.bf16.mxu1 %v14760_v8  ;;  %v14809_v8 = vld [vmem:[#allocation11 + $0x3c8] ss:$16 sps:$4 sm:$0xff]  }
 0xa14   : > { %5897 = vmatpush1.bf16.msra.mxu0 %v14755_v20  ;;  %v14859_v20 = vld [vmem:[#allocation11 + $0x4e4] ss:$16 sps:$4 sm:$0xff]  }
 0xa15   : > { %6045 = vmatpush1.bf16.msra.mxu1 %v14758_v31  ;;  %5898 = vmatprep.subr.bf16.mxu0 %v14763_v32  ;;  %v14814_v31 = vld [vmem:[#allocation11 + $0x3ec] ss:$16 sps:$4 sm:$0xff]   ;;  %v14857_v32 = vld [vmem:[#allocation11 + $0x4e0] ss:$16 sps:$4 sm:$0xff]  }
 0xa16   : > { %6046 = vmatprep.subr.bf16.mxu1 %v14766_v5  ;;  %v14812_v5 = vld [vmem:[#allocation11 + $0x3e8] ss:$16 sps:$4 sm:$0xff]  }
 0xa18   : > { %5899 = vmatpush1.bf16.msra.mxu0 %v14761_v27  ;;  %v14865_v27 = vld [vmem:[#allocation11 + $0x504] ss:$16 sps:$4 sm:$0xff]  }
 0xa19   : > { %6047 = vmatpush1.bf16.msra.mxu1 %v14764_v25  ;;  %5900 = vmatprep.subr.bf16.mxu0 %v14769_v42  ;;  %v14820_v25 = vld [vmem:[#allocation11 + $0x40c] ss:$16 sps:$4 sm:$0xff]   ;;  %v14863_v42 = vld [vmem:[#allocation11 + $0x500] ss:$16 sps:$4 sm:$0xff]  }
 0xa1a   : > { %6048 = vmatprep.subr.bf16.mxu1 %v14772_v29  ;;  %v14818_v29 = vld [vmem:[#allocation11 + $0x408] ss:$16 sps:$4 sm:$0xff]  }
 0xa1c   : > { %5901 = vmatpush1.bf16.msra.mxu0 %v14767_v50  ;;  %v14871_v50 = vld [vmem:[#allocation11 + $0x524] ss:$16 sps:$4 sm:$0xff]  }
 0xa1d   : > { %6049 = vmatpush1.bf16.msra.mxu1 %v14770_v33  ;;  %5902 = vmatprep.subr.bf16.mxu0 %v14775_v18  ;;  %v14869_v33 = vld [vmem:[#allocation11 + $0x520] ss:$16 sps:$4 sm:$0xff]   ;;  %v14824_v18 = vld [vmem:[#allocation11 + $0x428] ss:$16 sps:$4 sm:$0xff]  }
 0xa1e   : > { %6050 = vmatprep.subr.bf16.mxu1 %v14778_v19  ;;  %v14877_v19 = vld [vmem:[#allocation11 + $0x544] ss:$16 sps:$4 sm:$0xff]  }
 0xa20   : > { %5903 = vmatpush1.bf16.msra.mxu0 %v14773_v6  ;;  %v14832_v6 = vld [vmem:[#allocation11 + $0x44c] ss:$16 sps:$4 sm:$0xff]  }
 0xa21   : > { %6051 = vmatpush1.bf16.msra.mxu1 %v14776_v13  ;;  %5904 = vmatprep.subr.bf16.mxu0 %v14781_v49  ;;  %v14830_v13 = vld [vmem:[#allocation11 + $0x448] ss:$16 sps:$4 sm:$0xff]   ;;  %v14883_v49 = vld [vmem:[#allocation11 + $0x564] ss:$16 sps:$4 sm:$0xff]  }
 0xa22   : > { %6052 = vmatprep.subr.bf16.mxu1 %v14784_v34  ;;  %v14838_v34 = vld [vmem:[#allocation11 + $0x46c] ss:$16 sps:$4 sm:$0xff]  }
 0xa24   : > { %5905 = vmatpush1.bf16.msra.mxu0 %v14779_v2  ;;  %v14881_v2 = vld [vmem:[#allocation11 + $0x560] ss:$16 sps:$4 sm:$0xff]  }
 0xa25   : > { %6053 = vmatpush1.bf16.msra.mxu1 %v14782_v0  ;;  %5906 = vmatprep.subr.bf16.mxu0 %v14787_v41  ;;  %v14889_v0 = vld [vmem:[#allocation11 + $0x584] ss:$16 sps:$4 sm:$0xff]   ;;  %v14844_v41 = vld [vmem:[#allocation11 + $0x48c] ss:$16 sps:$4 sm:$0xff]  }
 0xa26   : > { %6054 = vmatprep.subr.bf16.mxu1 %v14790_v22  ;;  %v14887_v22 = vld [vmem:[#allocation11 + $0x580] ss:$16 sps:$4 sm:$0xff]  }
 0xa28   : > { %5907 = vmatpush1.bf16.msra.mxu0 %v14785_v45  ;;  %v14842_v45 = vld [vmem:[#allocation11 + $0x488] ss:$16 sps:$4 sm:$0xff]  }
 0xa29   : > { %6055 = vmatpush1.bf16.msra.mxu1 %v14788_v28  ;;  %5917 = vmatprep.subr.bf16.mxu0 %v14817_v43  ;;  %v14893_v28 = vld [vmem:[#allocation11 + $0x5a0] ss:$16 sps:$4 sm:$0xff]   ;;  %v14848_v43 = vld [vmem:[#allocation11 + $0x4a8] ss:$16 sps:$4 sm:$0xff]  }
 0xa2a   : > { %6056 = vmatprep.subr.bf16.mxu1 %v14793_v60  ;;  %v14901_v60 = vld [vmem:[#allocation11 + $0x5c4] ss:$16 sps:$4 sm:$0xff]  }
 0xa2b   : > { %5909 = vmatmul.mubr.bf16.vlgmr.msra.gmra.mrb[32].mxu0 %v19667_v47 }
 0xa2c   : > { %5918 = vmatpush1.bf16.msra.mxu0 %v14815_v59  ;;  %v14856_v59 = vld [vmem:[#allocation11 + $0x4cc] ss:$16 sps:$4 sm:$0xff]  }
 0xa2d   : > { %6057 = vmatpush1.bf16.msra.mxu1 %v14791_v16  ;;  %5919 = vmatprep.subr.bf16.mxu0 %v14823_v57  ;;  %v14899_v16 = vld [vmem:[#allocation11 + $0x5c0] ss:$16 sps:$4 sm:$0xff]   ;;  %v14854_v57 = vld [vmem:[#allocation11 + $0x4c8] ss:$16 sps:$4 sm:$0xff]  }
 0xa2e   : > { %6058 = vmatprep.subr.bf16.mxu1 %v14796_v14  ;;  %v14907_v14 = vld [vmem:[#allocation11 + $0x5e4] ss:$16 sps:$4 sm:$0xff]  }
 0xa30   : > { %5920 = vmatpush1.bf16.msra.mxu0 %v14821_v63  ;;  %v14862_v63 = vld [vmem:[#allocation11 + $0x4ec] ss:$16 sps:$4 sm:$0xff]  }
 0xa31   : > { %6059 = vmatpush1.bf16.msra.mxu1 %v14794_v56  ;;  %5921 = vmatprep.subr.bf16.mxu0 %v14829_v30  ;;  %v14905_v56 = vld [vmem:[#allocation11 + $0x5e0] ss:$16 sps:$4 sm:$0xff]   ;;  %v14860_v30 = vld [vmem:[#allocation11 + $0x4e8] ss:$16 sps:$4 sm:$0xff]  }
 0xa32   : > { %6060 = vmatprep.subr.bf16.mxu1 %v14799_v61  ;;  %v14913_v61 = vld [vmem:[#allocation11 + $0x604] ss:$16 sps:$4 sm:$0xff]  }
 0xa34   : > { %5922 = vmatpush1.bf16.msra.mxu0 %v14827_v15  ;;  %v14868_v15 = vld [vmem:[#allocation11 + $0x50c] ss:$16 sps:$4 sm:$0xff]  }
 0xa35   : > { %6061 = vmatpush1.bf16.msra.mxu1 %v14797_v40  ;;  %5923 = vmatprep.subr.bf16.mxu0 %v14835_v4  ;;  %v14866_v40 = vld [vmem:[#allocation11 + $0x508] ss:$16 sps:$4 sm:$0xff]   ;;  %v14874_v4 = vld [vmem:[#allocation11 + $0x52c] ss:$16 sps:$4 sm:$0xff]  }
 0xa36   : > { %6062 = vmatprep.subr.bf16.mxu1 %v14802_v37  ;;  %v14872_v37 = vld [vmem:[#allocation11 + $0x528] ss:$16 sps:$4 sm:$0xff]  }
 0xa38   : > { %5924 = vmatpush1.bf16.msra.mxu0 %v14833_v26  ;;  %v14880_v26 = vld [vmem:[#allocation11 + $0x54c] ss:$16 sps:$4 sm:$0xff]  }
 0xa39   : > { %6063 = vmatpush1.bf16.msra.mxu1 %v14800_v54  ;;  %5925 = vmatprep.subr.bf16.mxu0 %v14841_v53  ;;  %v14878_v54 = vld [vmem:[#allocation11 + $0x548] ss:$16 sps:$4 sm:$0xff]   ;;  %v14886_v53 = vld [vmem:[#allocation11 + $0x56c] ss:$16 sps:$4 sm:$0xff]  }
 0xa3a   : > { %6064 = vmatprep.subr.bf16.mxu1 %v14805_v58  ;;  %v14884_v58 = vld [vmem:[#allocation11 + $0x568] ss:$16 sps:$4 sm:$0xff]  }
 0xa3c   : > { %5926 = vmatpush1.bf16.msra.mxu0 %v14839_v52  ;;  %v14892_v52 = vld [vmem:[#allocation11 + $0x58c] ss:$16 sps:$4 sm:$0xff]  }
 0xa3d   : > { %6065 = vmatpush1.bf16.msra.mxu1 %v14803_v3  ;;  %5927 = vmatprep.subr.bf16.mxu0 %v14847_v55  ;;  %v14890_v3 = vld [vmem:[#allocation11 + $0x588] ss:$16 sps:$4 sm:$0xff]   ;;  %v14898_v55 = vld [vmem:[#allocation11 + $0x5ac] ss:$16 sps:$4 sm:$0xff]  }
 0xa3e   : > { %6066 = vmatprep.subr.bf16.mxu1 %v14808_v12  ;;  %v14896_v12 = vld [vmem:[#allocation11 + $0x5a8] ss:$16 sps:$4 sm:$0xff]  }
 0xa40   : > { %5928 = vmatpush1.bf16.msra.mxu0 %v14845_v23 }
 0xa41   : > { %6067 = vmatpush1.bf16.msra.mxu1 %v14806_v24  ;;  %5929 = vmatprep.subr.bf16.mxu0 %v14853_v10  ;;  %v14904_v24 = vld [vmem:[#allocation11 + $0x5cc] ss:$16 sps:$4 sm:$0xff]  }
 0xa42   : > { %6068 = vmatprep.subr.bf16.mxu1 %v14811_v46 }
 0xa44   : > { %5930 = vmatpush1.bf16.msra.mxu0 %v14851_v17 }
 0xa45   : > { %6069 = vmatpush1.bf16.msra.mxu1 %v14809_v8  ;;  %5931 = vmatprep.subr.bf16.mxu0 %v14859_v20 }
 0xa46   : > { %6070 = vmatprep.subr.bf16.mxu1 %v14814_v31 }
 0xa48   : > { %5932 = vmatpush1.bf16.msra.mxu0 %v14857_v32  ;;  %v14902_v32 = vld [vmem:[#allocation11 + $0x5c8] ss:$16 sps:$4 sm:$0xff]  }
 0xa49   : > { %6071 = vmatpush1.bf16.msra.mxu1 %v14812_v5  ;;  %5933 = vmatprep.subr.bf16.mxu0 %v14865_v27  ;;  %v14910_v27 = vld [vmem:[#allocation11 + $0x5ec] ss:$16 sps:$4 sm:$0xff]  }
 0xa4a   : > { %6081 = vmatprep.subr.bf16.mxu1 %v14820_v25 }
 0xa4c   : > { %6073 = vmatmul.mubr.bf16.vlgmr.msra.gmra.mrb[32].mxu1 %v19667_v47  ;;  %5934 = vmatpush1.bf16.msra.mxu0 %v14863_v42 }
 0xa4d   : > { %6082 = vmatpush1.bf16.msra.mxu1 %v14818_v29  ;;  %5935 = vmatprep.subr.bf16.mxu0 %v14871_v50  ;;  %v20191_v29 = vld [vmem:[#allocation40_spill] sm:$0xff] }
 0xa4e   : > { %6083 = vmatprep.subr.bf16.mxu1 %v14826_v1  ;;  %v14908_v1 = vld [vmem:[#allocation11 + $0x5e8] ss:$16 sps:$4 sm:$0xff]  }
 0xa50   : > { %5936 = vmatpush1.bf16.msra.mxu0 %v14869_v33 }
 0xa51   : > { %6084 = vmatpush1.bf16.msra.mxu1 %v14824_v18  ;;  %5937 = vmatprep.subr.bf16.mxu0 %v14877_v19  ;;  %v14916_v18 = vld [vmem:[#allocation11 + $0x60c] ss:$16 sps:$4 sm:$0xff]  }
 0xa52   : > { %6085 = vmatprep.subr.bf16.mxu1 %v14832_v6  ;;  %v14911_v6 = vld [vmem:[#allocation11 + $0x600] ss:$16 sps:$4 sm:$0xff]  }
 0xa54   : > { %5938 = vmatpush1.bf16.msra.mxu0 %v14875_v35 }
 0xa55   : > { %6086 = vmatpush1.bf16.msra.mxu1 %v14830_v13  ;;  %5939 = vmatprep.subr.bf16.mxu0 %v14883_v49  ;;  %v14914_v13 = vld [vmem:[#allocation11 + $0x608] ss:$16 sps:$4 sm:$0xff]   ;;  %v14919_v49 = vld [vmem:[#allocation11 + $0x624] ss:$16 sps:$4 sm:$0xff]  }
 0xa56   : > { %6087 = vmatprep.subr.bf16.mxu1 %v14838_v34  ;;  %v14922_v34 = vld [vmem:[#allocation11 + $0x62c] ss:$16 sps:$4 sm:$0xff]  }
 0xa58   : > { %5940 = vmatpush1.bf16.msra.mxu0 %v14881_v2  ;;  %v14920_v2 = vld [vmem:[#allocation11 + $0x628] ss:$16 sps:$4 sm:$0xff]  }
 0xa59   : > { %6088 = vmatpush1.bf16.msra.mxu1 %v14836_v38  ;;  %5941 = vmatprep.subr.bf16.mxu0 %v14889_v0  ;;  %v14925_v38 = vld [vmem:[#allocation11 + $0x644] ss:$16 sps:$4 sm:$0xff]   ;;  %v14928_v0 = vld [vmem:[#allocation11 + $0x64c] ss:$16 sps:$4 sm:$0xff]  }
 0xa5a   : > { %6089 = vmatprep.subr.bf16.mxu1 %v14844_v41  ;;  %v14923_v41 = vld [vmem:[#allocation11 + $0x640] ss:$16 sps:$4 sm:$0xff]  }
 0xa5c   : > { %5942 = vmatpush1.bf16.msra.mxu0 %v14887_v22  ;;  %v14926_v22 = vld [vmem:[#allocation11 + $0x648] ss:$16 sps:$4 sm:$0xff]  }
 0xa5d   : > { %6090 = vmatpush1.bf16.msra.mxu1 %v14842_v45  ;;  %5943 = vmatprep.subr.bf16.mxu0 %v14895_v39  ;;  %v14931_v45 = vld [vmem:[#allocation11 + $0x664] ss:$16 sps:$4 sm:$0xff]   ;;  %v14934_v39 = vld [vmem:[#allocation11 + $0x66c] ss:$16 sps:$4 sm:$0xff]  }
 0xa5e   : > { %6091 = vmatprep.subr.bf16.mxu1 %v14850_v62  ;;  %v14929_v62 = vld [vmem:[#allocation11 + $0x660] ss:$16 sps:$4 sm:$0xff]  }
 0xa60   : > { %5944 = vmatpush1.bf16.msra.mxu0 %v14893_v28  ;;  %v14932_v28 = vld [vmem:[#allocation11 + $0x668] ss:$16 sps:$4 sm:$0xff]  }
 0xa61   : > { %6092 = vmatpush1.bf16.msra.mxu1 %v14848_v43  ;;  %5945 = vmatprep.subr.bf16.mxu0 %v14901_v60  ;;  %v14937_v43 = vld [vmem:[#allocation11 + $0x684] ss:$16 sps:$4 sm:$0xff]   ;;  %v14940_v60 = vld [vmem:[#allocation11 + $0x68c] ss:$16 sps:$4 sm:$0xff]  }
 0xa62   : > { %6093 = vmatprep.subr.bf16.mxu1 %v14856_v59  ;;  %v14935_v59 = vld [vmem:[#allocation11 + $0x680] ss:$16 sps:$4 sm:$0xff]  }
 0xa64   : > { %5946 = vmatpush1.bf16.msra.mxu0 %v14899_v16  ;;  %v14938_v16 = vld [vmem:[#allocation11 + $0x688] ss:$16 sps:$4 sm:$0xff]  }
 0xa65   : > { %6094 = vmatpush1.bf16.msra.mxu1 %v14854_v57  ;;  %5947 = vmatprep.subr.bf16.mxu0 %v14907_v14  ;;  %v14943_v57 = vld [vmem:[#allocation11 + $0x6a4] ss:$16 sps:$4 sm:$0xff]   ;;  %v14946_v14 = vld [vmem:[#allocation11 + $0x6ac] ss:$16 sps:$4 sm:$0xff]  }
 0xa66   : > { %6095 = vmatprep.subr.bf16.mxu1 %v14862_v63  ;;  %v14941_v63 = vld [vmem:[#allocation11 + $0x6a0] ss:$16 sps:$4 sm:$0xff]  }
 0xa68   : > { %5948 = vmatpush1.bf16.msra.mxu0 %v14905_v56  ;;  %v14944_v56 = vld [vmem:[#allocation11 + $0x6a8] ss:$16 sps:$4 sm:$0xff]  }
 0xa69   : > { %6096 = vmatpush1.bf16.msra.mxu1 %v14860_v30  ;;  %5958 = vmatprep.subr.bf16.mxu0 %v14913_v61  ;;  %v14949_v30 = vld [vmem:[#allocation11 + $0x6c4] ss:$16 sps:$4 sm:$0xff]   ;;  %v14952_v61 = vld [vmem:[#allocation11 + $0x6cc] ss:$16 sps:$4 sm:$0xff]  }
 0xa6a   : > { %6097 = vmatprep.subr.bf16.mxu1 %v14868_v15 }
 0xa6d   : > { %6098 = vmatpush1.bf16.msra.mxu1 %v14866_v40 }
 0xa6e   : > { %6099 = vmatprep.subr.bf16.mxu1 %v14874_v4  ;;  %v14947_v4 = vld [vmem:[#allocation11 + $0x6c0] ss:$16 sps:$4 sm:$0xff]  }
 0xa71   : > { %6100 = vmatpush1.bf16.msra.mxu1 %v14872_v37 }
 0xa72   : > { %6101 = vmatprep.subr.bf16.mxu1 %v14880_v26 }
 0xa75   : > { %6102 = vmatpush1.bf16.msra.mxu1 %v14878_v54  ;;  %v14950_v54 = vld [vmem:[#allocation11 + $0x6c8] ss:$16 sps:$4 sm:$0xff]  }
 0xa76   : > { %6103 = vmatprep.subr.bf16.mxu1 %v14886_v53  ;;  %v14955_v53 = vld [vmem:[#allocation11 + $0x6e4] ss:$16 sps:$4 sm:$0xff]  }
 0xa79   : > { %6104 = vmatpush1.bf16.msra.mxu1 %v14884_v58 }
 0xa7a   : > { %6105 = vmatprep.subr.bf16.mxu1 %v14892_v52  ;;  %v14958_v52 = vld [vmem:[#allocation11 + $0x6ec] ss:$16 sps:$4 sm:$0xff]  }
 0xa7d   : > { %6106 = vmatpush1.bf16.msra.mxu1 %v14890_v3 }
 0xa7e   : > { %v4200_v23 = vpop.f32.mrb[28].mxu0  ;;  %6107 = vmatprep.subr.bf16.mxu1 %v14898_v55  ;;  %v14953_v55 = vld [vmem:[#allocation11 + $0x6e0] ss:$16 sps:$4 sm:$0xff]  }
 0xa7f   : > { %v4257_v10 = vmul.f32 %v19637_v36, %v4200_v23  ;;  %v4202_v46 = vpop.f32.mrb[29].mxu0  ;;  %v14956_v23 = vld [vmem:[#allocation11 + $0x6e8] ss:$16 sps:$4 sm:$0xff]  }
 0xa80   : > { %v4258_v17 = vmul.f32 %v19637_v36, %v4202_v46  ;;  %v4204_v8 = vpop.f32.mrb[30].mxu0 }
 0xa81   : > { %v4270_v20 = vadd.f32 %v19641_v21, %v4257_v10  ;;  %6108 = vmatpush1.bf16.msra.mxu1 %v14896_v12  ;;  %v4205_v31 = vpop.f32.mrb[31].mxu0  ;;  %v14964_v10 = vld [vmem:[#allocation11 + $0x70c] ss:$16 sps:$4 sm:$0xff]  }
 0xa82   : > { %v4271_v5 = vadd.f32 %v19641_v21, %v4258_v17  ;;  %6109 = vmatprep.subr.bf16.mxu1 %v14904_v24  ;;  %v14961_v24 = vld [vmem:[#allocation11 + $0x704] ss:$16 sps:$4 sm:$0xff]   ;;  %v14959_v17 = vld [vmem:[#allocation11 + $0x700] ss:$16 sps:$4 sm:$0xff]  }
 0xa83   : > { %v4278_v25 = vmax.f32 %v4270_v20, 0.0  ;;  %v14962_v20 = vld [vmem:[#allocation11 + $0x708] ss:$16 sps:$4 sm:$0xff]   ;;  %v14967_v31 = vld [vmem:[#allocation11 + $0x724] ss:$16 sps:$4 sm:$0xff]  }
 0xa84   : > { %v4279_v42 = vmax.f32 %v4271_v5, 0.0  ;;  %v14965_v5 = vld [vmem:[#allocation11 + $0x720] ss:$16 sps:$4 sm:$0xff]  }
 0xa85   : > { %v4286_v50 = vmul.f32 %v4278_v25, %v20191_v29  ;;  %6110 = vmatpush1.bf16.msra.mxu1 %v14902_v32  ;;  %v14970_v32 = vld [vmem:[#allocation11 + $0x72c] ss:$16 sps:$4 sm:$0xff]   ;;  %v14974_v29 = vld [vmem:[#allocation11 + $0x748] ss:$16 sps:$4 sm:$0xff]  }
 0xa86   : > { %v4287_v33 = vmul.f32 %v4279_v42, %v17351_v9  ;;  %6111 = vmatprep.subr.bf16.mxu1 %v14910_v27  ;;  %v14917_v9 = vld [vmem:[#allocation11 + $0x620] ss:$16 sps:$4 sm:$0xff]   ;;  %v14968_v27 = vld [vmem:[#allocation11 + $0x728] ss:$16 sps:$4 sm:$0xff]   ;;  %v14976_v25 = vld [vmem:[#allocation11 + $0x74c] ss:$16 sps:$4 sm:$0xff]  }
 0xa87   : > { %v19679_v35 = vpack.c.bf16 %v4286_v50, %v4286_v50  ;;  %v14971_v42 = vld [vmem:[#allocation11 + $0x740] ss:$16 sps:$4 sm:$0xff]   ;;  %v14979_v50 = vld [vmem:[#allocation11 + $0x764] ss:$16 sps:$4 sm:$0xff]  }
 0xa88   : > { %v19677_v19 = vpack.c.bf16 %v4287_v33, %v4287_v33  ;;  %v14977_v33 = vld [vmem:[#allocation11 + $0x760] ss:$16 sps:$4 sm:$0xff]  }
 0xa89   : > { %6112 = vmatpush1.bf16.msra.mxu1 %v14908_v1  ;;  %v14982_v1 = vld [vmem:[#allocation11 + $0x76c] ss:$16 sps:$4 sm:$0xff]  }
 0xa8a   : > { %5949 = vmatprep.mubr.bf16.mxu0 %v19677_v19  ;;  %6113 = vmatprep.mubr.bf16.mxu1 %v19677_v19 }
 0xa8b   : > { %5950 = vmatmul.mubr.bf16.vlgmr.msra.gmra.mrb[32].mxu0 %v19679_v35  ;;  %6122 = vmatprep.subr.bf16.mxu1 %v14916_v18  ;;  %v14980_v18 = vld [vmem:[#allocation11 + $0x768] ss:$16 sps:$4 sm:$0xff]  }
 0xa8c   : > { %5959 = vmatpush1.bf16.msra.mxu0 %v14911_v6  ;;  %6114 = vmatmul.mubr.bf16.vlgmr.msra.gmra.mrb[32].mxu1 %v19679_v35  ;;  %v14985_v6 = vld [vmem:[#allocation11 + $0x784] ss:$16 sps:$4 sm:$0xff]  }
 0xa8d   : > { %6123 = vmatpush1.bf16.msra.mxu1 %v14914_v13  ;;  %5960 = vmatprep.subr.bf16.mxu0 %v14919_v49  ;;  %v14988_v13 = vld [vmem:[#allocation11 + $0x78c] ss:$16 sps:$4 sm:$0xff]   ;;  %v14983_v49 = vld [vmem:[#allocation11 + $0x780] ss:$16 sps:$4 sm:$0xff]  }
 0xa8e   : > { %6124 = vmatprep.subr.bf16.mxu1 %v14922_v34 }
 0xa90   : > { %5961 = vmatpush1.bf16.msra.mxu0 %v14917_v9  ;;  %v14986_v9 = vld [vmem:[#allocation11 + $0x788] ss:$16 sps:$4 sm:$0xff]  }
 0xa91   : > { %6125 = vmatpush1.bf16.msra.mxu1 %v14920_v2  ;;  %5962 = vmatprep.subr.bf16.mxu0 %v14925_v38  ;;  %v14991_v2 = vld [vmem:[#allocation11 + $0x7a4] ss:$16 sps:$4 sm:$0xff]   ;;  %v14994_v38 = vld [vmem:[#allocation11 + $0x7ac] ss:$16 sps:$4 sm:$0xff]  }
 0xa92   : > { %6126 = vmatprep.subr.bf16.mxu1 %v14928_v0  ;;  %v14989_v0 = vld [vmem:[#allocation11 + $0x7a0] ss:$16 sps:$4 sm:$0xff]  }
 0xa94   : > { %5963 = vmatpush1.bf16.msra.mxu0 %v14923_v41 }
 0xa95   : > { %6127 = vmatpush1.bf16.msra.mxu1 %v14926_v22  ;;  %5964 = vmatprep.subr.bf16.mxu0 %v14931_v45  ;;  %v14992_v22 = vld [vmem:[#allocation11 + $0x7a8] ss:$16 sps:$4 sm:$0xff]   ;;  %v14997_v45 = vld [vmem:[#allocation11 + $0x7c4] ss:$16 sps:$4 sm:$0xff]  }
 0xa96   : > { %6128 = vmatprep.subr.bf16.mxu1 %v14934_v39  ;;  %v15000_v39 = vld [vmem:[#allocation11 + $0x7cc] ss:$16 sps:$4 sm:$0xff]  }
 0xa98   : > { %5965 = vmatpush1.bf16.msra.mxu0 %v14929_v62  ;;  %v14995_v62 = vld [vmem:[#allocation11 + $0x7c0] ss:$16 sps:$4 sm:$0xff]  }
 0xa99   : > { %6129 = vmatpush1.bf16.msra.mxu1 %v14932_v28  ;;  %5966 = vmatprep.subr.bf16.mxu0 %v14937_v43  ;;  %v15003_v43 = vld [vmem:[#allocation11 + $0x7e4] ss:$16 sps:$4 sm:$0xff]  }
 0xa9a   : > { %6130 = vmatprep.subr.bf16.mxu1 %v14940_v60  ;;  %v15006_v60 = vld [vmem:[#allocation11 + $0x7ec] ss:$16 sps:$4 sm:$0xff]  }
 0xa9c   : > { %5967 = vmatpush1.bf16.msra.mxu0 %v14935_v59  ;;  %v15001_v59 = vld [vmem:[#allocation11 + $0x7e0] ss:$16 sps:$4 sm:$0xff]  }
 0xa9d   : > { %6131 = vmatpush1.bf16.msra.mxu1 %v14938_v16  ;;  %5968 = vmatprep.subr.bf16.mxu0 %v14943_v57  ;;  %v15009_v57 = vld [vmem:[#allocation11 + $0x804] ss:$16 sps:$4 sm:$0xff]  }
 0xa9e   : > { %6132 = vmatprep.subr.bf16.mxu1 %v14946_v14  ;;  %v15012_v14 = vld [vmem:[#allocation11 + $0x80c] ss:$16 sps:$4 sm:$0xff]  }
 0xa9f   : > { %v4241_v15 = vpop.f32.mrb[28].mxu1 }
 0xaa0   : > { %v4243_v40 = vpop.f32.mrb[29].mxu1  ;;  %5969 = vmatpush1.bf16.msra.mxu0 %v14941_v63  ;;  %v4259_v34 = vmul.f32 %v19637_v36, %v4241_v15  ;;  %v15007_v63 = vld [vmem:[#allocation11 + $0x800] ss:$16 sps:$4 sm:$0xff]   ;;  %v19699_v15 = vshrl.u32 %v19648_v7, 16 }
 0xaa1   : > { %v4260_v37 = vmul.f32 %v19637_v36, %v4243_v40  ;;  %6133 = vmatpush1.bf16.msra.mxu1 %v14944_v56  ;;  %v4245_v26 = vpop.f32.mrb[30].mxu1  ;;  %5970 = vmatprep.subr.bf16.mxu0 %v14949_v30  ;;  %v14998_v36 = vld [vmem:[#allocation11 + $0x7c8] ss:$16 sps:$4 sm:$0xff]   ;;  %v15013_v40 = vld [vmem:[#allocation11 + $0x820] ss:$16 sps:$4 sm:$0xff]  }
 0xaa2   : > { %v4246_v58 = vpop.f32.mrb[31].mxu1  ;;  %6134 = vmatprep.subr.bf16.mxu1 %v14952_v61  ;;  %v4272_v41 = vadd.f32 %v19641_v21, %v4259_v34  ;;  %v15010_v30 = vld [vmem:[#allocation11 + $0x808] ss:$16 sps:$4 sm:$0xff]   ;;  %v15015_v61 = vld [vmem:[#allocation11 + $0x824] ss:$16 sps:$4 sm:$0xff]  }
 0xaa3   : > { %v4273_v3 = vadd.f32 %v19641_v21, %v4260_v37  ;;  %v15004_v21 = vld [vmem:[#allocation11 + $0x7e8] ss:$16 sps:$4 sm:$0xff]   ;;  %v15021_v37 = vld [vmem:[#allocation11 + $0x844] ss:$16 sps:$4 sm:$0xff]   ;;  %v15024_v26 = vld [vmem:[#allocation11 + $0x84c] ss:$16 sps:$4 sm:$0xff]  }
 0xaa4   : > { %5971 = vmatpush1.bf16.msra.mxu0 %v14947_v4  ;;  %v4280_v28 = vmax.f32 %v4272_v41, 0.0  ;;  %v15016_v4 = vld [vmem:[#allocation11 + $0x828] ss:$16 sps:$4 sm:$0xff]   ;;  %v15027_v58 = vld [vmem:[#allocation11 + $0x864] ss:$16 sps:$4 sm:$0xff]  }
 0xaa5   : > { %v4281_v12 = vmax.f32 %v4273_v3, 0.0  ;;  %6135 = vmatpush1.bf16.msra.mxu1 %v14950_v54  ;;  %5972 = vmatprep.subr.bf16.mxu0 %v14955_v53  ;;  %v15019_v54 = vld [vmem:[#allocation11 + $0x840] ss:$16 sps:$4 sm:$0xff]   ;;  %v15022_v53 = vld [vmem:[#allocation11 + $0x848] ss:$16 sps:$4 sm:$0xff]  }
 0xaa6   : > { %6136 = vmatprep.subr.bf16.mxu1 %v14958_v52  ;;  %v4288_v16 = vmul.f32 %v4280_v28, %v17357_v44  ;;  %v15018_v44 = vld [vmem:[#allocation11 + $0x82c] ss:$16 sps:$4 sm:$0xff]   ;;  %v15025_v3 = vld [vmem:[#allocation11 + $0x860] ss:$16 sps:$4 sm:$0xff]   ;;  %v15070_v41 = vld [vmem:[#allocation11 + $0x948] ss:$16 sps:$4 sm:$0xff]  }
 0xaa7   : > { %v4289_v46 = vmul.f32 %v4281_v12, %v17410_v11  ;;  %v14973_v11 = vld [vmem:[#allocation11 + $0x744] ss:$16 sps:$4 sm:$0xff]   ;;  %v15030_v52 = vld [vmem:[#allocation11 + $0x86c] ss:$16 sps:$4 sm:$0xff]   ;;  %v15061_v34 = vld [vmem:[#allocation11 + $0x920] ss:$16 sps:$4 sm:$0xff]  }
 0xaa8   : > { %5973 = vmatpush1.bf16.msra.mxu0 %v14953_v55  ;;  %v19695_v56 = vpack.c.bf16 %v4288_v16, %v4288_v16  ;;  %v15028_v55 = vld [vmem:[#allocation11 + $0x868] ss:$16 sps:$4 sm:$0xff]   ;;  %v15033_v12 = vld [vmem:[#allocation11 + $0x884] ss:$16 sps:$4 sm:$0xff]   ;;  %v15090_v16 = vld [vmem:[#allocation11 + $0x9ac] ss:$16 sps:$4 sm:$0xff]  }
 0xaa9   : > { %v19688_v8 = vpack.c.bf16 %v4289_v46, %v4289_v46  ;;  %6137 = vmatpush1.bf16.msra.mxu1 %v14956_v23  ;;  %5974 = vmatprep.subr.bf16.mxu0 %v14961_v24  ;;  %v15036_v23 = vld [vmem:[#allocation11 + $0x88c] ss:$16 sps:$4 sm:$0xff]   ;;  %v15031_v24 = vld [vmem:[#allocation11 + $0x880] ss:$16 sps:$4 sm:$0xff]   ;;  %v15039_v46 = vld [vmem:[#allocation11 + $0x8a4] ss:$16 sps:$4 sm:$0xff]  }
 0xaaa   : > { %6138 = vmatprep.subr.bf16.mxu1 %v14964_v10  ;;  %v15034_v10 = vld [vmem:[#allocation11 + $0x888] ss:$16 sps:$4 sm:$0xff]   ;;  %v15081_v28 = vld [vmem:[#allocation11 + $0x984] ss:$16 sps:$4 sm:$0xff]  }
 0xaab   : > { %5990 = vmatprep.mubr.bf16.mxu0 %v19688_v8  ;;  %6154 = vmatprep.mubr.bf16.mxu1 %v19688_v8 }
 0xaac   : > { %5975 = vmatpush1.bf16.msra.mxu0 %v14959_v17  ;;  %v15042_v17 = vld [vmem:[#allocation11 + $0x8ac] ss:$16 sps:$4 sm:$0xff]  }
 0xaad   : > { %6139 = vmatpush1.bf16.msra.mxu1 %v14962_v20  ;;  %5976 = vmatprep.subr.bf16.mxu0 %v14967_v31  ;;  %v15037_v20 = vld [vmem:[#allocation11 + $0x8a0] ss:$16 sps:$4 sm:$0xff]   ;;  %v15040_v31 = vld [vmem:[#allocation11 + $0x8a8] ss:$16 sps:$4 sm:$0xff]  }
 0xaae   : > { %6140 = vmatprep.subr.bf16.mxu1 %v14970_v32  ;;  %v15045_v32 = vld [vmem:[#allocation11 + $0x8c4] ss:$16 sps:$4 sm:$0xff]  }
 0xab0   : > { %5977 = vmatpush1.bf16.msra.mxu0 %v14965_v5  ;;  %v15048_v5 = vld [vmem:[#allocation11 + $0x8cc] ss:$16 sps:$4 sm:$0xff]  }
 0xab1   : > { %6141 = vmatpush1.bf16.msra.mxu1 %v14968_v27  ;;  %5978 = vmatprep.subr.bf16.mxu0 %v14973_v11  ;;  %v15043_v27 = vld [vmem:[#allocation11 + $0x8c0] ss:$16 sps:$4 sm:$0xff]   ;;  %v15046_v11 = vld [vmem:[#allocation11 + $0x8c8] ss:$16 sps:$4 sm:$0xff]  }
 0xab2   : > { %6142 = vmatprep.subr.bf16.mxu1 %v14976_v25  ;;  %v15051_v25 = vld [vmem:[#allocation11 + $0x8e4] ss:$16 sps:$4 sm:$0xff]  }
 0xab4   : > { %5979 = vmatpush1.bf16.msra.mxu0 %v14971_v42  ;;  %v15054_v42 = vld [vmem:[#allocation11 + $0x8ec] ss:$16 sps:$4 sm:$0xff]  }
 0xab5   : > { %6143 = vmatpush1.bf16.msra.mxu1 %v14974_v29  ;;  %5980 = vmatprep.subr.bf16.mxu0 %v14979_v50  ;;  %v15049_v29 = vld [vmem:[#allocation11 + $0x8e0] ss:$16 sps:$4 sm:$0xff]   ;;  %v15052_v50 = vld [vmem:[#allocation11 + $0x8e8] ss:$16 sps:$4 sm:$0xff]  }
 0xab6   : > { %6144 = vmatprep.subr.bf16.mxu1 %v14982_v1  ;;  %v15057_v1 = vld [vmem:[#allocation11 + $0x904] ss:$16 sps:$4 sm:$0xff]  }
 0xab8   : > { %5981 = vmatpush1.bf16.msra.mxu0 %v14977_v33  ;;  %v15060_v33 = vld [vmem:[#allocation11 + $0x90c] ss:$16 sps:$4 sm:$0xff]  }
 0xab9   : > { %6145 = vmatpush1.bf16.msra.mxu1 %v14980_v18  ;;  %5982 = vmatprep.subr.bf16.mxu0 %v14985_v6  ;;  %v15055_v18 = vld [vmem:[#allocation11 + $0x900] ss:$16 sps:$4 sm:$0xff]   ;;  %v15058_v6 = vld [vmem:[#allocation11 + $0x908] ss:$16 sps:$4 sm:$0xff]  }
 0xaba   : > { %6146 = vmatprep.subr.bf16.mxu1 %v14988_v13  ;;  %v15063_v13 = vld [vmem:[#allocation11 + $0x924] ss:$16 sps:$4 sm:$0xff]  }
 0xabc   : > { %5983 = vmatpush1.bf16.msra.mxu0 %v14983_v49  ;;  %v15066_v49 = vld [vmem:[#allocation11 + $0x92c] ss:$16 sps:$4 sm:$0xff]  }
 0xabd   : > { %6147 = vmatpush1.bf16.msra.mxu1 %v14986_v9  ;;  %5984 = vmatprep.subr.bf16.mxu0 %v14991_v2  ;;  %v15064_v9 = vld [vmem:[#allocation11 + $0x928] ss:$16 sps:$4 sm:$0xff]   ;;  %v15069_v2 = vld [vmem:[#allocation11 + $0x944] ss:$16 sps:$4 sm:$0xff]  }
 0xabe   : > { %6148 = vmatprep.subr.bf16.mxu1 %v14994_v38  ;;  %v15072_v38 = vld [vmem:[#allocation11 + $0x94c] ss:$16 sps:$4 sm:$0xff]  }
 0xac0   : > { %5985 = vmatpush1.bf16.msra.mxu0 %v14989_v0  ;;  %v15067_v0 = vld [vmem:[#allocation11 + $0x940] ss:$16 sps:$4 sm:$0xff]  }
 0xac1   : > { %6149 = vmatpush1.bf16.msra.mxu1 %v14992_v22  ;;  %5986 = vmatprep.subr.bf16.mxu0 %v14997_v45  ;;  %v15075_v22 = vld [vmem:[#allocation11 + $0x964] ss:$16 sps:$4 sm:$0xff]   ;;  %v15078_v45 = vld [vmem:[#allocation11 + $0x96c] ss:$16 sps:$4 sm:$0xff]  }
 0xac2   : > { %6150 = vmatprep.subr.bf16.mxu1 %v15000_v39  ;;  %v15073_v39 = vld [vmem:[#allocation11 + $0x960] ss:$16 sps:$4 sm:$0xff]  }
 0xac4   : > { %5987 = vmatpush1.bf16.msra.mxu0 %v14995_v62  ;;  %v15076_v62 = vld [vmem:[#allocation11 + $0x968] ss:$16 sps:$4 sm:$0xff]  }
 0xac5   : > { %6151 = vmatpush1.bf16.msra.mxu1 %v14998_v36  ;;  %5988 = vmatprep.subr.bf16.mxu0 %v15003_v43  ;;  %v15084_v36 = vld [vmem:[#allocation11 + $0x98c] ss:$16 sps:$4 sm:$0xff]   ;;  %v15079_v43 = vld [vmem:[#allocation11 + $0x980] ss:$16 sps:$4 sm:$0xff]  }
 0xac6   : > { %6152 = vmatprep.subr.bf16.mxu1 %v15006_v60  ;;  %v15082_v60 = vld [vmem:[#allocation11 + $0x988] ss:$16 sps:$4 sm:$0xff]  }
 0xac8   : > { %5989 = vmatpush1.bf16.msra.mxu0 %v15001_v59  ;;  %v15087_v59 = vld [vmem:[#allocation11 + $0x9a4] ss:$16 sps:$4 sm:$0xff]  }
 0xac9   : > { %6153 = vmatpush1.bf16.msra.mxu1 %v15004_v21  ;;  %7762 = vmatprep.subr.bf16.mxu0 %v15009_v57  ;;  %v15085_v21 = vld [vmem:[#allocation11 + $0x9a0] ss:$16 sps:$4 sm:$0xff]   ;;  %v15088_v57 = vld [vmem:[#allocation11 + $0x9a8] ss:$16 sps:$4 sm:$0xff]  }
 0xaca   : > { %7926 = vmatprep.subr.bf16.mxu1 %v15012_v14  ;;  %v15093_v14 = vld [vmem:[#allocation11 + $0x9c4] ss:$16 sps:$4 sm:$0xff]  }
 0xacb   : > { %5991 = vmatmul.mubr.bf16.vlgmr.msra.gmra.mrb[32].mxu0 %v19695_v56 }
 0xacc   : > { %6155 = vmatmul.mubr.bf16.vlgmr.msra.gmra.mrb[32].mxu1 %v19695_v56  ;;  %7763 = vmatpush1.bf16.msra.mxu0 %v15007_v63  ;;  %v15096_v63 = vld [vmem:[#allocation11 + $0x9cc] ss:$16 sps:$4 sm:$0xff]  }
 0xacd   : > { %7794 = vmatprep.mubr.bf16.mxu0 %v19699_v15  ;;  %7927 = vmatpush1.bf16.msra.mxu1 %v15010_v30  ;;  %v15091_v30 = vld [vmem:[#allocation11 + $0x9c0] ss:$16 sps:$4 sm:$0xff]  }
 0xace   : > { %7958 = vmatprep.mubr.bf16.mxu1 %v19699_v15  ;;  %7764 = vmatprep.subr.bf16.mxu0 %v15015_v61  ;;  %v15094_v61 = vld [vmem:[#allocation11 + $0x9c8] ss:$16 sps:$4 sm:$0xff]  }
 0xacf   : > { %7928 = vmatprep.subr.bf16.mxu1 %v15018_v44  ;;  %v15099_v44 = vld [vmem:[#allocation11 + $0x9e4] ss:$16 sps:$4 sm:$0xff]  }
 0xad0   : > { %7765 = vmatpush1.bf16.msra.mxu0 %v15013_v40  ;;  %v15102_v40 = vld [vmem:[#allocation11 + $0x9ec] ss:$16 sps:$4 sm:$0xff]  }
 0xad1   : > { %7929 = vmatpush1.bf16.msra.mxu1 %v15016_v4  ;;  %7766 = vmatprep.subr.bf16.mxu0 %v15021_v37  ;;  %v15097_v4 = vld [vmem:[#allocation11 + $0x9e0] ss:$16 sps:$4 sm:$0xff]   ;;  %v15100_v37 = vld [vmem:[#allocation11 + $0x9e8] ss:$16 sps:$4 sm:$0xff]  }
 0xad2   : > { %7930 = vmatprep.subr.bf16.mxu1 %v15024_v26  ;;  %v15105_v26 = vld [vmem:[#allocation11 + $0xa04] ss:$16 sps:$4 sm:$0xff]  }
 0xad4   : > { %7767 = vmatpush1.bf16.msra.mxu0 %v15019_v54  ;;  %v15108_v54 = vld [vmem:[#allocation11 + $0xa0c] ss:$16 sps:$4 sm:$0xff]  }
 0xad5   : > { %7931 = vmatpush1.bf16.msra.mxu1 %v15022_v53  ;;  %7768 = vmatprep.subr.bf16.mxu0 %v15027_v58  ;;  %v15103_v53 = vld [vmem:[#allocation11 + $0xa00] ss:$16 sps:$4 sm:$0xff]   ;;  %v19705_v58 = vshrl.u32 %v19653_v48, 16 }
 0xad6   : > { %7932 = vmatprep.subr.bf16.mxu1 %v15030_v52  ;;  %v15111_v52 = vld [vmem:[#allocation11 + $0xa24] ss:$16 sps:$4 sm:$0xff]  }
 0xad8   : > { %7769 = vmatpush1.bf16.msra.mxu0 %v15025_v3  ;;  %v19708_v3 = vshrl.u32 %v19659_v51, 16 }
 0xad9   : > { %7933 = vmatpush1.bf16.msra.mxu1 %v15028_v55  ;;  %7770 = vmatprep.subr.bf16.mxu0 %v15033_v12  ;;  %v15106_v55 = vld [vmem:[#allocation11 + $0xa08] ss:$16 sps:$4 sm:$0xff]   ;;  %v15114_v12 = vld [vmem:[#allocation11 + $0xa2c] ss:$16 sps:$4 sm:$0xff]  }
 0xada   : > { %7934 = vmatprep.subr.bf16.mxu1 %v15036_v23  ;;  %v15109_v23 = vld [vmem:[#allocation11 + $0xa20] ss:$16 sps:$4 sm:$0xff]  }
 0xadc   : > { %7771 = vmatpush1.bf16.msra.mxu0 %v15031_v24  ;;  %v15117_v24 = vld [vmem:[#allocation11 + $0xa44] ss:$16 sps:$4 sm:$0xff]  }
 0xadd   : > { %7935 = vmatpush1.bf16.msra.mxu1 %v15034_v10  ;;  %7772 = vmatprep.subr.bf16.mxu0 %v15039_v46  ;;  %v15112_v10 = vld [vmem:[#allocation11 + $0xa28] ss:$16 sps:$4 sm:$0xff]   ;;  %v15120_v46 = vld [vmem:[#allocation11 + $0xa4c] ss:$16 sps:$4 sm:$0xff]  }
 0xade   : > { %7936 = vmatprep.subr.bf16.mxu1 %v15042_v17  ;;  %v15115_v17 = vld [vmem:[#allocation11 + $0xa40] ss:$16 sps:$4 sm:$0xff]  }
 0xae0   : > { %7773 = vmatpush1.bf16.msra.mxu0 %v15037_v20  ;;  %v15123_v20 = vld [vmem:[#allocation11 + $0xa64] ss:$16 sps:$4 sm:$0xff]  }
 0xae1   : > { %7937 = vmatpush1.bf16.msra.mxu1 %v15040_v31  ;;  %7774 = vmatprep.subr.bf16.mxu0 %v15045_v32  ;;  %v15118_v31 = vld [vmem:[#allocation11 + $0xa48] ss:$16 sps:$4 sm:$0xff]   ;;  %v15126_v32 = vld [vmem:[#allocation11 + $0xa6c] ss:$16 sps:$4 sm:$0xff]  }
 0xae2   : > { %7938 = vmatprep.subr.bf16.mxu1 %v15048_v5  ;;  %v15121_v5 = vld [vmem:[#allocation11 + $0xa60] ss:$16 sps:$4 sm:$0xff]  }
 0xae4   : > { %7775 = vmatpush1.bf16.msra.mxu0 %v15043_v27  ;;  %v15129_v27 = vld [vmem:[#allocation11 + $0xa84] ss:$16 sps:$4 sm:$0xff]  }
 0xae5   : > { %7939 = vmatpush1.bf16.msra.mxu1 %v15046_v11  ;;  %7776 = vmatprep.subr.bf16.mxu0 %v15051_v25  ;;  %v15124_v11 = vld [vmem:[#allocation11 + $0xa68] ss:$16 sps:$4 sm:$0xff]   ;;  %v15132_v25 = vld [vmem:[#allocation11 + $0xa8c] ss:$16 sps:$4 sm:$0xff]  }
 0xae6   : > { %7940 = vmatprep.subr.bf16.mxu1 %v15054_v42  ;;  %v15127_v42 = vld [vmem:[#allocation11 + $0xa80] ss:$16 sps:$4 sm:$0xff]  }
 0xae8   : > { %7777 = vmatpush1.bf16.msra.mxu0 %v15049_v29  ;;  %v15135_v29 = vld [vmem:[#allocation11 + $0xaa4] ss:$16 sps:$4 sm:$0xff]  }
 0xae9   : > { %7941 = vmatpush1.bf16.msra.mxu1 %v15052_v50  ;;  %7778 = vmatprep.subr.bf16.mxu0 %v15057_v1  ;;  %v15130_v50 = vld [vmem:[#allocation11 + $0xa88] ss:$16 sps:$4 sm:$0xff]   ;;  %v15138_v1 = vld [vmem:[#allocation11 + $0xaac] ss:$16 sps:$4 sm:$0xff]  }
 0xaea   : > { %7942 = vmatprep.subr.bf16.mxu1 %v15060_v33  ;;  %v15133_v33 = vld [vmem:[#allocation11 + $0xaa0] ss:$16 sps:$4 sm:$0xff]  }
 0xaec   : > { %7779 = vmatpush1.bf16.msra.mxu0 %v15055_v18  ;;  %v15141_v18 = vld [vmem:[#allocation11 + $0xac4] ss:$16 sps:$4 sm:$0xff]  }
 0xaed   : > { %7943 = vmatpush1.bf16.msra.mxu1 %v15058_v6  ;;  %7780 = vmatprep.subr.bf16.mxu0 %v15063_v13  ;;  %v15136_v6 = vld [vmem:[#allocation11 + $0xaa8] ss:$16 sps:$4 sm:$0xff]   ;;  %v15144_v13 = vld [vmem:[#allocation11 + $0xacc] ss:$16 sps:$4 sm:$0xff]  }
 0xaee   : > { %7944 = vmatprep.subr.bf16.mxu1 %v15066_v49  ;;  %v15139_v49 = vld [vmem:[#allocation11 + $0xac0] ss:$16 sps:$4 sm:$0xff]  }
 0xaf0   : > { %7781 = vmatpush1.bf16.msra.mxu0 %v15061_v34  ;;  %v15147_v34 = vld [vmem:[#allocation11 + $0xae4] ss:$16 sps:$4 sm:$0xff]  }
 0xaf1   : > { %7945 = vmatpush1.bf16.msra.mxu1 %v15064_v9  ;;  %7782 = vmatprep.subr.bf16.mxu0 %v15069_v2  ;;  %v15142_v9 = vld [vmem:[#allocation11 + $0xac8] ss:$16 sps:$4 sm:$0xff]   ;;  %v15150_v2 = vld [vmem:[#allocation11 + $0xaec] ss:$16 sps:$4 sm:$0xff]  }
 0xaf2   : > { %7946 = vmatprep.subr.bf16.mxu1 %v15072_v38  ;;  %v15145_v38 = vld [vmem:[#allocation11 + $0xae0] ss:$16 sps:$4 sm:$0xff]  }
 0xaf4   : > { %7783 = vmatpush1.bf16.msra.mxu0 %v15067_v0  ;;  %v15153_v0 = vld [vmem:[#allocation11 + $0xb04] ss:$16 sps:$4 sm:$0xff]  }
 0xaf5   : > { %7947 = vmatpush1.bf16.msra.mxu1 %v15070_v41  ;;  %7784 = vmatprep.subr.bf16.mxu0 %v15075_v22  ;;  %v15148_v41 = vld [vmem:[#allocation11 + $0xae8] ss:$16 sps:$4 sm:$0xff]   ;;  %v15156_v22 = vld [vmem:[#allocation11 + $0xb0c] ss:$16 sps:$4 sm:$0xff]  }
 0xaf6   : > { %7948 = vmatprep.subr.bf16.mxu1 %v15078_v45  ;;  %v15151_v45 = vld [vmem:[#allocation11 + $0xb00] ss:$16 sps:$4 sm:$0xff]  }
 0xaf8   : > { %7785 = vmatpush1.bf16.msra.mxu0 %v15073_v39  ;;  %v15159_v39 = vld [vmem:[#allocation11 + $0xb24] ss:$16 sps:$4 sm:$0xff]  }
 0xaf9   : > { %7949 = vmatpush1.bf16.msra.mxu1 %v15076_v62  ;;  %7786 = vmatprep.subr.bf16.mxu0 %v15081_v28  ;;  %v15154_v62 = vld [vmem:[#allocation11 + $0xb08] ss:$16 sps:$4 sm:$0xff]   ;;  %v15162_v28 = vld [vmem:[#allocation11 + $0xb2c] ss:$16 sps:$4 sm:$0xff]  }
 0xafa   : > { %7950 = vmatprep.subr.bf16.mxu1 %v15084_v36  ;;  %v15157_v36 = vld [vmem:[#allocation11 + $0xb20] ss:$16 sps:$4 sm:$0xff]  }
 0xafc   : > { %7787 = vmatpush1.bf16.msra.mxu0 %v15079_v43  ;;  %v15165_v43 = vld [vmem:[#allocation11 + $0xb44] ss:$16 sps:$4 sm:$0xff]  }
 0xafd   : > { %7951 = vmatpush1.bf16.msra.mxu1 %v15082_v60  ;;  %7788 = vmatprep.subr.bf16.mxu0 %v15087_v59  ;;  %v15160_v60 = vld [vmem:[#allocation11 + $0xb28] ss:$16 sps:$4 sm:$0xff]   ;;  %v15168_v59 = vld [vmem:[#allocation11 + $0xb4c] ss:$16 sps:$4 sm:$0xff]  }
 0xafe   : > { %7952 = vmatprep.subr.bf16.mxu1 %v15090_v16  ;;  %v15163_v16 = vld [vmem:[#allocation11 + $0xb40] ss:$16 sps:$4 sm:$0xff]  }
 0xb00   : > { %7789 = vmatpush1.bf16.msra.mxu0 %v15085_v21  ;;  %v15171_v21 = vld [vmem:[#allocation11 + $0xb64] ss:$16 sps:$4 sm:$0xff]  }
 0xb01   : > { %7953 = vmatpush1.bf16.msra.mxu1 %v15088_v57  ;;  %7790 = vmatprep.subr.bf16.mxu0 %v15093_v14  ;;  %v15166_v57 = vld [vmem:[#allocation11 + $0xb48] ss:$16 sps:$4 sm:$0xff]   ;;  %v15174_v14 = vld [vmem:[#allocation11 + $0xb6c] ss:$16 sps:$4 sm:$0xff]  }
 0xb02   : > { %7954 = vmatprep.subr.bf16.mxu1 %v15096_v63  ;;  %v15169_v63 = vld [vmem:[#allocation11 + $0xb60] ss:$16 sps:$4 sm:$0xff]  }
 0xb04   : > { %7791 = vmatpush1.bf16.msra.mxu0 %v15091_v30  ;;  %v15177_v30 = vld [vmem:[#allocation11 + $0xb84] ss:$16 sps:$4 sm:$0xff]  }
 0xb05   : > { %7955 = vmatpush1.bf16.msra.mxu1 %v15094_v61  ;;  %7792 = vmatprep.subr.bf16.mxu0 %v15099_v44  ;;  %v15172_v61 = vld [vmem:[#allocation11 + $0xb68] ss:$16 sps:$4 sm:$0xff]   ;;  %v15180_v44 = vld [vmem:[#allocation11 + $0xb8c] ss:$16 sps:$4 sm:$0xff]  }
 0xb06   : > { %7956 = vmatprep.subr.bf16.mxu1 %v15102_v40  ;;  %v15175_v40 = vld [vmem:[#allocation11 + $0xb80] ss:$16 sps:$4 sm:$0xff]  }
 0xb08   : > { %7793 = vmatpush1.bf16.msra.mxu0 %v15097_v4  ;;  %v15183_v4 = vld [vmem:[#allocation11 + $0xba4] ss:$16 sps:$4 sm:$0xff]  }
 0xb09   : > { %7957 = vmatpush1.bf16.msra.mxu1 %v15100_v37  ;;  %7803 = vmatprep.subr.bf16.mxu0 %v15105_v26  ;;  %v15178_v37 = vld [vmem:[#allocation11 + $0xb88] ss:$16 sps:$4 sm:$0xff]   ;;  %v15186_v26 = vld [vmem:[#allocation11 + $0xbac] ss:$16 sps:$4 sm:$0xff]  }
 0xb0a   : > { %7967 = vmatprep.subr.bf16.mxu1 %v15108_v54  ;;  %v15181_v54 = vld [vmem:[#allocation11 + $0xba0] ss:$16 sps:$4 sm:$0xff]  }
 0xb0b   : > { %7795 = vmatmul.mubr.bf16.vlgmr.msra.gmra.mrb[36].mxu0 %v19705_v58 }
 0xb0c   : > { %7804 = vmatpush1.bf16.msra.mxu0 %v15103_v53  ;;  %7835 = vmatprep.mubr.bf16.mxu0 %v19708_v3  ;;  %v15189_v53 = vld [vmem:[#allocation11 + $0xbc4] ss:$16 sps:$4 sm:$0xff]  }
 0xb0d   : > { %7959 = vmatmul.mubr.bf16.vlgmr.msra.gmra.mrb[36].mxu1 %v19705_v58  ;;  %7805 = vmatprep.subr.bf16.mxu0 %v15111_v52  ;;  %v15184_v52 = vld [vmem:[#allocation11 + $0xba8] ss:$16 sps:$4 sm:$0xff]  }
 0xb0e   : > { %7968 = vmatpush1.bf16.msra.mxu1 %v15106_v55  ;;  %7999 = vmatprep.mubr.bf16.mxu1 %v19708_v3  ;;  %v15192_v55 = vld [vmem:[#allocation11 + $0xbcc] ss:$16 sps:$4 sm:$0xff]  }
 0xb0f   : > { %7969 = vmatprep.subr.bf16.mxu1 %v15114_v12  ;;  %v15187_v12 = vld [vmem:[#allocation11 + $0xbc0] ss:$16 sps:$4 sm:$0xff]  }
 0xb10   : > { %7806 = vmatpush1.bf16.msra.mxu0 %v15109_v23  ;;  %v15195_v23 = vld [vmem:[#allocation11 + $0xbe4] ss:$16 sps:$4 sm:$0xff]  }
 0xb11   : > { %7807 = vmatprep.subr.bf16.mxu0 %v15117_v24  ;;  %v15190_v24 = vld [vmem:[#allocation11 + $0xbc8] ss:$16 sps:$4 sm:$0xff]  }
 0xb12   : > { %7970 = vmatpush1.bf16.msra.mxu1 %v15112_v10  ;;  %v15198_v10 = vld [vmem:[#allocation11 + $0xbec] ss:$16 sps:$4 sm:$0xff]  }
 0xb13   : > { %7971 = vmatprep.subr.bf16.mxu1 %v15120_v46  ;;  %v15193_v46 = vld [vmem:[#allocation11 + $0xbe0] ss:$16 sps:$4 sm:$0xff]  }
 0xb14   : > { %7808 = vmatpush1.bf16.msra.mxu0 %v15115_v17  ;;  %v15201_v17 = vld [vmem:[#allocation11 + $0xc04] ss:$16 sps:$4 sm:$0xff]  }
 0xb15   : > { %7809 = vmatprep.subr.bf16.mxu0 %v15123_v20  ;;  %v15196_v20 = vld [vmem:[#allocation11 + $0xbe8] ss:$16 sps:$4 sm:$0xff]  }
 0xb16   : > { %7972 = vmatpush1.bf16.msra.mxu1 %v15118_v31  ;;  %v15204_v31 = vld [vmem:[#allocation11 + $0xc0c] ss:$16 sps:$4 sm:$0xff]  }
 0xb17   : > { %7973 = vmatprep.subr.bf16.mxu1 %v15126_v32  ;;  %v15199_v32 = vld [vmem:[#allocation11 + $0xc00] ss:$16 sps:$4 sm:$0xff]  }
 0xb18   : > { %7810 = vmatpush1.bf16.msra.mxu0 %v15121_v5  ;;  %v19715_v5 = vshrl.u32 %v19667_v47, 16 }
 0xb19   : > { %7811 = vmatprep.subr.bf16.mxu0 %v15129_v27  ;;  %v15207_v27 = vld [vmem:[#allocation11 + $0xc24] ss:$16 sps:$4 sm:$0xff]  }
 0xb1a   : > { %7974 = vmatpush1.bf16.msra.mxu1 %v15124_v11  ;;  %v19718_v11 = vshrl.u32 %v19677_v19, 16 }
 0xb1b   : > { %7975 = vmatprep.subr.bf16.mxu1 %v15132_v25  ;;  %v15202_v25 = vld [vmem:[#allocation11 + $0xc08] ss:$16 sps:$4 sm:$0xff]  }
 0xb1c   : > { %7812 = vmatpush1.bf16.msra.mxu0 %v15127_v42  ;;  %v15210_v42 = vld [vmem:[#allocation11 + $0xc2c] ss:$16 sps:$4 sm:$0xff]  }
 0xb1d   : > { %7813 = vmatprep.subr.bf16.mxu0 %v15135_v29  ;;  %v15205_v29 = vld [vmem:[#allocation11 + $0xc20] ss:$16 sps:$4 sm:$0xff]  }
 0xb1e   : > { %7976 = vmatpush1.bf16.msra.mxu1 %v15130_v50  ;;  %v15213_v50 = vld [vmem:[#allocation11 + $0xc44] ss:$16 sps:$4 sm:$0xff]  }
 0xb1f   : > { %7977 = vmatprep.subr.bf16.mxu1 %v15138_v1  ;;  %v15208_v1 = vld [vmem:[#allocation11 + $0xc28] ss:$16 sps:$4 sm:$0xff]  }
 0xb20   : > { %7814 = vmatpush1.bf16.msra.mxu0 %v15133_v33  ;;  %v15216_v33 = vld [vmem:[#allocation11 + $0xc4c] ss:$16 sps:$4 sm:$0xff]  }
 0xb21   : > { %7815 = vmatprep.subr.bf16.mxu0 %v15141_v18  ;;  %v15211_v18 = vld [vmem:[#allocation11 + $0xc40] ss:$16 sps:$4 sm:$0xff]  }
 0xb22   : > { %7978 = vmatpush1.bf16.msra.mxu1 %v15136_v6  ;;  %v15219_v6 = vld [vmem:[#allocation11 + $0xc64] ss:$16 sps:$4 sm:$0xff]  }
 0xb23   : > { %7979 = vmatprep.subr.bf16.mxu1 %v15144_v13  ;;  %v15214_v13 = vld [vmem:[#allocation11 + $0xc48] ss:$16 sps:$4 sm:$0xff]  }
 0xb24   : > { %7816 = vmatpush1.bf16.msra.mxu0 %v15139_v49  ;;  %v15222_v49 = vld [vmem:[#allocation11 + $0xc6c] ss:$16 sps:$4 sm:$0xff]  }
 0xb25   : > { %7817 = vmatprep.subr.bf16.mxu0 %v15147_v34  ;;  %v15217_v34 = vld [vmem:[#allocation11 + $0xc60] ss:$16 sps:$4 sm:$0xff]  }
 0xb26   : > { %7980 = vmatpush1.bf16.msra.mxu1 %v15142_v9  ;;  %v15225_v9 = vld [vmem:[#allocation11 + $0xc84] ss:$16 sps:$4 sm:$0xff]  }
 0xb27   : > { %7981 = vmatprep.subr.bf16.mxu1 %v15150_v2  ;;  %v15220_v2 = vld [vmem:[#allocation11 + $0xc68] ss:$16 sps:$4 sm:$0xff]  }
 0xb28   : > { %7818 = vmatpush1.bf16.msra.mxu0 %v15145_v38  ;;  %v15228_v38 = vld [vmem:[#allocation11 + $0xc8c] ss:$16 sps:$4 sm:$0xff]  }
 0xb29   : > { %7819 = vmatprep.subr.bf16.mxu0 %v15153_v0  ;;  %v15223_v0 = vld [vmem:[#allocation11 + $0xc80] ss:$16 sps:$4 sm:$0xff]  }
 0xb2a   : > { %7982 = vmatpush1.bf16.msra.mxu1 %v15148_v41  ;;  %v15231_v41 = vld [vmem:[#allocation11 + $0xca4] ss:$16 sps:$4 sm:$0xff]  }
 0xb2b   : > { %7983 = vmatprep.subr.bf16.mxu1 %v15156_v22  ;;  %v15226_v22 = vld [vmem:[#allocation11 + $0xc88] ss:$16 sps:$4 sm:$0xff]  }
 0xb2c   : > { %7820 = vmatpush1.bf16.msra.mxu0 %v15151_v45  ;;  %v15234_v45 = vld [vmem:[#allocation11 + $0xcac] ss:$16 sps:$4 sm:$0xff]  }
 0xb2d   : > { %7821 = vmatprep.subr.bf16.mxu0 %v15159_v39  ;;  %v15229_v39 = vld [vmem:[#allocation11 + $0xca0] ss:$16 sps:$4 sm:$0xff]  }
 0xb2e   : > { %7984 = vmatpush1.bf16.msra.mxu1 %v15154_v62  ;;  %v15237_v62 = vld [vmem:[#allocation11 + $0xcc4] ss:$16 sps:$4 sm:$0xff]  }
 0xb2f   : > { %7985 = vmatprep.subr.bf16.mxu1 %v15162_v28  ;;  %v15232_v28 = vld [vmem:[#allocation11 + $0xca8] ss:$16 sps:$4 sm:$0xff]  }
 0xb30   : > { %7822 = vmatpush1.bf16.msra.mxu0 %v15157_v36  ;;  %v15240_v36 = vld [vmem:[#allocation11 + $0xccc] ss:$16 sps:$4 sm:$0xff]  }
 0xb31   : > { %7823 = vmatprep.subr.bf16.mxu0 %v15165_v43  ;;  %v15235_v43 = vld [vmem:[#allocation11 + $0xcc0] ss:$16 sps:$4 sm:$0xff]  }
 0xb32   : > { %7986 = vmatpush1.bf16.msra.mxu1 %v15160_v60  ;;  %v15243_v60 = vld [vmem:[#allocation11 + $0xce4] ss:$16 sps:$4 sm:$0xff]  }
 0xb33   : > { %7987 = vmatprep.subr.bf16.mxu1 %v15168_v59  ;;  %v15238_v59 = vld [vmem:[#allocation11 + $0xcc8] ss:$16 sps:$4 sm:$0xff]  }
 0xb34   : > { %7824 = vmatpush1.bf16.msra.mxu0 %v15163_v16  ;;  %v15246_v16 = vld [vmem:[#allocation11 + $0xcec] ss:$16 sps:$4 sm:$0xff]  }
 0xb35   : > { %7825 = vmatprep.subr.bf16.mxu0 %v15171_v21  ;;  %v15241_v21 = vld [vmem:[#allocation11 + $0xce0] ss:$16 sps:$4 sm:$0xff]  }
 0xb36   : > { %7988 = vmatpush1.bf16.msra.mxu1 %v15166_v57  ;;  %v15249_v57 = vld [vmem:[#allocation11 + $0xd04] ss:$16 sps:$4 sm:$0xff]  }
 0xb37   : > { %7989 = vmatprep.subr.bf16.mxu1 %v15174_v14  ;;  %v15244_v14 = vld [vmem:[#allocation11 + $0xce8] ss:$16 sps:$4 sm:$0xff]  }
 0xb38   : > { %7826 = vmatpush1.bf16.msra.mxu0 %v15169_v63  ;;  %v15252_v63 = vld [vmem:[#allocation11 + $0xd0c] ss:$16 sps:$4 sm:$0xff]  }
 0xb39   : > { %7827 = vmatprep.subr.bf16.mxu0 %v15177_v30  ;;  %v15247_v30 = vld [vmem:[#allocation11 + $0xd00] ss:$16 sps:$4 sm:$0xff]  }
 0xb3a   : > { %7990 = vmatpush1.bf16.msra.mxu1 %v15172_v61  ;;  %v15255_v61 = vld [vmem:[#allocation11 + $0xd24] ss:$16 sps:$4 sm:$0xff]  }
 0xb3b   : > { %7991 = vmatprep.subr.bf16.mxu1 %v15180_v44  ;;  %v15250_v44 = vld [vmem:[#allocation11 + $0xd08] ss:$16 sps:$4 sm:$0xff]  }
 0xb3c   : > { %7828 = vmatpush1.bf16.msra.mxu0 %v15175_v40  ;;  %v15258_v40 = vld [vmem:[#allocation11 + $0xd2c] ss:$16 sps:$4 sm:$0xff]  }
 0xb3d   : > { %7829 = vmatprep.subr.bf16.mxu0 %v15183_v4  ;;  %v15253_v4 = vld [vmem:[#allocation11 + $0xd20] ss:$16 sps:$4 sm:$0xff]  }
 0xb3e   : > { %7992 = vmatpush1.bf16.msra.mxu1 %v15178_v37  ;;  %v15261_v37 = vld [vmem:[#allocation11 + $0xd44] ss:$16 sps:$4 sm:$0xff]  }
 0xb3f   : > { %7993 = vmatprep.subr.bf16.mxu1 %v15186_v26  ;;  %v15256_v26 = vld [vmem:[#allocation11 + $0xd28] ss:$16 sps:$4 sm:$0xff]  }
 0xb40   : > { %7830 = vmatpush1.bf16.msra.mxu0 %v15181_v54  ;;  %v15264_v54 = vld [vmem:[#allocation11 + $0xd4c] ss:$16 sps:$4 sm:$0xff]  }
 0xb41   : > { %7831 = vmatprep.subr.bf16.mxu0 %v15189_v53  ;;  %v15259_v53 = vld [vmem:[#allocation11 + $0xd40] ss:$16 sps:$4 sm:$0xff]  }
 0xb42   : > { %7994 = vmatpush1.bf16.msra.mxu1 %v15184_v52  ;;  %v15267_v52 = vld [vmem:[#allocation11 + $0xd64] ss:$16 sps:$4 sm:$0xff]  }
 0xb43   : > { %7995 = vmatprep.subr.bf16.mxu1 %v15192_v55  ;;  %v15262_v55 = vld [vmem:[#allocation11 + $0xd48] ss:$16 sps:$4 sm:$0xff]  }
 0xb44   : > { %7832 = vmatpush1.bf16.msra.mxu0 %v15187_v12  ;;  %v15270_v12 = vld [vmem:[#allocation11 + $0xd6c] ss:$16 sps:$4 sm:$0xff]  }
 0xb45   : > { %7833 = vmatprep.subr.bf16.mxu0 %v15195_v23  ;;  %v15265_v23 = vld [vmem:[#allocation11 + $0xd60] ss:$16 sps:$4 sm:$0xff]  }
 0xb46   : > { %7996 = vmatpush1.bf16.msra.mxu1 %v15190_v24  ;;  %v15273_v24 = vld [vmem:[#allocation11 + $0xd84] ss:$16 sps:$4 sm:$0xff]  }
 0xb47   : > { %7997 = vmatprep.subr.bf16.mxu1 %v15198_v10  ;;  %v15268_v10 = vld [vmem:[#allocation11 + $0xd68] ss:$16 sps:$4 sm:$0xff]  }
 0xb48   : > { %7834 = vmatpush1.bf16.msra.mxu0 %v15193_v46  ;;  %v15276_v46 = vld [vmem:[#allocation11 + $0xd8c] ss:$16 sps:$4 sm:$0xff]  }
 0xb49   : > { %7844 = vmatprep.subr.bf16.mxu0 %v15201_v17  ;;  %v15271_v17 = vld [vmem:[#allocation11 + $0xd80] ss:$16 sps:$4 sm:$0xff]  }
 0xb4a   : > { %7998 = vmatpush1.bf16.msra.mxu1 %v15196_v20  ;;  %v15279_v20 = vld [vmem:[#allocation11 + $0xda4] ss:$16 sps:$4 sm:$0xff]  }
 0xb4b   : > { %7836 = vmatmul.mubr.bf16.vlgmr.msra.gmra.mrb[36].mxu0 %v19715_v5  ;;  %8008 = vmatprep.subr.bf16.mxu1 %v15204_v31  ;;  %v15274_v31 = vld [vmem:[#allocation11 + $0xd88] ss:$16 sps:$4 sm:$0xff]  }
 0xb4c   : > { %7845 = vmatpush1.bf16.msra.mxu0 %v15199_v32  ;;  %7876 = vmatprep.mubr.bf16.mxu0 %v19718_v11  ;;  %v15282_v32 = vld [vmem:[#allocation11 + $0xdac] ss:$16 sps:$4 sm:$0xff]  }
 0xb4d   : > { %8000 = vmatmul.mubr.bf16.vlgmr.msra.gmra.mrb[36].mxu1 %v19715_v5  ;;  %7846 = vmatprep.subr.bf16.mxu0 %v15207_v27  ;;  %v15277_v27 = vld [vmem:[#allocation11 + $0xda0] ss:$16 sps:$4 sm:$0xff]  }
 0xb4e   : > { %8009 = vmatpush1.bf16.msra.mxu1 %v15202_v25  ;;  %8040 = vmatprep.mubr.bf16.mxu1 %v19718_v11  ;;  %v15285_v25 = vld [vmem:[#allocation11 + $0xdc4] ss:$16 sps:$4 sm:$0xff]  }
 0xb4f   : > { %8010 = vmatprep.subr.bf16.mxu1 %v15210_v42  ;;  %v15280_v42 = vld [vmem:[#allocation11 + $0xda8] ss:$16 sps:$4 sm:$0xff]  }
 0xb50   : > { %7847 = vmatpush1.bf16.msra.mxu0 %v15205_v29  ;;  %v15288_v29 = vld [vmem:[#allocation11 + $0xdcc] ss:$16 sps:$4 sm:$0xff]  }
 0xb51   : > { %7848 = vmatprep.subr.bf16.mxu0 %v15213_v50  ;;  %v15283_v50 = vld [vmem:[#allocation11 + $0xdc0] ss:$16 sps:$4 sm:$0xff]  }
 0xb52   : > { %8011 = vmatpush1.bf16.msra.mxu1 %v15208_v1  ;;  %v15291_v1 = vld [vmem:[#allocation11 + $0xde4] ss:$16 sps:$4 sm:$0xff]  }
 0xb53   : > { %8012 = vmatprep.subr.bf16.mxu1 %v15216_v33  ;;  %v15286_v33 = vld [vmem:[#allocation11 + $0xdc8] ss:$16 sps:$4 sm:$0xff]  }
 0xb54   : > { %7849 = vmatpush1.bf16.msra.mxu0 %v15211_v18  ;;  %v15294_v18 = vld [vmem:[#allocation11 + $0xdec] ss:$16 sps:$4 sm:$0xff]  }
 0xb55   : > { %7850 = vmatprep.subr.bf16.mxu0 %v15219_v6  ;;  %v15289_v6 = vld [vmem:[#allocation11 + $0xde0] ss:$16 sps:$4 sm:$0xff]  }
 0xb56   : > { %8013 = vmatpush1.bf16.msra.mxu1 %v15214_v13  ;;  %v15297_v13 = vld [vmem:[#allocation11 + $0xe04] ss:$16 sps:$4 sm:$0xff]  }
 0xb57   : > { %8014 = vmatprep.subr.bf16.mxu1 %v15222_v49  ;;  %v15292_v49 = vld [vmem:[#allocation11 + $0xde8] ss:$16 sps:$4 sm:$0xff]  }
 0xb58   : > { %7851 = vmatpush1.bf16.msra.mxu0 %v15217_v34  ;;  %v15300_v34 = vld [vmem:[#allocation11 + $0xe0c] ss:$16 sps:$4 sm:$0xff]  }
 0xb59   : > { %7852 = vmatprep.subr.bf16.mxu0 %v15225_v9  ;;  %v15295_v9 = vld [vmem:[#allocation11 + $0xe00] ss:$16 sps:$4 sm:$0xff]  }
 0xb5a   : > { %8015 = vmatpush1.bf16.msra.mxu1 %v15220_v2  ;;  %v19725_v2 = vshrl.u32 %v19679_v35, 16 }
 0xb5b   : > { %8016 = vmatprep.subr.bf16.mxu1 %v15228_v38  ;;  %v15303_v38 = vld [vmem:[#allocation11 + $0xe24] ss:$16 sps:$4 sm:$0xff]  }
 0xb5c   : > { %7853 = vmatpush1.bf16.msra.mxu0 %v15223_v0  ;;  %v19728_v0 = vshrl.u32 %v19688_v8, 16 }
 0xb5d   : > { %7854 = vmatprep.subr.bf16.mxu0 %v15231_v41  ;;  %v15298_v41 = vld [vmem:[#allocation11 + $0xe08] ss:$16 sps:$4 sm:$0xff]  }
 0xb5e   : > { %8017 = vmatpush1.bf16.msra.mxu1 %v15226_v22  ;;  %v15306_v22 = vld [vmem:[#allocation11 + $0xe2c] ss:$16 sps:$4 sm:$0xff]  }
 0xb5f   : > { %8018 = vmatprep.subr.bf16.mxu1 %v15234_v45  ;;  %v15301_v45 = vld [vmem:[#allocation11 + $0xe20] ss:$16 sps:$4 sm:$0xff]  }
 0xb60   : > { %7855 = vmatpush1.bf16.msra.mxu0 %v15229_v39  ;;  %v15309_v39 = vld [vmem:[#allocation11 + $0xe44] ss:$16 sps:$4 sm:$0xff]  }
 0xb61   : > { %7856 = vmatprep.subr.bf16.mxu0 %v15237_v62  ;;  %v15304_v62 = vld [vmem:[#allocation11 + $0xe28] ss:$16 sps:$4 sm:$0xff]  }
 0xb62   : > { %8019 = vmatpush1.bf16.msra.mxu1 %v15232_v28  ;;  %v15312_v28 = vld [vmem:[#allocation11 + $0xe4c] ss:$16 sps:$4 sm:$0xff]  }
 0xb63   : > { %8020 = vmatprep.subr.bf16.mxu1 %v15240_v36  ;;  %v15307_v36 = vld [vmem:[#allocation11 + $0xe40] ss:$16 sps:$4 sm:$0xff]  }
 0xb64   : > { %7857 = vmatpush1.bf16.msra.mxu0 %v15235_v43  ;;  %v15315_v43 = vld [vmem:[#allocation11 + $0xe64] ss:$16 sps:$4 sm:$0xff]  }
 0xb65   : > { %7858 = vmatprep.subr.bf16.mxu0 %v15243_v60  ;;  %v15310_v60 = vld [vmem:[#allocation11 + $0xe48] ss:$16 sps:$4 sm:$0xff]  }
 0xb66   : > { %8021 = vmatpush1.bf16.msra.mxu1 %v15238_v59  ;;  %v15318_v59 = vld [vmem:[#allocation11 + $0xe6c] ss:$16 sps:$4 sm:$0xff]  }
 0xb67   : > { %8022 = vmatprep.subr.bf16.mxu1 %v15246_v16  ;;  %v15313_v16 = vld [vmem:[#allocation11 + $0xe60] ss:$16 sps:$4 sm:$0xff]  }
 0xb68   : > { %7859 = vmatpush1.bf16.msra.mxu0 %v15241_v21  ;;  %v15321_v21 = vld [vmem:[#allocation11 + $0xe84] ss:$16 sps:$4 sm:$0xff]  }
 0xb69   : > { %7860 = vmatprep.subr.bf16.mxu0 %v15249_v57  ;;  %v15316_v57 = vld [vmem:[#allocation11 + $0xe68] ss:$16 sps:$4 sm:$0xff]  }
 0xb6a   : > { %8023 = vmatpush1.bf16.msra.mxu1 %v15244_v14  ;;  %v16525_v14 = vmov 1966171168  }
 0xb6b   : > { %8024 = vmatprep.subr.bf16.mxu1 %v15252_v63  ;;  %v6170_v63 = vunpack.c.l.s4 %v16525_v14  ;;  %v15364_v14 = vld [vmem:[#allocation11 + $0xf68] ss:$16 sps:$4 sm:$0xff]  }
 0xb6c   : > { %7861 = vmatpush1.bf16.msra.mxu0 %v15247_v30  ;;  %v15324_v30 = vld [vmem:[#allocation11 + $0xe8c] ss:$16 sps:$4 sm:$0xff]  }
 0xb6d   : > { %7862 = vmatprep.subr.bf16.mxu0 %v15255_v61  ;;  %v15319_v61 = vld [vmem:[#allocation11 + $0xe80] ss:$16 sps:$4 sm:$0xff]  }
 0xb6e   : > { %8025 = vmatpush1.bf16.msra.mxu1 %v15250_v44  ;;  %v15327_v44 = vld [vmem:[#allocation11 + $0xea4] ss:$16 sps:$4 sm:$0xff]  }
 0xb6f   : > { %8026 = vmatprep.subr.bf16.mxu1 %v15258_v40  ;;  %v15322_v40 = vld [vmem:[#allocation11 + $0xe88] ss:$16 sps:$4 sm:$0xff]  }
 0xb70   : > { %7863 = vmatpush1.bf16.msra.mxu0 %v15253_v4  ;;  %v6171_v4 = vunpack.c.0.s8 %v6170_v63  ;;  %v15372_v63 = vld [vmem:[#allocation11 + $0xf8c] ss:$16 sps:$4 sm:$0xff]  }
 0xb71   : > { %7864 = vmatprep.subr.bf16.mxu0 %v15261_v37  ;;  %v15330_v37 = vld [vmem:[#allocation11 + $0xeac] ss:$16 sps:$4 sm:$0xff]  }
 0xb72   : > { %8027 = vmatpush1.bf16.msra.mxu1 %v15256_v26  ;;  %v15325_v26 = vld [vmem:[#allocation11 + $0xea0] ss:$16 sps:$4 sm:$0xff]  }
 0xb73   : > { %8028 = vmatprep.subr.bf16.mxu1 %v15264_v54  ;;  %v15333_v54 = vld [vmem:[#allocation11 + $0xec4] ss:$16 sps:$4 sm:$0xff]  }
 0xb74   : > { %7865 = vmatpush1.bf16.msra.mxu0 %v15259_v53 }
 0xb75   : > { %7866 = vmatprep.subr.bf16.mxu0 %v15267_v52  ;;  %v20192_v52 = vld [vmem:[#allocation31_spill] sm:$0xff] }
 0xb76   : > { %8029 = vmatpush1.bf16.msra.mxu1 %v15262_v55  ;;  %v19735_v55 = vsub.s32 %v6171_v4, %v20192_v52  ;;  %v15373_v4 = vld [vmem:[#allocation11 + $0xfa0] ss:$16 sps:$4 sm:$0xff]   ;;  %v15387_v52 = vld [vmem:[#allocation11 + $0xfe4] ss:$16 sps:$4 sm:$0xff]  }
 0xb77   : > { %8030 = vmatprep.subr.bf16.mxu1 %v15270_v12  ;;  %v15328_v12 = vld [vmem:[#allocation11 + $0xea8] ss:$16 sps:$4 sm:$0xff]  }
 0xb78   : > { %7867 = vmatpush1.bf16.msra.mxu0 %v15265_v23 }
 0xb79   : > { %7868 = vmatprep.subr.bf16.mxu0 %v15273_v24 }
 0xb7a   : > { %8031 = vmatpush1.bf16.msra.mxu1 %v15268_v10  ;;  %v15336_v10 = vld [vmem:[#allocation11 + $0xecc] ss:$16 sps:$4 sm:$0xff]  }
 0xb7b   : > { %8032 = vmatprep.subr.bf16.mxu1 %v15276_v46 }
 0xb7c   : > { %7869 = vmatpush1.bf16.msra.mxu0 %v15271_v17 }
 0xb7d   : > { %7870 = vmatprep.subr.bf16.mxu0 %v15279_v20 }
 0xb7e   : > { %8033 = vmatpush1.bf16.msra.mxu1 %v15274_v31  ;;  %v15331_v31 = vld [vmem:[#allocation11 + $0xec0] ss:$16 sps:$4 sm:$0xff]  }
 0xb7f   : > { %8034 = vmatprep.subr.bf16.mxu1 %v15282_v32 }
 0xb80   : > { %7871 = vmatpush1.bf16.msra.mxu0 %v15277_v27 }
 0xb81   : > { %7872 = vmatprep.subr.bf16.mxu0 %v15285_v25 }
 0xb82   : > { %8035 = vmatpush1.bf16.msra.mxu1 %v15280_v42  ;;  %v15339_v42 = vld [vmem:[#allocation11 + $0xee4] ss:$16 sps:$4 sm:$0xff]  }
 0xb83   : > { %8036 = vmatprep.subr.bf16.mxu1 %v15288_v29 }
 0xb84   : > { %7873 = vmatpush1.bf16.msra.mxu0 %v15283_v50 }
 0xb85   : > { %7874 = vmatprep.subr.bf16.mxu0 %v15291_v1  ;;  %v15334_v1 = vld [vmem:[#allocation11 + $0xec8] ss:$16 sps:$4 sm:$0xff]  }
 0xb86   : > { %8037 = vmatpush1.bf16.msra.mxu1 %v15286_v33 }
 0xb87   : > { %8038 = vmatprep.subr.bf16.mxu1 %v15294_v18  ;;  %v15342_v18 = vld [vmem:[#allocation11 + $0xeec] ss:$16 sps:$4 sm:$0xff]  }
 0xb88   : > { %7875 = vmatpush1.bf16.msra.mxu0 %v15289_v6  ;;  %v15337_v6 = vld [vmem:[#allocation11 + $0xee0] ss:$16 sps:$4 sm:$0xff]  }
 0xb89   : > { %7885 = vmatprep.subr.bf16.mxu0 %v15297_v13 }
 0xb8a   : > { %8039 = vmatpush1.bf16.msra.mxu1 %v15292_v49  ;;  %v15345_v49 = vld [vmem:[#allocation11 + $0xf04] ss:$16 sps:$4 sm:$0xff]  }
 0xb8b   : > { %7877 = vmatmul.mubr.bf16.vlgmr.msra.gmra.mrb[36].mxu0 %v19725_v2  ;;  %8049 = vmatprep.subr.bf16.mxu1 %v15300_v34  ;;  %v15340_v34 = vld [vmem:[#allocation11 + $0xee8] ss:$16 sps:$4 sm:$0xff]  }
 0xb8c   : > { %7886 = vmatpush1.bf16.msra.mxu0 %v15295_v9  ;;  %7917 = vmatprep.mubr.bf16.mxu0 %v19728_v0  ;;  %v15348_v9 = vld [vmem:[#allocation11 + $0xf0c] ss:$16 sps:$4 sm:$0xff]  }
 0xb8d   : > { %8041 = vmatmul.mubr.bf16.vlgmr.msra.gmra.mrb[36].mxu1 %v19725_v2  ;;  %7887 = vmatprep.subr.bf16.mxu0 %v15303_v38  ;;  %v15343_v38 = vld [vmem:[#allocation11 + $0xf00] ss:$16 sps:$4 sm:$0xff]  }
 0xb8e   : > { %8050 = vmatpush1.bf16.msra.mxu1 %v15298_v41  ;;  %8081 = vmatprep.mubr.bf16.mxu1 %v19728_v0  ;;  %v15351_v41 = vld [vmem:[#allocation11 + $0xf24] ss:$16 sps:$4 sm:$0xff]  }
 0xb8f   : > { %8051 = vmatprep.subr.bf16.mxu1 %v15306_v22  ;;  %v15346_v22 = vld [vmem:[#allocation11 + $0xf08] ss:$16 sps:$4 sm:$0xff]  }
 0xb90   : > { %7888 = vmatpush1.bf16.msra.mxu0 %v15301_v45  ;;  %v15354_v45 = vld [vmem:[#allocation11 + $0xf2c] ss:$16 sps:$4 sm:$0xff]  }
 0xb91   : > { %7889 = vmatprep.subr.bf16.mxu0 %v15309_v39  ;;  %v15349_v39 = vld [vmem:[#allocation11 + $0xf20] ss:$16 sps:$4 sm:$0xff]  }
 0xb92   : > { %8052 = vmatpush1.bf16.msra.mxu1 %v15304_v62  ;;  %v15357_v62 = vld [vmem:[#allocation11 + $0xf44] ss:$16 sps:$4 sm:$0xff]  }
 0xb93   : > { %8053 = vmatprep.subr.bf16.mxu1 %v15312_v28  ;;  %v15352_v28 = vld [vmem:[#allocation11 + $0xf28] ss:$16 sps:$4 sm:$0xff]  }
 0xb94   : > { %7890 = vmatpush1.bf16.msra.mxu0 %v15307_v36  ;;  %v15360_v36 = vld [vmem:[#allocation11 + $0xf4c] ss:$16 sps:$4 sm:$0xff]  }
 0xb95   : > { %7891 = vmatprep.subr.bf16.mxu0 %v15315_v43  ;;  %v15355_v43 = vld [vmem:[#allocation11 + $0xf40] ss:$16 sps:$4 sm:$0xff]  }
 0xb96   : > { %8054 = vmatpush1.bf16.msra.mxu1 %v15310_v60  ;;  %v15363_v60 = vld [vmem:[#allocation11 + $0xf64] ss:$16 sps:$4 sm:$0xff]  }
 0xb97   : > { %8055 = vmatprep.subr.bf16.mxu1 %v15318_v59  ;;  %v15358_v59 = vld [vmem:[#allocation11 + $0xf48] ss:$16 sps:$4 sm:$0xff]  }
 0xb98   : > { %7892 = vmatpush1.bf16.msra.mxu0 %v15313_v16  ;;  %v15366_v16 = vld [vmem:[#allocation11 + $0xf6c] ss:$16 sps:$4 sm:$0xff]  }
 0xb99   : > { %7893 = vmatprep.subr.bf16.mxu0 %v15321_v21  ;;  %v15361_v21 = vld [vmem:[#allocation11 + $0xf60] ss:$16 sps:$4 sm:$0xff]  }
 0xb9a   : > { %8056 = vmatpush1.bf16.msra.mxu1 %v15316_v57  ;;  %v15369_v57 = vld [vmem:[#allocation11 + $0xf84] ss:$16 sps:$4 sm:$0xff]  }
 0xb9b   : > { %8057 = vmatprep.subr.bf16.mxu1 %v15324_v30  ;;  %v15367_v30 = vld [vmem:[#allocation11 + $0xf80] ss:$16 sps:$4 sm:$0xff]  }
 0xb9c   : > { %7894 = vmatpush1.bf16.msra.mxu0 %v15319_v61  ;;  %v15375_v61 = vld [vmem:[#allocation11 + $0xfa4] ss:$16 sps:$4 sm:$0xff]  }
 0xb9d   : > { %7895 = vmatprep.subr.bf16.mxu0 %v15327_v44  ;;  %v15370_v44 = vld [vmem:[#allocation11 + $0xf88] ss:$16 sps:$4 sm:$0xff]  }
 0xb9e   : > { %8058 = vmatpush1.bf16.msra.mxu1 %v15322_v40  ;;  %v5992_v53 = vpop.f32.mrb[32].mxu0  ;;  %v15378_v40 = vld [vmem:[#allocation11 + $0xfac] ss:$16 sps:$4 sm:$0xff]  }
 0xb9f   : > { %v5994_v23 = vpop.f32.mrb[33].mxu0  ;;  %v6156_v24 = vpop.f32.mrb[32].mxu1  ;;  %8059 = vmatprep.subr.bf16.mxu1 %v15330_v37  ;;  %v15381_v37 = vld [vmem:[#allocation11 + $0xfc4] ss:$16 sps:$4 sm:$0xff]  }
 0xba0   : > { %v6167_v46 = vcombine.low %v5992_v53, %v5994_v23  ;;  %v5996_v17 = vpop.f32.mrb[34].mxu0  ;;  %v6158_v20 = vpop.f32.mrb[33].mxu1  ;;  %7896 = vmatpush1.bf16.msra.mxu0 %v15325_v26  ;;  %v15376_v26 = vld [vmem:[#allocation11 + $0xfa8] ss:$16 sps:$4 sm:$0xff]   ;;  %v15379_v53 = vld [vmem:[#allocation11 + $0xfc0] ss:$16 sps:$4 sm:$0xff]  }
 0xba1   : > { %v6168_v32 = vcombine.low %v6156_v24, %v6158_v20  ;;  %v5997_v27 = vpop.f32.mrb[35].mxu0  ;;  %v6160_v25 = vpop.f32.mrb[34].mxu1  ;;  %7897 = vmatprep.subr.bf16.mxu0 %v15333_v54  ;;  %v15384_v54 = vld [vmem:[#allocation11 + $0xfcc] ss:$16 sps:$4 sm:$0xff]   ;;  %v15385_v24 = vld [vmem:[#allocation11 + $0xfe0] ss:$16 sps:$4 sm:$0xff]  }
 0xba2   : > { %v19738_v29 = vrot.slane %v6167_v46, %v19735_v55  ;;  %8060 = vmatpush1.bf16.msra.mxu1 %v15328_v12  ;;  %v6161_v50 = vpop.f32.mrb[35].mxu1  ;;  %v15382_v12 = vld [vmem:[#allocation11 + $0xfc8] ss:$16 sps:$4 sm:$0xff]   ;;  %v15390_v23 = vld [vmem:[#allocation11 + $0xfec] ss:$16 sps:$4 sm:$0xff]   ;;  %v8386_v27 = vrot.slane %v19648_v7, 1 }
 0xba3   : > { %v19741_v33 = vrot.slane %v6168_v32, %v19735_v55  ;;  %8061 = vmatprep.subr.bf16.mxu1 %v15336_v10  ;;  %v15393_v10 = vld [vmem:[#allocation11 + $0x1004] ss:$16 sps:$4 sm:$0xff]   ;;  %v15388_v46 = vld [vmem:[#allocation11 + $0xfe8] ss:$16 sps:$4 sm:$0xff]   ;;  %v15396_v17 = vld [vmem:[#allocation11 + $0x100c] ss:$16 sps:$4 sm:$0xff]  }
 0xba4   : > { %7898 = vmatpush1.bf16.msra.mxu0 %v15331_v31  ;;  %v15391_v20 = vld [vmem:[#allocation11 + $0x1000] ss:$16 sps:$4 sm:$0xff]   ;;  %v19746_v31 = vshrl.u32 %v19695_v56, 16  ;;  %v15399_v32 = vld [vmem:[#allocation11 + $0x1024] ss:$16 sps:$4 sm:$0xff]  }
 0xba5   : > { %v6183_v13 = vcombine.low %v19738_v29, %v19741_v33  ;;  %7899 = vmatprep.subr.bf16.mxu0 %v15339_v42  ;;  %v15394_v25 = vld [vmem:[#allocation11 + $0x1008] ss:$16 sps:$4 sm:$0xff]   ;;  %v15402_v42 = vld [vmem:[#allocation11 + $0x102c] ss:$16 sps:$4 sm:$0xff]   ;;  %v15397_v50 = vld [vmem:[#allocation11 + $0x1020] ss:$16 sps:$4 sm:$0xff]  }
 0xba6   : > { %8062 = vmatpush1.bf16.msra.mxu1 %v15334_v1  ;;  %v15405_v1 = vld [vmem:[#allocation11 + $0x1044] ss:$16 sps:$4 sm:$0xff]  }
 0xba7   : > { %8063 = vmatprep.subr.bf16.mxu1 %v15342_v18  ;;  %v15400_v18 = vld [vmem:[#allocation11 + $0x1028] ss:$16 sps:$4 sm:$0xff]   ;;  %v15411_v7 = vld [vmem:[#allocation11 + $0x1064] ss:$16 sps:$4 sm:$0xff]  }
 0xba8   : > { %7900 = vmatpush1.bf16.msra.mxu0 %v15337_v6  ;;  %v15408_v6 = vld [vmem:[#allocation11 + $0x104c] ss:$16 sps:$4 sm:$0xff]   ;;  %v15735_v29 = vld [vmem:[#allocation11 + $0x1724] ss:$16 sps:$4 sm:$0xff]  }
 0xba9   : > { %7901 = vmatprep.subr.bf16.mxu0 %v15345_v49  ;;  %v15403_v49 = vld [vmem:[#allocation11 + $0x1040] ss:$16 sps:$4 sm:$0xff]  }
 0xbaa   : > { %8064 = vmatpush1.bf16.msra.mxu1 %v15340_v34  ;;  %v15406_v34 = vld [vmem:[#allocation11 + $0x1048] ss:$16 sps:$4 sm:$0xff]  }
 0xbab   : > { %8065 = vmatprep.subr.bf16.mxu1 %v15348_v9  ;;  %v15414_v9 = vld [vmem:[#allocation11 + $0x106c] ss:$16 sps:$4 sm:$0xff]  }
 0xbac   : > { %7902 = vmatpush1.bf16.msra.mxu0 %v15343_v38  ;;  %v15409_v38 = vld [vmem:[#allocation11 + $0x1060] ss:$16 sps:$4 sm:$0xff]  }
 0xbad   : > { %7903 = vmatprep.subr.bf16.mxu0 %v15351_v41  ;;  %v15417_v41 = vld [vmem:[#allocation11 + $0x1084] ss:$16 sps:$4 sm:$0xff]  }
 0xbae   : > { %8066 = vmatpush1.bf16.msra.mxu1 %v15346_v22  ;;  %v15412_v22 = vld [vmem:[#allocation11 + $0x1068] ss:$16 sps:$4 sm:$0xff]  }
 0xbaf   : > { %8067 = vmatprep.subr.bf16.mxu1 %v15354_v45  ;;  %v15420_v45 = vld [vmem:[#allocation11 + $0x108c] ss:$16 sps:$4 sm:$0xff]  }
 0xbb0   : > { %7904 = vmatpush1.bf16.msra.mxu0 %v15349_v39  ;;  %v15415_v39 = vld [vmem:[#allocation11 + $0x1080] ss:$16 sps:$4 sm:$0xff]  }
 0xbb1   : > { %7905 = vmatprep.subr.bf16.mxu0 %v15357_v62  ;;  %v15423_v62 = vld [vmem:[#allocation11 + $0x10a4] ss:$16 sps:$4 sm:$0xff]  }
 0xbb2   : > { %8068 = vmatpush1.bf16.msra.mxu1 %v15352_v28  ;;  %v15418_v28 = vld [vmem:[#allocation11 + $0x1088] ss:$16 sps:$4 sm:$0xff]  }
 0xbb3   : > { %8069 = vmatprep.subr.bf16.mxu1 %v15360_v36  ;;  %v15426_v36 = vld [vmem:[#allocation11 + $0x10ac] ss:$16 sps:$4 sm:$0xff]  }
 0xbb4   : > { %7906 = vmatpush1.bf16.msra.mxu0 %v15355_v43  ;;  %v15421_v43 = vld [vmem:[#allocation11 + $0x10a0] ss:$16 sps:$4 sm:$0xff]  }
 0xbb5   : > { %7907 = vmatprep.subr.bf16.mxu0 %v15363_v60  ;;  %v15429_v60 = vld [vmem:[#allocation11 + $0x10c4] ss:$16 sps:$4 sm:$0xff]  }
 0xbb6   : > { %8070 = vmatpush1.bf16.msra.mxu1 %v15358_v59  ;;  %v15424_v59 = vld [vmem:[#allocation11 + $0x10a8] ss:$16 sps:$4 sm:$0xff]  }
 0xbb7   : > { %8071 = vmatprep.subr.bf16.mxu1 %v15366_v16  ;;  %v15432_v16 = vld [vmem:[#allocation11 + $0x10cc] ss:$16 sps:$4 sm:$0xff]  }
 0xbb8   : > { %7908 = vmatpush1.bf16.msra.mxu0 %v15361_v21  ;;  %v15427_v21 = vld [vmem:[#allocation11 + $0x10c0] ss:$16 sps:$4 sm:$0xff]  }
 0xbb9   : > { %7909 = vmatprep.subr.bf16.mxu0 %v15369_v57  ;;  %v15435_v57 = vld [vmem:[#allocation11 + $0x10e4] ss:$16 sps:$4 sm:$0xff]  }
 0xbba   : > { %8072 = vmatpush1.bf16.msra.mxu1 %v15364_v14  ;;  %v15430_v14 = vld [vmem:[#allocation11 + $0x10c8] ss:$16 sps:$4 sm:$0xff]  }
 0xbbb   : > { %8073 = vmatprep.subr.bf16.mxu1 %v15372_v63  ;;  %v15438_v63 = vld [vmem:[#allocation11 + $0x10ec] ss:$16 sps:$4 sm:$0xff]  }
 0xbbc   : > { %7910 = vmatpush1.bf16.msra.mxu0 %v15367_v30  ;;  %v15433_v30 = vld [vmem:[#allocation11 + $0x10e0] ss:$16 sps:$4 sm:$0xff]  }
 0xbbd   : > { %7911 = vmatprep.subr.bf16.mxu0 %v15375_v61  ;;  %v15441_v61 = vld [vmem:[#allocation11 + $0x1104] ss:$16 sps:$4 sm:$0xff]  }
 0xbbe   : > { %8074 = vmatpush1.bf16.msra.mxu1 %v15370_v44  ;;  %v15436_v44 = vld [vmem:[#allocation11 + $0x10e8] ss:$16 sps:$4 sm:$0xff]  }
 0xbbf   : > { %8075 = vmatprep.subr.bf16.mxu1 %v15378_v40  ;;  %v15444_v40 = vld [vmem:[#allocation11 + $0x110c] ss:$16 sps:$4 sm:$0xff]  }
 0xbc0   : > { %7912 = vmatpush1.bf16.msra.mxu0 %v15373_v4  ;;  %v15439_v4 = vld [vmem:[#allocation11 + $0x1100] ss:$16 sps:$4 sm:$0xff]  }
 0xbc1   : > { %7913 = vmatprep.subr.bf16.mxu0 %v15381_v37  ;;  %v15447_v37 = vld [vmem:[#allocation11 + $0x1124] ss:$16 sps:$4 sm:$0xff]  }
 0xbc2   : > { %8076 = vmatpush1.bf16.msra.mxu1 %v15376_v26  ;;  %v15442_v26 = vld [vmem:[#allocation11 + $0x1108] ss:$16 sps:$4 sm:$0xff]  }
 0xbc3   : > { %8077 = vmatprep.subr.bf16.mxu1 %v15384_v54  ;;  %v15450_v54 = vld [vmem:[#allocation11 + $0x112c] ss:$16 sps:$4 sm:$0xff]  }
 0xbc4   : > { %7914 = vmatpush1.bf16.msra.mxu0 %v15379_v53  ;;  %v15445_v53 = vld [vmem:[#allocation11 + $0x1120] ss:$16 sps:$4 sm:$0xff]  }
 0xbc5   : > { %7915 = vmatprep.subr.bf16.mxu0 %v15387_v52  ;;  %v15453_v52 = vld [vmem:[#allocation11 + $0x1144] ss:$16 sps:$4 sm:$0xff]  }
 0xbc6   : > { %8078 = vmatpush1.bf16.msra.mxu1 %v15382_v12  ;;  %v15448_v12 = vld [vmem:[#allocation11 + $0x1128] ss:$16 sps:$4 sm:$0xff]  }
 0xbc7   : > { %8079 = vmatprep.subr.bf16.mxu1 %v15390_v23  ;;  %v15456_v23 = vld [vmem:[#allocation11 + $0x114c] ss:$16 sps:$4 sm:$0xff]  }
 0xbc8   : > { %7916 = vmatpush1.bf16.msra.mxu0 %v15385_v24  ;;  %v15451_v24 = vld [vmem:[#allocation11 + $0x1140] ss:$16 sps:$4 sm:$0xff]  }
 0xbc9   : > { %9681 = vmatprep.subr.bf16.mxu0 %v15393_v10  ;;  %v15459_v10 = vld [vmem:[#allocation11 + $0x1164] ss:$16 sps:$4 sm:$0xff]  }
 0xbca   : > { %8080 = vmatpush1.bf16.msra.mxu1 %v15388_v46  ;;  %v15454_v46 = vld [vmem:[#allocation11 + $0x1148] ss:$16 sps:$4 sm:$0xff]  }
 0xbcb   : > { %7918 = vmatmul.mubr.bf16.vlgmr.msra.gmra.mrb[36].mxu0 %v19746_v31  ;;  %9845 = vmatprep.subr.bf16.mxu1 %v15396_v17  ;;  %v15462_v17 = vld [vmem:[#allocation11 + $0x116c] ss:$16 sps:$4 sm:$0xff]  }
 0xbcc   : > { %9682 = vmatpush1.bf16.msra.mxu0 %v15391_v20  ;;  %9713 = vmatprep.mubr.bf16.mxu0 %v8386_v27  ;;  %v15457_v20 = vld [vmem:[#allocation11 + $0x1160] ss:$16 sps:$4 sm:$0xff]  }
 0xbcd   : > { %8082 = vmatmul.mubr.bf16.vlgmr.msra.gmra.mrb[36].mxu1 %v19746_v31  ;;  %9683 = vmatprep.subr.bf16.mxu0 %v15399_v32  ;;  %v15465_v32 = vld [vmem:[#allocation11 + $0x1184] ss:$16 sps:$4 sm:$0xff]  }
 0xbce   : > { %9846 = vmatpush1.bf16.msra.mxu1 %v15394_v25  ;;  %9877 = vmatprep.mubr.bf16.mxu1 %v8386_v27  ;;  %v15460_v27 = vld [vmem:[#allocation11 + $0x1168] ss:$16 sps:$4 sm:$0xff]   ;;  %v15468_v25 = vld [vmem:[#allocation11 + $0x118c] ss:$16 sps:$4 sm:$0xff]  }
 0xbcf   : > { %9847 = vmatprep.subr.bf16.mxu1 %v15402_v42  ;;  %v15463_v42 = vld [vmem:[#allocation11 + $0x1180] ss:$16 sps:$4 sm:$0xff]  }
 0xbd0   : > { %9684 = vmatpush1.bf16.msra.mxu0 %v15397_v50  ;;  %v15471_v50 = vld [vmem:[#allocation11 + $0x11a4] ss:$16 sps:$4 sm:$0xff]  }
 0xbd1   : > { %9685 = vmatprep.subr.bf16.mxu0 %v15405_v1  ;;  %v15466_v1 = vld [vmem:[#allocation11 + $0x1188] ss:$16 sps:$4 sm:$0xff]  }
 0xbd2   : > { %9848 = vmatpush1.bf16.msra.mxu1 %v15400_v18  ;;  %v15474_v18 = vld [vmem:[#allocation11 + $0x11ac] ss:$16 sps:$4 sm:$0xff]  }
 0xbd3   : > { %9849 = vmatprep.subr.bf16.mxu1 %v15408_v6  ;;  %v15469_v6 = vld [vmem:[#allocation11 + $0x11a0] ss:$16 sps:$4 sm:$0xff]  }
 0xbd4   : > { %9686 = vmatpush1.bf16.msra.mxu0 %v15403_v49  ;;  %v15477_v49 = vld [vmem:[#allocation11 + $0x11c4] ss:$16 sps:$4 sm:$0xff]  }
 0xbd5   : > { %9687 = vmatprep.subr.bf16.mxu0 %v15411_v7  ;;  %v15472_v7 = vld [vmem:[#allocation11 + $0x11a8] ss:$16 sps:$4 sm:$0xff]  }
 0xbd6   : > { %9850 = vmatpush1.bf16.msra.mxu1 %v15406_v34  ;;  %v15480_v34 = vld [vmem:[#allocation11 + $0x11cc] ss:$16 sps:$4 sm:$0xff]  }
 0xbd7   : > { %9851 = vmatprep.subr.bf16.mxu1 %v15414_v9  ;;  %v15475_v9 = vld [vmem:[#allocation11 + $0x11c0] ss:$16 sps:$4 sm:$0xff]  }
 0xbd8   : > { %9688 = vmatpush1.bf16.msra.mxu0 %v15409_v38  ;;  %v15483_v38 = vld [vmem:[#allocation11 + $0x11e4] ss:$16 sps:$4 sm:$0xff]  }
 0xbd9   : > { %9689 = vmatprep.subr.bf16.mxu0 %v15417_v41  ;;  %v15478_v41 = vld [vmem:[#allocation11 + $0x11c8] ss:$16 sps:$4 sm:$0xff]  }
 0xbda   : > { %9852 = vmatpush1.bf16.msra.mxu1 %v15412_v22  ;;  %v15486_v22 = vld [vmem:[#allocation11 + $0x11ec] ss:$16 sps:$4 sm:$0xff]  }
 0xbdb   : > { %9853 = vmatprep.subr.bf16.mxu1 %v15420_v45  ;;  %v15481_v45 = vld [vmem:[#allocation11 + $0x11e0] ss:$16 sps:$4 sm:$0xff]  }
 0xbdc   : > { %9690 = vmatpush1.bf16.msra.mxu0 %v15415_v39  ;;  %v15489_v39 = vld [vmem:[#allocation11 + $0x1204] ss:$16 sps:$4 sm:$0xff]  }
 0xbdd   : > { %9691 = vmatprep.subr.bf16.mxu0 %v15423_v62  ;;  %v15484_v62 = vld [vmem:[#allocation11 + $0x11e8] ss:$16 sps:$4 sm:$0xff]  }
 0xbde   : > { %9854 = vmatpush1.bf16.msra.mxu1 %v15418_v28  ;;  %v15492_v28 = vld [vmem:[#allocation11 + $0x120c] ss:$16 sps:$4 sm:$0xff]  }
 0xbdf   : > { %9855 = vmatprep.subr.bf16.mxu1 %v15426_v36  ;;  %v15487_v36 = vld [vmem:[#allocation11 + $0x1200] ss:$16 sps:$4 sm:$0xff]  }
 0xbe0   : > { %9692 = vmatpush1.bf16.msra.mxu0 %v15421_v43  ;;  %v8385_v43 = vrot.slane %v19653_v48, 1  ;;  %v15504_v48 = vld [vmem:[#allocation11 + $0x124c] ss:$16 sps:$4 sm:$0xff]  }
 0xbe1   : > { %9693 = vmatprep.subr.bf16.mxu0 %v15429_v60  ;;  %v15495_v60 = vld [vmem:[#allocation11 + $0x1224] ss:$16 sps:$4 sm:$0xff]  }
 0xbe2   : > { %9856 = vmatpush1.bf16.msra.mxu1 %v15424_v59  ;;  %v8388_v59 = vrot.slane %v19659_v51, 1  ;;  %v15502_v51 = vld [vmem:[#allocation11 + $0x1248] ss:$16 sps:$4 sm:$0xff]  }
 0xbe3   : > { %9857 = vmatprep.subr.bf16.mxu1 %v15432_v16  ;;  %v15490_v16 = vld [vmem:[#allocation11 + $0x1208] ss:$16 sps:$4 sm:$0xff]  }
 0xbe4   : > { %9694 = vmatpush1.bf16.msra.mxu0 %v15427_v21  ;;  %v15498_v21 = vld [vmem:[#allocation11 + $0x122c] ss:$16 sps:$4 sm:$0xff]  }
 0xbe5   : > { %9695 = vmatprep.subr.bf16.mxu0 %v15435_v57  ;;  %v15493_v57 = vld [vmem:[#allocation11 + $0x1220] ss:$16 sps:$4 sm:$0xff]  }
 0xbe6   : > { %9858 = vmatpush1.bf16.msra.mxu1 %v15430_v14  ;;  %v15501_v14 = vld [vmem:[#allocation11 + $0x1244] ss:$16 sps:$4 sm:$0xff]  }
 0xbe7   : > { %9859 = vmatprep.subr.bf16.mxu1 %v15438_v63  ;;  %v15496_v63 = vld [vmem:[#allocation11 + $0x1228] ss:$16 sps:$4 sm:$0xff]  }
 0xbe8   : > { %9696 = vmatpush1.bf16.msra.mxu0 %v15433_v30  ;;  %v15499_v30 = vld [vmem:[#allocation11 + $0x1240] ss:$16 sps:$4 sm:$0xff]  }
 0xbe9   : > { %9697 = vmatprep.subr.bf16.mxu0 %v15441_v61  ;;  %v15507_v61 = vld [vmem:[#allocation11 + $0x1264] ss:$16 sps:$4 sm:$0xff]  }
 0xbea   : > { %9860 = vmatpush1.bf16.msra.mxu1 %v15436_v44  ;;  %v15510_v44 = vld [vmem:[#allocation11 + $0x126c] ss:$16 sps:$4 sm:$0xff]  }
 0xbeb   : > { %9861 = vmatprep.subr.bf16.mxu1 %v15444_v40  ;;  %v15505_v40 = vld [vmem:[#allocation11 + $0x1260] ss:$16 sps:$4 sm:$0xff]  }
 0xbec   : > { %9698 = vmatpush1.bf16.msra.mxu0 %v15439_v4  ;;  %v15513_v4 = vld [vmem:[#allocation11 + $0x1284] ss:$16 sps:$4 sm:$0xff]  }
 0xbed   : > { %9699 = vmatprep.subr.bf16.mxu0 %v15447_v37  ;;  %v15508_v37 = vld [vmem:[#allocation11 + $0x1268] ss:$16 sps:$4 sm:$0xff]  }
 0xbee   : > { %9862 = vmatpush1.bf16.msra.mxu1 %v15442_v26  ;;  %v15516_v26 = vld [vmem:[#allocation11 + $0x128c] ss:$16 sps:$4 sm:$0xff]  }
 0xbef   : > { %9863 = vmatprep.subr.bf16.mxu1 %v15450_v54  ;;  %v15511_v54 = vld [vmem:[#allocation11 + $0x1280] ss:$16 sps:$4 sm:$0xff]  }
 0xbf0   : > { %9700 = vmatpush1.bf16.msra.mxu0 %v15445_v53  ;;  %v15519_v53 = vld [vmem:[#allocation11 + $0x12a4] ss:$16 sps:$4 sm:$0xff]  }
 0xbf1   : > { %9701 = vmatprep.subr.bf16.mxu0 %v15453_v52  ;;  %v15514_v52 = vld [vmem:[#allocation11 + $0x1288] ss:$16 sps:$4 sm:$0xff]  }
 0xbf2   : > { %9864 = vmatpush1.bf16.msra.mxu1 %v15448_v12  ;;  %v15522_v12 = vld [vmem:[#allocation11 + $0x12ac] ss:$16 sps:$4 sm:$0xff]  }
 0xbf3   : > { %9865 = vmatprep.subr.bf16.mxu1 %v15456_v23  ;;  %v15517_v23 = vld [vmem:[#allocation11 + $0x12a0] ss:$16 sps:$4 sm:$0xff]  }
 0xbf4   : > { %9702 = vmatpush1.bf16.msra.mxu0 %v15451_v24  ;;  %v15525_v24 = vld [vmem:[#allocation11 + $0x12c4] ss:$16 sps:$4 sm:$0xff]  }
 0xbf5   : > { %9703 = vmatprep.subr.bf16.mxu0 %v15459_v10  ;;  %v15520_v10 = vld [vmem:[#allocation11 + $0x12a8] ss:$16 sps:$4 sm:$0xff]  }
 0xbf6   : > { %9866 = vmatpush1.bf16.msra.mxu1 %v15454_v46  ;;  %v15528_v46 = vld [vmem:[#allocation11 + $0x12cc] ss:$16 sps:$4 sm:$0xff]  }
 0xbf7   : > { %9867 = vmatprep.subr.bf16.mxu1 %v15462_v17  ;;  %v15523_v17 = vld [vmem:[#allocation11 + $0x12c0] ss:$16 sps:$4 sm:$0xff]  }
 0xbf8   : > { %9704 = vmatpush1.bf16.msra.mxu0 %v15457_v20  ;;  %v15531_v20 = vld [vmem:[#allocation11 + $0x12e4] ss:$16 sps:$4 sm:$0xff]  }
 0xbf9   : > { %9705 = vmatprep.subr.bf16.mxu0 %v15465_v32  ;;  %v15526_v32 = vld [vmem:[#allocation11 + $0x12c8] ss:$16 sps:$4 sm:$0xff]  }
 0xbfa   : > { %9868 = vmatpush1.bf16.msra.mxu1 %v15460_v27  ;;  %v15534_v27 = vld [vmem:[#allocation11 + $0x12ec] ss:$16 sps:$4 sm:$0xff]  }
 0xbfb   : > { %9869 = vmatprep.subr.bf16.mxu1 %v15468_v25  ;;  %v15529_v25 = vld [vmem:[#allocation11 + $0x12e0] ss:$16 sps:$4 sm:$0xff]  }
 0xbfc   : > { %9706 = vmatpush1.bf16.msra.mxu0 %v15463_v42  ;;  %v15537_v42 = vld [vmem:[#allocation11 + $0x1304] ss:$16 sps:$4 sm:$0xff]  }
 0xbfd   : > { %9707 = vmatprep.subr.bf16.mxu0 %v15471_v50  ;;  %v15532_v50 = vld [vmem:[#allocation11 + $0x12e8] ss:$16 sps:$4 sm:$0xff]  }
 0xbfe   : > { %9870 = vmatpush1.bf16.msra.mxu1 %v15466_v1  ;;  %v15540_v1 = vld [vmem:[#allocation11 + $0x130c] ss:$16 sps:$4 sm:$0xff]  }
 0xbff   : > { %9871 = vmatprep.subr.bf16.mxu1 %v15474_v18  ;;  %v15535_v18 = vld [vmem:[#allocation11 + $0x1300] ss:$16 sps:$4 sm:$0xff]  }
 0xc00   : > { %9708 = vmatpush1.bf16.msra.mxu0 %v15469_v6  ;;  %v15543_v6 = vld [vmem:[#allocation11 + $0x1324] ss:$16 sps:$4 sm:$0xff]  }
 0xc01   : > { %9709 = vmatprep.subr.bf16.mxu0 %v15477_v49  ;;  %v15538_v49 = vld [vmem:[#allocation11 + $0x1308] ss:$16 sps:$4 sm:$0xff]  }
 0xc02   : > { %9872 = vmatpush1.bf16.msra.mxu1 %v15472_v7  ;;  %v15546_v7 = vld [vmem:[#allocation11 + $0x132c] ss:$16 sps:$4 sm:$0xff]  }
 0xc03   : > { %9873 = vmatprep.subr.bf16.mxu1 %v15480_v34  ;;  %v15541_v34 = vld [vmem:[#allocation11 + $0x1320] ss:$16 sps:$4 sm:$0xff]  }
 0xc04   : > { %9710 = vmatpush1.bf16.msra.mxu0 %v15475_v9  ;;  %v15549_v9 = vld [vmem:[#allocation11 + $0x1344] ss:$16 sps:$4 sm:$0xff]  }
 0xc05   : > { %9711 = vmatprep.subr.bf16.mxu0 %v15483_v38  ;;  %v15544_v38 = vld [vmem:[#allocation11 + $0x1328] ss:$16 sps:$4 sm:$0xff]  }
 0xc06   : > { %9874 = vmatpush1.bf16.msra.mxu1 %v15478_v41  ;;  %v15552_v41 = vld [vmem:[#allocation11 + $0x134c] ss:$16 sps:$4 sm:$0xff]  }
 0xc07   : > { %9875 = vmatprep.subr.bf16.mxu1 %v15486_v22  ;;  %v15547_v22 = vld [vmem:[#allocation11 + $0x1340] ss:$16 sps:$4 sm:$0xff]  }
 0xc08   : > { %9712 = vmatpush1.bf16.msra.mxu0 %v15481_v45  ;;  %v15555_v45 = vld [vmem:[#allocation11 + $0x1364] ss:$16 sps:$4 sm:$0xff]  }
 0xc09   : > { %9722 = vmatprep.subr.bf16.mxu0 %v15489_v39  ;;  %v15550_v39 = vld [vmem:[#allocation11 + $0x1348] ss:$16 sps:$4 sm:$0xff]  }
 0xc0a   : > { %9876 = vmatpush1.bf16.msra.mxu1 %v15484_v62  ;;  %v15558_v62 = vld [vmem:[#allocation11 + $0x136c] ss:$16 sps:$4 sm:$0xff]  }
 0xc0b   : > { %9714 = vmatmul.mubr.bf16.vlgmr.msra.gmra.mrb[40].mxu0 %v8385_v43  ;;  %9886 = vmatprep.subr.bf16.mxu1 %v15492_v28  ;;  %v15553_v28 = vld [vmem:[#allocation11 + $0x1360] ss:$16 sps:$4 sm:$0xff]  }
 0xc0c   : > { %9723 = vmatpush1.bf16.msra.mxu0 %v15487_v36  ;;  %9754 = vmatprep.mubr.bf16.mxu0 %v8388_v59  ;;  %v15561_v36 = vld [vmem:[#allocation11 + $0x1384] ss:$16 sps:$4 sm:$0xff]  }
 0xc0d   : > { %9878 = vmatmul.mubr.bf16.vlgmr.msra.gmra.mrb[40].mxu1 %v8385_v43  ;;  %9724 = vmatprep.subr.bf16.mxu0 %v15495_v60  ;;  %v15556_v43 = vld [vmem:[#allocation11 + $0x1368] ss:$16 sps:$4 sm:$0xff]   ;;  %v15564_v60 = vld [vmem:[#allocation11 + $0x138c] ss:$16 sps:$4 sm:$0xff]  }
 0xc0e   : > { %9887 = vmatpush1.bf16.msra.mxu1 %v15490_v16  ;;  %9918 = vmatprep.mubr.bf16.mxu1 %v8388_v59  ;;  %v15559_v59 = vld [vmem:[#allocation11 + $0x1380] ss:$16 sps:$4 sm:$0xff]   ;;  %v15567_v16 = vld [vmem:[#allocation11 + $0x13a4] ss:$16 sps:$4 sm:$0xff]  }
 0xc0f   : > { %9888 = vmatprep.subr.bf16.mxu1 %v15498_v21  ;;  %v15562_v21 = vld [vmem:[#allocation11 + $0x1388] ss:$16 sps:$4 sm:$0xff]  }
 0xc10   : > { %9725 = vmatpush1.bf16.msra.mxu0 %v15493_v57  ;;  %v15570_v57 = vld [vmem:[#allocation11 + $0x13ac] ss:$16 sps:$4 sm:$0xff]  }
 0xc11   : > { %9726 = vmatprep.subr.bf16.mxu0 %v15501_v14  ;;  %v15565_v14 = vld [vmem:[#allocation11 + $0x13a0] ss:$16 sps:$4 sm:$0xff]  }
 0xc12   : > { %9889 = vmatpush1.bf16.msra.mxu1 %v15496_v63  ;;  %v15573_v63 = vld [vmem:[#allocation11 + $0x13c4] ss:$16 sps:$4 sm:$0xff]  }
 0xc13   : > { %9890 = vmatprep.subr.bf16.mxu1 %v15504_v48  ;;  %v15568_v48 = vld [vmem:[#allocation11 + $0x13a8] ss:$16 sps:$4 sm:$0xff]  }
 0xc14   : > { %9727 = vmatpush1.bf16.msra.mxu0 %v15499_v30  ;;  %v15576_v30 = vld [vmem:[#allocation11 + $0x13cc] ss:$16 sps:$4 sm:$0xff]  }
 0xc15   : > { %9728 = vmatprep.subr.bf16.mxu0 %v15507_v61  ;;  %v15571_v61 = vld [vmem:[#allocation11 + $0x13c0] ss:$16 sps:$4 sm:$0xff]  }
 0xc16   : > { %9891 = vmatpush1.bf16.msra.mxu1 %v15502_v51  ;;  %v15579_v51 = vld [vmem:[#allocation11 + $0x13e4] ss:$16 sps:$4 sm:$0xff]  }
 0xc17   : > { %9892 = vmatprep.subr.bf16.mxu1 %v15510_v44  ;;  %v15574_v44 = vld [vmem:[#allocation11 + $0x13c8] ss:$16 sps:$4 sm:$0xff]  }
 0xc18   : > { %9729 = vmatpush1.bf16.msra.mxu0 %v15505_v40  ;;  %v15582_v40 = vld [vmem:[#allocation11 + $0x13ec] ss:$16 sps:$4 sm:$0xff]  }
 0xc19   : > { %9730 = vmatprep.subr.bf16.mxu0 %v15513_v4  ;;  %v15577_v4 = vld [vmem:[#allocation11 + $0x13e0] ss:$16 sps:$4 sm:$0xff]  }
 0xc1a   : > { %9893 = vmatpush1.bf16.msra.mxu1 %v15508_v37  ;;  %v15585_v37 = vld [vmem:[#allocation11 + $0x1404] ss:$16 sps:$4 sm:$0xff]  }
 0xc1b   : > { %9894 = vmatprep.subr.bf16.mxu1 %v15516_v26  ;;  %v15580_v26 = vld [vmem:[#allocation11 + $0x13e8] ss:$16 sps:$4 sm:$0xff]  }
 0xc1c   : > { %9731 = vmatpush1.bf16.msra.mxu0 %v15511_v54  ;;  %v15588_v54 = vld [vmem:[#allocation11 + $0x140c] ss:$16 sps:$4 sm:$0xff]  }
 0xc1d   : > { %9732 = vmatprep.subr.bf16.mxu0 %v15519_v53  ;;  %v15583_v53 = vld [vmem:[#allocation11 + $0x1400] ss:$16 sps:$4 sm:$0xff]  }
 0xc1e   : > { %9895 = vmatpush1.bf16.msra.mxu1 %v15514_v52  ;;  %v8387_v52 = vrot.slane %v19667_v47, 1  ;;  %v15600_v47 = vld [vmem:[#allocation11 + $0x144c] ss:$16 sps:$4 sm:$0xff]  }
 0xc1f   : > { %9896 = vmatprep.subr.bf16.mxu1 %v15522_v12  ;;  %v15591_v12 = vld [vmem:[#allocation11 + $0x1424] ss:$16 sps:$4 sm:$0xff]  }
 0xc20   : > { %9733 = vmatpush1.bf16.msra.mxu0 %v15517_v23  ;;  %v8390_v23 = vrot.slane %v19677_v19, 1  ;;  %v15598_v19 = vld [vmem:[#allocation11 + $0x1448] ss:$16 sps:$4 sm:$0xff]  }
 0xc21   : > { %9734 = vmatprep.subr.bf16.mxu0 %v15525_v24  ;;  %v15586_v24 = vld [vmem:[#allocation11 + $0x1408] ss:$16 sps:$4 sm:$0xff]  }
 0xc22   : > { %9897 = vmatpush1.bf16.msra.mxu1 %v15520_v10  ;;  %v15594_v10 = vld [vmem:[#allocation11 + $0x142c] ss:$16 sps:$4 sm:$0xff]  }
 0xc23   : > { %9898 = vmatprep.subr.bf16.mxu1 %v15528_v46  ;;  %v15589_v46 = vld [vmem:[#allocation11 + $0x1420] ss:$16 sps:$4 sm:$0xff]  }
 0xc24   : > { %9735 = vmatpush1.bf16.msra.mxu0 %v15523_v17  ;;  %v15597_v17 = vld [vmem:[#allocation11 + $0x1444] ss:$16 sps:$4 sm:$0xff]  }
 0xc25   : > { %9736 = vmatprep.subr.bf16.mxu0 %v15531_v20  ;;  %v15592_v20 = vld [vmem:[#allocation11 + $0x1428] ss:$16 sps:$4 sm:$0xff]  }
 0xc26   : > { %9899 = vmatpush1.bf16.msra.mxu1 %v15526_v32  ;;  %v15595_v32 = vld [vmem:[#allocation11 + $0x1440] ss:$16 sps:$4 sm:$0xff]  }
 0xc27   : > { %9900 = vmatprep.subr.bf16.mxu1 %v15534_v27  ;;  %v15603_v27 = vld [vmem:[#allocation11 + $0x1464] ss:$16 sps:$4 sm:$0xff]  }
 0xc28   : > { %9737 = vmatpush1.bf16.msra.mxu0 %v15529_v25  ;;  %v15606_v25 = vld [vmem:[#allocation11 + $0x146c] ss:$16 sps:$4 sm:$0xff]  }
 0xc29   : > { %9738 = vmatprep.subr.bf16.mxu0 %v15537_v42  ;;  %v15601_v42 = vld [vmem:[#allocation11 + $0x1460] ss:$16 sps:$4 sm:$0xff]  }
 0xc2a   : > { %9901 = vmatpush1.bf16.msra.mxu1 %v15532_v50  ;;  %v15609_v50 = vld [vmem:[#allocation11 + $0x1484] ss:$16 sps:$4 sm:$0xff]  }
 0xc2b   : > { %9902 = vmatprep.subr.bf16.mxu1 %v15540_v1  ;;  %v15604_v1 = vld [vmem:[#allocation11 + $0x1468] ss:$16 sps:$4 sm:$0xff]  }
 0xc2c   : > { %9739 = vmatpush1.bf16.msra.mxu0 %v15535_v18  ;;  %v15612_v18 = vld [vmem:[#allocation11 + $0x148c] ss:$16 sps:$4 sm:$0xff]  }
 0xc2d   : > { %9740 = vmatprep.subr.bf16.mxu0 %v15543_v6  ;;  %v15607_v6 = vld [vmem:[#allocation11 + $0x1480] ss:$16 sps:$4 sm:$0xff]  }
 0xc2e   : > { %9903 = vmatpush1.bf16.msra.mxu1 %v15538_v49  ;;  %v15615_v49 = vld [vmem:[#allocation11 + $0x14a4] ss:$16 sps:$4 sm:$0xff]  }
 0xc2f   : > { %9904 = vmatprep.subr.bf16.mxu1 %v15546_v7  ;;  %v15610_v7 = vld [vmem:[#allocation11 + $0x1488] ss:$16 sps:$4 sm:$0xff]  }
 0xc30   : > { %9741 = vmatpush1.bf16.msra.mxu0 %v15541_v34  ;;  %v15618_v34 = vld [vmem:[#allocation11 + $0x14ac] ss:$16 sps:$4 sm:$0xff]  }
 0xc31   : > { %9742 = vmatprep.subr.bf16.mxu0 %v15549_v9  ;;  %v15613_v9 = vld [vmem:[#allocation11 + $0x14a0] ss:$16 sps:$4 sm:$0xff]  }
 0xc32   : > { %9905 = vmatpush1.bf16.msra.mxu1 %v15544_v38  ;;  %v15621_v38 = vld [vmem:[#allocation11 + $0x14c4] ss:$16 sps:$4 sm:$0xff]  }
 0xc33   : > { %9906 = vmatprep.subr.bf16.mxu1 %v15552_v41  ;;  %v15616_v41 = vld [vmem:[#allocation11 + $0x14a8] ss:$16 sps:$4 sm:$0xff]  }
 0xc34   : > { %9743 = vmatpush1.bf16.msra.mxu0 %v15547_v22  ;;  %v15624_v22 = vld [vmem:[#allocation11 + $0x14cc] ss:$16 sps:$4 sm:$0xff]  }
 0xc35   : > { %9744 = vmatprep.subr.bf16.mxu0 %v15555_v45  ;;  %v15619_v45 = vld [vmem:[#allocation11 + $0x14c0] ss:$16 sps:$4 sm:$0xff]  }
 0xc36   : > { %9907 = vmatpush1.bf16.msra.mxu1 %v15550_v39  ;;  %v15627_v39 = vld [vmem:[#allocation11 + $0x14e4] ss:$16 sps:$4 sm:$0xff]  }
 0xc37   : > { %9908 = vmatprep.subr.bf16.mxu1 %v15558_v62  ;;  %v15622_v62 = vld [vmem:[#allocation11 + $0x14c8] ss:$16 sps:$4 sm:$0xff]  }
 0xc38   : > { %9745 = vmatpush1.bf16.msra.mxu0 %v15553_v28  ;;  %v15630_v28 = vld [vmem:[#allocation11 + $0x14ec] ss:$16 sps:$4 sm:$0xff]  }
 0xc39   : > { %9746 = vmatprep.subr.bf16.mxu0 %v15561_v36  ;;  %v15625_v36 = vld [vmem:[#allocation11 + $0x14e0] ss:$16 sps:$4 sm:$0xff]  }
 0xc3a   : > { %9909 = vmatpush1.bf16.msra.mxu1 %v15556_v43  ;;  %v15633_v43 = vld [vmem:[#allocation11 + $0x1504] ss:$16 sps:$4 sm:$0xff]  }
 0xc3b   : > { %9910 = vmatprep.subr.bf16.mxu1 %v15564_v60  ;;  %v15628_v60 = vld [vmem:[#allocation11 + $0x14e8] ss:$16 sps:$4 sm:$0xff]  }
 0xc3c   : > { %9747 = vmatpush1.bf16.msra.mxu0 %v15559_v59  ;;  %v15636_v59 = vld [vmem:[#allocation11 + $0x150c] ss:$16 sps:$4 sm:$0xff]  }
 0xc3d   : > { %9748 = vmatprep.subr.bf16.mxu0 %v15567_v16  ;;  %v15631_v16 = vld [vmem:[#allocation11 + $0x1500] ss:$16 sps:$4 sm:$0xff]  }
 0xc3e   : > { %9911 = vmatpush1.bf16.msra.mxu1 %v15562_v21  ;;  %v15639_v21 = vld [vmem:[#allocation11 + $0x1524] ss:$16 sps:$4 sm:$0xff]  }
 0xc3f   : > { %9912 = vmatprep.subr.bf16.mxu1 %v15570_v57  ;;  %v15634_v57 = vld [vmem:[#allocation11 + $0x1508] ss:$16 sps:$4 sm:$0xff]  }
 0xc40   : > { %9749 = vmatpush1.bf16.msra.mxu0 %v15565_v14  ;;  %v15642_v14 = vld [vmem:[#allocation11 + $0x152c] ss:$16 sps:$4 sm:$0xff]  }
 0xc41   : > { %9750 = vmatprep.subr.bf16.mxu0 %v15573_v63  ;;  %v15637_v63 = vld [vmem:[#allocation11 + $0x1520] ss:$16 sps:$4 sm:$0xff]  }
 0xc42   : > { %9913 = vmatpush1.bf16.msra.mxu1 %v15568_v48  ;;  %v15645_v48 = vld [vmem:[#allocation11 + $0x1544] ss:$16 sps:$4 sm:$0xff]  }
 0xc43   : > { %9914 = vmatprep.subr.bf16.mxu1 %v15576_v30  ;;  %v15640_v30 = vld [vmem:[#allocation11 + $0x1528] ss:$16 sps:$4 sm:$0xff]  }
 0xc44   : > { %9751 = vmatpush1.bf16.msra.mxu0 %v15571_v61  ;;  %v15648_v61 = vld [vmem:[#allocation11 + $0x154c] ss:$16 sps:$4 sm:$0xff]  }
 0xc45   : > { %9752 = vmatprep.subr.bf16.mxu0 %v15579_v51  ;;  %v15643_v51 = vld [vmem:[#allocation11 + $0x1540] ss:$16 sps:$4 sm:$0xff]  }
 0xc46   : > { %9915 = vmatpush1.bf16.msra.mxu1 %v15574_v44  ;;  %v15651_v44 = vld [vmem:[#allocation11 + $0x1564] ss:$16 sps:$4 sm:$0xff]  }
 0xc47   : > { %9916 = vmatprep.subr.bf16.mxu1 %v15582_v40  ;;  %v15646_v40 = vld [vmem:[#allocation11 + $0x1548] ss:$16 sps:$4 sm:$0xff]  }
 0xc48   : > { %9753 = vmatpush1.bf16.msra.mxu0 %v15577_v4  ;;  %v15654_v4 = vld [vmem:[#allocation11 + $0x156c] ss:$16 sps:$4 sm:$0xff]  }
 0xc49   : > { %9763 = vmatprep.subr.bf16.mxu0 %v15585_v37  ;;  %v15649_v37 = vld [vmem:[#allocation11 + $0x1560] ss:$16 sps:$4 sm:$0xff]  }
 0xc4a   : > { %9917 = vmatpush1.bf16.msra.mxu1 %v15580_v26  ;;  %v15657_v26 = vld [vmem:[#allocation11 + $0x1584] ss:$16 sps:$4 sm:$0xff]  }
 0xc4b   : > { %9755 = vmatmul.mubr.bf16.vlgmr.msra.gmra.mrb[40].mxu0 %v8387_v52  ;;  %9927 = vmatprep.subr.bf16.mxu1 %v15588_v54  ;;  %v15652_v54 = vld [vmem:[#allocation11 + $0x1568] ss:$16 sps:$4 sm:$0xff]  }
 0xc4c   : > { %9764 = vmatpush1.bf16.msra.mxu0 %v15583_v53  ;;  %9795 = vmatprep.mubr.bf16.mxu0 %v8390_v23  ;;  %v15660_v53 = vld [vmem:[#allocation11 + $0x158c] ss:$16 sps:$4 sm:$0xff]  }
 0xc4d   : > { %9919 = vmatmul.mubr.bf16.vlgmr.msra.gmra.mrb[40].mxu1 %v8387_v52  ;;  %9765 = vmatprep.subr.bf16.mxu0 %v15591_v12  ;;  %v15655_v52 = vld [vmem:[#allocation11 + $0x1580] ss:$16 sps:$4 sm:$0xff]   ;;  %v15663_v12 = vld [vmem:[#allocation11 + $0x15a4] ss:$16 sps:$4 sm:$0xff]  }
 0xc4e   : > { %9928 = vmatpush1.bf16.msra.mxu1 %v15586_v24  ;;  %9959 = vmatprep.mubr.bf16.mxu1 %v8390_v23  ;;  %v15658_v23 = vld [vmem:[#allocation11 + $0x1588] ss:$16 sps:$4 sm:$0xff]   ;;  %v15666_v24 = vld [vmem:[#allocation11 + $0x15ac] ss:$16 sps:$4 sm:$0xff]  }
 0xc4f   : > { %9929 = vmatprep.subr.bf16.mxu1 %v15594_v10  ;;  %v15661_v10 = vld [vmem:[#allocation11 + $0x15a0] ss:$16 sps:$4 sm:$0xff]  }
 0xc50   : > { %9766 = vmatpush1.bf16.msra.mxu0 %v15589_v46  ;;  %v15669_v46 = vld [vmem:[#allocation11 + $0x15c4] ss:$16 sps:$4 sm:$0xff]  }
 0xc51   : > { %9767 = vmatprep.subr.bf16.mxu0 %v15597_v17  ;;  %v15664_v17 = vld [vmem:[#allocation11 + $0x15a8] ss:$16 sps:$4 sm:$0xff]  }
 0xc52   : > { %9930 = vmatpush1.bf16.msra.mxu1 %v15592_v20  ;;  %v15672_v20 = vld [vmem:[#allocation11 + $0x15cc] ss:$16 sps:$4 sm:$0xff]  }
 0xc53   : > { %9931 = vmatprep.subr.bf16.mxu1 %v15600_v47  ;;  %v15667_v47 = vld [vmem:[#allocation11 + $0x15c0] ss:$16 sps:$4 sm:$0xff]  }
 0xc54   : > { %9768 = vmatpush1.bf16.msra.mxu0 %v15595_v32  ;;  %v15675_v32 = vld [vmem:[#allocation11 + $0x15e4] ss:$16 sps:$4 sm:$0xff]  }
 0xc55   : > { %9769 = vmatprep.subr.bf16.mxu0 %v15603_v27  ;;  %v15670_v27 = vld [vmem:[#allocation11 + $0x15c8] ss:$16 sps:$4 sm:$0xff]  }
 0xc56   : > { %9932 = vmatpush1.bf16.msra.mxu1 %v15598_v19  ;;  %v15678_v19 = vld [vmem:[#allocation11 + $0x15ec] ss:$16 sps:$4 sm:$0xff]  }
 0xc57   : > { %9933 = vmatprep.subr.bf16.mxu1 %v15606_v25  ;;  %v15673_v25 = vld [vmem:[#allocation11 + $0x15e0] ss:$16 sps:$4 sm:$0xff]  }
 0xc58   : > { %9770 = vmatpush1.bf16.msra.mxu0 %v15601_v42  ;;  %v15681_v42 = vld [vmem:[#allocation11 + $0x1604] ss:$16 sps:$4 sm:$0xff]  }
 0xc59   : > { %9771 = vmatprep.subr.bf16.mxu0 %v15609_v50  ;;  %v15676_v50 = vld [vmem:[#allocation11 + $0x15e8] ss:$16 sps:$4 sm:$0xff]  }
 0xc5a   : > { %9934 = vmatpush1.bf16.msra.mxu1 %v15604_v1  ;;  %v15684_v1 = vld [vmem:[#allocation11 + $0x160c] ss:$16 sps:$4 sm:$0xff]  }
 0xc5b   : > { %9935 = vmatprep.subr.bf16.mxu1 %v15612_v18  ;;  %v15679_v18 = vld [vmem:[#allocation11 + $0x1600] ss:$16 sps:$4 sm:$0xff]  }
 0xc5c   : > { %9772 = vmatpush1.bf16.msra.mxu0 %v15607_v6  ;;  %v8389_v6 = vrot.slane %v19679_v35, 1  ;;  %v15696_v35 = vld [vmem:[#allocation11 + $0x164c] ss:$16 sps:$4 sm:$0xff]  }
 0xc5d   : > { %9773 = vmatprep.subr.bf16.mxu0 %v15615_v49  ;;  %v15687_v49 = vld [vmem:[#allocation11 + $0x1624] ss:$16 sps:$4 sm:$0xff]  }
 0xc5e   : > { %9936 = vmatpush1.bf16.msra.mxu1 %v15610_v7  ;;  %v8392_v7 = vrot.slane %v19688_v8, 1  ;;  %v15694_v8 = vld [vmem:[#allocation11 + $0x1648] ss:$16 sps:$4 sm:$0xff]  }
 0xc5f   : > { %9937 = vmatprep.subr.bf16.mxu1 %v15618_v34  ;;  %v15682_v34 = vld [vmem:[#allocation11 + $0x1608] ss:$16 sps:$4 sm:$0xff]  }
 0xc60   : > { %9774 = vmatpush1.bf16.msra.mxu0 %v15613_v9  ;;  %v15690_v9 = vld [vmem:[#allocation11 + $0x162c] ss:$16 sps:$4 sm:$0xff]  }
 0xc61   : > { %9775 = vmatprep.subr.bf16.mxu0 %v15621_v38  ;;  %v15685_v38 = vld [vmem:[#allocation11 + $0x1620] ss:$16 sps:$4 sm:$0xff]  }
 0xc62   : > { %9938 = vmatpush1.bf16.msra.mxu1 %v15616_v41  ;;  %v15693_v41 = vld [vmem:[#allocation11 + $0x1644] ss:$16 sps:$4 sm:$0xff]  }
 0xc63   : > { %9939 = vmatprep.subr.bf16.mxu1 %v15624_v22  ;;  %v15688_v22 = vld [vmem:[#allocation11 + $0x1628] ss:$16 sps:$4 sm:$0xff]  }
 0xc64   : > { %9776 = vmatpush1.bf16.msra.mxu0 %v15619_v45  ;;  %v15691_v45 = vld [vmem:[#allocation11 + $0x1640] ss:$16 sps:$4 sm:$0xff]  }
 0xc65   : > { %9777 = vmatprep.subr.bf16.mxu0 %v15627_v39  ;;  %v15699_v39 = vld [vmem:[#allocation11 + $0x1664] ss:$16 sps:$4 sm:$0xff]  }
 0xc66   : > { %9940 = vmatpush1.bf16.msra.mxu1 %v15622_v62  ;;  %v15702_v62 = vld [vmem:[#allocation11 + $0x166c] ss:$16 sps:$4 sm:$0xff]  }
 0xc67   : > { %9941 = vmatprep.subr.bf16.mxu1 %v15630_v28  ;;  %v15697_v28 = vld [vmem:[#allocation11 + $0x1660] ss:$16 sps:$4 sm:$0xff]  }
 0xc68   : > { %9778 = vmatpush1.bf16.msra.mxu0 %v15625_v36  ;;  %v15705_v36 = vld [vmem:[#allocation11 + $0x1684] ss:$16 sps:$4 sm:$0xff]  }
 0xc69   : > { %9779 = vmatprep.subr.bf16.mxu0 %v15633_v43  ;;  %v15700_v43 = vld [vmem:[#allocation11 + $0x1668] ss:$16 sps:$4 sm:$0xff]  }
 0xc6a   : > { %9942 = vmatpush1.bf16.msra.mxu1 %v15628_v60  ;;  %v15708_v60 = vld [vmem:[#allocation11 + $0x168c] ss:$16 sps:$4 sm:$0xff]  }
 0xc6b   : > { %9943 = vmatprep.subr.bf16.mxu1 %v15636_v59  ;;  %v15703_v59 = vld [vmem:[#allocation11 + $0x1680] ss:$16 sps:$4 sm:$0xff]  }
 0xc6c   : > { %9780 = vmatpush1.bf16.msra.mxu0 %v15631_v16  ;;  %v15711_v16 = vld [vmem:[#allocation11 + $0x16a4] ss:$16 sps:$4 sm:$0xff]  }
 0xc6d   : > { %9781 = vmatprep.subr.bf16.mxu0 %v15639_v21  ;;  %v15706_v21 = vld [vmem:[#allocation11 + $0x1688] ss:$16 sps:$4 sm:$0xff]  }
 0xc6e   : > { %9944 = vmatpush1.bf16.msra.mxu1 %v15634_v57  ;;  %v15714_v57 = vld [vmem:[#allocation11 + $0x16ac] ss:$16 sps:$4 sm:$0xff]  }
 0xc6f   : > { %9945 = vmatprep.subr.bf16.mxu1 %v15642_v14  ;;  %v15709_v14 = vld [vmem:[#allocation11 + $0x16a0] ss:$16 sps:$4 sm:$0xff]  }
 0xc70   : > { %9782 = vmatpush1.bf16.msra.mxu0 %v15637_v63  ;;  %v15717_v63 = vld [vmem:[#allocation11 + $0x16c4] ss:$16 sps:$4 sm:$0xff]  }
 0xc71   : > { %9783 = vmatprep.subr.bf16.mxu0 %v15645_v48 }
 0xc72   : > { %9946 = vmatpush1.bf16.msra.mxu1 %v15640_v30  ;;  %v15712_v30 = vld [vmem:[#allocation11 + $0x16a8] ss:$16 sps:$4 sm:$0xff]  }
 0xc73   : > { %9947 = vmatprep.subr.bf16.mxu1 %v15648_v61 }
 0xc74   : > { %9784 = vmatpush1.bf16.msra.mxu0 %v15643_v51  ;;  %v15720_v51 = vld [vmem:[#allocation11 + $0x16cc] ss:$16 sps:$4 sm:$0xff]  }
 0xc75   : > { %9785 = vmatprep.subr.bf16.mxu0 %v15651_v44 }
 0xc76   : > { %9948 = vmatpush1.bf16.msra.mxu1 %v15646_v40 }
 0xc77   : > { %9949 = vmatprep.subr.bf16.mxu1 %v15654_v4 }
 0xc78   : > { %9786 = vmatpush1.bf16.msra.mxu0 %v15649_v37  ;;  %v15715_v37 = vld [vmem:[#allocation11 + $0x16c0] ss:$16 sps:$4 sm:$0xff]  }
 0xc79   : > { %9787 = vmatprep.subr.bf16.mxu0 %v15657_v26 }
 0xc7a   : > { %9950 = vmatpush1.bf16.msra.mxu1 %v15652_v54 }
 0xc7b   : > { %9951 = vmatprep.subr.bf16.mxu1 %v15660_v53  ;;  %v15723_v53 = vld [vmem:[#allocation11 + $0x16e4] ss:$16 sps:$4 sm:$0xff]  }
 0xc7c   : > { %9788 = vmatpush1.bf16.msra.mxu0 %v15655_v52 }
 0xc7d   : > { %9789 = vmatprep.subr.bf16.mxu0 %v15663_v12 }
 0xc7e   : > { %9952 = vmatpush1.bf16.msra.mxu1 %v15658_v23 }
 0xc7f   : > { %9953 = vmatprep.subr.bf16.mxu1 %v15666_v24  ;;  %v15718_v24 = vld [vmem:[#allocation11 + $0x16c8] ss:$16 sps:$4 sm:$0xff]  }
 0xc80   : > { %9790 = vmatpush1.bf16.msra.mxu0 %v15661_v10 }
 0xc81   : > { %9791 = vmatprep.subr.bf16.mxu0 %v15669_v46  ;;  %v15726_v46 = vld [vmem:[#allocation11 + $0x16ec] ss:$16 sps:$4 sm:$0xff]  }
 0xc82   : > { %9954 = vmatpush1.bf16.msra.mxu1 %v15664_v17  ;;  %v6190_v17 = vrot.slane %v6183_v13, %v19735_v55  ;;  %v15730_v13 = vld [vmem:[#allocation11 + $0x1708] ss:$16 sps:$4 sm:$0xff]  }
 0xc83   : > { %9955 = vmatprep.subr.bf16.mxu1 %v15672_v20 }
 0xc84   : > { %9792 = vmatpush1.bf16.msra.mxu0 %v15667_v47  ;;  %v15721_v47 = vld [vmem:[#allocation11 + $0x16e0] ss:$16 sps:$4 sm:$0xff]  }
 0xc85   : > { %9793 = vmatprep.subr.bf16.mxu0 %v15675_v32  ;;  %v4290_v32 = vld [vmem:[#allocation13] sm:$0xf] }
 0xc86   : > { %9956 = vmatpush1.bf16.msra.mxu1 %v15670_v27  ;;  %v15729_v27 = vld [vmem:[#allocation11 + $0x1704] ss:$16 sps:$4 sm:$0xff]  }
 0xc87   : > { %9957 = vmatprep.subr.bf16.mxu1 %v15678_v19 }
 0xc88   : > { %9794 = vmatpush1.bf16.msra.mxu0 %v15673_v25  ;;  %v15724_v25 = vld [vmem:[#allocation11 + $0x16e8] ss:$16 sps:$4 sm:$0xff]  }
 0xc89   : > { %9804 = vmatprep.subr.bf16.mxu0 %v15681_v42  ;;  %v15732_v42 = vld [vmem:[#allocation11 + $0x170c] ss:$16 sps:$4 sm:$0xff]  }
 0xc8a   : > { %9958 = vmatpush1.bf16.msra.mxu1 %v15676_v50  ;;  %v6192_v50 = vadd.f32 %v6190_v17, %v4290_v32  ;;  %v15798_v17 = vld [vmem:[#allocation11 + $0x186c] ss:$16 sps:$4 sm:$0xff]   ;;  %v15796_v32 = vld [vmem:[#allocation11 + $0x1868] ss:$16 sps:$4 sm:$0xff]  }
 0xc8b   : > { %9796 = vmatmul.mubr.bf16.vlgmr.msra.gmra.mrb[40].mxu0 %v8389_v6  ;;  %9968 = vmatprep.subr.bf16.mxu1 %v15684_v1 }
 0xc8c   : > { %9805 = vmatpush1.bf16.msra.mxu0 %v15679_v18  ;;  %9836 = vmatprep.mubr.bf16.mxu0 %v8392_v7  ;;  %v15727_v18 = vld [vmem:[#allocation11 + $0x1700] ss:$16 sps:$4 sm:$0xff]  }
 0xc8d   : > { %9960 = vmatmul.mubr.bf16.vlgmr.msra.gmra.mrb[40].mxu1 %v8389_v6  ;;  %9806 = vmatprep.subr.bf16.mxu0 %v15687_v49  ;;  %v15738_v6 = vld [vmem:[#allocation11 + $0x172c] ss:$16 sps:$4 sm:$0xff]   ;;  %v15733_v49 = vld [vmem:[#allocation11 + $0x1720] ss:$16 sps:$4 sm:$0xff]  }
 0xc8e   : > { %9969 = vmatpush1.bf16.msra.mxu1 %v15682_v34  ;;  %10000 = vmatprep.mubr.bf16.mxu1 %v8392_v7  ;;  %v15741_v7 = vld [vmem:[#allocation11 + $0x1744] ss:$16 sps:$4 sm:$0xff]   ;;  %v15736_v34 = vld [vmem:[#allocation11 + $0x1728] ss:$16 sps:$4 sm:$0xff]  }
 0xc8f   : > { %9970 = vmatprep.subr.bf16.mxu1 %v15690_v9  ;;  %v15744_v9 = vld [vmem:[#allocation11 + $0x174c] ss:$16 sps:$4 sm:$0xff]  }
 0xc90   : > { %9807 = vmatpush1.bf16.msra.mxu0 %v15685_v38  ;;  %v15739_v38 = vld [vmem:[#allocation11 + $0x1740] ss:$16 sps:$4 sm:$0xff]  }
 0xc91   : > { %9808 = vmatprep.subr.bf16.mxu0 %v15693_v41  ;;  %v15747_v41 = vld [vmem:[#allocation11 + $0x1764] ss:$16 sps:$4 sm:$0xff]  }
 0xc92   : > { %9971 = vmatpush1.bf16.msra.mxu1 %v15688_v22  ;;  %v15742_v22 = vld [vmem:[#allocation11 + $0x1748] ss:$16 sps:$4 sm:$0xff]  }
 0xc93   : > { %9972 = vmatprep.subr.bf16.mxu1 %v15696_v35  ;;  %v15750_v35 = vld [vmem:[#allocation11 + $0x176c] ss:$16 sps:$4 sm:$0xff]  }
 0xc94   : > { %9809 = vmatpush1.bf16.msra.mxu0 %v15691_v45  ;;  %v15745_v45 = vld [vmem:[#allocation11 + $0x1760] ss:$16 sps:$4 sm:$0xff]  }
 0xc95   : > { %9810 = vmatprep.subr.bf16.mxu0 %v15699_v39  ;;  %v15753_v39 = vld [vmem:[#allocation11 + $0x1784] ss:$16 sps:$4 sm:$0xff]  }
 0xc96   : > { %9973 = vmatpush1.bf16.msra.mxu1 %v15694_v8  ;;  %v15748_v8 = vld [vmem:[#allocation11 + $0x1768] ss:$16 sps:$4 sm:$0xff]  }
 0xc97   : > { %9974 = vmatprep.subr.bf16.mxu1 %v15702_v62  ;;  %v15756_v62 = vld [vmem:[#allocation11 + $0x178c] ss:$16 sps:$4 sm:$0xff]  }
 0xc98   : > { %9811 = vmatpush1.bf16.msra.mxu0 %v15697_v28  ;;  %v15751_v28 = vld [vmem:[#allocation11 + $0x1780] ss:$16 sps:$4 sm:$0xff]  }
 0xc99   : > { %9812 = vmatprep.subr.bf16.mxu0 %v15705_v36  ;;  %v15759_v36 = vld [vmem:[#allocation11 + $0x17a4] ss:$16 sps:$4 sm:$0xff]  }
 0xc9a   : > { %9975 = vmatpush1.bf16.msra.mxu1 %v15700_v43  ;;  %v15754_v43 = vld [vmem:[#allocation11 + $0x1788] ss:$16 sps:$4 sm:$0xff]  }
 0xc9b   : > { %9976 = vmatprep.subr.bf16.mxu1 %v15708_v60  ;;  %v15762_v60 = vld [vmem:[#allocation11 + $0x17ac] ss:$16 sps:$4 sm:$0xff]  }
 0xc9c   : > { %9813 = vmatpush1.bf16.msra.mxu0 %v15703_v59  ;;  %v15757_v59 = vld [vmem:[#allocation11 + $0x17a0] ss:$16 sps:$4 sm:$0xff]  }
 0xc9d   : > { %9814 = vmatprep.subr.bf16.mxu0 %v15711_v16  ;;  %v15765_v16 = vld [vmem:[#allocation11 + $0x17c4] ss:$16 sps:$4 sm:$0xff]  }
 0xc9e   : > { %9977 = vmatpush1.bf16.msra.mxu1 %v15706_v21  ;;  %v7919_v48 = vpop.f32.mrb[36].mxu0  ;;  %v15760_v21 = vld [vmem:[#allocation11 + $0x17a8] ss:$16 sps:$4 sm:$0xff]  }
 0xc9f   : > { %v7921_v61 = vpop.f32.mrb[37].mxu0  ;;  %9978 = vmatprep.subr.bf16.mxu1 %v15714_v57  ;;  %v15768_v57 = vld [vmem:[#allocation11 + $0x17cc] ss:$16 sps:$4 sm:$0xff]  }
 0xca0   : > { %v8094_v44 = vcombine.low %v7919_v48, %v7921_v61  ;;  %v8083_v40 = vpop.f32.mrb[36].mxu1  ;;  %v7923_v4 = vpop.f32.mrb[38].mxu0  ;;  %9815 = vmatpush1.bf16.msra.mxu0 %v15709_v14  ;;  %v15763_v14 = vld [vmem:[#allocation11 + $0x17c0] ss:$16 sps:$4 sm:$0xff]   ;;  %v15766_v48 = vld [vmem:[#allocation11 + $0x17c8] ss:$16 sps:$4 sm:$0xff]  }
 0xca1   : > { %v8085_v26 = vpop.f32.mrb[37].mxu1  ;;  %v7924_v54 = vpop.f32.mrb[39].mxu0  ;;  %9816 = vmatprep.subr.bf16.mxu0 %v15717_v63  ;;  %v15771_v63 = vld [vmem:[#allocation11 + $0x17e4] ss:$16 sps:$4 sm:$0xff]   ;;  %v15769_v61 = vld [vmem:[#allocation11 + $0x17e0] ss:$16 sps:$4 sm:$0xff]  }
 0xca2   : > { %v8102_v52 = vrot.slane %v8094_v44, %v19735_v55  ;;  %v8095_v12 = vcombine.low %v8083_v40, %v8085_v26  ;;  %v8087_v23 = vpop.f32.mrb[38].mxu1  ;;  %9979 = vmatpush1.bf16.msra.mxu1 %v15712_v30  ;;  %v15774_v30 = vld [vmem:[#allocation11 + $0x17ec] ss:$16 sps:$4 sm:$0xff]   ;;  %v15772_v44 = vld [vmem:[#allocation11 + $0x17e8] ss:$16 sps:$4 sm:$0xff]   ;;  %v10297_v54 = vrot.slane %v19699_v15, 1 }
 0xca3   : > { %v8088_v10 = vpop.f32.mrb[39].mxu1  ;;  %9980 = vmatprep.subr.bf16.mxu1 %v15720_v51  ;;  %v15777_v51 = vld [vmem:[#allocation11 + $0x1804] ss:$16 sps:$4 sm:$0xff]   ;;  %v15780_v40 = vld [vmem:[#allocation11 + $0x180c] ss:$16 sps:$4 sm:$0xff]  }
 0xca4   : > { %v8109_v20 = vrot.slane %v8095_v12, %v19735_v55  ;;  %9817 = vmatpush1.bf16.msra.mxu0 %v15715_v37  ;;  %v15775_v4 = vld [vmem:[#allocation11 + $0x1800] ss:$16 sps:$4 sm:$0xff]   ;;  %v8391_v37 = vrot.slane %v19695_v56, 1  ;;  %v15783_v26 = vld [vmem:[#allocation11 + $0x1824] ss:$16 sps:$4 sm:$0xff]  }
 0xca5   : > { %9818 = vmatprep.subr.bf16.mxu0 %v15723_v53  ;;  %v15778_v53 = vld [vmem:[#allocation11 + $0x1808] ss:$16 sps:$4 sm:$0xff]   ;;  %v15781_v12 = vld [vmem:[#allocation11 + $0x1820] ss:$16 sps:$4 sm:$0xff]   ;;  %v15789_v23 = vld [vmem:[#allocation11 + $0x1844] ss:$16 sps:$4 sm:$0xff]  }
 0xca6   : > { %v8110_v19 = vcombine.low %v8102_v52, %v8109_v20  ;;  %9981 = vmatpush1.bf16.msra.mxu1 %v15718_v24  ;;  %v15786_v52 = vld [vmem:[#allocation11 + $0x182c] ss:$16 sps:$4 sm:$0xff]   ;;  %v15784_v24 = vld [vmem:[#allocation11 + $0x1828] ss:$16 sps:$4 sm:$0xff]   ;;  %v15787_v10 = vld [vmem:[#allocation11 + $0x1840] ss:$16 sps:$4 sm:$0xff]  }
 0xca7   : > { %9982 = vmatprep.subr.bf16.mxu1 %v15726_v46  ;;  %v15792_v56 = vld [vmem:[#allocation11 + $0x184c] ss:$16 sps:$4 sm:$0xff]   ;;  %v15795_v46 = vld [vmem:[#allocation11 + $0x1864] ss:$16 sps:$4 sm:$0xff]   ;;  %v15790_v15 = vld [vmem:[#allocation11 + $0x1848] ss:$16 sps:$4 sm:$0xff]  }
 0xca8   : > { %v8117_v1 = vrot.slane %v8110_v19, %v19735_v55  ;;  %9819 = vmatpush1.bf16.msra.mxu0 %v15721_v47  ;;  %v15793_v20 = vld [vmem:[#allocation11 + $0x1860] ss:$16 sps:$4 sm:$0xff]   ;;  %v15801_v47 = vld [vmem:[#allocation11 + $0x1884] ss:$16 sps:$4 sm:$0xff]  }
 0xca9   : > { %9820 = vmatprep.subr.bf16.mxu0 %v15729_v27  ;;  %v15804_v27 = vld [vmem:[#allocation11 + $0x188c] ss:$16 sps:$4 sm:$0xff]   ;;  %v15799_v19 = vld [vmem:[#allocation11 + $0x1880] ss:$16 sps:$4 sm:$0xff]  }
 0xcaa   : > { %v19764_v33 = vadd.f32 %v8117_v1, %v6192_v50  ;;  %9983 = vmatpush1.bf16.msra.mxu1 %v15724_v25  ;;  %v15807_v25 = vld [vmem:[#allocation11 + $0x18a4] ss:$16 sps:$4 sm:$0xff]   ;;  %v15810_v50 = vld [vmem:[#allocation11 + $0x18ac] ss:$16 sps:$4 sm:$0xff]   ;;  %v15805_v1 = vld [vmem:[#allocation11 + $0x18a0] ss:$16 sps:$4 sm:$0xff]  }
 0xcab   : > { %9984 = vmatprep.subr.bf16.mxu1 %v15732_v42  ;;  %v15802_v42 = vld [vmem:[#allocation11 + $0x1888] ss:$16 sps:$4 sm:$0xff]  }
 0xcac   : > { %9821 = vmatpush1.bf16.msra.mxu0 %v15727_v18  ;;  %v15813_v18 = vld [vmem:[#allocation11 + $0x18c4] ss:$16 sps:$4 sm:$0xff]  }
 0xcad   : > { %9822 = vmatprep.subr.bf16.mxu0 %v15735_v29  ;;  %v15808_v29 = vld [vmem:[#allocation11 + $0x18a8] ss:$16 sps:$4 sm:$0xff]  }
 0xcae   : > { %9985 = vmatpush1.bf16.msra.mxu1 %v15730_v13  ;;  %v15816_v13 = vld [vmem:[#allocation11 + $0x18cc] ss:$16 sps:$4 sm:$0xff]  }
 0xcaf   : > { %9986 = vmatprep.subr.bf16.mxu1 %v15738_v6  ;;  %v15811_v6 = vld [vmem:[#allocation11 + $0x18c0] ss:$16 sps:$4 sm:$0xff]  }
 0xcb0   : > { %9823 = vmatpush1.bf16.msra.mxu0 %v15733_v49  ;;  %v15819_v49 = vld [vmem:[#allocation11 + $0x18e4] ss:$16 sps:$4 sm:$0xff]  }
 0xcb1   : > { %9824 = vmatprep.subr.bf16.mxu0 %v15741_v7  ;;  %v15814_v7 = vld [vmem:[#allocation11 + $0x18c8] ss:$16 sps:$4 sm:$0xff]  }
 0xcb2   : > { %9987 = vmatpush1.bf16.msra.mxu1 %v15736_v34  ;;  %v15822_v34 = vld [vmem:[#allocation11 + $0x18ec] ss:$16 sps:$4 sm:$0xff]  }
 0xcb3   : > { %9988 = vmatprep.subr.bf16.mxu1 %v15744_v9  ;;  %v15817_v9 = vld [vmem:[#allocation11 + $0x18e0] ss:$16 sps:$4 sm:$0xff]  }
 0xcb4   : > { %9825 = vmatpush1.bf16.msra.mxu0 %v15739_v38  ;;  %v15825_v38 = vld [vmem:[#allocation11 + $0x1904] ss:$16 sps:$4 sm:$0xff]  }
 0xcb5   : > { %9826 = vmatprep.subr.bf16.mxu0 %v15747_v41  ;;  %v15820_v41 = vld [vmem:[#allocation11 + $0x18e8] ss:$16 sps:$4 sm:$0xff]  }
 0xcb6   : > { %9989 = vmatpush1.bf16.msra.mxu1 %v15742_v22  ;;  %v15828_v22 = vld [vmem:[#allocation11 + $0x190c] ss:$16 sps:$4 sm:$0xff]  }
 0xcb7   : > { %9990 = vmatprep.subr.bf16.mxu1 %v15750_v35  ;;  %v15823_v35 = vld [vmem:[#allocation11 + $0x1900] ss:$16 sps:$4 sm:$0xff]  }
 0xcb8   : > { %9827 = vmatpush1.bf16.msra.mxu0 %v15745_v45  ;;  %v15831_v45 = vld [vmem:[#allocation11 + $0x1924] ss:$16 sps:$4 sm:$0xff]  }
 0xcb9   : > { %9828 = vmatprep.subr.bf16.mxu0 %v15753_v39  ;;  %v15826_v39 = vld [vmem:[#allocation11 + $0x1908] ss:$16 sps:$4 sm:$0xff]  }
 0xcba   : > { %9991 = vmatpush1.bf16.msra.mxu1 %v15748_v8  ;;  %v15834_v8 = vld [vmem:[#allocation11 + $0x192c] ss:$16 sps:$4 sm:$0xff]  }
 0xcbb   : > { %9992 = vmatprep.subr.bf16.mxu1 %v15756_v62  ;;  %v15829_v62 = vld [vmem:[#allocation11 + $0x1920] ss:$16 sps:$4 sm:$0xff]  }
 0xcbc   : > { %9829 = vmatpush1.bf16.msra.mxu0 %v15751_v28  ;;  %v15837_v28 = vld [vmem:[#allocation11 + $0x1944] ss:$16 sps:$4 sm:$0xff]  }
 0xcbd   : > { %9830 = vmatprep.subr.bf16.mxu0 %v15759_v36  ;;  %v15832_v36 = vld [vmem:[#allocation11 + $0x1928] ss:$16 sps:$4 sm:$0xff]  }
 0xcbe   : > { %9993 = vmatpush1.bf16.msra.mxu1 %v15754_v43  ;;  %v15840_v43 = vld [vmem:[#allocation11 + $0x194c] ss:$16 sps:$4 sm:$0xff]  }
 0xcbf   : > { %9994 = vmatprep.subr.bf16.mxu1 %v15762_v60  ;;  %v15835_v60 = vld [vmem:[#allocation11 + $0x1940] ss:$16 sps:$4 sm:$0xff]  }
 0xcc0   : > { %9831 = vmatpush1.bf16.msra.mxu0 %v15757_v59  ;;  %v15843_v59 = vld [vmem:[#allocation11 + $0x1964] ss:$16 sps:$4 sm:$0xff]  }
 0xcc1   : > { %9832 = vmatprep.subr.bf16.mxu0 %v15765_v16  ;;  %v15838_v16 = vld [vmem:[#allocation11 + $0x1948] ss:$16 sps:$4 sm:$0xff]  }
 0xcc2   : > { %9995 = vmatpush1.bf16.msra.mxu1 %v15760_v21  ;;  %v15846_v21 = vld [vmem:[#allocation11 + $0x196c] ss:$16 sps:$4 sm:$0xff]  }
 0xcc3   : > { %9996 = vmatprep.subr.bf16.mxu1 %v15768_v57  ;;  %v15841_v57 = vld [vmem:[#allocation11 + $0x1960] ss:$16 sps:$4 sm:$0xff]  }
 0xcc4   : > { %9833 = vmatpush1.bf16.msra.mxu0 %v15763_v14  ;;  %v15849_v14 = vld [vmem:[#allocation11 + $0x1984] ss:$16 sps:$4 sm:$0xff]  }
 0xcc5   : > { %9834 = vmatprep.subr.bf16.mxu0 %v15771_v63  ;;  %v15844_v63 = vld [vmem:[#allocation11 + $0x1968] ss:$16 sps:$4 sm:$0xff]  }
 0xcc6   : > { %9997 = vmatpush1.bf16.msra.mxu1 %v15766_v48  ;;  %v15852_v48 = vld [vmem:[#allocation11 + $0x198c] ss:$16 sps:$4 sm:$0xff]  }
 0xcc7   : > { %9998 = vmatprep.subr.bf16.mxu1 %v15774_v30  ;;  %v15847_v30 = vld [vmem:[#allocation11 + $0x1980] ss:$16 sps:$4 sm:$0xff]  }
 0xcc8   : > { %9835 = vmatpush1.bf16.msra.mxu0 %v15769_v61  ;;  %v15855_v61 = vld [vmem:[#allocation11 + $0x19a4] ss:$16 sps:$4 sm:$0xff]  }
 0xcc9   : > { %11592 = vmatprep.subr.bf16.mxu0 %v15777_v51  ;;  %v15850_v51 = vld [vmem:[#allocation11 + $0x1988] ss:$16 sps:$4 sm:$0xff]  }
 0xcca   : > { %9999 = vmatpush1.bf16.msra.mxu1 %v15772_v44  ;;  %v15858_v44 = vld [vmem:[#allocation11 + $0x19ac] ss:$16 sps:$4 sm:$0xff]  }
 0xccb   : > { %9837 = vmatmul.mubr.bf16.vlgmr.msra.gmra.mrb[40].mxu0 %v8391_v37  ;;  %11756 = vmatprep.subr.bf16.mxu1 %v15780_v40  ;;  %v15853_v40 = vld [vmem:[#allocation11 + $0x19a0] ss:$16 sps:$4 sm:$0xff]  }
 0xccc   : > { %11593 = vmatpush1.bf16.msra.mxu0 %v15775_v4  ;;  %11624 = vmatprep.mubr.bf16.mxu0 %v10297_v54  ;;  %v15861_v4 = vld [vmem:[#allocation11 + $0x19c4] ss:$16 sps:$4 sm:$0xff]  }
 0xccd   : > { %10001 = vmatmul.mubr.bf16.vlgmr.msra.gmra.mrb[40].mxu1 %v8391_v37  ;;  %11594 = vmatprep.subr.bf16.mxu0 %v15783_v26  ;;  %v15856_v37 = vld [vmem:[#allocation11 + $0x19a8] ss:$16 sps:$4 sm:$0xff]   ;;  %v15864_v26 = vld [vmem:[#allocation11 + $0x19cc] ss:$16 sps:$4 sm:$0xff]  }
 0xcce   : > { %11757 = vmatpush1.bf16.msra.mxu1 %v15778_v53  ;;  %11788 = vmatprep.mubr.bf16.mxu1 %v10297_v54  ;;  %v15859_v54 = vld [vmem:[#allocation11 + $0x19c0] ss:$16 sps:$4 sm:$0xff]   ;;  %v15867_v53 = vld [vmem:[#allocation11 + $0x19e4] ss:$16 sps:$4 sm:$0xff]  }
 0xccf   : > { %11758 = vmatprep.subr.bf16.mxu1 %v15786_v52  ;;  %v15862_v52 = vld [vmem:[#allocation11 + $0x19c8] ss:$16 sps:$4 sm:$0xff]  }
 0xcd0   : > { %11595 = vmatpush1.bf16.msra.mxu0 %v15781_v12  ;;  %v15870_v12 = vld [vmem:[#allocation11 + $0x19ec] ss:$16 sps:$4 sm:$0xff]  }
 0xcd1   : > { %11596 = vmatprep.subr.bf16.mxu0 %v15789_v23  ;;  %v15865_v23 = vld [vmem:[#allocation11 + $0x19e0] ss:$16 sps:$4 sm:$0xff]  }
 0xcd2   : > { %11759 = vmatpush1.bf16.msra.mxu1 %v15784_v24  ;;  %v15873_v24 = vld [vmem:[#allocation11 + $0x1a04] ss:$16 sps:$4 sm:$0xff]  }
 0xcd3   : > { %11760 = vmatprep.subr.bf16.mxu1 %v15792_v56  ;;  %v15868_v56 = vld [vmem:[#allocation11 + $0x19e8] ss:$16 sps:$4 sm:$0xff]  }
 0xcd4   : > { %11597 = vmatpush1.bf16.msra.mxu0 %v15787_v10  ;;  %v15876_v10 = vld [vmem:[#allocation11 + $0x1a0c] ss:$16 sps:$4 sm:$0xff]  }
 0xcd5   : > { %11598 = vmatprep.subr.bf16.mxu0 %v15795_v46  ;;  %v15871_v46 = vld [vmem:[#allocation11 + $0x1a00] ss:$16 sps:$4 sm:$0xff]  }
 0xcd6   : > { %11761 = vmatpush1.bf16.msra.mxu1 %v15790_v15  ;;  %v10296_v15 = vrot.slane %v19705_v58, 1  ;;  %v15888_v58 = vld [vmem:[#allocation11 + $0x1a4c] ss:$16 sps:$4 sm:$0xff]  }
 0xcd7   : > { %11762 = vmatprep.subr.bf16.mxu1 %v15798_v17  ;;  %v15879_v17 = vld [vmem:[#allocation11 + $0x1a24] ss:$16 sps:$4 sm:$0xff]  }
 0xcd8   : > { %11599 = vmatpush1.bf16.msra.mxu0 %v15793_v20  ;;  %v10299_v20 = vrot.slane %v19708_v3, 1  ;;  %v15886_v3 = vld [vmem:[#allocation11 + $0x1a48] ss:$16 sps:$4 sm:$0xff]  }
 0xcd9   : > { %11600 = vmatprep.subr.bf16.mxu0 %v15801_v47  ;;  %v15874_v47 = vld [vmem:[#allocation11 + $0x1a08] ss:$16 sps:$4 sm:$0xff]  }
 0xcda   : > { %11763 = vmatpush1.bf16.msra.mxu1 %v15796_v32  ;;  %v15882_v32 = vld [vmem:[#allocation11 + $0x1a2c] ss:$16 sps:$4 sm:$0xff]  }
 0xcdb   : > { %11764 = vmatprep.subr.bf16.mxu1 %v15804_v27  ;;  %v15877_v27 = vld [vmem:[#allocation11 + $0x1a20] ss:$16 sps:$4 sm:$0xff]  }
 0xcdc   : > { %11601 = vmatpush1.bf16.msra.mxu0 %v15799_v19  ;;  %v15885_v19 = vld [vmem:[#allocation11 + $0x1a44] ss:$16 sps:$4 sm:$0xff]  }
 0xcdd   : > { %11602 = vmatprep.subr.bf16.mxu0 %v15807_v25  ;;  %v15880_v25 = vld [vmem:[#allocation11 + $0x1a28] ss:$16 sps:$4 sm:$0xff]  }
 0xcde   : > { %11765 = vmatpush1.bf16.msra.mxu1 %v15802_v42  ;;  %v15883_v42 = vld [vmem:[#allocation11 + $0x1a40] ss:$16 sps:$4 sm:$0xff]  }
 0xcdf   : > { %11766 = vmatprep.subr.bf16.mxu1 %v15810_v50  ;;  %v15891_v50 = vld [vmem:[#allocation11 + $0x1a64] ss:$16 sps:$4 sm:$0xff]  }
 0xce0   : > { %11603 = vmatpush1.bf16.msra.mxu0 %v15805_v1  ;;  %v15894_v1 = vld [vmem:[#allocation11 + $0x1a6c] ss:$16 sps:$4 sm:$0xff]  }
 0xce1   : > { %11604 = vmatprep.subr.bf16.mxu0 %v15813_v18  ;;  %v15889_v18 = vld [vmem:[#allocation11 + $0x1a60] ss:$16 sps:$4 sm:$0xff]  }
 0xce2   : > { %11767 = vmatpush1.bf16.msra.mxu1 %v15808_v29  ;;  %v15897_v29 = vld [vmem:[#allocation11 + $0x1a84] ss:$16 sps:$4 sm:$0xff]  }
 0xce3   : > { %11768 = vmatprep.subr.bf16.mxu1 %v15816_v13  ;;  %v15892_v13 = vld [vmem:[#allocation11 + $0x1a68] ss:$16 sps:$4 sm:$0xff]  }
 0xce4   : > { %11605 = vmatpush1.bf16.msra.mxu0 %v15811_v6  ;;  %v15900_v6 = vld [vmem:[#allocation11 + $0x1a8c] ss:$16 sps:$4 sm:$0xff]  }
 0xce5   : > { %11606 = vmatprep.subr.bf16.mxu0 %v15819_v49  ;;  %v15895_v49 = vld [vmem:[#allocation11 + $0x1a80] ss:$16 sps:$4 sm:$0xff]  }
 0xce6   : > { %11769 = vmatpush1.bf16.msra.mxu1 %v15814_v7  ;;  %v15903_v7 = vld [vmem:[#allocation11 + $0x1aa4] ss:$16 sps:$4 sm:$0xff]  }
 0xce7   : > { %11770 = vmatprep.subr.bf16.mxu1 %v15822_v34  ;;  %v15898_v34 = vld [vmem:[#allocation11 + $0x1a88] ss:$16 sps:$4 sm:$0xff]  }
 0xce8   : > { %11607 = vmatpush1.bf16.msra.mxu0 %v15817_v9  ;;  %v15906_v9 = vld [vmem:[#allocation11 + $0x1aac] ss:$16 sps:$4 sm:$0xff]  }
 0xce9   : > { %11608 = vmatprep.subr.bf16.mxu0 %v15825_v38  ;;  %v15901_v38 = vld [vmem:[#allocation11 + $0x1aa0] ss:$16 sps:$4 sm:$0xff]  }
 0xcea   : > { %11771 = vmatpush1.bf16.msra.mxu1 %v15820_v41  ;;  %v15909_v41 = vld [vmem:[#allocation11 + $0x1ac4] ss:$16 sps:$4 sm:$0xff]  }
 0xceb   : > { %11772 = vmatprep.subr.bf16.mxu1 %v15828_v22  ;;  %v15904_v22 = vld [vmem:[#allocation11 + $0x1aa8] ss:$16 sps:$4 sm:$0xff]  }
 0xcec   : > { %11609 = vmatpush1.bf16.msra.mxu0 %v15823_v35  ;;  %v15912_v35 = vld [vmem:[#allocation11 + $0x1acc] ss:$16 sps:$4 sm:$0xff]  }
 0xced   : > { %11610 = vmatprep.subr.bf16.mxu0 %v15831_v45  ;;  %v15907_v45 = vld [vmem:[#allocation11 + $0x1ac0] ss:$16 sps:$4 sm:$0xff]  }
 0xcee   : > { %11773 = vmatpush1.bf16.msra.mxu1 %v15826_v39  ;;  %v15915_v39 = vld [vmem:[#allocation11 + $0x1ae4] ss:$16 sps:$4 sm:$0xff]  }
 0xcef   : > { %11774 = vmatprep.subr.bf16.mxu1 %v15834_v8  ;;  %v15910_v8 = vld [vmem:[#allocation11 + $0x1ac8] ss:$16 sps:$4 sm:$0xff]  }
 0xcf0   : > { %11611 = vmatpush1.bf16.msra.mxu0 %v15829_v62  ;;  %v15918_v62 = vld [vmem:[#allocation11 + $0x1aec] ss:$16 sps:$4 sm:$0xff]  }
 0xcf1   : > { %11612 = vmatprep.subr.bf16.mxu0 %v15837_v28  ;;  %v15913_v28 = vld [vmem:[#allocation11 + $0x1ae0] ss:$16 sps:$4 sm:$0xff]  }
 0xcf2   : > { %11775 = vmatpush1.bf16.msra.mxu1 %v15832_v36  ;;  %v15921_v36 = vld [vmem:[#allocation11 + $0x1b04] ss:$16 sps:$4 sm:$0xff]  }
 0xcf3   : > { %11776 = vmatprep.subr.bf16.mxu1 %v15840_v43  ;;  %v15916_v43 = vld [vmem:[#allocation11 + $0x1ae8] ss:$16 sps:$4 sm:$0xff]  }
 0xcf4   : > { %11613 = vmatpush1.bf16.msra.mxu0 %v15835_v60  ;;  %v15924_v60 = vld [vmem:[#allocation11 + $0x1b0c] ss:$16 sps:$4 sm:$0xff]  }
 0xcf5   : > { %11614 = vmatprep.subr.bf16.mxu0 %v15843_v59  ;;  %v15919_v59 = vld [vmem:[#allocation11 + $0x1b00] ss:$16 sps:$4 sm:$0xff]  }
 0xcf6   : > { %11777 = vmatpush1.bf16.msra.mxu1 %v15838_v16  ;;  %v15927_v16 = vld [vmem:[#allocation11 + $0x1b24] ss:$16 sps:$4 sm:$0xff]  }
 0xcf7   : > { %11778 = vmatprep.subr.bf16.mxu1 %v15846_v21  ;;  %v15922_v21 = vld [vmem:[#allocation11 + $0x1b08] ss:$16 sps:$4 sm:$0xff]  }
 0xcf8   : > { %11615 = vmatpush1.bf16.msra.mxu0 %v15841_v57  ;;  %v15930_v57 = vld [vmem:[#allocation11 + $0x1b2c] ss:$16 sps:$4 sm:$0xff]  }
 0xcf9   : > { %11616 = vmatprep.subr.bf16.mxu0 %v15849_v14  ;;  %v15925_v14 = vld [vmem:[#allocation11 + $0x1b20] ss:$16 sps:$4 sm:$0xff]  }
 0xcfa   : > { %11779 = vmatpush1.bf16.msra.mxu1 %v15844_v63  ;;  %v15933_v63 = vld [vmem:[#allocation11 + $0x1b44] ss:$16 sps:$4 sm:$0xff]  }
 0xcfb   : > { %11780 = vmatprep.subr.bf16.mxu1 %v15852_v48  ;;  %v15928_v48 = vld [vmem:[#allocation11 + $0x1b28] ss:$16 sps:$4 sm:$0xff]  }
 0xcfc   : > { %11617 = vmatpush1.bf16.msra.mxu0 %v15847_v30  ;;  %v15936_v30 = vld [vmem:[#allocation11 + $0x1b4c] ss:$16 sps:$4 sm:$0xff]  }
 0xcfd   : > { %11618 = vmatprep.subr.bf16.mxu0 %v15855_v61  ;;  %v15931_v61 = vld [vmem:[#allocation11 + $0x1b40] ss:$16 sps:$4 sm:$0xff]  }
 0xcfe   : > { %11781 = vmatpush1.bf16.msra.mxu1 %v15850_v51  ;;  %v15939_v51 = vld [vmem:[#allocation11 + $0x1b64] ss:$16 sps:$4 sm:$0xff]  }
 0xcff   : > { %11782 = vmatprep.subr.bf16.mxu1 %v15858_v44  ;;  %v15934_v44 = vld [vmem:[#allocation11 + $0x1b48] ss:$16 sps:$4 sm:$0xff]  }
 0xd00   : > { %11619 = vmatpush1.bf16.msra.mxu0 %v15853_v40  ;;  %v15942_v40 = vld [vmem:[#allocation11 + $0x1b6c] ss:$16 sps:$4 sm:$0xff]  }
 0xd01   : > { %11620 = vmatprep.subr.bf16.mxu0 %v15861_v4  ;;  %v15937_v4 = vld [vmem:[#allocation11 + $0x1b60] ss:$16 sps:$4 sm:$0xff]  }
 0xd02   : > { %11783 = vmatpush1.bf16.msra.mxu1 %v15856_v37  ;;  %v15945_v37 = vld [vmem:[#allocation11 + $0x1b84] ss:$16 sps:$4 sm:$0xff]  }
 0xd03   : > { %11784 = vmatprep.subr.bf16.mxu1 %v15864_v26  ;;  %v15940_v26 = vld [vmem:[#allocation11 + $0x1b68] ss:$16 sps:$4 sm:$0xff]  }
 0xd04   : > { %11621 = vmatpush1.bf16.msra.mxu0 %v15859_v54  ;;  %v15948_v54 = vld [vmem:[#allocation11 + $0x1b8c] ss:$16 sps:$4 sm:$0xff]  }
 0xd05   : > { %11622 = vmatprep.subr.bf16.mxu0 %v15867_v53  ;;  %v15943_v53 = vld [vmem:[#allocation11 + $0x1b80] ss:$16 sps:$4 sm:$0xff]  }
 0xd06   : > { %11785 = vmatpush1.bf16.msra.mxu1 %v15862_v52  ;;  %v15951_v52 = vld [vmem:[#allocation11 + $0x1ba4] ss:$16 sps:$4 sm:$0xff]  }
 0xd07   : > { %11786 = vmatprep.subr.bf16.mxu1 %v15870_v12  ;;  %v15946_v12 = vld [vmem:[#allocation11 + $0x1b88] ss:$16 sps:$4 sm:$0xff]  }
 0xd08   : > { %11623 = vmatpush1.bf16.msra.mxu0 %v15865_v23  ;;  %v15954_v23 = vld [vmem:[#allocation11 + $0x1bac] ss:$16 sps:$4 sm:$0xff]  }
 0xd09   : > { %11633 = vmatprep.subr.bf16.mxu0 %v15873_v24  ;;  %v15949_v24 = vld [vmem:[#allocation11 + $0x1ba0] ss:$16 sps:$4 sm:$0xff]  }
 0xd0a   : > { %11787 = vmatpush1.bf16.msra.mxu1 %v15868_v56  ;;  %v15957_v56 = vld [vmem:[#allocation11 + $0x1bc4] ss:$16 sps:$4 sm:$0xff]  }
 0xd0b   : > { %11625 = vmatmul.mubr.bf16.vlgmr.msra.gmra.mrb[44].mxu0 %v10296_v15  ;;  %11797 = vmatprep.subr.bf16.mxu1 %v15876_v10  ;;  %v15952_v10 = vld [vmem:[#allocation11 + $0x1ba8] ss:$16 sps:$4 sm:$0xff]  }
 0xd0c   : > { %11634 = vmatpush1.bf16.msra.mxu0 %v15871_v46  ;;  %11665 = vmatprep.mubr.bf16.mxu0 %v10299_v20  ;;  %v15960_v46 = vld [vmem:[#allocation11 + $0x1bcc] ss:$16 sps:$4 sm:$0xff]  }
 0xd0d   : > { %11789 = vmatmul.mubr.bf16.vlgmr.msra.gmra.mrb[44].mxu1 %v10296_v15  ;;  %11635 = vmatprep.subr.bf16.mxu0 %v15879_v17  ;;  %v15955_v15 = vld [vmem:[#allocation11 + $0x1bc0] ss:$16 sps:$4 sm:$0xff]   ;;  %v15963_v17 = vld [vmem:[#allocation11 + $0x1be4] ss:$16 sps:$4 sm:$0xff]  }
 0xd0e   : > { %11798 = vmatpush1.bf16.msra.mxu1 %v15874_v47  ;;  %11829 = vmatprep.mubr.bf16.mxu1 %v10299_v20  ;;  %v15958_v20 = vld [vmem:[#allocation11 + $0x1bc8] ss:$16 sps:$4 sm:$0xff]   ;;  %v15966_v47 = vld [vmem:[#allocation11 + $0x1bec] ss:$16 sps:$4 sm:$0xff]  }
 0xd0f   : > { %11799 = vmatprep.subr.bf16.mxu1 %v15882_v32  ;;  %v15961_v32 = vld [vmem:[#allocation11 + $0x1be0] ss:$16 sps:$4 sm:$0xff]  }
 0xd10   : > { %11636 = vmatpush1.bf16.msra.mxu0 %v15877_v27  ;;  %v15969_v27 = vld [vmem:[#allocation11 + $0x1c04] ss:$16 sps:$4 sm:$0xff]  }
 0xd11   : > { %11637 = vmatprep.subr.bf16.mxu0 %v15885_v19  ;;  %v15964_v19 = vld [vmem:[#allocation11 + $0x1be8] ss:$16 sps:$4 sm:$0xff]  }
 0xd12   : > { %11800 = vmatpush1.bf16.msra.mxu1 %v15880_v25  ;;  %v15972_v25 = vld [vmem:[#allocation11 + $0x1c0c] ss:$16 sps:$4 sm:$0xff]  }
 0xd13   : > { %11801 = vmatprep.subr.bf16.mxu1 %v15888_v58  ;;  %v15967_v58 = vld [vmem:[#allocation11 + $0x1c00] ss:$16 sps:$4 sm:$0xff]  }
 0xd14   : > { %11638 = vmatpush1.bf16.msra.mxu0 %v15883_v42  ;;  %v10298_v42 = vrot.slane %v19715_v5, 1  ;;  %v15984_v5 = vld [vmem:[#allocation11 + $0x1c4c] ss:$16 sps:$4 sm:$0xff]  }
 0xd15   : > { %11639 = vmatprep.subr.bf16.mxu0 %v15891_v50  ;;  %v15975_v50 = vld [vmem:[#allocation11 + $0x1c24] ss:$16 sps:$4 sm:$0xff]  }
 0xd16   : > { %11802 = vmatpush1.bf16.msra.mxu1 %v15886_v3  ;;  %v10301_v3 = vrot.slane %v19718_v11, 1  ;;  %v15982_v11 = vld [vmem:[#allocation11 + $0x1c48] ss:$16 sps:$4 sm:$0xff]  }
 0xd17   : > { %11803 = vmatprep.subr.bf16.mxu1 %v15894_v1  ;;  %v15970_v1 = vld [vmem:[#allocation11 + $0x1c08] ss:$16 sps:$4 sm:$0xff]  }
 0xd18   : > { %11640 = vmatpush1.bf16.msra.mxu0 %v15889_v18  ;;  %v15978_v18 = vld [vmem:[#allocation11 + $0x1c2c] ss:$16 sps:$4 sm:$0xff]  }
 0xd19   : > { %11641 = vmatprep.subr.bf16.mxu0 %v15897_v29  ;;  %v15973_v29 = vld [vmem:[#allocation11 + $0x1c20] ss:$16 sps:$4 sm:$0xff]  }
 0xd1a   : > { %11804 = vmatpush1.bf16.msra.mxu1 %v15892_v13  ;;  %v15981_v13 = vld [vmem:[#allocation11 + $0x1c44] ss:$16 sps:$4 sm:$0xff]  }
 0xd1b   : > { %11805 = vmatprep.subr.bf16.mxu1 %v15900_v6  ;;  %v15976_v6 = vld [vmem:[#allocation11 + $0x1c28] ss:$16 sps:$4 sm:$0xff]  }
 0xd1c   : > { %11642 = vmatpush1.bf16.msra.mxu0 %v15895_v49  ;;  %v15979_v49 = vld [vmem:[#allocation11 + $0x1c40] ss:$16 sps:$4 sm:$0xff]  }
 0xd1d   : > { %11643 = vmatprep.subr.bf16.mxu0 %v15903_v7  ;;  %v15987_v7 = vld [vmem:[#allocation11 + $0x1c64] ss:$16 sps:$4 sm:$0xff]  }
 0xd1e   : > { %11806 = vmatpush1.bf16.msra.mxu1 %v15898_v34  ;;  %v15990_v34 = vld [vmem:[#allocation11 + $0x1c6c] ss:$16 sps:$4 sm:$0xff]  }
 0xd1f   : > { %11807 = vmatprep.subr.bf16.mxu1 %v15906_v9  ;;  %v15985_v9 = vld [vmem:[#allocation11 + $0x1c60] ss:$16 sps:$4 sm:$0xff]  }
 0xd20   : > { %11644 = vmatpush1.bf16.msra.mxu0 %v15901_v38  ;;  %v15993_v38 = vld [vmem:[#allocation11 + $0x1c84] ss:$16 sps:$4 sm:$0xff]  }
 0xd21   : > { %11645 = vmatprep.subr.bf16.mxu0 %v15909_v41  ;;  %v15988_v41 = vld [vmem:[#allocation11 + $0x1c68] ss:$16 sps:$4 sm:$0xff]  }
 0xd22   : > { %11808 = vmatpush1.bf16.msra.mxu1 %v15904_v22  ;;  %v15996_v22 = vld [vmem:[#allocation11 + $0x1c8c] ss:$16 sps:$4 sm:$0xff]  }
 0xd23   : > { %11809 = vmatprep.subr.bf16.mxu1 %v15912_v35  ;;  %v15991_v35 = vld [vmem:[#allocation11 + $0x1c80] ss:$16 sps:$4 sm:$0xff]  }
 0xd24   : > { %11646 = vmatpush1.bf16.msra.mxu0 %v15907_v45  ;;  %v15999_v45 = vld [vmem:[#allocation11 + $0x1ca4] ss:$16 sps:$4 sm:$0xff]  }
 0xd25   : > { %11647 = vmatprep.subr.bf16.mxu0 %v15915_v39  ;;  %v15994_v39 = vld [vmem:[#allocation11 + $0x1c88] ss:$16 sps:$4 sm:$0xff]  }
 0xd26   : > { %11810 = vmatpush1.bf16.msra.mxu1 %v15910_v8  ;;  %v16002_v8 = vld [vmem:[#allocation11 + $0x1cac] ss:$16 sps:$4 sm:$0xff]  }
 0xd27   : > { %11811 = vmatprep.subr.bf16.mxu1 %v15918_v62  ;;  %v15997_v62 = vld [vmem:[#allocation11 + $0x1ca0] ss:$16 sps:$4 sm:$0xff]  }
 0xd28   : > { %11648 = vmatpush1.bf16.msra.mxu0 %v15913_v28  ;;  %v16005_v28 = vld [vmem:[#allocation11 + $0x1cc4] ss:$16 sps:$4 sm:$0xff]  }
 0xd29   : > { %11649 = vmatprep.subr.bf16.mxu0 %v15921_v36  ;;  %v16000_v36 = vld [vmem:[#allocation11 + $0x1ca8] ss:$16 sps:$4 sm:$0xff]  }
 0xd2a   : > { %11812 = vmatpush1.bf16.msra.mxu1 %v15916_v43  ;;  %v16008_v43 = vld [vmem:[#allocation11 + $0x1ccc] ss:$16 sps:$4 sm:$0xff]  }
 0xd2b   : > { %11813 = vmatprep.subr.bf16.mxu1 %v15924_v60  ;;  %v16003_v60 = vld [vmem:[#allocation11 + $0x1cc0] ss:$16 sps:$4 sm:$0xff]  }
 0xd2c   : > { %11650 = vmatpush1.bf16.msra.mxu0 %v15919_v59  ;;  %v16011_v59 = vld [vmem:[#allocation11 + $0x1ce4] ss:$16 sps:$4 sm:$0xff]  }
 0xd2d   : > { %11651 = vmatprep.subr.bf16.mxu0 %v15927_v16  ;;  %v16006_v16 = vld [vmem:[#allocation11 + $0x1cc8] ss:$16 sps:$4 sm:$0xff]  }
 0xd2e   : > { %11814 = vmatpush1.bf16.msra.mxu1 %v15922_v21  ;;  %v16014_v21 = vld [vmem:[#allocation11 + $0x1cec] ss:$16 sps:$4 sm:$0xff]  }
 0xd2f   : > { %11815 = vmatprep.subr.bf16.mxu1 %v15930_v57  ;;  %v16009_v57 = vld [vmem:[#allocation11 + $0x1ce0] ss:$16 sps:$4 sm:$0xff]  }
 0xd30   : > { %11652 = vmatpush1.bf16.msra.mxu0 %v15925_v14  ;;  %v16017_v14 = vld [vmem:[#allocation11 + $0x1d04] ss:$16 sps:$4 sm:$0xff]  }
 0xd31   : > { %11653 = vmatprep.subr.bf16.mxu0 %v15933_v63  ;;  %v16012_v63 = vld [vmem:[#allocation11 + $0x1ce8] ss:$16 sps:$4 sm:$0xff]  }
 0xd32   : > { %11816 = vmatpush1.bf16.msra.mxu1 %v15928_v48  ;;  %v16020_v48 = vld [vmem:[#allocation11 + $0x1d0c] ss:$16 sps:$4 sm:$0xff]  }
 0xd33   : > { %11817 = vmatprep.subr.bf16.mxu1 %v15936_v30  ;;  %v16015_v30 = vld [vmem:[#allocation11 + $0x1d00] ss:$16 sps:$4 sm:$0xff]  }
 0xd34   : > { %11654 = vmatpush1.bf16.msra.mxu0 %v15931_v61  ;;  %v16023_v61 = vld [vmem:[#allocation11 + $0x1d24] ss:$16 sps:$4 sm:$0xff]  }
 0xd35   : > { %11655 = vmatprep.subr.bf16.mxu0 %v15939_v51  ;;  %v16018_v51 = vld [vmem:[#allocation11 + $0x1d08] ss:$16 sps:$4 sm:$0xff]  }
 0xd36   : > { %11818 = vmatpush1.bf16.msra.mxu1 %v15934_v44  ;;  %v16026_v44 = vld [vmem:[#allocation11 + $0x1d2c] ss:$16 sps:$4 sm:$0xff]  }
 0xd37   : > { %11819 = vmatprep.subr.bf16.mxu1 %v15942_v40  ;;  %v16021_v40 = vld [vmem:[#allocation11 + $0x1d20] ss:$16 sps:$4 sm:$0xff]  }
 0xd38   : > { %11656 = vmatpush1.bf16.msra.mxu0 %v15937_v4  ;;  %v16029_v4 = vld [vmem:[#allocation11 + $0x1d44] ss:$16 sps:$4 sm:$0xff]  }
 0xd39   : > { %11657 = vmatprep.subr.bf16.mxu0 %v15945_v37  ;;  %v16024_v37 = vld [vmem:[#allocation11 + $0x1d28] ss:$16 sps:$4 sm:$0xff]  }
 0xd3a   : > { %11820 = vmatpush1.bf16.msra.mxu1 %v15940_v26  ;;  %v16032_v26 = vld [vmem:[#allocation11 + $0x1d4c] ss:$16 sps:$4 sm:$0xff]  }
 0xd3b   : > { %11821 = vmatprep.subr.bf16.mxu1 %v15948_v54  ;;  %v16027_v54 = vld [vmem:[#allocation11 + $0x1d40] ss:$16 sps:$4 sm:$0xff]  }
 0xd3c   : > { %11658 = vmatpush1.bf16.msra.mxu0 %v15943_v53  ;;  %v16035_v53 = vld [vmem:[#allocation11 + $0x1d64] ss:$16 sps:$4 sm:$0xff]  }
 0xd3d   : > { %11659 = vmatprep.subr.bf16.mxu0 %v15951_v52  ;;  %v16030_v52 = vld [vmem:[#allocation11 + $0x1d48] ss:$16 sps:$4 sm:$0xff]  }
 0xd3e   : > { %11822 = vmatpush1.bf16.msra.mxu1 %v15946_v12  ;;  %v16038_v12 = vld [vmem:[#allocation11 + $0x1d6c] ss:$16 sps:$4 sm:$0xff]  }
 0xd3f   : > { %11823 = vmatprep.subr.bf16.mxu1 %v15954_v23  ;;  %v16033_v23 = vld [vmem:[#allocation11 + $0x1d60] ss:$16 sps:$4 sm:$0xff]  }
 0xd40   : > { %11660 = vmatpush1.bf16.msra.mxu0 %v15949_v24  ;;  %v16041_v24 = vld [vmem:[#allocation11 + $0x1d84] ss:$16 sps:$4 sm:$0xff]  }
 0xd41   : > { %11661 = vmatprep.subr.bf16.mxu0 %v15957_v56  ;;  %v16036_v56 = vld [vmem:[#allocation11 + $0x1d68] ss:$16 sps:$4 sm:$0xff]  }
 0xd42   : > { %11824 = vmatpush1.bf16.msra.mxu1 %v15952_v10  ;;  %v16044_v10 = vld [vmem:[#allocation11 + $0x1d8c] ss:$16 sps:$4 sm:$0xff]  }
 0xd43   : > { %11825 = vmatprep.subr.bf16.mxu1 %v15960_v46  ;;  %v16039_v46 = vld [vmem:[#allocation11 + $0x1d80] ss:$16 sps:$4 sm:$0xff]  }
 0xd44   : > { %11662 = vmatpush1.bf16.msra.mxu0 %v15955_v15  ;;  %v16047_v15 = vld [vmem:[#allocation11 + $0x1da4] ss:$16 sps:$4 sm:$0xff]  }
 0xd45   : > { %11663 = vmatprep.subr.bf16.mxu0 %v15963_v17  ;;  %v16042_v17 = vld [vmem:[#allocation11 + $0x1d88] ss:$16 sps:$4 sm:$0xff]  }
 0xd46   : > { %11826 = vmatpush1.bf16.msra.mxu1 %v15958_v20  ;;  %v16050_v20 = vld [vmem:[#allocation11 + $0x1dac] ss:$16 sps:$4 sm:$0xff]  }
 0xd47   : > { %11827 = vmatprep.subr.bf16.mxu1 %v15966_v47  ;;  %v16045_v47 = vld [vmem:[#allocation11 + $0x1da0] ss:$16 sps:$4 sm:$0xff]  }
 0xd48   : > { %11664 = vmatpush1.bf16.msra.mxu0 %v15961_v32  ;;  %v16053_v32 = vld [vmem:[#allocation11 + $0x1dc4] ss:$16 sps:$4 sm:$0xff]  }
 0xd49   : > { %11674 = vmatprep.subr.bf16.mxu0 %v15969_v27  ;;  %v16048_v27 = vld [vmem:[#allocation11 + $0x1da8] ss:$16 sps:$4 sm:$0xff]  }
 0xd4a   : > { %11828 = vmatpush1.bf16.msra.mxu1 %v15964_v19  ;;  %v16056_v19 = vld [vmem:[#allocation11 + $0x1dcc] ss:$16 sps:$4 sm:$0xff]  }
 0xd4b   : > { %11666 = vmatmul.mubr.bf16.vlgmr.msra.gmra.mrb[44].mxu0 %v10298_v42  ;;  %11838 = vmatprep.subr.bf16.mxu1 %v15972_v25  ;;  %v16051_v25 = vld [vmem:[#allocation11 + $0x1dc0] ss:$16 sps:$4 sm:$0xff]  }
 0xd4c   : > { %11675 = vmatpush1.bf16.msra.mxu0 %v15967_v58  ;;  %11706 = vmatprep.mubr.bf16.mxu0 %v10301_v3  ;;  %v16059_v58 = vld [vmem:[#allocation11 + $0x1de4] ss:$16 sps:$4 sm:$0xff]  }
 0xd4d   : > { %11830 = vmatmul.mubr.bf16.vlgmr.msra.gmra.mrb[44].mxu1 %v10298_v42  ;;  %11676 = vmatprep.subr.bf16.mxu0 %v15975_v50  ;;  %v16054_v42 = vld [vmem:[#allocation11 + $0x1dc8] ss:$16 sps:$4 sm:$0xff]   ;;  %v16062_v50 = vld [vmem:[#allocation11 + $0x1dec] ss:$16 sps:$4 sm:$0xff]  }
 0xd4e   : > { %11839 = vmatpush1.bf16.msra.mxu1 %v15970_v1  ;;  %11870 = vmatprep.mubr.bf16.mxu1 %v10301_v3  ;;  %v16057_v3 = vld [vmem:[#allocation11 + $0x1de0] ss:$16 sps:$4 sm:$0xff]   ;;  %v16065_v1 = vld [vmem:[#allocation11 + $0x1e04] ss:$16 sps:$4 sm:$0xff]  }
 0xd4f   : > { %11840 = vmatprep.subr.bf16.mxu1 %v15978_v18  ;;  %v16060_v18 = vld [vmem:[#allocation11 + $0x1de8] ss:$16 sps:$4 sm:$0xff]  }
 0xd50   : > { %11677 = vmatpush1.bf16.msra.mxu0 %v15973_v29  ;;  %v16068_v29 = vld [vmem:[#allocation11 + $0x1e0c] ss:$16 sps:$4 sm:$0xff]  }
 0xd51   : > { %11678 = vmatprep.subr.bf16.mxu0 %v15981_v13  ;;  %v16063_v13 = vld [vmem:[#allocation11 + $0x1e00] ss:$16 sps:$4 sm:$0xff]  }
 0xd52   : > { %11841 = vmatpush1.bf16.msra.mxu1 %v15976_v6  ;;  %v10300_v6 = vrot.slane %v19725_v2, 1  ;;  %v16080_v2 = vld [vmem:[#allocation11 + $0x1e4c] ss:$16 sps:$4 sm:$0xff]  }
 0xd53   : > { %11842 = vmatprep.subr.bf16.mxu1 %v15984_v5  ;;  %v16071_v5 = vld [vmem:[#allocation11 + $0x1e24] ss:$16 sps:$4 sm:$0xff]  }
 0xd54   : > { %11679 = vmatpush1.bf16.msra.mxu0 %v15979_v49  ;;  %v10303_v49 = vrot.slane %v19728_v0, 1  ;;  %v16078_v0 = vld [vmem:[#allocation11 + $0x1e48] ss:$16 sps:$4 sm:$0xff]  }
 0xd55   : > { %11680 = vmatprep.subr.bf16.mxu0 %v15987_v7  ;;  %v16066_v7 = vld [vmem:[#allocation11 + $0x1e08] ss:$16 sps:$4 sm:$0xff]  }
 0xd56   : > { %11843 = vmatpush1.bf16.msra.mxu1 %v15982_v11  ;;  %v16074_v11 = vld [vmem:[#allocation11 + $0x1e2c] ss:$16 sps:$4 sm:$0xff]  }
 0xd57   : > { %11844 = vmatprep.subr.bf16.mxu1 %v15990_v34  ;;  %v16069_v34 = vld [vmem:[#allocation11 + $0x1e20] ss:$16 sps:$4 sm:$0xff]  }
 0xd58   : > { %11681 = vmatpush1.bf16.msra.mxu0 %v15985_v9  ;;  %v16077_v9 = vld [vmem:[#allocation11 + $0x1e44] ss:$16 sps:$4 sm:$0xff]  }
 0xd59   : > { %11682 = vmatprep.subr.bf16.mxu0 %v15993_v38  ;;  %v16072_v38 = vld [vmem:[#allocation11 + $0x1e28] ss:$16 sps:$4 sm:$0xff]  }
 0xd5a   : > { %11845 = vmatpush1.bf16.msra.mxu1 %v15988_v41  ;;  %v16075_v41 = vld [vmem:[#allocation11 + $0x1e40] ss:$16 sps:$4 sm:$0xff]  }
 0xd5b   : > { %11846 = vmatprep.subr.bf16.mxu1 %v15996_v22  ;;  %v16083_v22 = vld [vmem:[#allocation11 + $0x1e64] ss:$16 sps:$4 sm:$0xff]  }
 0xd5c   : > { %11683 = vmatpush1.bf16.msra.mxu0 %v15991_v35  ;;  %v16086_v35 = vld [vmem:[#allocation11 + $0x1e6c] ss:$16 sps:$4 sm:$0xff]  }
 0xd5d   : > { %11684 = vmatprep.subr.bf16.mxu0 %v15999_v45  ;;  %v16081_v45 = vld [vmem:[#allocation11 + $0x1e60] ss:$16 sps:$4 sm:$0xff]  }
 0xd5e   : > { %11847 = vmatpush1.bf16.msra.mxu1 %v15994_v39  ;;  %v16089_v39 = vld [vmem:[#allocation11 + $0x1e84] ss:$16 sps:$4 sm:$0xff]  }
 0xd5f   : > { %11848 = vmatprep.subr.bf16.mxu1 %v16002_v8  ;;  %v16084_v8 = vld [vmem:[#allocation11 + $0x1e68] ss:$16 sps:$4 sm:$0xff]  }
 0xd60   : > { %11685 = vmatpush1.bf16.msra.mxu0 %v15997_v62  ;;  %v16092_v62 = vld [vmem:[#allocation11 + $0x1e8c] ss:$16 sps:$4 sm:$0xff]  }
 0xd61   : > { %11686 = vmatprep.subr.bf16.mxu0 %v16005_v28  ;;  %v16087_v28 = vld [vmem:[#allocation11 + $0x1e80] ss:$16 sps:$4 sm:$0xff]  }
 0xd62   : > { %11849 = vmatpush1.bf16.msra.mxu1 %v16000_v36  ;;  %v16095_v36 = vld [vmem:[#allocation11 + $0x1ea4] ss:$16 sps:$4 sm:$0xff]  }
 0xd63   : > { %11850 = vmatprep.subr.bf16.mxu1 %v16008_v43  ;;  %v16090_v43 = vld [vmem:[#allocation11 + $0x1e88] ss:$16 sps:$4 sm:$0xff]  }
 0xd64   : > { %11687 = vmatpush1.bf16.msra.mxu0 %v16003_v60  ;;  %v16098_v60 = vld [vmem:[#allocation11 + $0x1eac] ss:$16 sps:$4 sm:$0xff]  }
 0xd65   : > { %11688 = vmatprep.subr.bf16.mxu0 %v16011_v59  ;;  %v16093_v59 = vld [vmem:[#allocation11 + $0x1ea0] ss:$16 sps:$4 sm:$0xff]  }
 0xd66   : > { %11851 = vmatpush1.bf16.msra.mxu1 %v16006_v16  ;;  %v16101_v16 = vld [vmem:[#allocation11 + $0x1ec4] ss:$16 sps:$4 sm:$0xff]  }
 0xd67   : > { %11852 = vmatprep.subr.bf16.mxu1 %v16014_v21 }
 0xd68   : > { %11689 = vmatpush1.bf16.msra.mxu0 %v16009_v57  ;;  %v16096_v57 = vld [vmem:[#allocation11 + $0x1ea8] ss:$16 sps:$4 sm:$0xff]  }
 0xd69   : > { %11690 = vmatprep.subr.bf16.mxu0 %v16017_v14 }
 0xd6a   : > { %11853 = vmatpush1.bf16.msra.mxu1 %v16012_v63  ;;  %v16104_v63 = vld [vmem:[#allocation11 + $0x1ecc] ss:$16 sps:$4 sm:$0xff]  }
 0xd6b   : > { %11854 = vmatprep.subr.bf16.mxu1 %v16020_v48 }
 0xd6c   : > { %11691 = vmatpush1.bf16.msra.mxu0 %v16015_v30 }
 0xd6d   : > { %11692 = vmatprep.subr.bf16.mxu0 %v16023_v61 }
 0xd6e   : > { %11855 = vmatpush1.bf16.msra.mxu1 %v16018_v51  ;;  %v16099_v51 = vld [vmem:[#allocation11 + $0x1ec0] ss:$16 sps:$4 sm:$0xff]  }
 0xd6f   : > { %11856 = vmatprep.subr.bf16.mxu1 %v16026_v44 }
 0xd70   : > { %11693 = vmatpush1.bf16.msra.mxu0 %v16021_v40 }
 0xd71   : > { %11694 = vmatprep.subr.bf16.mxu0 %v16029_v4  ;;  %v16107_v4 = vld [vmem:[#allocation11 + $0x1ee4] ss:$16 sps:$4 sm:$0xff]  }
 0xd72   : > { %11857 = vmatpush1.bf16.msra.mxu1 %v16024_v37 }
 0xd73   : > { %11858 = vmatprep.subr.bf16.mxu1 %v16032_v26 }
 0xd74   : > { %11695 = vmatpush1.bf16.msra.mxu0 %v16027_v54 }
 0xd75   : > { %11696 = vmatprep.subr.bf16.mxu0 %v16035_v53  ;;  %v16102_v53 = vld [vmem:[#allocation11 + $0x1ec8] ss:$16 sps:$4 sm:$0xff]  }
 0xd76   : > { %11859 = vmatpush1.bf16.msra.mxu1 %v16030_v52 }
 0xd77   : > { %11860 = vmatprep.subr.bf16.mxu1 %v16038_v12  ;;  %v16110_v12 = vld [vmem:[#allocation11 + $0x1eec] ss:$16 sps:$4 sm:$0xff]  }
 0xd78   : > { %11697 = vmatpush1.bf16.msra.mxu0 %v16033_v23 }
 0xd79   : > { %11698 = vmatprep.subr.bf16.mxu0 %v16041_v24  ;;  %v16105_v24 = vld [vmem:[#allocation11 + $0x1ee0] ss:$16 sps:$4 sm:$0xff]  }
 0xd7a   : > { %11861 = vmatpush1.bf16.msra.mxu1 %v16036_v56  ;;  %v16113_v56 = vld [vmem:[#allocation11 + $0x1f04] ss:$16 sps:$4 sm:$0xff]  }
 0xd7b   : > { %11862 = vmatprep.subr.bf16.mxu1 %v16044_v10 }
 0xd7c   : > { %11699 = vmatpush1.bf16.msra.mxu0 %v16039_v46  ;;  %v16108_v46 = vld [vmem:[#allocation11 + $0x1ee8] ss:$16 sps:$4 sm:$0xff]  }
 0xd7d   : > { %11700 = vmatprep.subr.bf16.mxu0 %v16047_v15  ;;  %v16116_v15 = vld [vmem:[#allocation11 + $0x1f0c] ss:$16 sps:$4 sm:$0xff]  }
 0xd7e   : > { %11863 = vmatpush1.bf16.msra.mxu1 %v16042_v17 }
 0xd7f   : > { %11864 = vmatprep.subr.bf16.mxu1 %v16050_v20  ;;  %v16111_v20 = vld [vmem:[#allocation11 + $0x1f00] ss:$16 sps:$4 sm:$0xff]  }
 0xd80   : > { %11701 = vmatpush1.bf16.msra.mxu0 %v16045_v47  ;;  %v16119_v47 = vld [vmem:[#allocation11 + $0x1f24] ss:$16 sps:$4 sm:$0xff]  }
 0xd81   : > { %11702 = vmatprep.subr.bf16.mxu0 %v16053_v32 }
 0xd82   : > { %11865 = vmatpush1.bf16.msra.mxu1 %v16048_v27  ;;  %v16114_v27 = vld [vmem:[#allocation11 + $0x1f08] ss:$16 sps:$4 sm:$0xff]  }
 0xd83   : > { %11866 = vmatprep.subr.bf16.mxu1 %v16056_v19  ;;  %v16122_v19 = vld [vmem:[#allocation11 + $0x1f2c] ss:$16 sps:$4 sm:$0xff]  }
 0xd84   : > { %11703 = vmatpush1.bf16.msra.mxu0 %v16051_v25  ;;  %v16117_v25 = vld [vmem:[#allocation11 + $0x1f20] ss:$16 sps:$4 sm:$0xff]  }
 0xd85   : > { %11704 = vmatprep.subr.bf16.mxu0 %v16059_v58  ;;  %v16125_v58 = vld [vmem:[#allocation11 + $0x1f44] ss:$16 sps:$4 sm:$0xff]  }
 0xd86   : > { %11867 = vmatpush1.bf16.msra.mxu1 %v16054_v42  ;;  %v16120_v42 = vld [vmem:[#allocation11 + $0x1f28] ss:$16 sps:$4 sm:$0xff]  }
 0xd87   : > { %11868 = vmatprep.subr.bf16.mxu1 %v16062_v50  ;;  %v16128_v50 = vld [vmem:[#allocation11 + $0x1f4c] ss:$16 sps:$4 sm:$0xff]  }
 0xd88   : > { %11705 = vmatpush1.bf16.msra.mxu0 %v16057_v3  ;;  %v16123_v3 = vld [vmem:[#allocation11 + $0x1f40] ss:$16 sps:$4 sm:$0xff]  }
 0xd89   : > { %11715 = vmatprep.subr.bf16.mxu0 %v16065_v1  ;;  %v16131_v1 = vld [vmem:[#allocation11 + $0x1f64] ss:$16 sps:$4 sm:$0xff]  }
 0xd8a   : > { %11869 = vmatpush1.bf16.msra.mxu1 %v16060_v18  ;;  %v16126_v18 = vld [vmem:[#allocation11 + $0x1f48] ss:$16 sps:$4 sm:$0xff]  }
 0xd8b   : > { %11707 = vmatmul.mubr.bf16.vlgmr.msra.gmra.mrb[44].mxu0 %v10300_v6  ;;  %11879 = vmatprep.subr.bf16.mxu1 %v16068_v29  ;;  %v16129_v29 = vld [vmem:[#allocation11 + $0x1f60] ss:$16 sps:$4 sm:$0xff]  }
 0xd8c   : > { %11716 = vmatpush1.bf16.msra.mxu0 %v16063_v13  ;;  %11747 = vmatprep.mubr.bf16.mxu0 %v10303_v49  ;;  %v16137_v13 = vld [vmem:[#allocation11 + $0x1f84] ss:$16 sps:$4 sm:$0xff]  }
 0xd8d   : > { %11871 = vmatmul.mubr.bf16.vlgmr.msra.gmra.mrb[44].mxu1 %v10300_v6  ;;  %11717 = vmatprep.subr.bf16.mxu0 %v16071_v5  ;;  %v16132_v6 = vld [vmem:[#allocation11 + $0x1f68] ss:$16 sps:$4 sm:$0xff]   ;;  %v16140_v5 = vld [vmem:[#allocation11 + $0x1f8c] ss:$16 sps:$4 sm:$0xff]  }
 0xd8e   : > { %11880 = vmatpush1.bf16.msra.mxu1 %v16066_v7  ;;  %11911 = vmatprep.mubr.bf16.mxu1 %v10303_v49  ;;  %v16135_v49 = vld [vmem:[#allocation11 + $0x1f80] ss:$16 sps:$4 sm:$0xff]   ;;  %v16143_v7 = vld [vmem:[#allocation11 + $0x1fa4] ss:$16 sps:$4 sm:$0xff]  }
 0xd8f   : > { %11881 = vmatprep.subr.bf16.mxu1 %v16074_v11  ;;  %v16138_v11 = vld [vmem:[#allocation11 + $0x1f88] ss:$16 sps:$4 sm:$0xff]  }
 0xd90   : > { %11718 = vmatpush1.bf16.msra.mxu0 %v16069_v34  ;;  %v16146_v34 = vld [vmem:[#allocation11 + $0x1fac] ss:$16 sps:$4 sm:$0xff]  }
 0xd91   : > { %11719 = vmatprep.subr.bf16.mxu0 %v16077_v9  ;;  %v16141_v9 = vld [vmem:[#allocation11 + $0x1fa0] ss:$16 sps:$4 sm:$0xff]  }
 0xd92   : > { %11882 = vmatpush1.bf16.msra.mxu1 %v16072_v38  ;;  %v16149_v38 = vld [vmem:[#allocation11 + $0x1fc4] ss:$16 sps:$4 sm:$0xff]  }
 0xd93   : > { %11883 = vmatprep.subr.bf16.mxu1 %v16080_v2  ;;  %v16144_v2 = vld [vmem:[#allocation11 + $0x1fa8] ss:$16 sps:$4 sm:$0xff]  }
 0xd94   : > { %11720 = vmatpush1.bf16.msra.mxu0 %v16075_v41  ;;  %v16152_v41 = vld [vmem:[#allocation11 + $0x1fcc] ss:$16 sps:$4 sm:$0xff]  }
 0xd95   : > { %11721 = vmatprep.subr.bf16.mxu0 %v16083_v22  ;;  %v16147_v22 = vld [vmem:[#allocation11 + $0x1fc0] ss:$16 sps:$4 sm:$0xff]  }
 0xd96   : > { %11884 = vmatpush1.bf16.msra.mxu1 %v16078_v0  ;;  %v16155_v0 = vld [vmem:[#allocation11 + $0x1fe4] ss:$16 sps:$4 sm:$0xff]  }
 0xd97   : > { %11885 = vmatprep.subr.bf16.mxu1 %v16086_v35  ;;  %v16150_v35 = vld [vmem:[#allocation11 + $0x1fc8] ss:$16 sps:$4 sm:$0xff]  }
 0xd98   : > { %11722 = vmatpush1.bf16.msra.mxu0 %v16081_v45  ;;  %v16158_v45 = vld [vmem:[#allocation11 + $0x1fec] ss:$16 sps:$4 sm:$0xff]  }
 0xd99   : > { %11723 = vmatprep.subr.bf16.mxu0 %v16089_v39  ;;  %v16153_v39 = vld [vmem:[#allocation11 + $0x1fe0] ss:$16 sps:$4 sm:$0xff]  }
 0xd9a   : > { %11886 = vmatpush1.bf16.msra.mxu1 %v16084_v8  ;;  %v16159_v8 = vld [vmem:[%s20193_s26 + $0x40] sm:$0xff]   ;;  %s12327_s26 = sshll.u32 %s751_s2, 4  ;;  %s19892_s26 = int_to_ptr.vmem [resolvable:$true] %s12327_s26 }
 0xd9b   : > { %11887 = vmatprep.subr.bf16.mxu1 %v16092_v62  ;;  %v16156_v62 = vld [vmem:[#allocation11 + $0x1fe8] ss:$16 sps:$4 sm:$0xff]   ;;  %s16416_s23 = scalar_lea.vmem %s19892_s26, 16  ;;  %p16423_p0 = scmp.lt.s32.totalorder %s19892_s26, %s16421_s28 }
 0xd9c   : > { %11724 = vmatpush1.bf16.msra.mxu0 %v16087_v28  ;;  %v16160_v28 = vld [vmem:[%s20194_s29 + $0xc0] sm:$0xff]   ;;  %p16417_p8 = scmp.ne.s32.totalorder %s19892_s26, %s16416_s23  ;;  %p16424_p6 = scmp.lt.s32.totalorder %s16422_s0, %s16416_s23 }
 0xd9d   : > { %11725 = vmatprep.subr.bf16.mxu0 %v16095_v36  ;;  %v16161_v36 = vld [vmem:[%s20194_s29] sm:$0xff]  }
 0xd9e   : > { %11888 = vmatpush1.bf16.msra.mxu1 %v16090_v43  ;;  %v9838_v21 = vpop.f32.mrb[40].mxu0  ;;  %v10302_v43 = vrot.slane %v19746_v31, 1  ;;  %v16165_v31 = vld [vmem:[%s20194_s29 + $0x8] sm:$0xff]   ;;  %p16418_p13 = pnand %p16417_p8, %p20202_p11  ;;  %p16425_p5 = por %p16424_p6, %p16423_p0 }
 0xd9f   : > { %v9840_v14 = vpop.f32.mrb[41].mxu0  ;;  %11889 = vmatprep.subr.bf16.mxu1 %v16098_v60  ;;  %v16163_v60 = vld [vmem:[%s20194_s29 + $0x48] sm:$0xff]  }
 0xda0   : > { %v10013_v48 = vcombine.low %v9838_v21, %v9840_v14  ;;  %v10002_v30 = vpop.f32.mrb[40].mxu1  ;;  %v9842_v61 = vpop.f32.mrb[42].mxu0  ;;  %11726 = vmatpush1.bf16.msra.mxu0 %v16093_v59  ;;  %v16162_v59 = vld [vmem:[%s20194_s29 + $0x80] sm:$0xff]   ;;  %v16167_v21 = vld [vmem:[%s20194_s29 + $0x50] sm:$0xff]   ;;  %p16419_p1 = pneg %p16418_p13 }
 0xda1   : > { %v10004_v44 = vpop.f32.mrb[41].mxu1  ;;  %v9843_v40 = vpop.f32.mrb[43].mxu0  ;;  %11727 = vmatprep.subr.bf16.mxu0 %v16101_v16  ;;  %v16164_v16 = vld [vmem:[%s20194_s29 + $0xc8] sm:$0xff]   ;;  %v16168_v14 = vld [vmem:[%s20194_s29 + $0xd0] sm:$0xff]   ;;  %v16172_v61 = vld [vmem:[%s20194_s29 + $0xd8] sm:$0xff]  }
 0xda2   : > { %v10021_v37 = vrot.slane %v10013_v48, %v19735_v55  ;;  %v10014_v26 = vcombine.low %v10002_v30, %v10004_v44  ;;  %v10006_v54 = vpop.f32.mrb[42].mxu1  ;;  %11890 = vmatpush1.bf16.msra.mxu1 %v16096_v57  ;;  %v16166_v57 = vld [vmem:[%s20194_s29 + $0x88] sm:$0xff]   ;;  %v16171_v48 = vld [vmem:[%s20194_s29 + $0x58] sm:$0xff]   ;;  %v16170_v30 = vld [vmem:[%s20194_s29 + $0x90] sm:$0xff]   ;;  %p16426_p9 = pnand %p16425_p5, %p16419_p1 }
 0xda3   : > { %v10007_v52 = vpop.f32.mrb[43].mxu1  ;;  %11891 = vmatprep.subr.bf16.mxu1 %v16104_v63  ;;  %v16169_v63 = vld [vmem:[%s20194_s29 + $0x10] sm:$0xff]   ;;  %v16174_v44 = vld [vmem:[%s20194_s29 + $0x98] sm:$0xff]   ;;  %v16175_v40 = vld [vmem:[%s20194_s29 + $0x60] sm:$0xff]  }
 0xda4   : > { %v10028_v23 = vrot.slane %v10014_v26, %v19735_v55  ;;  %11728 = vmatpush1.bf16.msra.mxu0 %v16099_v51  ;;  %v16173_v51 = vld [vmem:[%s20194_s29 + $0x18] sm:$0xff]   ;;  %v16178_v26 = vld [vmem:[%s20194_s29 + $0xa0] sm:$0xff]   ;;  %v16179_v54 = vld [vmem:[%s20194_s29 + $0x68] sm:$0xff]  }
 0xda5   : > { %11729 = vmatprep.subr.bf16.mxu0 %v16107_v4  ;;  %v16176_v4 = vld [vmem:[%s20194_s29 + $0xe0] sm:$0xff]   ;;  %v16181_v52 = vld [vmem:[%s20194_s29 + $0x28] sm:$0xff]  }
 0xda6   : > { %v10029_v10 = vcombine.low %v10021_v37, %v10028_v23  ;;  %11892 = vmatpush1.bf16.msra.mxu1 %v16102_v53  ;;  %v16177_v37 = vld [vmem:[%s20194_s29 + $0x20] sm:$0xff]   ;;  %v16180_v53 = vld [vmem:[%s20194_s29 + $0xe8] sm:$0xff]   ;;  %v16183_v23 = vld [vmem:[%s20194_s29 + $0x70] sm:$0xff]  }
 0xda7   : > { %11893 = vmatprep.subr.bf16.mxu1 %v16110_v12  ;;  %v16182_v12 = vld [vmem:[%s20194_s29 + $0xa8] sm:$0xff]  }
 0xda8   : > { %v10036_v17 = vrot.slane %v10029_v10, %v19735_v55  ;;  %11730 = vmatpush1.bf16.msra.mxu0 %v16105_v24  ;;  %v16184_v24 = vld [vmem:[%s20194_s29 + $0xf0] sm:$0xff]  }
 0xda9   : > { %11731 = vmatprep.subr.bf16.mxu0 %v16113_v56  ;;  %v16185_v56 = vld [vmem:[%s20194_s29 + $0x30] sm:$0xff]  }
 0xdaa   : > { %v19778_v32 = vadd.f32 %v10036_v17, %v19764_v33  ;;  %11894 = vmatpush1.bf16.msra.mxu1 %v16108_v46  ;;  %v16134_v33 = vld [vmem:[#allocation11 + $0x1f6c] ss:$16 sps:$4 sm:$0xff]  }
 0xdab   : > { %11895 = vmatprep.subr.bf16.mxu1 %v16116_v15  ;;  %v16186_v10 = vld [vmem:[%s20194_s29 + $0xb0] sm:$0xff]   ;;  %v16187_v46 = vld [vmem:[%s20194_s29 + $0x78] sm:$0xff]  }
 0xdac   : > { %11732 = vmatpush1.bf16.msra.mxu0 %v16111_v20  ;;  %v16188_v15 = vld [vmem:[%s20194_s29 + $0xf8] sm:$0xff]  }
 0xdad   : > { %11733 = vmatprep.subr.bf16.mxu0 %v16119_v47  ;;  %v16189_v17 = vld [vmem:[%s20194_s29 + $0x38] sm:$0xff]  }
 0xdae   : > { %11896 = vmatpush1.bf16.msra.mxu1 %v16114_v27  ;;  %v16190_v20 = vld [vmem:[%s20194_s29 + $0xb8] sm:$0xff]  }
 0xdaf   : > { %11897 = vmatprep.subr.bf16.mxu1 %v16122_v19 }
 0xdb0   : > { %11734 = vmatpush1.bf16.msra.mxu0 %v16117_v25 }
 0xdb1   : > { %11735 = vmatprep.subr.bf16.mxu0 %v16125_v58 }
 0xdb2   : > { %11898 = vmatpush1.bf16.msra.mxu1 %v16120_v42 }
 0xdb3   : > { %11899 = vmatprep.subr.bf16.mxu1 %v16128_v50 }
 0xdb4   : > { %11736 = vmatpush1.bf16.msra.mxu0 %v16123_v3 }
 0xdb5   : > { %11737 = vmatprep.subr.bf16.mxu0 %v16131_v1 }
 0xdb6   : > { %11900 = vmatpush1.bf16.msra.mxu1 %v16126_v18 }
 0xdb7   : > { %11901 = vmatprep.subr.bf16.mxu1 %v16134_v33 }
 0xdb8   : > { %11738 = vmatpush1.bf16.msra.mxu0 %v16129_v29 }
 0xdb9   : > { %11739 = vmatprep.subr.bf16.mxu0 %v16137_v13 }
 0xdba   : > { %11902 = vmatpush1.bf16.msra.mxu1 %v16132_v6 }
 0xdbb   : > { %11903 = vmatprep.subr.bf16.mxu1 %v16140_v5 }
 0xdbc   : > { %11740 = vmatpush1.bf16.msra.mxu0 %v16135_v49  ;;  %v20196_v49 = vld [vmem:[#allocation32_spill] sm:$0xff] }
 0xdbd   : > { %11741 = vmatprep.subr.bf16.mxu0 %v16143_v7 }
 0xdbe   : > { %11904 = vmatpush1.bf16.msra.mxu1 %v16138_v11  ;;  %v20197_v11 = vld [vmem:[#allocation35_spill] sm:$0xff] }
 0xdbf   : > { %11905 = vmatprep.subr.bf16.mxu1 %v16146_v34 }
 0xdc0   : > { %11742 = vmatpush1.bf16.msra.mxu0 %v16141_v9  ;;  %v20198_v9 = vld [vmem:[#allocation34_spill] sm:$0xff] }
 0xdc1   : > { %11743 = vmatprep.subr.bf16.mxu0 %v16149_v38 }
 0xdc2   : > { %11906 = vmatpush1.bf16.msra.mxu1 %v16144_v2  ;;  %v20199_v2 = vld [vmem:[#allocation33_spill] sm:$0xff] }
 0xdc3   : > { %11907 = vmatprep.subr.bf16.mxu1 %v16152_v41 }
 0xdc4   : > { %11744 = vmatpush1.bf16.msra.mxu0 %v16147_v22 }
 0xdc5   : > { %11745 = vmatprep.subr.bf16.mxu0 %v16155_v0 }
 0xdc6   : > { %11908 = vmatpush1.bf16.msra.mxu1 %v16150_v35 }
 0xdc7   : > { %11909 = vmatprep.subr.bf16.mxu1 %v16158_v45 }
 0xdc8   : > { %11746 = vmatpush1.bf16.msra.mxu0 %v16153_v39  ;;  %v12039_v39 = vld [vmem:[#allocation14] sm:$0x1] }
 0xdc9   : > { %13566 = vmatprep.subr.bf16.mxu0 %v16159_v8 }
 0xdca   : > { %11910 = vmatpush1.bf16.msra.mxu1 %v16156_v62 }
 0xdcb   : > { %11748 = vmatmul.mubr.bf16.vlgmr.msra.gmra.mrb[44].mxu0 %v10302_v43  ;;  %13588 = vmatprep.subr.bf16.mxu1 %v16160_v28 }
 0xdcc   : > { %13567 = vmatpush3.bf16.msra.mxu0 %v16161_v36 }
 0xdcd   : > { %11912 = vmatmul.mubr.bf16.vlgmr.msra.gmra.mrb[44].mxu1 %v10302_v43  ;;  %13568 = vmatprep.subr.bf16.mxu0 %v16163_v60 }
 0xdce   : > { %13589 = vmatpush3.bf16.msra.mxu1 %v16162_v59 }
 0xdcf   : > { %13590 = vmatprep.subr.bf16.mxu1 %v16164_v16 }
 0xdd0   : > { %13569 = vmatpush3.bf16.msra.mxu0 %v16165_v31 }
 0xdd1   : > { %13570 = vmatprep.subr.bf16.mxu0 %v16167_v21 }
 0xdd2   : > { %13591 = vmatpush3.bf16.msra.mxu1 %v16166_v57 }
 0xdd3   : > { %13592 = vmatprep.subr.bf16.mxu1 %v16168_v14 }
 0xdd4   : > { %13571 = vmatpush3.bf16.msra.mxu0 %v16169_v63 }
 0xdd5   : > { %13572 = vmatprep.subr.bf16.mxu0 %v16171_v48 }
 0xdd6   : > { %13593 = vmatpush3.bf16.msra.mxu1 %v16170_v30 }
 0xdd7   : > { %13594 = vmatprep.subr.bf16.mxu1 %v16172_v61 }
 0xdd8   : > { %13573 = vmatpush3.bf16.msra.mxu0 %v16173_v51 }
 0xdd9   : > { %13574 = vmatprep.subr.bf16.mxu0 %v16175_v40 }
 0xdda   : > { %13595 = vmatpush3.bf16.msra.mxu1 %v16174_v44 }
 0xddb   : > { %13596 = vmatprep.subr.bf16.mxu1 %v16176_v4 }
 0xddc   : > { %13575 = vmatpush3.bf16.msra.mxu0 %v16177_v37 }
 0xddd   : > { %13576 = vmatprep.subr.bf16.mxu0 %v16179_v54 }
 0xdde   : > { %13597 = vmatpush3.bf16.msra.mxu1 %v16178_v26 }
 0xddf   : > { %13598 = vmatprep.subr.bf16.mxu1 %v16180_v53 }
 0xde0   : > { %13577 = vmatpush3.bf16.msra.mxu0 %v16181_v52 }
 0xde1   : > { %13578 = vmatprep.subr.bf16.mxu0 %v16183_v23 }
 0xde2   : > { %13599 = vmatpush3.bf16.msra.mxu1 %v16182_v12 }
 0xde3   : > { %13600 = vmatprep.subr.bf16.mxu1 %v16184_v24 }
 0xde4   : > { %13579 = vmatpush3.bf16.msra.mxu0 %v16185_v56 }
 0xde5   : > { %13580 = vmatprep.subr.bf16.mxu0 %v16187_v46 }
 0xde6   : > { %13601 = vmatpush3.bf16.msra.mxu1 %v16186_v10 }
 0xde7   : > { %13602 = vmatprep.subr.bf16.mxu1 %v16188_v15 }
 0xde8   : > { %13581 = vmatpush3.bf16.msra.mxu0 %v16189_v17 }
 0xdea   : > { %13603 = vmatpush3.bf16.msra.mxu1 %v16190_v20 }
 0xe9e   : > { %v11749_v47 = vpop.f32.mrb[44].mxu0 }
 0xe9f   : > { %v11751_v27 = vpop.f32.mrb[45].mxu0 }
 0xea0   : > { %v11924_v19 = vcombine.low %v11749_v47, %v11751_v27  ;;  %v11913_v25 = vpop.f32.mrb[44].mxu1  ;;  %v11753_v58 = vpop.f32.mrb[46].mxu0 }
 0xea1   : > { %v11915_v42 = vpop.f32.mrb[45].mxu1  ;;  %v11754_v50 = vpop.f32.mrb[47].mxu0 }
 0xea2   : > { %v11932_v3 = vrot.slane %v11924_v19, %v19735_v55  ;;  %v11925_v1 = vcombine.low %v11913_v25, %v11915_v42  ;;  %v11917_v18 = vpop.f32.mrb[46].mxu1 }
 0xea3   : > { %v11918_v33 = vpop.f32.mrb[47].mxu1 }
 0xea4   : > { %v11939_v29 = vrot.slane %v11925_v1, %v19735_v55 }
 0xea6   : > { %v11940_v13 = vcombine.low %v11932_v3, %v11939_v29 }
 0xea8   : > { %v11947_v6 = vrot.slane %v11940_v13, %v19735_v55 }
 0xeaa   : > { %v11949_v5 = vadd.f32 %v11947_v6, %v19778_v32 }
 0xeac   : > { %v11958_v7 = vrot.slane %v11949_v5, %v20196_v49  ;;  %v11966_v34 = vrot.slane %v11949_v5, %v20197_v11  ;;  %v11954_v38 = vrot.slane %v11949_v5, %v20198_v9  ;;  %v11962_v41 = vrot.slane %v11949_v5, %v20199_v2 }
 0xeae   : > { %v11972_v22 = vpack.c.bf16 %v11958_v7, %v11958_v7  ;;  %v11974_v0 = vpack.c.bf16 %v11966_v34, %v11966_v34  ;;  %v11971_v35 = vpack.c.bf16 %v11954_v38, %v11954_v38  ;;  %v11973_v45 = vpack.c.bf16 %v11962_v41, %v11962_v41 }
 0xeb0   : > { %12264 = vmatprep.mubr.bf16.mxu0 %v11972_v22  ;;  %12304 = vmatprep.mubr.bf16.mxu1 %v11974_v0 }
 0xeb1   : > { %12265 = vmatmul.mubr.bf16.vlgmr.msra.gmra.mrb[48].mxu0 %v11971_v35  ;;  %12305 = vmatmul.mubr.bf16.vlgmr.msra.gmra.mrb[48].mxu1 %v11973_v45 }
 0xf84   : > { %v13582_v55 = vpop.f32.mrb[48].mxu0  ;;  %v13604_v32 = vpop.f32.mrb[48].mxu1 }
 0xf85   : > { %v13583_v8 = vpop.f32.mrb[49].mxu0  ;;  %v13605_v62 = vpop.f32.mrb[49].mxu1 }
 0xf86   : > { %v13584_v28 = vadd.f32 %v13583_v8, %v13582_v55  ;;  %v13606_v36 = vadd.f32 %v13605_v62, %v13604_v32  ;;  %v13585_v43 = vpop.f32.mrb[50].mxu0  ;;  %v13607_v60 = vpop.f32.mrb[50].mxu1 }
 0xf87   : > { %v13586_v59 = vpop.f32.mrb[51].mxu0  ;;  %v13608_v16 = vpop.f32.mrb[51].mxu1 }
 0xf88   : > { %v12267_v31 = vadd.f32 %v13584_v28, %v12039_v39 }
 0xf8a   : > { %v12307_v21 = vadd.f32 %v13606_v36, %v12267_v31 }
 0xf8c   : > { %12313 = vst.msk [vmem:[%s751_s2] sm:$0x1] %vm12312_vm0, %v12307_v21 }
 0xf8d   : > { %16429 = shalt.err (!%p16426_p9)
}
 0xf8e   : > { %s16430_s21 = scalar_lea.hbm %s19890_s13, 16  ;;  %s16434_s25 = scalar_lea.hbm %s20201_s15, 32 }
 0xf8f   : > { %p16431_p12 = scmp.ne.s32.totalorder %s19890_s13, %s16430_s21  ;;  %p16435_p3 = scmp.lt.u32.totalorder %s19890_s13, %s20201_s15 }
 0xf90   : > { %p16436_p4 = scmp.lt.u32.totalorder %s16434_s25, %s16430_s21  ;;  %p16438_p8 = scmp.lt.u32.totalorder %s16430_s21, %s19890_s13 }
 0xf91   : > { %p16432_p10 = pnand %p16431_p12, %p20202_p11 }
 0xf92   : > { %p16437_p7 = por %p16436_p4, %p16435_p3 }
 0xf93   : > { %p16433_p2 = pneg %p16432_p10 }
 0xf94   : > { %p16439_p13 = por %p16438_p8, %p16437_p7 }
 0xf96   : > { %p16440_p1 = pnand %p16439_p13, %p16433_p2 }
 0xf98   : > { %16443 = shalt.err (!%p16440_p1)
}
 0xf99   : > { %13739 = dma.vmem_to_hbm [thread:$0]  (%p20202_p11), %s19892_s26, 16, %s19890_s13, %s12315_s16  }
 0xf9a PF: > { %s20203_s2 = sld [smem:[#allocation26_spill]]  ;;  %s20204_s27 = sld [smem:[#allocation23_spill]] }
 0xf9b   : > { %s20205_s10 = sld [smem:[#allocation30_spill]] }
 0xfa0   : > { %p13786_p0 = scmp.ge.s32.totalorder %s20203_s2, 2  ;;  %s12339_s23 = sand.u32 1, %s20204_s27  }
 0xfa1   : > { %p20206_p6 = scmp.ne.s32.totalorder %s20205_s10, 0  ;;  %s12340_s3 = scalar_lea.sflag [#allocation4], %s12339_s23 }
 0xfa3   : > { %p13767_p5 = pnand %p13786_p0, %p20206_p6 }
 0xfa5   : > { %16481 = dma.done.wait (!%p13767_p5), %s12340_s3, 16  }
 0xfa6   : > { %16483 = vsyncadd (!%p13767_p5), %s12340_s3, 4294967280  ;;  %s20207_s27 = sld [smem:[#allocation27_spill]]  ;;  %s20208_s2 = sld [smem:[#allocation24_spill]] }
 0xfa7   : > { %s20209_s25 = sld [smem:[#allocation25_spill]]  ;;  %s20210_s26 = sld [smem:[#allocation28_spill]] }
 0xfac   : > { %p36_p9 = scmp.ge.s32.totalorder %s20207_s27, 4  }
 0xfae   :  { %38 = sbr.rel (!%p36_p9) target bundleno = 21 (0x15), region = 175 }
 0xfb5   :  { %12344 = vsyncpa [#allocation3], 1 }
 0xfb6   :  { %12346 = vsyncpa [#allocation3 + $0x1], 1 }
 0xfb7   :  { %12347 = vsyncpa [#allocation6], 1 }
 0xfb8   :  { %12348 = vsyncpa [#allocation9], 1 }
 0xfb9   :  { %12349 = vsyncpa [#allocation12], 1 }
 0xfba   :  { %12350 = vsyncpa [#allocation15], 1 }
 0xfbb   :  { %12351 = vsyncpa [#allocation4], 1 }
 0xfbc   :  { %12353 = vsyncpa [#allocation4 + $0x1], 1 }

</bundles_post_ra>
